<compile_context>
chip_gen: v5e
topology: v5e:2x2
jax: 0.10.0
libtpu: 0.0.40
codegen_flags: <defaults>
</compile_context>

<pallas_src>
import math
from functools import partial

import numpy as np
import jax
import jax.numpy as jnp
from jax.experimental import pallas as pl
from jax.experimental.pallas import tpu as pltpu


# ----------------------------------------------------------------------------
# Kernel: one (batch element, query tile) of multi-head attention
# ----------------------------------------------------------------------------
def mha_kernel(q_ref, kv_ref, mask_ref,
               wq_ref, bq_ref, wkv_ref, bkv_ref, wo_ref, bo_ref,
               out_ref, k_scr, v_scr, *, heads):
    tq, d_model = q_ref.shape
    sk = kv_ref.shape[0]
    d_k = d_model // heads
    scale = 1.0 / math.sqrt(d_k)

    # ---- K/V projection: fused (Sk, D) @ (D, 2D) bf16 MXU matmul, computed
    # once per batch element (qi == 0) and reused across query tiles via VMEM
    # scratch (the qi grid axis is "arbitrary", so scratch carries over).
    @pl.when(pl.program_id(1) == 0)
    def _():
        kv = jnp.dot(kv_ref[...], wkv_ref[...],
                     preferred_element_type=jnp.float32) + bkv_ref[...]
        k_scr[...] = kv[:, :d_model].astype(jnp.bfloat16)   # lane-aligned slice
        v_scr[...] = kv[:, d_model:].astype(jnp.bfloat16)

    # ---- Q projection for this query tile; 1/sqrt(d_k) folded into q
    # (one (TQ, D) multiply instead of (H, TQ, Sk)).
    q = jnp.dot(q_ref[...], wq_ref[...],
                preferred_element_type=jnp.float32) + bq_ref[...]
    q = (q * scale).astype(jnp.bfloat16)                     # (TQ, D)

    # ---- Head split via reshape + transpose (no sub-128-lane concatenation).
    q3 = jnp.transpose(q.reshape(tq, heads, d_k), (1, 0, 2))            # (H,TQ,dk)
    k3 = jnp.transpose(k_scr[...].reshape(sk, heads, d_k), (1, 0, 2))   # (H,Sk,dk)
    v3 = jnp.transpose(v_scr[...].reshape(sk, heads, d_k), (1, 0, 2))   # (H,Sk,dk)

    # ---- All-head attention scores: (H, TQ, Sk) f32 accumulation.
    # d_k (< 128) underfills the MXU contraction depth; the full-TQ M dimension
    # per head matmul amortizes pipeline fill/drain (can't change d_k itself).
    scores = jnp.einsum('hqd,hkd->hqk', q3, k3,
                        preferred_element_type=jnp.float32)

    # masked_fill(mask == 0, -1e9) from the compressed (1, Sk) key mask.
    scores = jnp.where(mask_ref[...][None, :, :] == 0.0,
                       jnp.float32(-1e9), scores)

    # ---- Numerically stable softmax over keys (f32; EUP reciprocal).
    # pl.reciprocal(approx=True): ~1e-3 relative error vs exact divide.
    scores = scores - jnp.max(scores, axis=-1, keepdims=True)
    p = jnp.exp(scores)
    p = p * pl.reciprocal(jnp.sum(p, axis=-1, keepdims=True), approx=True)
    # TODO(synk): attention-weight dropout from the reference is identity here
    # (inference semantics); no RNG is applied.

    # ---- Per-head context, batched: (H, TQ, dk).
    ctx3 = jnp.einsum('hqk,hkd->hqd', p.astype(jnp.bfloat16), v3,
                      preferred_element_type=jnp.float32)

    # ---- Merge heads (transpose + reshape) and ONE full-width output proj.
    ctx = jnp.transpose(ctx3.astype(jnp.bfloat16), (1, 0, 2)).reshape(tq, d_model)
    out = jnp.dot(ctx, wo_ref[...], preferred_element_type=jnp.float32) + bo_ref[...]
    out_ref[...] = out.astype(out_ref.dtype)


# ----------------------------------------------------------------------------
# Wrapper
# ----------------------------------------------------------------------------
def multi_headed_attention(query, key, value, key_mask, params, *, heads,
                           q_tile=None):
    """query: (B,Sq,D), key/value: (B,Sk,D), key_mask: (B,1,Sk) in {0,1}."""
    B, Sq, D = query.shape
    Sk = key.shape[1]
    assert D % heads == 0, "heads must divide d_model"
    if key is not value:
        # TODO(synk): distinct key/value sources (cross-attention) would need an
        # unfused K/V projection path; this BERT module only does self-attention.
        raise NotImplementedError(
            "fused K/V projection assumes key and value are the same tensor")

    if q_tile is None:
        q_tile = min(Sq, 256)
        # Budget the live f32 (H, TQ, Sk) scores + probs intermediates so the
        # kernel also fits v7x's 64 MiB VMEM (v5e/v6e have 128 MiB).
        while q_tile > 128 and 2 * heads * q_tile * Sk * 4 > 24 * 1024 * 1024:
            q_tile //= 2
    assert Sq % q_tile == 0, "Sq must be a multiple of the query tile"

    # Grid: batch axis "parallel" (megacore), query-tile axis "arbitrary" so
    # the K/V scratch carries across tiles.  NOTE: on v7x parallelism comes
    # from the batch axis only -- use B >= 2 (or hoist K/V projection) if B==1.
    grid = (B, Sq // q_tile)

    # Fused K/V projection weights: (D, 2D) bf16, biases (1, 2D) f32.
    wkv = jnp.concatenate([params["wk"], params["wv"]], axis=1)
    bkv = jnp.concatenate([params["bk"], params["bv"]], axis=1)

    # Activations cross the boundary in bf16 (halves HBM<->VMEM DMA bytes).
    q_bf16 = query.astype(jnp.bfloat16)
    kv_bf16 = key.astype(jnp.bfloat16)

    def const_spec(shape):
        # Weights/biases: identical block every grid step -> no double buffer.
        nd = len(shape)
        return pl.BlockSpec(shape, lambda b, qi: (0,) * nd,
                            pipeline_mode=pl.Buffered(1))

    in_specs = [
        pl.BlockSpec((None, q_tile, D), lambda b, qi: (b, qi, 0)),  # query tile
        pl.BlockSpec((None, Sk, D), lambda b, qi: (b, 0, 0)),       # key/value rows
        pl.BlockSpec((None, 1, Sk), lambda b, qi: (b, 0, 0)),       # key mask
        const_spec((D, D)), const_spec((1, D)),                     # wq, bq
        const_spec((D, 2 * D)), const_spec((1, 2 * D)),             # wkv, bkv
        const_spec((D, D)), const_spec((1, D)),                     # wo, bo
    ]
    out_spec = pl.BlockSpec((None, q_tile, D), lambda b, qi: (b, qi, 0))

    return pl.pallas_call(
        partial(mha_kernel, heads=heads),
        out_shape=jax.ShapeDtypeStruct((B, Sq, D), jnp.bfloat16),
        grid=grid,
        in_specs=in_specs,
        out_specs=out_spec,
        scratch_shapes=[pltpu.VMEM((Sk, D), jnp.bfloat16),   # projected K
                        pltpu.VMEM((Sk, D), jnp.bfloat16)],  # projected V
        compiler_params=pltpu.CompilerParams(
            dimension_semantics=("parallel", "arbitrary"),
            vmem_limit_bytes=64 * 1024 * 1024),
    )(q_bf16, kv_bf16, key_mask,
      params["wq"], params["bq"], wkv, bkv, params["wo"], params["bo"])


# ----------------------------------------------------------------------------
# Parameter init + pure-JAX reference (numeric sanity check)
# ----------------------------------------------------------------------------
def init_params(key, d_model):
    ks = jax.random.split(key, 8)

    def w(k):   # bf16 weights, (in_dim, out_dim)
        return (0.02 * jax.random.normal(k, (d_model, d_model), jnp.float32)
                ).astype(jnp.bfloat16)

    def b(k):   # f32 biases, (1, out_dim)
        return 0.02 * jax.random.normal(k, (1, d_model), jnp.float32)

    return {"wq": w(ks[0]), "bq": b(ks[1]),
            "wk": w(ks[2]), "bk": b(ks[3]),
            "wv": w(ks[4]), "bv": b(ks[5]),
            "wo": w(ks[6]), "bo": b(ks[7])}


def mha_reference(query, key, value, key_mask, params, heads):
    D = query.shape[-1]
    d_k = D // heads

    def lin(x, w, b):
        return jnp.einsum('bsd,df->bsf', x, w.astype(jnp.float32)) + b

    q = lin(query, params["wq"], params["bq"])
    k = lin(key, params["wk"], params["bk"])
    v = lin(value, params["wv"], params["bv"])

    def split(x):
        B, S, _ = x.shape
        return x.reshape(B, S, heads, d_k).transpose(0, 2, 1, 3)

    q, k, v = split(q), split(k), split(v)
    scores = jnp.einsum('bhqd,bhkd->bhqk', q, k) / math.sqrt(d_k)
    scores = jnp.where(key_mask[:, None, :, :] == 0, -1e9, scores)
    w = jax.nn.softmax(scores, axis=-1)
    ctx = jnp.einsum('bhqk,bhkd->bhqd', w, v)
    B, H, S, _ = ctx.shape
    ctx = ctx.transpose(0, 2, 1, 3).reshape(B, S, D)
    return (jnp.einsum('bsd,df->bsf', ctx, params["wo"].astype(jnp.float32))
            + params["bo"])


# ----------------------------------------------------------------------------
if __name__ == "__main__":
    # Small but lane-aligned shapes (multiples of 128 on the last two dims).
    B, S, D, H = 2, 128, 128, 4

    root = jax.random.PRNGKey(0)
    k_x, k_p = jax.random.split(root)

    x = jax.random.normal(k_x, (B, S, D), dtype=jnp.float32)

    # Key-validity mask: batch 0 fully valid, batch 1 has 32 padded tail keys.
    valid_len = jnp.array([S, S - 32])
    key_mask = (jnp.arange(S)[None, :] < valid_len[:, None]).astype(jnp.float32)
    key_mask = key_mask[:, None, :]                       # (B, 1, S)

    params = init_params(k_p, D)

    out = multi_headed_attention(x, x, x, key_mask, params, heads=H)
    jax.block_until_ready(out)
    assert out.shape == (B, S, D)

    ref = mha_reference(x, x, x, key_mask, params, H)
    np.testing.assert_allclose(np.asarray(out.astype(jnp.float32)),
                               np.asarray(ref), atol=3e-2, rtol=3e-2)
    print("KERNEL_OK")
</pallas_src>

<mosaic_0001>
module attributes {stable_mosaic.version = 11 : i64} {
  func.func @mha_kernel(%arg0: i32, %arg1: i32, %arg2: memref<1x128x128xbf16, #tpu.memory_space<vmem>>, %arg3: memref<1x128x128xbf16, #tpu.memory_space<vmem>>, %arg4: memref<1x1x128xf32, #tpu.memory_space<vmem>>, %arg5: memref<128x128xbf16, #tpu.memory_space<vmem>>, %arg6: memref<1x128xf32, #tpu.memory_space<vmem>>, %arg7: memref<128x256xbf16, #tpu.memory_space<vmem>>, %arg8: memref<1x256xf32, #tpu.memory_space<vmem>>, %arg9: memref<128x128xbf16, #tpu.memory_space<vmem>>, %arg10: memref<1x128xf32, #tpu.memory_space<vmem>>, %arg11: memref<1x128x128xbf16, #tpu.memory_space<vmem>>, %arg12: memref<128x128xbf16, #tpu.memory_space<vmem>>, %arg13: memref<128x128xbf16, #tpu.memory_space<vmem>>) attributes {dimension_semantics = [#tpu.dimension_semantics<parallel>, #tpu.dimension_semantics<arbitrary>], iteration_bounds = array<i64: 2, 1>, scalar_prefetch = 0 : i64, scratch_operands = 2 : i64, tpu.core_type = #tpu.core_type<tc>, window_params = [{transform_indices = @transform_0, window_bounds = array<i64: 1, 128, 128>}, {transform_indices = @transform_1, window_bounds = array<i64: 1, 128, 128>}, {transform_indices = @transform_2, window_bounds = array<i64: 1, 1, 128>}, {pipeline_mode = #tpu.pipeline_mode<synchronous>, transform_indices = @transform_3, window_bounds = array<i64: 128, 128>}, {pipeline_mode = #tpu.pipeline_mode<synchronous>, transform_indices = @transform_4, window_bounds = array<i64: 1, 128>}, {pipeline_mode = #tpu.pipeline_mode<synchronous>, transform_indices = @transform_5, window_bounds = array<i64: 128, 256>}, {pipeline_mode = #tpu.pipeline_mode<synchronous>, transform_indices = @transform_6, window_bounds = array<i64: 1, 256>}, {pipeline_mode = #tpu.pipeline_mode<synchronous>, transform_indices = @transform_7, window_bounds = array<i64: 128, 128>}, {pipeline_mode = #tpu.pipeline_mode<synchronous>, transform_indices = @transform_8, window_bounds = array<i64: 1, 128>}, {transform_indices = @transform_9, window_bounds = array<i64: 1, 128, 128>}]} {
    %c0_i32 = arith.constant 0 : i32
    %0 = arith.cmpi eq, %arg1, %c0_i32 : i32
    %1 = arith.extui %0 : i1 to i32
    %c0_i32_0 = arith.constant 0 : i32
    %2 = arith.cmpi ne, %1, %c0_i32_0 : i32
    scf.if %2 {
      %c0_29 = arith.constant 0 : index
      %c0_30 = arith.constant 0 : index
      %c0_31 = arith.constant 0 : index
      %55 = vector.load %arg3[%c0_29, %c0_30, %c0_31] : memref<1x128x128xbf16, #tpu.memory_space<vmem>>, vector<1x128x128xbf16>
      %56 = vector.shape_cast %55 : vector<1x128x128xbf16> to vector<128x128xbf16>
      %c0_32 = arith.constant 0 : index
      %c0_33 = arith.constant 0 : index
      %57 = vector.load %arg7[%c0_32, %c0_33] : memref<128x256xbf16, #tpu.memory_space<vmem>>, vector<128x256xbf16>
      %cst_34 = arith.constant dense<0.000000e+00> : vector<128x256xf32>
      %58 = tpu.matmul %56, %57, %cst_34 {dimension_numbers = #tpu.dot_dimension_numbers<[1], [0], [0], [1], [0, 0, 1, 1], [], []>} : vector<128x128xbf16>, vector<128x256xbf16>, vector<128x256xf32> -> vector<128x256xf32>
      %c0_35 = arith.constant 0 : index
      %c0_36 = arith.constant 0 : index
      %59 = vector.load %arg8[%c0_35, %c0_36] : memref<1x256xf32, #tpu.memory_space<vmem>>, vector<1x256xf32>
      %60 = vector.broadcast %59 : vector<1x256xf32> to vector<128x256xf32>
      %61 = arith.addf %58, %60 : vector<128x256xf32>
      %62 = vector.extract_strided_slice %61 {offsets = [0, 0], sizes = [128, 128], strides = [1, 1]} : vector<128x256xf32> to vector<128x128xf32>
      %63 = arith.truncf %62 : vector<128x128xf32> to vector<128x128xbf16>
      %c0_37 = arith.constant 0 : index
      %c0_38 = arith.constant 0 : index
      %64 = vector.load %arg12[%c0_37, %c0_38] : memref<128x128xbf16, #tpu.memory_space<vmem>>, vector<128x128xbf16>
      tpu.vector_store %arg12[%c0_37, %c0_38], %63 {strides = array<i32>} : memref<128x128xbf16, #tpu.memory_space<vmem>>, vector<128x128xbf16>,
      %65 = vector.extract_strided_slice %61 {offsets = [0, 128], sizes = [128, 128], strides = [1, 1]} : vector<128x256xf32> to vector<128x128xf32>
      %66 = arith.truncf %65 : vector<128x128xf32> to vector<128x128xbf16>
      %c0_39 = arith.constant 0 : index
      %c0_40 = arith.constant 0 : index
      %67 = vector.load %arg13[%c0_39, %c0_40] : memref<128x128xbf16, #tpu.memory_space<vmem>>, vector<128x128xbf16>
      tpu.vector_store %arg13[%c0_39, %c0_40], %66 {strides = array<i32>} : memref<128x128xbf16, #tpu.memory_space<vmem>>, vector<128x128xbf16>,
    } else {
    }
    %c0 = arith.constant 0 : index
    %c0_1 = arith.constant 0 : index
    %c0_2 = arith.constant 0 : index
    %3 = vector.load %arg2[%c0, %c0_1, %c0_2] : memref<1x128x128xbf16, #tpu.memory_space<vmem>>, vector<1x128x128xbf16>
    %4 = vector.shape_cast %3 : vector<1x128x128xbf16> to vector<128x128xbf16>
    %c0_3 = arith.constant 0 : index
    %c0_4 = arith.constant 0 : index
    %5 = vector.load %arg5[%c0_3, %c0_4] : memref<128x128xbf16, #tpu.memory_space<vmem>>, vector<128x128xbf16>
    %cst = arith.constant dense<0.000000e+00> : vector<128x128xf32>
    %6 = tpu.matmul %4, %5, %cst {dimension_numbers = #tpu.dot_dimension_numbers<[1], [0], [0], [1], [0, 0, 1, 1], [], []>} : vector<128x128xbf16>, vector<128x128xbf16>, vector<128x128xf32> -> vector<128x128xf32>
    %c0_5 = arith.constant 0 : index
    %c0_6 = arith.constant 0 : index
    %7 = vector.load %arg6[%c0_5, %c0_6] : memref<1x128xf32, #tpu.memory_space<vmem>>, vector<1x128xf32>
    %8 = vector.broadcast %7 : vector<1x128xf32> to vector<128x128xf32>
    %9 = arith.addf %6, %8 : vector<128x128xf32>
    %cst_7 = arith.constant 0.176776692 : f32
    %10 = vector.broadcast %cst_7 : f32 to vector<128x128xf32>
    %11 = arith.mulf %9, %10 : vector<128x128xf32>
    %12 = arith.truncf %11 : vector<128x128xf32> to vector<128x128xbf16>
    %13 = vector.shape_cast %12 : vector<128x128xbf16> to vector<128x4x32xbf16>
    %14 = tpu.transpose %13, [1, 0, 2] : vector<128x4x32xbf16> -> vector<4x128x32xbf16>
    %c0_8 = arith.constant 0 : index
    %c0_9 = arith.constant 0 : index
    %15 = vector.load %arg12[%c0_8, %c0_9] : memref<128x128xbf16, #tpu.memory_space<vmem>>, vector<128x128xbf16>
    %16 = vector.shape_cast %15 : vector<128x128xbf16> to vector<128x4x32xbf16>
    %17 = tpu.transpose %16, [1, 0, 2] : vector<128x4x32xbf16> -> vector<4x128x32xbf16>
    %c0_10 = arith.constant 0 : index
    %c0_11 = arith.constant 0 : index
    %18 = vector.load %arg13[%c0_10, %c0_11] : memref<128x128xbf16, #tpu.memory_space<vmem>>, vector<128x128xbf16>
    %19 = vector.shape_cast %18 : vector<128x128xbf16> to vector<128x4x32xbf16>
    %20 = tpu.transpose %19, [1, 0, 2] : vector<128x4x32xbf16> -> vector<4x128x32xbf16>
    "tpu.trace_start"() <{level = 10 : i32, message = "hqd,hkd->hqk"}> : () -> ()
    %cst_12 = arith.constant dense<0.000000e+00> : vector<4x128x128xf32>
    %21 = tpu.matmul %14, %17, %cst_12 {dimension_numbers = #tpu.dot_dimension_numbers<[2], [2], [1], [1], [0, 0, 0, 1, 1, 1], [0], [0]>} : vector<4x128x32xbf16>, vector<4x128x32xbf16>, vector<4x128x128xf32> -> vector<4x128x128xf32>
    "tpu.trace_stop"() : () -> ()
    %c0_13 = arith.constant 0 : index
    %c0_14 = arith.constant 0 : index
    %c0_15 = arith.constant 0 : index
    %22 = vector.load %arg4[%c0_13, %c0_14, %c0_15] : memref<1x1x128xf32, #tpu.memory_space<vmem>>, vector<1x1x128xf32>
    %23 = vector.shape_cast %22 : vector<1x1x128xf32> to vector<1x128xf32>
    %24 = vector.shape_cast %23 : vector<1x128xf32> to vector<1x1x128xf32>
    %cst_16 = arith.constant 0.000000e+00 : f32
    %25 = vector.broadcast %cst_16 : f32 to vector<1x1x128xf32>
    %26 = arith.cmpf oeq, %24, %25 : vector<1x1x128xf32>
    %cst_17 = arith.constant -1.000000e+09 : f32
    %27 = vector.shape_cast %26 : vector<1x1x128xi1> to vector<1x1x128xi1>
    %28 = vector.broadcast %27 : vector<1x1x128xi1> to vector<4x128x128xi1>
    %29 = vector.broadcast %cst_17 : f32 to vector<4x128x128xf32>
    %30 = arith.select %28, %29, %21 : vector<4x128x128xi1>, vector<4x128x128xf32>
    %cst_18 = arith.constant dense<0xFF800000> : vector<4x128xf32>
    %31 = vector.multi_reduction <maximumf>, %30, %cst_18 [2] : vector<4x128x128xf32> to vector<4x128xf32>
    %32 = vector.shape_cast %31 : vector<4x128xf32> to vector<4x128x1xf32>
    %33 = vector.broadcast %32 : vector<4x128x1xf32> to vector<4x128x128xf32>
    %34 = arith.subf %30, %33 : vector<4x128x128xf32>
    %35 = math.exp %34 : vector<4x128x128xf32>
    %cst_19 = arith.constant dense<0.000000e+00> : vector<4x128xf32>
    %36 = vector.multi_reduction <add>, %35, %cst_19 [2] : vector<4x128x128xf32> to vector<4x128xf32>
    %37 = vector.shape_cast %36 : vector<4x128xf32> to vector<4x128x1xf32>
    %38 = tpu.reciprocal %37 {approx = true} : vector<4x128x1xf32> -> vector<4x128x1xf32>
    %39 = vector.broadcast %38 : vector<4x128x1xf32> to vector<4x128x128xf32>
    %40 = arith.mulf %35, %39 : vector<4x128x128xf32>
    %41 = arith.truncf %40 : vector<4x128x128xf32> to vector<4x128x128xbf16>
    "tpu.trace_start"() <{level = 10 : i32, message = "hqk,hkd->hqd"}> : () -> ()
    %cst_20 = arith.constant dense<0.000000e+00> : vector<4x128x32xf32>
    %42 = tpu.matmul %41, %20, %cst_20 {dimension_numbers = #tpu.dot_dimension_numbers<[2], [1], [1], [2], [0, 0, 0, 1, 1, 2], [0], [0]>} : vector<4x128x128xbf16>, vector<4x128x32xbf16>, vector<4x128x32xf32> -> vector<4x128x32xf32>
    "tpu.trace_stop"() : () -> ()
    %43 = arith.truncf %42 : vector<4x128x32xf32> to vector<4x128x32xbf16>
    %44 = tpu.transpose %43, [1, 0, 2] : vector<4x128x32xbf16> -> vector<128x4x32xbf16>
    %45 = vector.shape_cast %44 : vector<128x4x32xbf16> to vector<128x128xbf16>
    %c0_21 = arith.constant 0 : index
    %c0_22 = arith.constant 0 : index
    %46 = vector.load %arg9[%c0_21, %c0_22] : memref<128x128xbf16, #tpu.memory_space<vmem>>, vector<128x128xbf16>
    %cst_23 = arith.constant dense<0.000000e+00> : vector<128x128xf32>
    %47 = tpu.matmul %45, %46, %cst_23 {dimension_numbers = #tpu.dot_dimension_numbers<[1], [0], [0], [1], [0, 0, 1, 1], [], []>} : vector<128x128xbf16>, vector<128x128xbf16>, vector<128x128xf32> -> vector<128x128xf32>
    %c0_24 = arith.constant 0 : index
    %c0_25 = arith.constant 0 : index
    %48 = vector.load %arg10[%c0_24, %c0_25] : memref<1x128xf32, #tpu.memory_space<vmem>>, vector<1x128xf32>
    %49 = vector.broadcast %48 : vector<1x128xf32> to vector<128x128xf32>
    %50 = arith.addf %47, %49 : vector<128x128xf32>
    %51 = arith.truncf %50 : vector<128x128xf32> to vector<128x128xbf16>
    %c0_26 = arith.constant 0 : index
    %c0_27 = arith.constant 0 : index
    %c0_28 = arith.constant 0 : index
    %52 = vector.load %arg11[%c0_26, %c0_27, %c0_28] : memref<1x128x128xbf16, #tpu.memory_space<vmem>>, vector<1x128x128xbf16>
    %53 = vector.shape_cast %52 : vector<1x128x128xbf16> to vector<128x128xbf16>
    %54 = vector.shape_cast %51 : vector<128x128xbf16> to vector<1x128x128xbf16>
    tpu.vector_store %arg11[%c0_26, %c0_27, %c0_28], %54 {strides = array<i32>} : memref<1x128x128xbf16, #tpu.memory_space<vmem>>, vector<1x128x128xbf16>,
    return
  }
  func.func @transform_0(%arg0: i32, %arg1: i32) -> (i32, i32, i32) {
    %c0_i32 = arith.constant 0 : i32
    %c0_i32_0 = arith.constant 0 : i32
    return %arg0, %arg1, %c0_i32 : i32, i32, i32
  }
  func.func @transform_1(%arg0: i32, %arg1: i32) -> (i32, i32, i32) {
    %c0_i32 = arith.constant 0 : i32
    %c0_i32_0 = arith.constant 0 : i32
    %c0_i32_1 = arith.constant 0 : i32
    return %arg0, %c0_i32, %c0_i32_0 : i32, i32, i32
  }
  func.func @transform_2(%arg0: i32, %arg1: i32) -> (i32, i32, i32) {
    %c0_i32 = arith.constant 0 : i32
    %c0_i32_0 = arith.constant 0 : i32
    %c0_i32_1 = arith.constant 0 : i32
    return %arg0, %c0_i32, %c0_i32_0 : i32, i32, i32
  }
  func.func @transform_3(%arg0: i32, %arg1: i32) -> (i32, i32) {
    %c0_i32 = arith.constant 0 : i32
    %c0_i32_0 = arith.constant 0 : i32
    %c0_i32_1 = arith.constant 0 : i32
    return %c0_i32, %c0_i32_0 : i32, i32
  }
  func.func @transform_4(%arg0: i32, %arg1: i32) -> (i32, i32) {
    %c0_i32 = arith.constant 0 : i32
    %c0_i32_0 = arith.constant 0 : i32
    %c0_i32_1 = arith.constant 0 : i32
    return %c0_i32, %c0_i32_0 : i32, i32
  }
  func.func @transform_5(%arg0: i32, %arg1: i32) -> (i32, i32) {
    %c0_i32 = arith.constant 0 : i32
    %c0_i32_0 = arith.constant 0 : i32
    %c0_i32_1 = arith.constant 0 : i32
    return %c0_i32, %c0_i32_0 : i32, i32
  }
  func.func @transform_6(%arg0: i32, %arg1: i32) -> (i32, i32) {
    %c0_i32 = arith.constant 0 : i32
    %c0_i32_0 = arith.constant 0 : i32
    %c0_i32_1 = arith.constant 0 : i32
    return %c0_i32, %c0_i32_0 : i32, i32
  }
  func.func @transform_7(%arg0: i32, %arg1: i32) -> (i32, i32) {
    %c0_i32 = arith.constant 0 : i32
    %c0_i32_0 = arith.constant 0 : i32
    %c0_i32_1 = arith.constant 0 : i32
    return %c0_i32, %c0_i32_0 : i32, i32
  }
  func.func @transform_8(%arg0: i32, %arg1: i32) -> (i32, i32) {
    %c0_i32 = arith.constant 0 : i32
    %c0_i32_0 = arith.constant 0 : i32
    %c0_i32_1 = arith.constant 0 : i32
    return %c0_i32, %c0_i32_0 : i32, i32
  }
  func.func @transform_9(%arg0: i32, %arg1: i32) -> (i32, i32, i32) {
    %c0_i32 = arith.constant 0 : i32
    %c0_i32_0 = arith.constant 0 : i32
    return %arg0, %arg1, %c0_i32 : i32, i32, i32
  }
}

</mosaic_0001>

<bundles_post_ra>
// kernel: tpu_custom_call.1
= control target key start
LH: loop header
LB: loop body
LE: loop exit
PB: predicated region body
PF: predicated region fallthrough
CT: control target
= control target key end

     0   :  { %s18833_s0 = inlined_call_operand.hbm [shape: bf16[2,128,128], index: 0, kind: input, shape index: {}]   ;;  %s18834_s1 = inlined_call_operand.hbm [shape: bf16[2,128,128], index: 1, kind: input, shape index: {}]   ;;  %s18835_s2 = inlined_call_operand.hbm [shape: f32[2,1,128], index: 2, kind: input, shape index: {}]   ;;  %s18836_s3 = inlined_call_operand.hbm [shape: bf16[128,128], index: 3, kind: input, shape index: {}]   ;;  %s18837_s4 = inlined_call_operand.vmem [shape: f32[1,128], index: 4, kind: input, shape index: {}]   ;;  %s18838_s5 = inlined_call_operand.hbm [shape: bf16[128,256], index: 5, kind: input, shape index: {}]   ;;  %s18839_s6 = inlined_call_operand.vmem [shape: f32[1,256], index: 6, kind: input, shape index: {}]   ;;  %s18840_s7 = inlined_call_operand.hbm [shape: bf16[128,128], index: 7, kind: input, shape index: {}]   ;;  %s18841_s8 = inlined_call_operand.vmem [shape: f32[1,128], index: 8, kind: input, shape index: {}]   ;;  %s18842_s9 = inlined_call_operand.hbm [shape: bf16[2,128,128], index: 9, kind: output, shape index: {}]  }
   0x1   :  { %19107 = sst [smem:[#allocation257_spill]] %s18834_s1 }
   0x2   :  { %19108 = sst [smem:[#allocation258_spill]] %s18836_s3 }
   0x3   :  { %19109 = sst [smem:[#allocation259_spill]] %s18838_s5 }
   0x4   :  { %19110 = sst [smem:[#allocation260_spill]] %s18840_s7 }
   0x5   :  { %19111 = sst [smem:[#allocation261_spill]] %s18842_s9 }
   0x6   :  { %14 = vsyncpa [#allocation5], 0 }
   0x7   :  { %16 = vsyncpa [#allocation5 + $0x1], 0 }
   0x8   :  { %17 = vsyncpa [#allocation8], 0 }
   0x9   :  { %19 = vsyncpa [#allocation8 + $0x1], 0 }
   0xa   :  { %20 = vsyncpa [#allocation11], 0 }
   0xb   :  { %21 = vsyncpa [#allocation14], 0 }
   0xc   :  { %22 = vsyncpa [#allocation6], 0 }
   0xd   :  { %24 = vsyncpa [#allocation6 + $0x1], 0  ;;  %s12293_s30 = smov 0   ;;  %s12295_s10 = smov 0  }
   0xe   :  { %s12297_s11 = smov 0   ;;  %s12299_s12 = smov 0  }
   0xf   :  { %s12301_s13 = smov 0   ;;  %s12303_s14 = smov 0  }
  0x10 LB: > { %19112 = sst [smem:[#allocation21_spill]] %s12207_s30  ;;  %s12324_s15 = sadd.s32 4294967295, %s12227_s14   ;;  %s12227_s14 = sphi %s12303_s14, %s30_s14   ;;  %s12223_s13 = sphi %s12301_s13, %s19955_s13   ;;  %s12219_s12 = sphi %s12299_s12, %s19954_s12   ;;  %s12215_s11 = sphi %s12297_s11, %s19950_s11   ;;  %s12211_s10 = sphi %s12295_s10, %s19953_s10   ;;  %s12207_s30 = sphi %s12293_s30, %s19952_s30  }
  0x11   : > { %19113 = sst [smem:[#allocation22_spill]] %s12215_s11  ;;  %s11111_s16 = sadd.s32 4294967294, %s12227_s14  }
  0x12   : > { %19114 = sst [smem:[#allocation23_spill]] %s12227_s14  ;;  %p64_p0 = scmp.ne.s32.totalorder %s12211_s10, %s12207_s30 }
  0x13   : > { %p65_p1 = scmp.eq.s32.totalorder %s12324_s15, 0  ;;  %p268_p2 = scmp.eq.s32.totalorder %s12324_s15, 1 }
  0x14   : > { %p274_p3 = scmp.eq.s32.totalorder %s11111_s16, 1  ;;  %p11112_p5 = scmp.ge.s32.totalorder %s12227_s14, 1 }
  0x15   : > { %p12333_p4 = por %p65_p1, %p64_p0  ;;  %p281_p7 = scmp.lt.s32.totalorder %s12227_s14, 3 }
  0x16   : > { %p12338_p6 = por %p274_p3, %p64_p0  ;;  %s19118_s3 = sld [smem:[#allocation258_spill]] }
  0x17   : > { %p12346_p8 = pnand %p11112_p5, %p281_p7  ;;  %s12229_s23 = smov [#allocation10]  }
  0x18   : > { %s19116_s18 = scalar_select %p12338_p6, 1, 0 }
  0x19   : > { %p11579_p9 = pneg %p12346_p8  ;;  %s294_s24 = sshll.u32 %s12229_s23, 4  ;;  %s295_s24 = int_to_ptr.vmem [resolvable:$true] %s294_s24 }
  0x1a   : > { %19117 = sst [smem:[#allocation24_spill]] %s19116_s18  ;;  %p11116_p11 = scmp.ge.s32.totalorder %s12227_s14, 2 }
  0x1b   : > { %p12354_p10 = pnand %p11579_p9, %p65_p1  ;;  %s18843_s26 = smov 64  }
  0x1c   : > { %s292_s21 = sshll.u32 %s19118_s3, 4  ;;  %s18845_s27 = smov 4   ;;  %s293_s21 = int_to_ptr.hbm [resolvable:$true] %s292_s21 }
  0x1d   : > { %11582 = dma.hbm_to_vmem [thread:$0]  (!%p12354_p10), %s293_s21, 1024, %s295_s24, [#allocation11], %s18843_s26, %s18843_s26, %s18845_s27  }
  0x1e   : > { %s42_s28 = sadd.s32 1, %s12223_s13  ;;  %s51_s29 = sadd.s32 1, %s12215_s11 }
  0x1f   : > { %p44_p12 = scmp.ge.s32.totalorder %s42_s28, 2  ;;  %p58_p13 = scmp.ne.s32.totalorder %s12215_s11, %s12211_s10 }
  0x20   : > { %p59_p0 = scmp.eq.s32.totalorder %s12227_s14, 0  ;;  %p11606_p7 = scmp.lt.s32.totalorder %s12227_s14, 2 }
  0x21   : > { %s19957_s28 = smov (%p44_p12, %s42_s28), 0  ;;  %p12373_p5 = por %p268_p2, %p58_p13 }
  0x22   : > { %19121 = sst [smem:[#allocation25_spill]] %s19957_s28  ;;  %p60_p3 = por %p59_p0, %p58_p13 }
  0x23   : > { %s19122_s16 = scalar_select %p12373_p5, 1, 0 }
  0x24   : > { %s46_s19 = ssub.s32 %s12223_s13, %s19957_s28  ;;  %s12381_s20 = sand.u32 1, %s12215_s11  }
  0x25   : > { %19123 = sst [smem:[#allocation26_spill]] %s19122_s16  ;;  %p49_p9 = scmp.eq.s32.totalorder %s46_s19, 0 }
  0x26   : > { %s18855_s21 = sshll.u32 %s12381_s20, 6  ;;  %s18856_s23 = sshll.u32 %s12223_s13, 6 }
  0x27   : > { %s12386_s24 = scalar_select %p49_p9, %s12215_s11, %s51_s29  }
  0x28   : > { %p12388_p12 = pnand %p11606_p7, %p60_p3  ;;  %s369_s27 = sand.u32 1, %s12227_s14  }
  0x29   : > { %19124 = sst [smem:[#allocation27_spill]] %s12386_s24  ;;  %s373_s30 = scalar_lea.vmem [#allocation7], %s18855_s21 }
  0x2a   : > { %s19126_s1 = sld [smem:[#allocation257_spill]]  ;;  %s381_s16 = sshll.u32 %s373_s30, 4  ;;  %s382_s16 = int_to_ptr.vmem [resolvable:$true] %s381_s16 }
  0x2b   : > { %s12400_s29 = scalar_lea.sflag [#allocation8], %s369_s27  ;;  %s19127_s24 = smov 4  }
  0x2c   : > { %s19128_s11 = smov 64   ;;  %s19129_s5 = sld [smem:[#allocation259_spill]] }
  0x2d   : > { %s19130_s7 = sld [smem:[#allocation260_spill]]  ;;  %s12234_s9 = smov 8  }
  0x2e   : > { %s12235_s14 = smov [#allocation13]   ;;  %s19131_s21 = sshll.u32 %s12223_s13, 6 }
  0x2f   : > { %s356_s3 = scalar_lea.hbm %s18833_s0, %s19131_s21 }
  0x30   : > { %s378_s28 = scalar_lea.hbm %s19126_s1, %s18856_s23  ;;  %s12233_s1 = smov 128  }
  0x31   : > { %s379_s19 = sshll.u32 %s378_s28, 4  ;;  %s12232_s28 = smov [#allocation12]   ;;  %s380_s19 = int_to_ptr.hbm [resolvable:$true] %s379_s19 }
  0x32   : > { %11595 = dma.hbm_to_vmem [thread:$0]  (!%p12388_p12), %s380_s19, 1024, %s382_s16, %s12400_s29, %s19128_s11, %s19128_s11, %s19127_s24  }
  0x33   : > { %s309_s18 = sshll.u32 %s19129_s5, 4  ;;  %s311_s30 = sshll.u32 %s12232_s28, 4  ;;  %s310_s18 = int_to_ptr.hbm [resolvable:$true] %s309_s18  ;;  %s312_s30 = int_to_ptr.vmem [resolvable:$true] %s311_s30 }
  0x34   : > { %s326_s27 = sshll.u32 %s19130_s7, 4  ;;  %s328_s16 = sshll.u32 %s12235_s14, 4  ;;  %s327_s27 = int_to_ptr.hbm [resolvable:$true] %s326_s27  ;;  %s329_s16 = int_to_ptr.vmem [resolvable:$true] %s328_s16 }
  0x35   : > { %11585 = dma.hbm_to_vmem [thread:$0]  (!%p12354_p10), %s310_s18, 2048, %s312_s30, [#allocation11], %s12233_s1, %s12233_s1, %s12234_s9  }
  0x36   : > { %11588 = dma.hbm_to_vmem [thread:$0]  (!%p12354_p10), %s327_s27, 1024, %s329_s16, [#allocation14], %s19128_s11, %s19128_s11, %s19127_s24  }
  0x37   : > { %s19132_s28 = sshll.u32 %s12381_s20, 6  ;;  %s357_s1 = sshll.u32 %s356_s3, 4  ;;  %s358_s1 = int_to_ptr.hbm [resolvable:$true] %s357_s1 }
  0x38   : > { %s349_s5 = scalar_lea.vmem [#allocation4], %s19132_s28  ;;  %s346_s9 = scalar_lea.sflag [#allocation5], %s12381_s20 }
  0x39   : > { %s359_s7 = sshll.u32 %s349_s5, 4  ;;  %s397_s30 = scalar_lea.hbm %s18835_s2, %s12223_s13  ;;  %s360_s7 = int_to_ptr.vmem [resolvable:$true] %s359_s7 }
  0x3a   : > { %11592 = dma.hbm_to_vmem [thread:$0]  (!%p12388_p12), %s358_s1, 1024, %s360_s7, %s346_s9, %s19128_s11, %s19128_s11, %s19127_s24  }
  0x3b   : > { %s394_s27 = scalar_lea.vmem [#allocation9], %s12381_s20  ;;  %s399_s16 = sshll.u32 %s397_s30, 4  ;;  %s400_s16 = int_to_ptr.hbm [resolvable:$true] %s399_s16 }
  0x3c   : > { %s401_s14 = sshll.u32 %s394_s27, 4  ;;  %410 = sbr.rel (%p12346_p8) target bundleno = 2214 (0x8a6), region = 56  ;;  %s402_s14 = int_to_ptr.vmem [resolvable:$true] %s401_s14 }
  0x3d   : > { %11598 = dma.hbm_to_vmem [thread:$0]  (!%p12388_p12), %s400_s16, 16, %s402_s14, %s12400_s29  }
  0x41   : > { %s12445_s5 = sand.u32 1, %s12211_s10  }
  0x42   : > { %s12448_s7 = sshll.u32 %s12445_s5, 6  ;;  %s413_s11 = scalar_lea.sflag [#allocation5], %s12445_s5 }
  0x43   : > { %s12452_s20 = scalar_lea.vmem [#allocation4], %s12448_s7 }
  0x44   : > { %12186 = dma.done.wait (%p12333_p4), %s413_s11, 1024  }
  0x45   : > { %12188 = vsyncadd (%p12333_p4), %s413_s11, 4294966272  ;;  %s422_s22 = sand.u32 1, %s12324_s15   ;;  %s12460_s24 = scalar_lea.vmem [#allocation7], %s12448_s7 }
  0x46   : > { %s423_s26 = scalar_lea.sflag [#allocation8], %s422_s22 }
  0x47   : > { %12190 = dma.done.wait (%p12333_p4), %s423_s26, 1040  }
  0x48   : > { %12192 = vsyncadd (%p12333_p4), %s423_s26, 4294966256  ;;  %s435_s29 = scalar_lea.vmem [#allocation9], %s12445_s5 }
  0x49   : > { %12194 = dma.done.wait (%p65_p1), [#allocation11], 3072  }
  0x4a   : > { %12196 = vsyncadd (%p65_p1), [#allocation11], 4294964224 }
  0x4b   : > { %12198 = dma.done.wait (%p65_p1), [#allocation14], 1024  }
  0x4c   : > { %12200 = vsyncadd (%p65_p1), [#allocation14], 4294966272  ;;  %v11220_v0 = vld [vmem:[#allocation12 + $0x70] sm:$0xf]  ;;  %v11384_v1 = vld [vmem:[#allocation12 + $0x74] sm:$0xf0] }
  0x4d   : > { %v11400_v2 = vld [vmem:[#allocation10 + $0x38] sm:$0xff]  ;;  %v11221_v3 = vor.u32 %v11384_v1, %v11220_v0  ;;  %v11212_v4 = vld [vmem:[#allocation12 + $0x60] sm:$0xf]  ;;  %v11382_v5 = vld [vmem:[#allocation12 + $0x64] sm:$0xf0]  ;;  %s12236_s19 = smov 64  }
  0x4e   : > { %962 = vmatpush.bf16.msra.mxu2 %v11400_v2  ;;  %v11399_v6 = vld [vmem:[#allocation10 + $0x30] sm:$0xff]  ;;  %v11213_v7 = vor.u32 %v11382_v5, %v11212_v4  ;;  %v11380_v9 = vld [vmem:[#allocation12 + $0x54] sm:$0xf0]  ;;  %v11398_v10 = vld [vmem:[#allocation10 + $0x28] sm:$0xff]  ;;  %s12237_s3 = smov 96   ;;  %s12238_s28 = smov 32  }
  0x4f   : > { %668 = vmatpush.bf16.msra.mxu0 %v11221_v3  ;;  %v11204_v8 = vld [vmem:[#allocation12 + $0x50] sm:$0xf]  ;;  %v11383_v11 = vld [vmem:[#allocation12 + $0x74] sm:$0xf]  ;;  %v11196_v13 = vld [vmem:[#allocation12 + $0x40] sm:$0xf] }
  0x50   : > { %v11205_v12 = vor.u32 %v11380_v9, %v11204_v8  ;;  %v11222_v14 = vld [vmem:[#allocation12 + $0x78] sm:$0xf0]  ;;  %v11378_v15 = vld [vmem:[#allocation12 + $0x44] sm:$0xf0]  ;;  %v11381_v17 = vld [vmem:[#allocation12 + $0x64] sm:$0xf] }
  0x51   : > { %v11225_v16 = vor.u32 %v11383_v11, %v11222_v14  ;;  %v11214_v18 = vld [vmem:[#allocation12 + $0x68] sm:$0xf0]  ;;  %v11397_v19 = vld [vmem:[#allocation10 + $0x20] sm:$0xff]  ;;  %v11197_v21 = vor.u32 %v11378_v15, %v11196_v13  ;;  %v11379_v22 = vld [vmem:[#allocation12 + $0x54] sm:$0xf]  ;;  %vm1358_vm0 = vcmask 1047556  }
  0x52   : > { %963 = vmatpush.bf16.msra.mxu2 %v11399_v6  ;;  %v11217_v20 = vor.u32 %v11381_v17, %v11214_v18  ;;  %v11206_v23 = vld [vmem:[#allocation12 + $0x58] sm:$0xf0]  ;;  %v11188_v24 = vld [vmem:[#allocation12 + $0x30] sm:$0xf]  ;;  %v11376_v25 = vld [vmem:[#allocation12 + $0x34] sm:$0xf0] }
  0x53   : > { %669 = vmatpush.bf16.msra.mxu0 %v11213_v7  ;;  %717 = vmatpush.bf16.msra.mxu1 %v11225_v16  ;;  %v11396_v26 = vld [vmem:[#allocation10 + $0x18] sm:$0xff]  ;;  %v11209_v27 = vor.u32 %v11379_v22, %v11206_v23  ;;  %v11189_v28 = vor.u32 %v11376_v25, %v11188_v24  ;;  %v11377_v29 = vld [vmem:[#allocation12 + $0x44] sm:$0xf]  ;;  %v11198_v30 = vld [vmem:[#allocation12 + $0x48] sm:$0xf0]  ;;  %vm6932_vm1 = vcmask 261120  }
  0x54   : > { %v11180_v31 = vld [vmem:[#allocation12 + $0x20] sm:$0xf]  ;;  %v11374_v32 = vld [vmem:[#allocation12 + $0x24] sm:$0xf0]  ;;  %v11395_v33 = vld [vmem:[#allocation10 + $0x10] sm:$0xff]  ;;  %v11201_v34 = vor.u32 %v11377_v29, %v11198_v30  ;;  %vm10746_vm4 = vcmask 523264  }
  0x55   : > { %v11181_v35 = vor.u32 %v11374_v32, %v11180_v31  ;;  %v11375_v36 = vld [vmem:[#allocation12 + $0x34] sm:$0xf]  ;;  %v11190_v37 = vld [vmem:[#allocation12 + $0x38] sm:$0xf0]  ;;  %v11172_v38 = vld [vmem:[#allocation12 + $0x10] sm:$0xf] }
  0x56   : > { %964 = vmatpush.bf16.msra.mxu2 %v11398_v10  ;;  %v11372_v39 = vld [vmem:[#allocation12 + $0x14] sm:$0xf0]  ;;  %v11394_v40 = vld [vmem:[#allocation10 + $0x8] sm:$0xff]  ;;  %v11193_v41 = vor.u32 %v11375_v36, %v11190_v37  ;;  %v11373_v43 = vld [vmem:[#allocation12 + $0x24] sm:$0xf]  ;;  %vm10763_vm5 = vcmask 785408  }
  0x57   : > { %670 = vmatpush.bf16.msra.mxu0 %v11205_v12  ;;  %718 = vmatpush.bf16.msra.mxu1 %v11217_v20  ;;  %v11173_v42 = vor.u32 %v11372_v39, %v11172_v38  ;;  %v11182_v44 = vld [vmem:[#allocation12 + $0x28] sm:$0xf0]  ;;  %v11164_v45 = vld [vmem:[#allocation12] sm:$0xf]  ;;  %v11370_v46 = vld [vmem:[#allocation12 + $0x4] sm:$0xf0] }
  0x58   : > { %v11393_v47 = vld [vmem:[#allocation10] sm:$0xff]  ;;  %v11185_v48 = vor.u32 %v11373_v43, %v11182_v44  ;;  %v11165_v49 = vor.u32 %v11370_v46, %v11164_v45  ;;  %v11371_v50 = vld [vmem:[#allocation12 + $0x14] sm:$0xf]  ;;  %v11174_v51 = vld [vmem:[#allocation12 + $0x18] sm:$0xf0]  ;;  %s18755_s30 = scalar_lea.vmem [#allocation15], %s12448_s7 }
  0x59   : > { %v11385_v52 = vld [vmem:[%s12452_s20] sm:$0xff]  ;;  %v11177_v54 = vor.u32 %v11371_v50, %v11174_v51  ;;  %v11166_v56 = vld [vmem:[#allocation12 + $0x8] sm:$0xf0]  ;;  %v11388_v62 = vld [vmem:[%s12452_s20 + $0x18] sm:$0xff]  ;;  %s11409_s27 = sshll.u32 %s12219_s12, 6  ;;  %s19944_s7 = sld [smem:[#allocation261_spill]] }
  0x5a   : > { %965 = vmatpush.bf16.msra.mxu2 %v11397_v19  ;;  %v11361_v53 = vld [vmem:[%s12460_s24] sm:$0xff]  ;;  %v11386_v58 = vld [vmem:[%s12452_s20 + $0x8] sm:$0xff]  ;;  %v11387_v60 = vld [vmem:[%s12452_s20 + $0x10] sm:$0xff]  ;;  %s10938_s12 = scalar_lea.sflag [#allocation6], %s12445_s5 }
  0x5b   : > { %671 = vmatpush.bf16.msra.mxu0 %v11197_v21  ;;  %719 = vmatpush.bf16.msra.mxu1 %v11209_v27  ;;  %v11369_v55 = vld [vmem:[#allocation12 + $0x4] sm:$0xf]  ;;  %v11363_v61 = vld [vmem:[%s12460_s24 + $0x10] sm:$0xff]  ;;  %v11364_v63 = vld [vmem:[%s12460_s24 + $0x18] sm:$0xff] }
  0x5c   : > { %v11169_v57 = vor.u32 %v11369_v55, %v11166_v56  ;;  %v11362_v59 = vld [vmem:[%s12460_s24 + $0x8] sm:$0xff]  ;;  %v11389_v0 = vld [vmem:[%s12452_s20 + $0x20] sm:$0xff]  ;;  %v11391_v43 = vld [vmem:[%s12452_s20 + $0x30] sm:$0xff] }
  0x5d   : > { %v11365_v1 = vld [vmem:[%s12460_s24 + $0x20] sm:$0xff]  ;;  %v11366_v7 = vld [vmem:[%s12460_s24 + $0x28] sm:$0xff]  ;;  %v11392_v55 = vld [vmem:[%s12452_s20 + $0x38] sm:$0xff] }
  0x5e   : > { %966 = vmatpush.bf16.msra.mxu2 %v11396_v26  ;;  %v534_v2 = vld [vmem:[%s18839_s6] sm:$0x3]  ;;  %v11390_v8 = vld [vmem:[%s12452_s20 + $0x28] sm:$0xff]  ;;  %s10952_s20 = sshll.u32 %s18755_s30, 4  ;;  %s10953_s20 = int_to_ptr.vmem [resolvable:$true] %s10952_s20 }
  0x5f   : > { %672 = vmatpush.bf16.msra.mxu0 %v11189_v28  ;;  %720 = vmatpush.bf16.msra.mxu1 %v11201_v34  ;;  %v12491_v4 = vld [vmem:[%s18837_s4] ss:$0 sm:$0xff]  ;;  %v12493_v5 = vperm.slane %v534_v2, 0  ;;  %v12502_v16 = vperm.slane %v534_v2, 1  ;;  %s10951_s11 = scalar_lea.hbm %s19944_s7, %s11409_s27  ;;  %s12153_s21 = scalar_lea.hbm %s19944_s7, 128 }
  0x60   : > { %s10954_s26 = sshll.u32 %s10951_s11, 4  ;;  %s10955_s26 = int_to_ptr.hbm [resolvable:$true] %s10954_s26 }
  0x62   : > { %967 = vmatpush.bf16.msra.mxu2 %v11395_v33 }
  0x63   : > { %673 = vmatpush.bf16.msra.mxu0 %v11181_v35  ;;  %721 = vmatpush.bf16.msra.mxu1 %v11193_v41 }
  0x66   : > { %968 = vmatpush.bf16.msra.mxu2 %v11394_v40 }
  0x67   : > { %674 = vmatpush.bf16.msra.mxu0 %v11173_v42  ;;  %722 = vmatpush.bf16.msra.mxu1 %v11185_v48  ;;  %v11367_v42 = vld [vmem:[%s12460_s24 + $0x30] sm:$0xff] }
  0x6a   : > { %969 = vmatpush.bf16.msra.mxu2 %v11393_v47 }
  0x6b   : > { %675 = vmatpush.bf16.msra.mxu0 %v11165_v49  ;;  %723 = vmatpush.bf16.msra.mxu1 %v11177_v54 }
  0x6d   : > { %970 = vmatmul.bf16.vlgmr.msra.gmra.mxu2 %v11385_v52 }
  0x6e   : > { %676 = vmatmul.bf16.vlgmr.msra.gmra.mxu0 %v11361_v53 }
  0x6f   : > { %724 = vmatpush.bf16.msra.mxu1 %v11169_v57 }
  0x72   : > { %725 = vmatmul.bf16.vlgmr.msra.gmra.mxu1 %v11361_v53 }
  0x7d   : > { %975 = vmatmul.bf16.gmra.mxu2 %v11386_v58  ;;  %v11368_v58 = vld [vmem:[%s12460_s24 + $0x38] sm:$0xff]  ;;  %s12147_s24 = sshra.s32 %s10955_s26, 4  ;;  %s12148_s24 = int_to_ptr.hbm [resolvable:$true] %s12147_s24 }
  0x7e   : > { %681 = vmatmul.bf16.gmra.mxu0 %v11362_v59  ;;  %p12154_p8 = scmp.lt.s32.totalorder %s12148_s24, %s19944_s7 }
  0x82   : > { %730 = vmatmul.bf16.gmra.mxu1 %v11362_v59 }
  0x8d   : > { %980 = vmatmul.bf16.gmra.mxu2 %v11387_v60 }
  0x8e   : > { %686 = vmatmul.bf16.gmra.mxu0 %v11363_v61 }
  0x92   : > { %735 = vmatmul.bf16.gmra.mxu1 %v11363_v61 }
  0x9d   : > { %985 = vmatmul.bf16.gmra.mxu2 %v11388_v62 }
  0x9e   : > { %691 = vmatmul.bf16.gmra.mxu0 %v11364_v63 }
  0xa2   : > { %740 = vmatmul.bf16.gmra.mxu1 %v11364_v63 }
  0xad   : > { %990 = vmatmul.bf16.gmra.mxu2 %v11389_v0 }
  0xae   : > { %696 = vmatmul.bf16.gmra.mxu0 %v11365_v1 }
  0xb2   : > { %745 = vmatmul.bf16.gmra.mxu1 %v11365_v1 }
  0xbd   : > { %995 = vmatmul.bf16.gmra.mxu2 %v11390_v8 }
  0xbe   : > { %701 = vmatmul.bf16.gmra.mxu0 %v11366_v7 }
  0xc2   : > { %750 = vmatmul.bf16.gmra.mxu1 %v11366_v7 }
  0xcd   : > { %1000 = vmatmul.bf16.gmra.mxu2 %v11391_v43 }
  0xce   : > { %706 = vmatmul.bf16.gmra.mxu0 %v11367_v42 }
  0xd2   : > { %755 = vmatmul.bf16.gmra.mxu1 %v11367_v42 }
  0xdd   : > { %1005 = vmatmul.bf16.gmra.mxu2 %v11392_v55 }
  0xde   : > { %711 = vmatmul.bf16.gmra.mxu0 %v11368_v58 }
  0xe2   : > { %760 = vmatmul.bf16.gmra.mxu1 %v11368_v58 }
  0xeb   : > { %v677_v3 = vpop.f32.mrf.mxu0 }
  0xec   : > { %v678_v10 = vadd.f32 %v677_v3, %v12493_v5 }
  0xef   : > { %v726_v11 = vpop.f32.mrf.mxu1 }
  0xf0   : > { %v971_v6 = vpop.f32.mrf.mxu2  ;;  %v727_v18 = vadd.f32 %v726_v11, %v12502_v16 }
  0xf1   : > { %v972_v9 = vadd.f32 %v12491_v4, %v971_v6 }
  0xf3   : > { %v1011_v12 = vmul.f32 0.17677669, %v972_v9  ;;  %v679_v13 = vpop.f32.mrf.mxu0 }
  0xf4   : > { %v680_v14 = vadd.f32 %v679_v13, %v12493_v5 }
  0xf5   : > { %v12500_v15 = vpack.c.bf16 %v1011_v12, %v1011_v12 }
  0xf6   : > { %v11413_v17 = vpack.c.bf16 %v680_v14, %v678_v10 }
  0xf7   : > { %1091 = vrot.lane.b32.xlu1 %v12500_v15, %s12236_s19  ;;  %1059 = vrot.lane.b32.xlu0 %v12500_v15, %s12237_s3  ;;  %v728_v20 = vpop.f32.mrf.mxu1 }
  0xf8   : > { %11414 = vst [vmem:[#allocation2] sm:$0xff] %v11413_v17   ;;  %v973_v19 = vpop.f32.mrf.mxu2  ;;  %v729_v22 = vadd.f32 %v728_v20, %v12502_v16 }
  0xf9   : > { %v974_v23 = vadd.f32 %v12491_v4, %v973_v19 }
  0xfa   : > { %v11453_v24 = vpack.c.bf16 %v729_v22, %v727_v18 }
  0xfb   : > { %v682_v21 = vpop.f32.mrf.mxu0  ;;  %v1012_v27 = vmul.f32 0.17677669, %v974_v23 }
  0xfc   : > { %11454 = vst [vmem:[#allocation3] sm:$0xff] %v11453_v24   ;;  %v683_v28 = vadd.f32 %v682_v21, %v12493_v5 }
  0xfd   : > { %v12523_v32 = vpack.c.bf16 %v1012_v27, %v1012_v27 }
  0xff   : > { %1123 = vrot.lane.b32.xlu0 %v12500_v15, %s12238_s28  ;;  %v12513_v25 = vld [vmem:[#allocation2 + $0x4] sm:$0xf]  ;;  %v12515_v26 = vld [vmem:[#allocation2] sm:$0xf]  ;;  %v731_v29 = vpop.f32.mrf.mxu1 }
 0x100   : > { %3014 = vrot.lane.b32.xlu2 %v12513_v25, %s12237_s3  ;;  %3012 = vrot.lane.b32.xlu1 %v12515_v26, %s12237_s3  ;;  %v976_v34 = vpop.f32.mrf.mxu2  ;;  %v732_v35 = vadd.f32 %v731_v29, %v12502_v16 }
 0x101   : > { %v977_v38 = vadd.f32 %v12491_v4, %v976_v34 }
 0x103   : > { %v684_v30 = vpop.f32.mrf.mxu0  ;;  %v1013_v40 = vmul.f32 0.17677669, %v977_v38  ;;  %v12544_v45 = vld [vmem:[#allocation3 + $0x4] sm:$0xf]  ;;  %v12556_v51 = vld [vmem:[#allocation3] sm:$0xf] }
 0x104   : > { %v685_v31 = vadd.f32 %v684_v30, %v12493_v5  ;;  %v1158_v38 = vshrl.u32 %v12500_v15, 16 }
 0x105   : > { %v12542_v44 = vpack.c.bf16 %v1013_v40, %v1013_v40 }
 0x106   : > { %v11418_v33 = vpack.c.bf16 %v685_v31, %v683_v28 }
 0x107   : > { %1061 = vrot.lane.b32.xlu0 %v12523_v32, %s12237_s3  ;;  %v733_v36 = vpop.f32.mrf.mxu1 }
 0x108   : > { %3076 = vrot.lane.b32.xlu2 %v12515_v26, %s12238_s28  ;;  %3046 = vrot.lane.b32.xlu1 %v12513_v25, %s12236_s19  ;;  %11530 = vst [vmem:[#allocation2 + $0x8] sm:$0xff] %v11418_v33   ;;  %v734_v37 = vadd.f32 %v733_v36, %v12502_v16  ;;  %v978_v52 = vpop.f32.mrf.mxu2 }
 0x109   : > { %v979_v53 = vadd.f32 %v12491_v4, %v978_v52 }
 0x10a   : > { %v11458_v39 = vpack.c.bf16 %v734_v37, %v732_v35 }
 0x10b   : > { %v687_v41 = vpop.f32.mrf.mxu0  ;;  %v1014_v56 = vmul.f32 0.17677669, %v979_v53 }
 0x10c   : > { %11537 = vst [vmem:[#allocation3 + $0x8] sm:$0xff] %v11458_v39   ;;  %v688_v46 = vadd.f32 %v687_v41, %v12493_v5  ;;  %v12239_v39 = vmov 1983009808  }
 0x10d   : > { %v12574_v57 = vpack.c.bf16 %v1014_v56, %v1014_v56  ;;  %v1349_v40 = vunpack.c.l.s4 %v12239_v39 }
 0x10f   : > { %3044 = vrot.lane.b32.xlu0 %v12515_v26, %s12236_s19  ;;  %v12554_v50 = vld [vmem:[#allocation2 + $0xc] sm:$0xf]  ;;  %v12565_v54 = vld [vmem:[#allocation2 + $0x8] sm:$0xf] }
 0x110   : > { %1093 = vrot.lane.b32.xlu2 %v12523_v32, %s12236_s19  ;;  %1125 = vrot.lane.b32.xlu1 %v12523_v32, %s12238_s28  ;;  %v981_v59 = vpop.f32.mrf.mxu2 }
 0x111   : > { %v982_v61 = vadd.f32 %v12491_v4, %v981_v59 }
 0x113   : > { %v689_v47 = vpop.f32.mrf.mxu0  ;;  %v12584_v62 = vld [vmem:[#allocation3 + $0x8] sm:$0xf]  ;;  %v1015_v63 = vmul.f32 0.17677669, %v982_v61  ;;  %v12596_v6 = vld [vmem:[#allocation3 + $0xc] sm:$0xf] }
 0x114   : > { %v690_v48 = vadd.f32 %v689_v47, %v12493_v5  ;;  %v3123_v47 = vshrl.u32 %v12513_v25, 16 }
 0x115   : > { %v12593_v2 = vpack.c.bf16 %v1015_v63, %v1015_v63 }
 0x116   : > { %v11423_v49 = vpack.c.bf16 %v690_v48, %v688_v46  ;;  %v1170_v46 = vshrl.u32 %v12523_v32, 16 }
 0x117   : > { %3078 = vrot.lane.b32.xlu0 %v12513_v25, %s12238_s28 }
 0x118   : > { %1095 = vrot.lane.b32.xlu2 %v12542_v44, %s12236_s19  ;;  %4966 = vrot.lane.b32.xlu1 %v12544_v45, %s12237_s3  ;;  %11531 = vst [vmem:[#allocation2 + $0x10] sm:$0xff] %v11423_v49   ;;  %v983_v8 = vpop.f32.mrf.mxu2  ;;  %v3111_v49 = vshrl.u32 %v12515_v26, 16 }
 0x119   : > { %v984_v10 = vadd.f32 %v12491_v4, %v983_v8 }
 0x11b   : > { %v692_v60 = vpop.f32.mrf.mxu0  ;;  %v1016_v11 = vmul.f32 0.17677669, %v984_v10 }
 0x11c   : > { %v693_v0 = vadd.f32 %v692_v60, %v12493_v5  ;;  %v12240_v60 = vmov 1934713408  }
 0x11d   : > { %v12613_v12 = vpack.c.bf16 %v1016_v11, %v1016_v11  ;;  %v1363_v61 = vunpack.c.l.s4 %v12240_v60 }
 0x11f   : > { %4964 = vrot.lane.b32.xlu0 %v12556_v51, %s12237_s3  ;;  %v12604_v9 = vld [vmem:[#allocation2 + $0x10] sm:$0xf]  ;;  %v12617_v14 = vld [vmem:[#allocation2 + $0x14] sm:$0xf] }
 0x120   : > { %3018 = vrot.lane.b32.xlu2 %v12554_v50, %s12237_s3  ;;  %1063 = vrot.lane.b32.xlu1 %v12542_v44, %s12237_s3  ;;  %v986_v13 = vpop.f32.mrf.mxu2 }
 0x121   : > { %v987_v17 = vadd.f32 %v12491_v4, %v986_v13 }
 0x123   : > { %v694_v1 = vpop.f32.mrf.mxu0  ;;  %v1017_v19 = vmul.f32 0.17677669, %v987_v17 }
 0x124   : > { %v695_v3 = vadd.f32 %v694_v1, %v12493_v5 }
 0x125   : > { %v12632_v22 = vpack.c.bf16 %v1017_v19, %v1017_v19 }
 0x126   : > { %v11428_v7 = vpack.c.bf16 %v695_v3, %v693_v0  ;;  %v3147_v0 = vshrl.u32 %v12554_v50, 16  ;;  %v12672_v3 = vunpack.c.0.s8 %v1349_v40 }
 0x127   : > { %3048 = vrot.lane.b32.xlu0 %v12565_v54, %s12236_s19 }
 0x128   : > { %3080 = vrot.lane.b32.xlu2 %v12565_v54, %s12238_s28  ;;  %1127 = vrot.lane.b32.xlu1 %v12542_v44, %s12238_s28  ;;  %11532 = vst [vmem:[#allocation2 + $0x18] sm:$0xff] %v11428_v7   ;;  %v988_v20 = vpop.f32.mrf.mxu2 }
 0x129   : > { %v989_v23 = vadd.f32 %v12491_v4, %v988_v20  ;;  %19133 = vst [vmem:[#allocation28_spill] sm:$0xff] %v12672_v3 }
 0x12b   : > { %v697_v18 = vpop.f32.mrf.mxu0  ;;  %v1018_v29 = vmul.f32 0.17677669, %v989_v23 }
 0x12c   : > { %v698_v24 = vadd.f32 %v697_v18, %v12493_v5 }
 0x12d   : > { %v12645_v34 = vpack.c.bf16 %v1018_v29, %v1018_v29 }
 0x12f   : > { %3082 = vrot.lane.b32.xlu0 %v12554_v50, %s12238_s28  ;;  %v12647_v35 = vld [vmem:[#allocation2 + $0x1c] sm:$0xf]  ;;  %v12667_v59 = vld [vmem:[#allocation2 + $0x18] sm:$0xf] }
 0x130   : > { %1129 = vrot.lane.b32.xlu2 %v12574_v57, %s12238_s28  ;;  %1065 = vrot.lane.b32.xlu1 %v12574_v57, %s12237_s3  ;;  %v991_v30 = vpop.f32.mrf.mxu2 }
 0x131   : > { %v992_v48 = vadd.f32 %v12491_v4, %v991_v30 }
 0x133   : > { %v699_v27 = vpop.f32.mrf.mxu0  ;;  %v1019_v11 = vmul.f32 0.17677669, %v992_v48 }
 0x134   : > { %v700_v28 = vadd.f32 %v699_v27, %v12493_v5 }
 0x135   : > { %v12698_v40 = vpack.c.bf16 %v1019_v11, %v1019_v11 }
 0x136   : > { %v11433_v31 = vpack.c.bf16 %v700_v28, %v698_v24 }
 0x137   : > { %1097 = vrot.lane.b32.xlu0 %v12574_v57, %s12236_s19 }
 0x138   : > { %4968 = vrot.lane.b32.xlu2 %v12584_v62, %s12237_s3  ;;  %3016 = vrot.lane.b32.xlu1 %v12565_v54, %s12237_s3  ;;  %11533 = vst [vmem:[#allocation2 + $0x20] sm:$0xff] %v11433_v31   ;;  %v993_v43 = vpop.f32.mrf.mxu2 }
 0x139   : > { %v994_v63 = vadd.f32 %v12491_v4, %v993_v43 }
 0x13b   : > { %v1020_v24 = vmul.f32 0.17677669, %v994_v63 }
 0x13f   : > { %4970 = vrot.lane.b32.xlu0 %v12596_v6, %s12237_s3  ;;  %v12747_v27 = vld [vmem:[#allocation2 + $0x20] sm:$0xf] }
 0x140   : > { %1067 = vrot.lane.b32.xlu2 %v12593_v2, %s12237_s3  ;;  %3050 = vrot.lane.b32.xlu1 %v12554_v50, %s12236_s19 }
 0x147   : > { %1099 = vrot.lane.b32.xlu0 %v12593_v2, %s12236_s19 }
 0x148   : > { %1131 = vrot.lane.b32.xlu2 %v12593_v2, %s12238_s28  ;;  %3020 = vrot.lane.b32.xlu1 %v12604_v9, %s12237_s3 }
 0x14f   : > { %3052 = vrot.lane.b32.xlu0 %v12604_v9, %s12236_s19 }
 0x150   : > { %1069 = vrot.lane.b32.xlu2 %v12613_v12, %s12237_s3  ;;  %3054 = vrot.lane.b32.xlu1 %v12617_v14, %s12236_s19 }
 0x157   : > { %3086 = vrot.lane.b32.xlu0 %v12617_v14, %s12238_s28 }
 0x158   : > { %3022 = vrot.lane.b32.xlu2 %v12617_v14, %s12237_s3  ;;  %1101 = vrot.lane.b32.xlu1 %v12613_v12, %s12236_s19 }
 0x15a   : > { %v12630_v21 = vpop.permute.xlu2 %3014 }
 0x15b   : > { %v3124_v53 = vshrl.u32 %v12630_v21, 16  ;;  %v3122_v10 = vpack.i.b16 %v12630_v21, %v12513_v25  ;;  %v12689_v21 = vunpack.c.0.s8 %v1363_v61 }
 0x15d   : > { %v3125_v18 = vpack.i.b16 %v3124_v53, %v3123_v47  ;;  %19134 = vst [vmem:[#allocation29_spill] sm:$0xff] %v12689_v21  ;;  %v12696_v39 = vperm.slane %v3122_v10, %v12672_v3 }
 0x15f   : > { %1133 = vrot.lane.b32.xlu0 %v12613_v12, %s12238_s28  ;;  %v12702_v47 = vperm.slane %v3125_v18, %v12672_v3 }
 0x160   : > { %3084 = vrot.lane.b32.xlu2 %v12604_v9, %s12238_s28  ;;  %1103 = vrot.lane.b32.xlu1 %v12632_v22, %s12236_s19 }
 0x162   : > { %v12643_v33 = vpop.permute.xlu2 %3076 }
 0x167   : > { %1071 = vrot.lane.b32.xlu0 %v12632_v22, %s12237_s3 }
 0x168   : > { %3026 = vrot.lane.b32.xlu2 %v12647_v35, %s12237_s3  ;;  %1073 = vrot.lane.b32.xlu1 %v12645_v34, %s12237_s3 }
 0x169   : > { %v1092_v36 = vpop.permute.xlu1 %1091  ;;  %v1060_v37 = vpop.permute.xlu0 %1059 }
 0x16a   : > { %v1159_v41 = vshrl.u32 %v1060_v37, 16  ;;  %v12656_v42 = vpop.permute.xlu2 %1093  ;;  %v1157_v55 = vpack.i.b16 %v1060_v37, %v12500_v15  ;;  %v1164_v28 = vshrl.u32 %v1092_v36, 16 }
 0x16c   : > { %v1160_v7 = vpack.i.b16 %v1159_v41, %v1158_v38  ;;  %v1351_v19 = vperm.slane %v1157_v55, %v12672_v3 }
 0x16e   : > { %v1378_v29 = vperm.slane %v1160_v7, %v12672_v3  ;;  %v1360_v48 = vrot.slane %v1351_v19, 4 }
 0x16f   : > { %1135 = vrot.lane.b32.xlu0 %v12632_v22, %s12238_s28 }
 0x170   : > { %3088 = vrot.lane.b32.xlu2 %v12667_v59, %s12238_s28  ;;  %3024 = vrot.lane.b32.xlu1 %v12667_v59, %s12237_s3  ;;  %v1386_v7 = vrot.slane %v1378_v29, 4 }
 0x171   : > { %v1124_v23 = vpop.permute.xlu0 %1123 }
 0x172   : > { %v1163_v30 = vpack.i.b16 %v1124_v23, %v1092_v36  ;;  %v1165_v31 = vshrl.u32 %v1124_v23, 16  ;;  %v12693_v37 = vpop.permute.xlu2 %1095  ;;  %v3013_v38 = vpop.permute.xlu1 %3012  ;;  %v12705_v36 = vpack.c.bf16 %v1020_v24, %v1020_v24 }
 0x173   : > { %v3112_v41 = vshrl.u32 %v3013_v38, 16 }
 0x174   : > { %v1166_v53 = vpack.i.b16 %v1165_v31, %v1164_v28  ;;  %v1356_v55 = vperm.slane %v1163_v30, %v12672_v3  ;;  %v3110_v30 = vpack.i.b16 %v3013_v38, %v12515_v26 }
 0x175   : > { %v3113_v24 = vpack.i.b16 %v3112_v41, %v3111_v49 }
 0x176   : > { %v1357_v10 = vrot.slane %v1356_v55, 4  ;;  %v1361_v11 = vsel %vm1358_vm0, %v1356_v55, %v1360_v48  ;;  %v1383_v23 = vperm.slane %v1166_v53, %v12672_v3  ;;  %v3118_v48 = vshrl.u32 %v12643_v33, 16 }
 0x177   : > { %v1369_v28 = vperm.slane %v1361_v11, %v12689_v21  ;;  %3056 = vrot.lane.b32.xlu0 %v12667_v59, %s12236_s19  ;;  %v1176_v53 = vshrl.u32 %v12656_v42, 16 }
 0x178   : > { %v1359_v63 = vsel %vm1358_vm0, %v1357_v10, %v1351_v19  ;;  %v1384_v61 = vrot.slane %v1383_v23, 4  ;;  %v1387_v43 = vsel %vm1358_vm0, %v1383_v23, %v1386_v7  ;;  %1105 = vrot.lane.b32.xlu2 %v12645_v34, %s12236_s19  ;;  %3058 = vrot.lane.b32.xlu1 %v12647_v35, %s12236_s19 }
 0x179   : > { %v1365_v26 = vperm.slane %v1359_v63, %v12689_v21  ;;  %v1372_v49 = vrot.slane %v1369_v28, 4  ;;  %v1395_v38 = vperm.slane %v1387_v43, %v12689_v21  ;;  %v1062_v41 = vpop.permute.xlu0 %1061  ;;  %v12738_v63 = vperm.slane %v3110_v30, %v12672_v3  ;;  %v12743_v28 = vld [vmem:[#allocation2 + $0x24] sm:$0xf] }
 0x17a   : > { %v1385_v19 = vsel %vm1358_vm0, %v1384_v61, %v1378_v29  ;;  %v1169_v55 = vpack.i.b16 %v1062_v41, %v12523_v32  ;;  %v1171_v7 = vshrl.u32 %v1062_v41, 16  ;;  %v3019_v10 = vpop.permute.xlu2 %3018  ;;  %v12730_v11 = vpop.permute.xlu1 %3046  ;;  %v12741_v43 = vperm.slane %v3113_v24, %v12672_v3 }
 0x17b   : > { %v12733_v23 = vperm.slane %v1385_v19, %v12689_v21  ;;  %v12735_v60 = vrot.slane %v1395_v38, 4  ;;  %v702_v29 = vpop.f32.mrf.mxu0  ;;  %v1370_v61 = vrot.slane %v1365_v26, 4  ;;  %v12752_v17 = vsel %vm1358_vm0, 0, %v1372_v49 }
 0x17c   : > { %v1172_v41 = vpack.i.b16 %v1171_v7, %v1170_v46  ;;  %19137 = vst [vmem:[#allocation32_spill] sm:$0xff] %v12752_v17  ;;  %v1404_v24 = vperm.slane %v1169_v55, %v12672_v3  ;;  %v3146_v25 = vpack.i.b16 %v3019_v10, %v12554_v50  ;;  %v3148_v46 = vshrl.u32 %v3019_v10, 16 }
 0x17d   : > { %19135 = vst [vmem:[#allocation30_spill] sm:$0xff] %v12733_v23  ;;  %v1396_v15 = vrot.slane %v12733_v23, 4  ;;  %v12760_v32 = vsel %vm1358_vm0, 0, %v12735_v60  ;;  %v3312_v38 = vrot.slane %v12738_v63, 4  ;;  %v3338_v19 = vrot.slane %v12741_v43, 4 }
 0x17e   : > { %19136 = vst [vmem:[#allocation31_spill] sm:$0xff] %v12735_v60  ;;  %v12766_v20 = vperm.slane %v1172_v41, %v12672_v3  ;;  %v12772_v1 = vsel %vm1358_vm0, 0, %v1370_v61  ;;  %v12775_v30 = vsel %vm1358_vm0, %v1372_v49, %v1365_v26  ;;  %v12779_v7 = vperm.slane %v3146_v25, %v12672_v3  ;;  %v996_v41 = vpop.f32.mrf.mxu2 }
 0x17f   : > { %19138 = vst [vmem:[#allocation33_spill] sm:$0xff] %v12760_v32  ;;  %3090 = vrot.lane.b32.xlu0 %v12647_v35, %s12238_s28  ;;  %v1412_v13 = vrot.slane %v1404_v24, 4  ;;  %v3149_v61 = vpack.i.b16 %v3148_v46, %v3147_v0  ;;  %v997_v49 = vadd.f32 %v12491_v4, %v996_v41  ;;  %v12790_v10 = vsel %vm1358_vm0, 0, %v1396_v15 }
 0x180   : > { %19139 = vst [vmem:[#allocation34_spill] sm:$0xff] %v12772_v1  ;;  %1075 = vrot.lane.b32.xlu2 %v12698_v40, %s12237_s3  ;;  %1137 = vrot.lane.b32.xlu1 %v12645_v34, %s12238_s28  ;;  %v703_v31 = vadd.f32 %v702_v29, %v12493_v5  ;;  %v1438_v55 = vrot.slane %v12766_v20, 4  ;;  %v19176_v1 = vshrl.u32 %v12593_v2, 16 }
 0x181   : > { %19140 = vst [vmem:[#allocation35_spill] sm:$0xff] %v12775_v30  ;;  %v3045_v26 = vpop.permute.xlu0 %3044 }
 0x182   : > { %19141 = vst [vmem:[#allocation36_spill] sm:$0xff] %v12790_v10  ;;  %v12792_v25 = vpop.permute.xlu2 %3080  ;;  %v3116_v58 = vpack.i.b16 %v12643_v33, %v3045_v26  ;;  %v3117_v56 = vshrl.u32 %v3045_v26, 16  ;;  %v1126_v8 = vpop.permute.xlu1 %1125  ;;  %v12803_v33 = vperm.slane %v3149_v61, %v12672_v3  ;;  %v1021_v10 = vmul.f32 0.17677669, %v997_v49 }
 0x183   : > { %v1175_v50 = vpack.i.b16 %v1126_v8, %v12656_v42  ;;  %v1177_v0 = vshrl.u32 %v1126_v8, 16  ;;  %v704_v46 = vpop.f32.mrf.mxu0 }
 0x184   : > { %v3119_v15 = vpack.i.b16 %v3118_v48, %v3117_v56  ;;  %v3309_v18 = vperm.slane %v3116_v58, %v12672_v3  ;;  %v705_v32 = vadd.f32 %v704_v46, %v12493_v5 }
 0x185   : > { %v1178_v26 = vpack.i.b16 %v1177_v0, %v1176_v53  ;;  %v1409_v29 = vperm.slane %v1175_v50, %v12672_v3 }
 0x186   : > { %v3310_v60 = vrot.slane %v3309_v18, 4  ;;  %v3313_v52 = vsel %vm1358_vm0, %v3309_v18, %v3312_v38  ;;  %v3335_v42 = vperm.slane %v3119_v15, %v12672_v3  ;;  %v11438_v8 = vpack.c.bf16 %v705_v32, %v703_v31 }
 0x187   : > { %v3321_v41 = vperm.slane %v3313_v52, %v12689_v21  ;;  %v1410_v56 = vrot.slane %v1409_v29, 4  ;;  %v1413_v58 = vsel %vm1358_vm0, %v1409_v29, %v1412_v13  ;;  %v1435_v48 = vperm.slane %v1178_v26, %v12672_v3  ;;  %1077 = vrot.lane.b32.xlu0 %v12705_v36, %s12237_s3 }
 0x188   : > { %v3311_v53 = vsel %vm1358_vm0, %v3310_v60, %v12738_v63  ;;  %v3336_v61 = vrot.slane %v3335_v42, 4  ;;  %v3339_v49 = vsel %vm1358_vm0, %v3335_v42, %v3338_v19  ;;  %v1421_v18 = vperm.slane %v1413_v58, %v12689_v21  ;;  %1107 = vrot.lane.b32.xlu2 %v12698_v40, %s12236_s19  ;;  %1139 = vrot.lane.b32.xlu1 %v12698_v40, %s12238_s28 }
 0x189   : > { %v12822_v52 = vperm.slane %v3311_v53, %v12689_v21  ;;  %v12824_v13 = vrot.slane %v3321_v41, 4  ;;  %v3347_v31 = vperm.slane %v3339_v49, %v12689_v21  ;;  %v1411_v60 = vsel %vm1358_vm0, %v1410_v56, %v1404_v24  ;;  %v3079_v63 = vpop.permute.xlu0 %3078  ;;  %11534 = vst [vmem:[#allocation2 + $0x28] sm:$0xff] %v11438_v8  }
 0x18a   : > { %v3337_v19 = vsel %vm1358_vm0, %v3336_v61, %v12741_v43  ;;  %v1417_v38 = vperm.slane %v1411_v60, %v12689_v21  ;;  %v1424_v32 = vrot.slane %v1421_v18, 4  ;;  %v1436_v50 = vrot.slane %v1435_v48, 4  ;;  %v12831_v0 = vpop.permute.xlu2 %1129  ;;  %v4967_v46 = vpop.permute.xlu1 %4966 }
 0x18b   : > { %19142 = vst [vmem:[#allocation37_spill] sm:$0xff] %v12822_v52  ;;  %v3322_v15 = vrot.slane %v12822_v52, 4  ;;  %v12836_v41 = vsel %vm1358_vm0, 0, %v12824_v13  ;;  %v12839_v24 = vperm.slane %v3337_v19, %v12689_v21  ;;  %v12841_v26 = vrot.slane %v3347_v31, 4 }
 0x18c   : > { %19143 = vst [vmem:[#allocation38_spill] sm:$0xff] %v12824_v13  ;;  %v1422_v42 = vrot.slane %v1417_v38, 4  ;;  %v1437_v8 = vsel %vm1358_vm0, %v1436_v50, %v12766_v20  ;;  %v1439_v53 = vsel %vm1358_vm0, %v1435_v48, %v1438_v55  ;;  %v12853_v61 = vpack.c.bf16 %v1021_v10, %v1021_v10  ;;  %v998_v10 = vpop.f32.mrf.mxu2 }
 0x18d   : > { %19144 = vst [vmem:[#allocation39_spill] sm:$0xff] %v12836_v41  ;;  %v12849_v56 = vsel %vm1358_vm0, 0, %v12841_v26  ;;  %v12856_v49 = vsel %vm1358_vm0, 0, %v3322_v15  ;;  %v12859_v18 = vsel %vm1358_vm0, 0, %v1424_v32  ;;  %v12862_v31 = vperm.slane %v1437_v8, %v12689_v21 }
 0x18e   : > { %19145 = vst [vmem:[#allocation40_spill] sm:$0xff] %v12839_v24  ;;  %v1447_v20 = vperm.slane %v1439_v53, %v12689_v21  ;;  %v12868_v50 = vsel %vm1358_vm0, 0, %v1422_v42  ;;  %v3128_v55 = vpack.i.b16 %v3079_v63, %v12730_v11  ;;  %v3130_v8 = vshrl.u32 %v3079_v63, 16 }
 0x18f   : > { %19146 = vst [vmem:[#allocation41_spill] sm:$0xff] %v12841_v26  ;;  %3060 = vrot.lane.b32.xlu0 %v12747_v27, %s12236_s19  ;;  %v1448_v48 = vrot.slane %v12862_v31, 4  ;;  %v5074_v53 = vpack.i.b16 %v4967_v46, %v12544_v45  ;;  %v12882_v42 = vsel %vm1358_vm0, %v1424_v32, %v1417_v38  ;;  %v5076_v60 = vshrl.u32 %v4967_v46, 16 }
 0x190   : > { %19147 = vst [vmem:[#allocation42_spill] sm:$0xff] %v12849_v56  ;;  %v12874_v15 = vrot.slane %v1447_v20, 4  ;;  %3030 = vrot.lane.b32.xlu2 %v12743_v28, %s12237_s3  ;;  %3028 = vrot.lane.b32.xlu1 %v12747_v27, %s12237_s3  ;;  %v3361_v58 = vperm.slane %v3128_v55, %v12672_v3  ;;  %v19155_v29 = vshrl.u32 %v12730_v11, 16  ;;  %v12894_v38 = vadd.f32 %v12491_v4, %v998_v10 }
 0x191   : > { %19148 = vst [vmem:[#allocation43_spill] sm:$0xff] %v12856_v49  ;;  %v4965_v43 = vpop.permute.xlu0 %4964  ;;  %v12897_v32 = vsel %vm1358_vm0, 0, %v1448_v48  ;;  %v19157_v46 = vrot.slane %v12696_v39, 4 }
 0x192   : > { %19149 = vst [vmem:[#allocation44_spill] sm:$0xff] %v12859_v18  ;;  %v12888_v63 = vsel %vm1358_vm0, 0, %v12874_v15  ;;  %v1064_v23 = vpop.permute.xlu1 %1063  ;;  %v3362_v55 = vrot.slane %v3361_v58, 4 }
 0x193   : > { %19150 = vst [vmem:[#allocation45_spill] sm:$0xff] %v12862_v31  ;;  %v3131_v31 = vpack.i.b16 %v3130_v8, %v19155_v29  ;;  %v3365_v19 = vsel %vm1358_vm0, %v3361_v58, %v19157_v46  ;;  %v12907_v29 = vperm.slane %v5074_v53, %v12672_v3  ;;  %v19164_v46 = vshrl.u32 %v12584_v62, 16 }
 0x194   : > { %19151 = vst [vmem:[#allocation46_spill] sm:$0xff] %v12868_v50  ;;  %v4969_v50 = vpop.permute.xlu2 %4968  ;;  %v3373_v20 = vperm.slane %v3365_v19, %v12689_v21  ;;  %v3363_v48 = vsel %vm1358_vm0, %v3362_v55, %v12696_v39  ;;  %v19163_v19 = vrot.slane %v12702_v47, 4 }
 0x195   : > { %19152 = vst [vmem:[#allocation47_spill] sm:$0xff] %v12874_v15  ;;  %v19158_v15 = vshrl.u32 %v12544_v45, 16  ;;  %v3387_v11 = vperm.slane %v3131_v31, %v12672_v3  ;;  %v5086_v4 = vpack.i.b16 %v4969_v50, %v12584_v62  ;;  %v5088_v58 = vshrl.u32 %v4969_v50, 16 }
 0x196   : > { %19153 = vst [vmem:[#allocation48_spill] sm:$0xff] %v12882_v42  ;;  %v12917_v45 = vperm.slane %v3363_v48, %v12689_v21 }
 0x197   : > { %19154 = vst [vmem:[#allocation49_spill] sm:$0xff] %v12888_v63  ;;  %v5077_v18 = vpack.i.b16 %v5076_v60, %v19158_v15  ;;  %v12919_v60 = vrot.slane %v3373_v20, 4  ;;  %v3388_v31 = vrot.slane %v3387_v11, 4  ;;  %v3391_v15 = vsel %vm1358_vm0, %v3387_v11, %v19163_v19  ;;  %3094 = vrot.lane.b32.xlu0 %v12743_v28, %s12238_s28 }
 0x198   : > { %19156 = vst [vmem:[#allocation50_spill] sm:$0xff] %v12897_v32  ;;  %v3399_v53 = vperm.slane %v3391_v15, %v12689_v21  ;;  %v5089_v10 = vpack.i.b16 %v5088_v58, %v19164_v46  ;;  %v12928_v39 = vperm.slane %v5086_v4, %v12672_v3  ;;  %v3374_v50 = vrot.slane %v12917_v45, 4  ;;  %3092 = vrot.lane.b32.xlu2 %v12747_v27, %s12238_s28 }
 0x199   : > { %19159 = vst [vmem:[#allocation51_spill] sm:$0xff] %v12907_v29  ;;  %v12914_v8 = vperm.slane %v5077_v18, %v12672_v3  ;;  %v5062_v18 = vpack.i.b16 %v4965_v43, %v12556_v51  ;;  %v12936_v20 = vsel %vm1358_vm0, 0, %v12919_v60  ;;  %v3389_v55 = vsel %vm1358_vm0, %v3388_v31, %v12702_v47  ;;  %3062 = vrot.lane.b32.xlu1 %v12743_v28, %s12236_s19  ;;  %v3049_v19 = vpop.permute.xlu0 %3048 }
 0x19a   : > { %19161 = vst [vmem:[#allocation53_spill] sm:$0xff] %v12917_v45  ;;  %v5064_v11 = vshrl.u32 %v4965_v43, 16  ;;  %v12945_v62 = vperm.slane %v3389_v55, %v12689_v21  ;;  %v12947_v4 = vrot.slane %v3399_v53, 4  ;;  %v12954_v43 = vperm.slane %v5089_v10, %v12672_v3  ;;  %v1128_v55 = vpop.permute.xlu1 %1127 }
 0x19b   : > { %19160 = vst [vmem:[#allocation52_spill] sm:$0xff] %v12914_v8  ;;  %v19170_v31 = vshrl.u32 %v12556_v51, 16  ;;  %v12963_v48 = vperm.slane %v5062_v18, %v12672_v3  ;;  %v1181_v58 = vpack.i.b16 %v1064_v23, %v12542_v44  ;;  %v1183_v15 = vshrl.u32 %v1064_v23, 16 }
 0x19c   : > { %19162 = vst [vmem:[#allocation54_spill] sm:$0xff] %v12919_v60  ;;  %v1068_v63 = vpop.permute.xlu2 %1067  ;;  %v12960_v53 = vsel %vm1358_vm0, 0, %v12947_v4  ;;  %v12967_v47 = vsel %vm1358_vm0, 0, %v3374_v50  ;;  %v3140_v50 = vpack.i.b16 %v12792_v25, %v3049_v19  ;;  %v3141_v17 = vshrl.u32 %v3049_v19, 16 }
 0x19d   : > { %19165 = vst [vmem:[#allocation55_spill] sm:$0xff] %v12928_v39  ;;  %v5065_v46 = vpack.i.b16 %v5064_v11, %v19170_v31  ;;  %v19175_v31 = vshrl.u32 %v12542_v44, 16  ;;  %v1456_v32 = vperm.slane %v1181_v58, %v12672_v3  ;;  %v1205_v18 = vpack.i.b16 %v1068_v63, %v12593_v2 }
 0x19e   : > { %19166 = vst [vmem:[#allocation56_spill] sm:$0xff] %v12936_v20  ;;  %v1207_v42 = vshrl.u32 %v1068_v63, 16  ;;  %v1187_v10 = vpack.i.b16 %v1128_v55, %v12693_v37  ;;  %v19177_v63 = vshrl.u32 %v12792_v25, 16  ;;  %v12993_v19 = vperm.slane %v3140_v50, %v12672_v3 }
 0x19f   : > { %19167 = vst [vmem:[#allocation57_spill] sm:$0xff] %v12945_v62  ;;  %v12972_v11 = vperm.slane %v5065_v46, %v12672_v3  ;;  %v1184_v39 = vpack.i.b16 %v1183_v15, %v19175_v31  ;;  %v12986_v15 = vperm.slane %v1205_v18, %v12672_v3  ;;  %1109 = vrot.lane.b32.xlu0 %v12705_v36, %s12236_s19  ;;  %v1189_v31 = vshrl.u32 %v1128_v55, 16 }
 0x1a0   : > { %19168 = vst [vmem:[#allocation58_spill] sm:$0xff] %v12947_v4  ;;  %v1208_v44 = vpack.i.b16 %v1207_v42, %v19176_v1  ;;  %v3143_v58 = vpack.i.b16 %v19177_v63, %v3141_v17  ;;  %v1461_v23 = vperm.slane %v1187_v10, %v12672_v3  ;;  %1141 = vrot.lane.b32.xlu2 %v12705_v36, %s12238_s28  ;;  %v1464_v1 = vrot.slane %v1456_v32, 4 }
 0x1a1   : > { %19169 = vst [vmem:[#allocation59_spill] sm:$0xff] %v12954_v43  ;;  %v1482_v46 = vperm.slane %v1184_v39, %v12672_v3  ;;  %1079 = vrot.lane.b32.xlu1 %v12853_v61, %s12237_s3  ;;  %v1022_v17 = vmul.f32 0.17677669, %v12894_v38  ;;  %v13005_v25 = vpop.permute.xlu0 %3082  ;;  %v19178_v10 = vshrl.u32 %v12693_v37, 16  ;;  %v19219_v49 = vrot.slane %v12986_v15, 4 }
 0x1a2   : > { %19171 = vst [vmem:[#allocation60_spill] sm:$0xff] %v12960_v53  ;;  %v13002_v42 = vperm.slane %v1208_v44, %v12672_v3  ;;  %v13008_v55 = vperm.slane %v3143_v58, %v12672_v3  ;;  %v1462_v50 = vrot.slane %v1461_v23, 4  ;;  %v1066_v51 = vpop.permute.xlu1 %1065  ;;  %v1465_v38 = vsel %vm1358_vm0, %v1461_v23, %v1464_v1  ;;  %v13026_v44 = vld [vmem:[#allocation2 + $0x28] sm:$0xf] }
 0x1a3   : > { %19172 = vst [vmem:[#allocation61_spill] sm:$0xff] %v12963_v48  ;;  %v1490_v39 = vrot.slane %v1482_v46, 4  ;;  %v1190_v18 = vpack.i.b16 %v1189_v31, %v19178_v10  ;;  %v1473_v58 = vperm.slane %v1465_v38, %v12689_v21  ;;  %v13021_v37 = vpack.c.bf16 %v1022_v17, %v1022_v17 }
 0x1a4   : > { %19173 = vst [vmem:[#allocation62_spill] sm:$0xff] %v12967_v47  ;;  %v13012_v63 = vpop.permute.xlu2 %1131  ;;  %v1463_v30 = vsel %vm1358_vm0, %v1462_v50, %v1456_v32  ;;  %v1193_v2 = vpack.i.b16 %v1066_v51, %v12574_v57  ;;  %v1195_v29 = vshrl.u32 %v1066_v51, 16  ;;  %v707_v51 = vpop.f32.mrf.mxu0  ;;  %v19187_v47 = vshrl.u32 %v12613_v12, 16 }
 0x1a5   : > { %19174 = vst [vmem:[#allocation63_spill] sm:$0xff] %v12972_v11  ;;  %v1487_v8 = vperm.slane %v1190_v18, %v12672_v3  ;;  %v1469_v31 = vperm.slane %v1463_v30, %v12689_v21  ;;  %v1476_v23 = vrot.slane %v1473_v58, 4  ;;  %v19179_v30 = vshrl.u32 %v12574_v57, 16 }
 0x1a6   : > { %v1508_v43 = vperm.slane %v1193_v2, %v12672_v3  ;;  %v13046_v57 = vadd.f32 %v707_v51, %v12493_v5 }
 0x1a7   : > { %v1488_v1 = vrot.slane %v1487_v8, 4  ;;  %v1491_v32 = vsel %vm1358_vm0, %v1487_v8, %v1490_v39  ;;  %v1474_v50 = vrot.slane %v1469_v31, 4  ;;  %v1196_v38 = vpack.i.b16 %v1195_v29, %v19179_v30  ;;  %1111 = vrot.lane.b32.xlu0 %v12853_v61, %s12236_s19  ;;  %v736_v29 = vpop.f32.mrf.mxu1 }
 0x1a8   : > { %v1499_v18 = vperm.slane %v1491_v32, %v12689_v21  ;;  %v13037_v10 = vsel %vm1358_vm0, 0, %v1476_v23  ;;  %1143 = vrot.lane.b32.xlu2 %v12853_v61, %s12238_s28  ;;  %v13054_v32 = vsel %vm1358_vm0, %v1476_v23, %v1469_v31  ;;  %v13057_v2 = vadd.f32 %v736_v29, %v12502_v16 }
 0x1a9   : > { %19180 = vst [vmem:[#allocation64_spill] sm:$0xff] %v13037_v10  ;;  %v1489_v58 = vsel %vm1358_vm0, %v1488_v1, %v1482_v46  ;;  %3032 = vrot.lane.b32.xlu1 %v13026_v44, %s12237_s3  ;;  %v1098_v46 = vpop.permute.xlu0 %1097  ;;  %v13060_v1 = vsel %vm1358_vm0, 0, %v1474_v50  ;;  %v1534_v30 = vperm.slane %v1196_v38, %v12672_v3  ;;  %v1516_v50 = vrot.slane %v1508_v43, 4 }
 0x1aa   : > { %v13049_v8 = vperm.slane %v1489_v58, %v12689_v21  ;;  %v13051_v39 = vrot.slane %v1499_v18, 4  ;;  %19183 = vst [vmem:[#allocation67_spill] sm:$0xff] %v13054_v32  ;;  %v1199_v17 = vpack.i.b16 %v12831_v0, %v1098_v46  ;;  %v1200_v53 = vshrl.u32 %v1098_v46, 16  ;;  %v3017_v58 = vpop.permute.xlu1 %3016 }
 0x1ab   : > { %19184 = vst [vmem:[#allocation68_spill] sm:$0xff] %v13060_v1  ;;  %v19186_v1 = vshrl.u32 %v12831_v0, 16  ;;  %v1542_v20 = vrot.slane %v1534_v30, 4  ;;  %v3134_v60 = vpack.i.b16 %v3017_v58, %v12565_v54 }
 0x1ac   : > { %19181 = vst [vmem:[#allocation65_spill] sm:$0xff] %v13049_v8  ;;  %v1070_v51 = vpop.permute.xlu2 %1069  ;;  %v13066_v18 = vsel %vm1358_vm0, 0, %v13051_v39  ;;  %v1500_v32 = vrot.slane %v13049_v8, 4  ;;  %v1513_v4 = vperm.slane %v1199_v17, %v12672_v3  ;;  %v3136_v8 = vshrl.u32 %v3017_v58, 16 }
 0x1ad   : > { %19182 = vst [vmem:[#allocation66_spill] sm:$0xff] %v13051_v39  ;;  %v1217_v23 = vpack.i.b16 %v1070_v51, %v12613_v12  ;;  %v1219_v29 = vshrl.u32 %v1070_v51, 16  ;;  %v1202_v38 = vpack.i.b16 %v19186_v1, %v1200_v53  ;;  %v3408_v17 = vperm.slane %v3134_v60, %v12672_v3  ;;  %v2991_v12 = vld [vmem:[#allocation2 + $0x2c] sm:$0xf] }
 0x1ae   : > { %19185 = vst [vmem:[#allocation69_spill] sm:$0xff] %v13066_v18  ;;  %v1514_v31 = vrot.slane %v1513_v4, 4  ;;  %v1517_v10 = vsel %vm1358_vm0, %v1513_v4, %v1516_v50  ;;  %v19188_v58 = vshrl.u32 %v12565_v54, 16 }
 0x1af   : > { %v1220_v39 = vpack.i.b16 %v1219_v29, %v19187_v47  ;;  %v1539_v51 = vperm.slane %v1202_v38, %v12672_v3  ;;  %v13081_v45 = vperm.slane %v1217_v23, %v12672_v3  ;;  %v1525_v53 = vperm.slane %v1517_v10, %v12689_v21  ;;  %3064 = vrot.lane.b32.xlu0 %v13026_v44, %s12236_s19 }
 0x1b0   : > { %v1515_v47 = vsel %vm1358_vm0, %v1514_v31, %v1508_v43  ;;  %v3137_v23 = vpack.i.b16 %v3136_v8, %v19188_v58  ;;  %1081 = vrot.lane.b32.xlu2 %v13021_v37, %s12237_s3  ;;  %v13098_v10 = vsel %vm1358_vm0, 0, %v1500_v32  ;;  %v3416_v8 = vrot.slane %v3408_v17, 4 }
 0x1b1   : > { %v13084_v0 = vperm.slane %v1220_v39, %v12672_v3  ;;  %v1540_v4 = vrot.slane %v1539_v51, 4  ;;  %v1543_v1 = vsel %vm1358_vm0, %v1539_v51, %v1542_v20  ;;  %3066 = vrot.lane.b32.xlu1 %v2991_v12, %s12236_s19  ;;  %19189 = vst [vmem:[#allocation70_spill] sm:$0xff] %v13098_v10  ;;  %v1521_v60 = vperm.slane %v1515_v47, %v12689_v21  ;;  %v4971_v43 = vpop.permute.xlu0 %4970 }
 0x1b2   : > { %v1528_v39 = vrot.slane %v1525_v53, 4  ;;  %v1551_v29 = vperm.slane %v1543_v1, %v12689_v21  ;;  %v19190_v20 = vrot.slane %v12993_v19, 4  ;;  %v3434_v50 = vperm.slane %v3137_v23, %v12672_v3  ;;  %v3051_v51 = vpop.permute.xlu1 %3050 }
 0x1b3   : > { %v1541_v31 = vsel %vm1358_vm0, %v1540_v4, %v1534_v30  ;;  %v1526_v58 = vrot.slane %v1521_v60, 4  ;;  %v19196_v4 = vrot.slane %v13008_v55, 4 }
 0x1b4   : > { %v3415_v54 = vsel %vm1358_vm0, %v19190_v20, %v3408_v17  ;;  %v3023_v38 = vpop.permute.xlu2 %3022  ;;  %v13108_v32 = vsel %vm1358_vm0, 0, %v1528_v39  ;;  %v13111_v53 = vperm.slane %v1541_v31, %v12689_v21  ;;  %v13113_v47 = vrot.slane %v1551_v29, 4 }
 0x1b5   : > { %19191 = vst [vmem:[#allocation71_spill] sm:$0xff] %v13108_v32  ;;  %v3417_v17 = vsel %vm1358_vm0, %v12993_v19, %v3416_v8  ;;  %v3421_v1 = vperm.slane %v3415_v54, %v12689_v21  ;;  %v13126_v31 = vsel %vm1358_vm0, %v1528_v39, %v1521_v60  ;;  %v3441_v19 = vsel %vm1358_vm0, %v19196_v4, %v3434_v50  ;;  %v13141_v39 = vpop.f32.mrf.mxu1 }
 0x1b6   : > { %19192 = vst [vmem:[#allocation72_spill] sm:$0xff] %v13111_v53  ;;  %v1552_v23 = vrot.slane %v13111_v53, 4  ;;  %v13123_v20 = vsel %vm1358_vm0, 0, %v13113_v47  ;;  %v3425_v29 = vperm.slane %v3417_v17, %v12689_v21  ;;  %v3442_v8 = vrot.slane %v3434_v50, 4 }
 0x1b7   : > { %19193 = vst [vmem:[#allocation73_spill] sm:$0xff] %v13113_v47  ;;  %v3426_v30 = vrot.slane %v3421_v1, 4  ;;  %v13134_v54 = vsel %vm1358_vm0, 0, %v1526_v58  ;;  %v13137_v47 = vperm.slane %v3441_v19, %v12689_v21  ;;  %v3170_v60 = vpack.i.b16 %v3023_v38, %v12617_v14  ;;  %3098 = vrot.lane.b32.xlu0 %v2991_v12, %s12238_s28 }
 0x1b8   : > { %19194 = vst [vmem:[#allocation74_spill] sm:$0xff] %v13123_v20  ;;  %v3428_v53 = vrot.slane %v3425_v29, 4  ;;  %v3443_v46 = vsel %vm1358_vm0, %v13008_v55, %v3442_v8  ;;  %v3172_v4 = vshrl.u32 %v3023_v38, 16  ;;  %v5098_v50 = vpack.i.b16 %v4971_v43, %v12596_v6  ;;  %3034 = vrot.lane.b32.xlu2 %v2991_v12, %s12237_s3  ;;  %v1001_v20 = vpop.f32.mrf.mxu2 }
 0x1b9   : > { %19195 = vst [vmem:[#allocation75_spill] sm:$0xff] %v13126_v31  ;;  %1113 = vrot.lane.b32.xlu1 %v13021_v37, %s12236_s19  ;;  %v13151_v58 = vsel %vm1358_vm0, 0, %v1552_v23  ;;  %v3451_v19 = vperm.slane %v3443_v46, %v12689_v21  ;;  %v3452_v17 = vrot.slane %v13137_v47, 4  ;;  %v1100_v55 = vpop.permute.xlu0 %1099  ;;  %v13159_v38 = vsel %vm1358_vm0, 0, %v3426_v30 }
 0x1ba   : > { %19197 = vst [vmem:[#allocation76_spill] sm:$0xff] %v13134_v54  ;;  %v13154_v29 = vsel %vm1358_vm0, 0, %v3428_v53  ;;  %v19202_v12 = vshrl.u32 %v12617_v14, 16  ;;  %v13164_v32 = vperm.slane %v3170_v60, %v12672_v3  ;;  %v5100_v23 = vshrl.u32 %v4971_v43, 16  ;;  %v3021_v54 = vpop.permute.xlu1 %3020 }
 0x1bb   : > { %19198 = vst [vmem:[#allocation77_spill] sm:$0xff] %v13137_v47  ;;  %v13168_v31 = vrot.slane %v3451_v19, 4  ;;  %v13171_v46 = vsel %vm1358_vm0, %v3428_v53, %v3421_v1  ;;  %v13174_v18 = vperm.slane %v5098_v50, %v12672_v3  ;;  %v3152_v30 = vpack.i.b16 %v13005_v25, %v3051_v51  ;;  %v13194_v50 = vld [vmem:[%s18837_s4] ss:$0 sm:$0xff] }
 0x1bc   : > { %19199 = vst [vmem:[#allocation78_spill] sm:$0xff] %v13151_v58  ;;  %v3173_v8 = vpack.i.b16 %v3172_v4, %v19202_v12  ;;  %v13166_v58 = vpop.permute.xlu2 %3084  ;;  %v19206_v43 = vshrl.u32 %v12596_v6, 16  ;;  %v3153_v12 = vshrl.u32 %v3051_v51, 16  ;;  %v13184_v19 = vsel %vm1358_vm0, 0, %v3452_v17 }
 0x1bd   : > { %19200 = vst [vmem:[#allocation79_spill] sm:$0xff] %v13154_v29  ;;  %v13188_v53 = vsel %vm1358_vm0, 0, %v13168_v31  ;;  %v3465_v1 = vperm.slane %v3152_v30, %v12672_v3  ;;  %v19210_v30 = vrot.slane %v12779_v7, 4  ;;  %v739_v11 = vadd.f32 %v13141_v39, %v12502_v16 }
 0x1be   : > { %19201 = vst [vmem:[#allocation80_spill] sm:$0xff] %v13159_v38  ;;  %v13179_v4 = vperm.slane %v3173_v8, %v12672_v3  ;;  %v5101_v60 = vpack.i.b16 %v5100_v23, %v19206_v43  ;;  %v1002_v8 = vadd.f32 %v13194_v50, %v1001_v20  ;;  %v19209_v23 = vshrl.u32 %v13005_v25, 16 }
 0x1bf   : > { %19203 = vst [vmem:[#allocation81_spill] sm:$0xff] %v13168_v31  ;;  %v3466_v10 = vrot.slane %v3465_v1, 4  ;;  %v3469_v56 = vsel %vm1358_vm0, %v3465_v1, %v19210_v30  ;;  %1145 = vrot.lane.b32.xlu0 %v13021_v37, %s12238_s28  ;;  %v1211_v25 = vpack.i.b16 %v13012_v63, %v1100_v55  ;;  %v19250_v29 = vrot.slane %v13084_v0, 4 }
 0x1c0   : > { %19204 = vst [vmem:[#allocation82_spill] sm:$0xff] %v13171_v46  ;;  %v3155_v43 = vpack.i.b16 %v19209_v23, %v3153_v12  ;;  %v1023_v26 = vmul.f32 0.17677669, %v1002_v8  ;;  %v13209_v20 = vperm.slane %v5101_v60, %v12672_v3  ;;  %v3477_v6 = vperm.slane %v3469_v56, %v12689_v21  ;;  %3096 = vrot.lane.b32.xlu2 %v13026_v44, %s12238_s28  ;;  %v13223_v60 = vpop.f32.mrf.mxu1 }
 0x1c1   : > { %19205 = vst [vmem:[#allocation83_spill] sm:$0xff] %v13174_v18  ;;  %v3467_v12 = vsel %vm1358_vm0, %v3466_v10, %v12779_v7  ;;  %v1212_v8 = vshrl.u32 %v1100_v55, 16  ;;  %v3158_v23 = vpack.i.b16 %v3021_v54, %v12604_v9  ;;  %v13221_v30 = vpop.permute.xlu0 %3052  ;;  %v19214_v44 = vrot.slane %v12803_v33, 4 }
 0x1c2   : > { %19207 = vst [vmem:[#allocation84_spill] sm:$0xff] %v13184_v19  ;;  %v3491_v17 = vperm.slane %v3155_v43, %v12672_v3  ;;  %v13218_v1 = vpack.c.bf16 %v1023_v26, %v1023_v26  ;;  %v13226_v56 = vperm.slane %v3467_v12, %v12689_v21  ;;  %v13228_v43 = vrot.slane %v3477_v6, 4  ;;  %v13235_v26 = vpop.permute.xlu1 %3054 }
 0x1c3   : > { %19208 = vst [vmem:[#allocation85_spill] sm:$0xff] %v13188_v53  ;;  %v19215_v55 = vshrl.u32 %v13012_v63, 16  ;;  %v1565_v41 = vperm.slane %v1211_v25, %v12672_v3  ;;  %v3160_v12 = vshrl.u32 %v3021_v54, 16  ;;  %v19221_v63 = vshrl.u32 %v12604_v9, 16 }
 0x1c4   : > { %19211 = vst [vmem:[#allocation86_spill] sm:$0xff] %v13209_v20  ;;  %v3492_v14 = vrot.slane %v3491_v17, 4  ;;  %v3495_v51 = vsel %vm1358_vm0, %v3491_v17, %v19214_v44  ;;  %v13233_v7 = vpop.permute.xlu2 %3026  ;;  %1115 = vrot.lane.b32.xlu1 %v13218_v1, %s12236_s19  ;;  %v3478_v6 = vrot.slane %v13226_v56, 4  ;;  %v13246_v17 = vsel %vm1358_vm0, 0, %v13228_v43  ;;  %v709_v20 = vpop.f32.mrf.mxu0 }
 0x1c5   : > { %19212 = vst [vmem:[#allocation87_spill] sm:$0xff] %v13226_v56  ;;  %v3503_v10 = vperm.slane %v3495_v51, %v12689_v21  ;;  %v1214_v18 = vpack.i.b16 %v19215_v55, %v1212_v8  ;;  %v3166_v51 = vshrl.u32 %v13166_v58, 16  ;;  %v1566_v25 = vrot.slane %v1565_v41, 4 }
 0x1c6   : > { %19213 = vst [vmem:[#allocation88_spill] sm:$0xff] %v13228_v43  ;;  %v3493_v44 = vsel %vm1358_vm0, %v3492_v14, %v12803_v33  ;;  %v1569_v13 = vsel %vm1358_vm0, %v1565_v41, %v19219_v49  ;;  %v13263_v33 = vperm.slane %v3158_v23, %v12672_v3  ;;  %v3161_v55 = vpack.i.b16 %v3160_v12, %v19221_v63  ;;  %v1003_v63 = vpop.f32.mrf.mxu2 }
 0x1c7   : > { %19216 = vst [vmem:[#allocation89_spill] sm:$0xff] %v13246_v17  ;;  %v13253_v8 = vperm.slane %v3493_v44, %v12689_v21  ;;  %v13255_v54 = vrot.slane %v3503_v10, 4  ;;  %v1591_v52 = vperm.slane %v1214_v18, %v12672_v3  ;;  %v1567_v10 = vsel %vm1358_vm0, %v1566_v25, %v12986_v15  ;;  %1083 = vrot.lane.b32.xlu0 %v13218_v1, %s12237_s3 }
 0x1c8   : > { %v1577_v44 = vperm.slane %v1569_v13, %v12689_v21  ;;  %v13277_v41 = vsel %vm1358_vm0, 0, %v3478_v6  ;;  %v1573_v49 = vperm.slane %v1567_v10, %v12689_v21  ;;  %v19223_v23 = vrot.slane %v13002_v42, 4 }
 0x1c9   : > { %19217 = vst [vmem:[#allocation90_spill] sm:$0xff] %v13253_v8  ;;  %v13267_v14 = vsel %vm1358_vm0, 0, %v13255_v54  ;;  %v1592_v18 = vrot.slane %v1591_v52, 4  ;;  %v13286_v25 = vpop.permute.xlu0 %3086  ;;  %v710_v10 = vadd.f32 %v709_v20, %v12493_v5  ;;  %v3538_v15 = vperm.slane %v3161_v55, %v12672_v3 }
 0x1ca   : > { %19218 = vst [vmem:[#allocation91_spill] sm:$0xff] %v13255_v54  ;;  %v1595_v62 = vsel %vm1358_vm0, %v1591_v52, %v19223_v23  ;;  %v1580_v9 = vrot.slane %v1577_v44, 4  ;;  %v1578_v24 = vrot.slane %v1573_v49, 4  ;;  %v13295_v23 = vpop.permute.xlu1 %1101  ;;  %v1004_v55 = vadd.f32 %v13194_v50, %v1003_v63 }
 0x1cb   : > { %19220 = vst [vmem:[#allocation92_spill] sm:$0xff] %v13267_v14  ;;  %v1603_v12 = vperm.slane %v1595_v62, %v12689_v21  ;;  %v1593_v6 = vsel %vm1358_vm0, %v1592_v18, %v13002_v42  ;;  %v743_v42 = vpop.f32.mrf.mxu1  ;;  %v3520_v18 = vrot.slane %v13263_v33, 4  ;;  %v11443_v48 = vpack.c.bf16 %v710_v10, %v13046_v57 }
 0x1cc   : > { %19222 = vst [vmem:[#allocation93_spill] sm:$0xff] %v13277_v41  ;;  %v13293_v52 = vpop.permute.xlu2 %3088  ;;  %v13298_v44 = vsel %vm1358_vm0, 0, %v1580_v9  ;;  %v13301_v62 = vperm.slane %v1593_v6, %v12689_v21  ;;  %v13307_v20 = vsel %vm1358_vm0, 0, %v1578_v24  ;;  %v13310_v39 = vsel %vm1358_vm0, %v1580_v9, %v1573_v49  ;;  %v712_v41 = vpop.f32.mrf.mxu0 }
 0x1cd   : > { %19224 = vst [vmem:[#allocation94_spill] sm:$0xff] %v13298_v44  ;;  %v13303_v13 = vrot.slane %v1603_v12, 4  ;;  %v11463_v12 = vpack.c.bf16 %v739_v11, %v13057_v2  ;;  %v3194_v49 = vpack.i.b16 %v13233_v7, %v12647_v35  ;;  %v3196_v9 = vshrl.u32 %v13233_v7, 16 }
 0x1ce   : > { %19225 = vst [vmem:[#allocation95_spill] sm:$0xff] %v13301_v62  ;;  %v1604_v14 = vrot.slane %v13301_v62, 4  ;;  %v3164_v57 = vpack.i.b16 %v13166_v58, %v13221_v30  ;;  %v3546_v62 = vrot.slane %v3538_v15, 4  ;;  %v3165_v11 = vshrl.u32 %v13221_v30, 16 }
 0x1cf   : > { %19226 = vst [vmem:[#allocation96_spill] sm:$0xff] %v13303_v13  ;;  %v13317_v6 = vsel %vm1358_vm0, 0, %v13303_v13  ;;  %v1024_v13 = vmul.f32 0.17677669, %v1004_v55  ;;  %1147 = vrot.lane.b32.xlu0 %v13218_v1, %s12238_s28  ;;  %v19231_v2 = vshrl.u32 %v12647_v35, 16  ;;  %v13337_v7 = vperm.slane %v3194_v49, %v12672_v3 }
 0x1d0   : > { %19227 = vst [vmem:[#allocation97_spill] sm:$0xff] %v13307_v20  ;;  %v3517_v58 = vperm.slane %v3164_v57, %v12672_v3  ;;  %v3177_v55 = vshrl.u32 %v13235_v26, 16  ;;  %v3176_v30 = vpack.i.b16 %v13286_v25, %v13235_v26  ;;  %v742_v35 = vadd.f32 %v13223_v60, %v12502_v16 }
 0x1d1   : > { %19228 = vst [vmem:[#allocation98_spill] sm:$0xff] %v13310_v39  ;;  %v3197_v63 = vpack.i.b16 %v3196_v9, %v19231_v2  ;;  %v13340_v10 = vpack.c.bf16 %v1024_v13, %v1024_v13  ;;  %v13345_v24 = vpop.permute.xlu0 %1133  ;;  %v3178_v26 = vshrl.u32 %v13286_v25, 16 }
 0x1d2   : > { %19229 = vst [vmem:[#allocation99_spill] sm:$0xff] %v13317_v6  ;;  %v3521_v6 = vsel %vm1358_vm0, %v3517_v58, %v3520_v18  ;;  %v13353_v13 = vpop.permute.xlu1 %1103  ;;  %v3569_v18 = vperm.slane %v3176_v30, %v12672_v3  ;;  %v1223_v19 = vpack.i.b16 %v13345_v24, %v13295_v23 }
 0x1d3   : > { %11535 = vst [vmem:[#allocation2 + $0x30] sm:$0xff] %v11443_v48   ;;  %v13332_v48 = vsel %vm1358_vm0, 0, %v1604_v14  ;;  %v3518_v14 = vrot.slane %v3517_v58, 4  ;;  %1085 = vrot.lane.b32.xlu1 %v13340_v10, %s12237_s3  ;;  %v13363_v2 = vperm.slane %v3197_v63, %v12672_v3  ;;  %v746_v44 = vpop.f32.mrf.mxu1  ;;  %v3179_v63 = vpack.i.b16 %v3178_v26, %v3177_v55 }
 0x1d4   : > { %11538 = vst [vmem:[#allocation3 + $0x10] sm:$0xff] %v11463_v12   ;;  %v3167_v12 = vpack.i.b16 %v3166_v51, %v3165_v11  ;;  %v13351_v9 = vpop.permute.xlu2 %1105  ;;  %v3529_v51 = vperm.slane %v3521_v6, %v12689_v21  ;;  %v1006_v11 = vpop.f32.mrf.mxu2  ;;  %v744_v6 = vadd.f32 %v743_v42, %v12502_v16  ;;  %v19234_v42 = vrot.slane %v13164_v32, 4 }
 0x1d5   : > { %19230 = vst [vmem:[#allocation100_spill] sm:$0xff] %v13332_v48  ;;  %v3519_v58 = vsel %vm1358_vm0, %v3518_v14, %v13263_v33  ;;  %v3570_v33 = vrot.slane %v3569_v18, 4 }
 0x1d6   : > { %v3543_v57 = vperm.slane %v3167_v12, %v12672_v3  ;;  %v13369_v12 = vperm.slane %v3519_v58, %v12689_v21  ;;  %v13371_v49 = vrot.slane %v3529_v51, 4  ;;  %v3573_v14 = vsel %vm1358_vm0, %v3569_v18, %v19234_v42 }
 0x1d7   : > { %v3571_v18 = vsel %vm1358_vm0, %v3570_v33, %v13164_v32  ;;  %v11468_v55 = vpack.c.bf16 %v744_v6, %v742_v35  ;;  %v1007_v32 = vadd.f32 %v13194_v50, %v1006_v11  ;;  %v19243_v11 = vrot.slane %v13179_v4, 4 }
 0x1d8   : > { %19232 = vst [vmem:[#allocation101_spill] sm:$0xff] %v13369_v12  ;;  %v3544_v48 = vrot.slane %v3543_v57, 4  ;;  %v3547_v25 = vsel %vm1358_vm0, %v3543_v57, %v3546_v62  ;;  %v3530_v51 = vrot.slane %v13369_v12, 4  ;;  %v13385_v62 = vsel %vm1358_vm0, 0, %v13371_v49 }
 0x1d9   : > { %19233 = vst [vmem:[#allocation102_spill] sm:$0xff] %v13371_v49  ;;  %v3555_v60 = vperm.slane %v3547_v25, %v12689_v21  ;;  %v3581_v25 = vperm.slane %v3573_v14, %v12689_v21  ;;  %v13399_v42 = vperm.slane %v3571_v18, %v12689_v21  ;;  %v13405_v14 = vpop.permute.xlu0 %1071 }
 0x1da   : > { %v13374_v30 = vld [vmem:[#allocation2 + $0x34] sm:$0xf]  ;;  %v2992_v58 = vld [vmem:[#allocation2 + $0x30] sm:$0xf]  ;;  %19235 = vst [vmem:[#allocation103_spill] sm:$0xff] %v13385_v62  ;;  %v3545_v57 = vsel %vm1358_vm0, %v3544_v48, %v3538_v15  ;;  %v3595_v15 = vperm.slane %v3179_v63, %v12672_v3  ;;  %v1224_v48 = vshrl.u32 %v13295_v23, 16  ;;  %v13413_v18 = vpop.permute.xlu1 %1073 }
 0x1db   : > { %3038 = vrot.lane.b32.xlu2 %v13374_v30, %s12237_s3  ;;  %3068 = vrot.lane.b32.xlu0 %v2992_v58, %s12236_s19  ;;  %v13392_v26 = vperm.slane %v3545_v57, %v12689_v21  ;;  %v13394_v20 = vrot.slane %v3555_v60, 4  ;;  %19238 = vst [vmem:[#allocation106_spill] sm:$0xff] %v13399_v42  ;;  %v13401_v39 = vrot.slane %v3581_v25, 4  ;;  %v13416_v25 = vsel %vm1358_vm0, 0, %v3530_v51  ;;  %v13778_v49 = vld [vmem:[#allocation3 + $0x10] sm:$0xf] }
 0x1dc   : > { %v1076_v33 = vpop.permute.xlu2 %1075  ;;  %19241 = vst [vmem:[#allocation109_spill] sm:$0xff] %v13416_v25  ;;  %v3582_v63 = vrot.slane %v13399_v42, 4  ;;  %v3596_v17 = vrot.slane %v3595_v15, 4  ;;  %3036 = vrot.lane.b32.xlu1 %v2992_v58, %s12237_s3  ;;  %v3599_v6 = vsel %vm1358_vm0, %v3595_v15, %v19243_v11  ;;  %v1025_v51 = vmul.f32 0.17677669, %v1007_v32  ;;  %v1008_v60 = vpop.f32.mrf.mxu2 }
 0x1dd   : > { %19236 = vst [vmem:[#allocation104_spill] sm:$0xff] %v13392_v26  ;;  %v13409_v57 = vsel %vm1358_vm0, 0, %v13394_v20  ;;  %v13421_v54 = vsel %vm1358_vm0, 0, %v13401_v39  ;;  %v3607_v56 = vperm.slane %v3599_v6, %v12689_v21  ;;  %v1617_v32 = vperm.slane %v1223_v19, %v12672_v3  ;;  %v748_v11 = vpop.f32.mrf.mxu1 }
 0x1de   : > { %19237 = vst [vmem:[#allocation105_spill] sm:$0xff] %v13394_v20  ;;  %v3597_v43 = vsel %vm1358_vm0, %v3596_v17, %v13179_v4  ;;  %v13436_v35 = vsel %vm1358_vm0, 0, %v3582_v63  ;;  %v1225_v4 = vshrl.u32 %v13345_v24, 16  ;;  %v13446_v15 = vpack.c.bf16 %v1025_v51, %v1025_v51 }
 0x1df   : > { %19239 = vst [vmem:[#allocation107_spill] sm:$0xff] %v13401_v39  ;;  %v13439_v31 = vperm.slane %v3597_v43, %v12689_v21  ;;  %v13444_v17 = vrot.slane %v3607_v56, 4  ;;  %v13453_v63 = vadd.f32 %v712_v41, %v12493_v5  ;;  %v1253_v24 = vpack.i.b16 %v1076_v33, %v12698_v40 }
 0x1e0   : > { %19240 = vst [vmem:[#allocation108_spill] sm:$0xff] %v13409_v57  ;;  %v1226_v43 = vpack.i.b16 %v1225_v4, %v1224_v48  ;;  %v1618_v56 = vrot.slane %v1617_v32, 4  ;;  %v19247_v6 = vrot.slane %v13081_v45, 4  ;;  %v13461_v19 = vadd.f32 %v746_v44, %v12502_v16 }
 0x1e1   : > { %19242 = vst [vmem:[#allocation110_spill] sm:$0xff] %v13421_v54  ;;  %v1255_v53 = vshrl.u32 %v1076_v33, 16  ;;  %v13467_v48 = vsel %vm1358_vm0, 0, %v13444_v17  ;;  %v19249_v33 = vshrl.u32 %v12698_v40, 16  ;;  %v13737_v54 = vld [vmem:[#allocation3 + $0x14] sm:$0xf] }
 0x1e2   : > { %11539 = vst [vmem:[#allocation3 + $0x18] sm:$0xff] %v11468_v55   ;;  %v1621_v51 = vsel %vm1358_vm0, %v1617_v32, %v19247_v6  ;;  %v13463_v55 = vpop.permute.xlu0 %1135  ;;  %v13473_v23 = vpop.permute.xlu1 %3024  ;;  %v1619_v44 = vsel %vm1358_vm0, %v1618_v56, %v13081_v45  ;;  %v13482_v6 = vperm.slane %v1253_v24, %v12672_v3 }
 0x1e3   : > { %19244 = vst [vmem:[#allocation111_spill] sm:$0xff] %v13436_v35  ;;  %3100 = vrot.lane.b32.xlu2 %v2992_v58, %s12238_s28  ;;  %3102 = vrot.lane.b32.xlu0 %v13374_v30, %s12238_s28  ;;  %v1009_v58 = vadd.f32 %v13194_v50, %v1008_v60  ;;  %v1629_v41 = vperm.slane %v1621_v51, %v12689_v21 }
 0x1e4   : > { %19245 = vst [vmem:[#allocation112_spill] sm:$0xff] %v13439_v31  ;;  %v1643_v50 = vperm.slane %v1226_v43, %v12672_v3  ;;  %v13471_v4 = vpop.permute.xlu2 %1107  ;;  %3070 = vrot.lane.b32.xlu1 %v13374_v30, %s12236_s19  ;;  %v1256_v32 = vpack.i.b16 %v1255_v53, %v19249_v33  ;;  %v1229_v43 = vpack.i.b16 %v13405_v14, %v12632_v22 }
 0x1e5   : > { %19246 = vst [vmem:[#allocation113_spill] sm:$0xff] %v13444_v17  ;;  %v1026_v60 = vmul.f32 0.17677669, %v1009_v58  ;;  %v1625_v58 = vperm.slane %v1619_v44, %v12689_v21  ;;  %v1632_v51 = vrot.slane %v1629_v41, 4  ;;  %v751_v38 = vpop.f32.mrf.mxu1 }
 0x1e6   : > { %19248 = vst [vmem:[#allocation114_spill] sm:$0xff] %v13467_v48  ;;  %v1644_v47 = vrot.slane %v1643_v50, 4  ;;  %v1647_v45 = vsel %vm1358_vm0, %v1643_v50, %v19250_v29  ;;  %v13503_v29 = vperm.slane %v1256_v32, %v12672_v3  ;;  %v714_v50 = vpop.f32.mrf.mxu0  ;;  %v1664_v32 = vperm.slane %v1229_v43, %v12672_v3 }
 0x1e7   : > { %v1655_v40 = vperm.slane %v1647_v45, %v12689_v21  ;;  %v13493_v53 = vpack.c.bf16 %v1026_v60, %v1026_v60  ;;  %v1630_v24 = vrot.slane %v1625_v58, 4  ;;  %v13496_v33 = vsel %vm1358_vm0, 0, %v1632_v51 }
 0x1e8   : > { %19251 = vst [vmem:[#allocation115_spill] sm:$0xff] %v13496_v33  ;;  %v1645_v41 = vsel %vm1358_vm0, %v1644_v47, %v13084_v0  ;;  %v13511_v60 = vsel %vm1358_vm0, %v1632_v51, %v1625_v58  ;;  %v1231_v47 = vshrl.u32 %v13405_v14, 16  ;;  %v1243_v51 = vshrl.u32 %v13413_v18, 16 }
 0x1e9   : > { %v13506_v44 = vperm.slane %v1645_v41, %v12689_v21  ;;  %v13508_v45 = vrot.slane %v1655_v40, 4  ;;  %19254 = vst [vmem:[#allocation118_spill] sm:$0xff] %v13511_v60  ;;  %v1241_v41 = vpack.i.b16 %v13413_v18, %v12645_v34  ;;  %v715_v56 = vadd.f32 %v714_v50, %v12493_v5 }
 0x1ea   : > { %v13528_v60 = vpop.permute.xlu0 %3056  ;;  %v13531_v14 = vsel %vm1358_vm0, 0, %v1630_v24  ;;  %v19257_v0 = vshrl.u32 %v12632_v22, 16  ;;  %v13539_v46 = vpop.permute.xlu1 %3058  ;;  %v19258_v5 = vshrl.u32 %v12645_v34, 16  ;;  %v749_v24 = vadd.f32 %v748_v11, %v12502_v16  ;;  %v11932_v11 = vld [vmem:[#allocation2 + $0x18] sm:$0xf] }
 0x1eb   : > { %1117 = vrot.lane.b32.xlu2 %v13340_v10, %s12236_s19  ;;  %19252 = vst [vmem:[#allocation116_spill] sm:$0xff] %v13506_v44  ;;  %1089 = vrot.lane.b32.xlu0 %v13493_v53, %s12237_s3  ;;  %v1656_v40 = vrot.slane %v13506_v44, 4  ;;  %v13524_v58 = vsel %vm1358_vm0, 0, %v13508_v45  ;;  %v13537_v44 = vperm.slane %v1241_v41, %v12672_v3  ;;  %v11448_v8 = vpack.c.bf16 %v715_v56, %v13453_v63 }
 0x1ec   : > { %19253 = vst [vmem:[#allocation117_spill] sm:$0xff] %v13508_v45  ;;  %v1232_v33 = vpack.i.b16 %v1231_v47, %v19257_v0  ;;  %v3031_v45 = vpop.permute.xlu2 %3030  ;;  %v1244_v50 = vpack.i.b16 %v1243_v51, %v19258_v5  ;;  %1149 = vrot.lane.b32.xlu1 %v13340_v10, %s12238_s28  ;;  %v1672_v0 = vrot.slane %v1664_v32, 4  ;;  %v1235_v41 = vpack.i.b16 %v13463_v55, %v13353_v13 }
 0x1ed   : > { %19255 = vst [vmem:[#allocation119_spill] sm:$0xff] %v13524_v58  ;;  %v13549_v22 = vsel %vm1358_vm0, 0, %v1656_v40  ;;  %v11473_v34 = vpack.c.bf16 %v749_v24, %v13461_v19  ;;  %v1237_v63 = vshrl.u32 %v13463_v55, 16  ;;  %v3182_v56 = vpack.i.b16 %v13473_v23, %v11932_v11  ;;  %v11933_v11 = vld [vmem:[#allocation2 + $0x24] sm:$0xf] }
 0x1ee   : > { %19256 = vst [vmem:[#allocation120_spill] sm:$0xff] %v13531_v14  ;;  %v1690_v47 = vperm.slane %v1232_v33, %v12672_v3  ;;  %v13559_v51 = vperm.slane %v1244_v50, %v12672_v3  ;;  %v1669_v40 = vperm.slane %v1235_v41, %v12672_v3  ;;  %v3184_v5 = vshrl.u32 %v13473_v23, 16 }
 0x1ef   : > { %19259 = vst [vmem:[#allocation121_spill] sm:$0xff] %v13549_v22  ;;  %v19260_v19 = vshrl.u32 %v13353_v13, 16  ;;  %v3616_v24 = vperm.slane %v3182_v56, %v12672_v3  ;;  %v3218_v43 = vpack.i.b16 %v3031_v45, %v11933_v11  ;;  %v19261_v58 = vshrl.u32 %v12667_v59, 16 }
 0x1f0   : > { %11536 = vst [vmem:[#allocation2 + $0x38] sm:$0xff] %v11448_v8   ;;  %v1698_v8 = vrot.slane %v1690_v47, 4  ;;  %v1670_v50 = vrot.slane %v1669_v40, 4  ;;  %v1673_v18 = vsel %vm1358_vm0, %v1669_v40, %v1672_v0  ;;  %v3220_v33 = vshrl.u32 %v3031_v45, 16 }
 0x1f1   : > { %11540 = vst [vmem:[#allocation3 + $0x20] sm:$0xff] %v11473_v34   ;;  %v1238_v55 = vpack.i.b16 %v1237_v63, %v19260_v19  ;;  %v3185_v22 = vpack.i.b16 %v3184_v5, %v19261_v58  ;;  %v1681_v41 = vperm.slane %v1673_v18, %v12689_v21  ;;  %v752_v34 = vadd.f32 %v751_v38, %v12502_v16  ;;  %v753_v5 = vpop.f32.mrf.mxu1 }
 0x1f2   : > { %v13576_v13 = vperm.slane %v3218_v43, %v12672_v3  ;;  %v3091_v63 = vpop.permute.xlu0 %3090  ;;  %v1671_v56 = vsel %vm1358_vm0, %v1670_v50, %v1664_v32  ;;  %v19262_v0 = vshrl.u32 %v12743_v28, 16  ;;  %v3188_v45 = vpack.i.b16 %v13293_v52, %v13528_v60  ;;  %v13586_v58 = vpop.permute.xlu1 %1137 }
 0x1f3   : > { %1087 = vrot.lane.b32.xlu2 %v13446_v15, %s12237_s3  ;;  %v1695_v23 = vperm.slane %v1238_v55, %v12672_v3  ;;  %v13580_v19 = vperm.slane %v3185_v22, %v12672_v3  ;;  %v1677_v18 = vperm.slane %v1671_v56, %v12689_v21  ;;  %v1684_v38 = vrot.slane %v1681_v41, 4 }
 0x1f4   : > { %v3221_v59 = vpack.i.b16 %v3220_v33, %v19262_v0  ;;  %1151 = vrot.lane.b32.xlu1 %v13446_v15, %s12238_s28  ;;  %v3624_v28 = vrot.slane %v3616_v24, 4  ;;  %v13599_v11 = vpop.permute.xlu2 %3092  ;;  %v3189_v32 = vshrl.u32 %v13528_v60, 16  ;;  %v3621_v14 = vperm.slane %v3188_v45, %v12672_v3 }
 0x1f5   : > { %v1696_v40 = vrot.slane %v1695_v23, 4  ;;  %v1699_v43 = vsel %vm1358_vm0, %v1695_v23, %v1698_v8  ;;  %v1682_v50 = vrot.slane %v1677_v18, 4  ;;  %v13602_v41 = vsel %vm1358_vm0, 0, %v1684_v38 }
 0x1f6   : > { %v1707_v22 = vperm.slane %v1699_v43, %v12689_v21  ;;  %v13595_v33 = vperm.slane %v3221_v59, %v12672_v3  ;;  %19263 = vst [vmem:[#allocation122_spill] sm:$0xff] %v13602_v41  ;;  %v3650_v23 = vrot.slane %v13580_v19, 4  ;;  %v13614_v59 = vsel %vm1358_vm0, %v1684_v38, %v1677_v18 }
 0x1f7   : > { %v13597_v55 = vld [vmem:[#allocation2 + $0x38] sm:$0xf]  ;;  %v1697_v8 = vsel %vm1358_vm0, %v1696_v40, %v1690_v47  ;;  %19266 = vst [vmem:[#allocation125_spill] sm:$0xff] %v13614_v59  ;;  %v3201_v38 = vshrl.u32 %v13539_v46, 16  ;;  %v19269_v47 = vshrl.u32 %v13293_v52, 16  ;;  %v3622_v41 = vrot.slane %v3621_v14, 4 }
 0x1f8   : > { %3072 = vrot.lane.b32.xlu0 %v13597_v55, %s12236_s19  ;;  %v13609_v56 = vperm.slane %v1697_v8, %v12689_v21  ;;  %v13611_v0 = vrot.slane %v1707_v22, 4  ;;  %v13624_v8 = vsel %vm1358_vm0, 0, %v1682_v50  ;;  %v754_v22 = vadd.f32 %v753_v5, %v12502_v16  ;;  %v13728_v17 = vld [vmem:[#allocation3 + $0x24] sm:$0xf]  ;;  %v13808_v26 = vld [vmem:[#allocation3 + $0x20] sm:$0xf] }
 0x1f9   : > { %19267 = vst [vmem:[#allocation126_spill] sm:$0xff] %v13624_v8  ;;  %v3191_v40 = vpack.i.b16 %v19269_v47, %v3189_v32  ;;  %v3625_v60 = vsel %vm1358_vm0, %v3621_v14, %v3624_v28  ;;  %v3200_v59 = vpack.i.b16 %v3091_v63, %v13539_v46  ;;  %v3202_v14 = vshrl.u32 %v3091_v63, 16  ;;  %v13656_v47 = vld [vmem:[#allocation3 + $0x18] sm:$0xf]  ;;  %v13662_v63 = vld [vmem:[#allocation2 + $0x3c] sm:$0xf] }
 0x1fa   : > { %19264 = vst [vmem:[#allocation123_spill] sm:$0xff] %v13609_v56  ;;  %v13628_v18 = vsel %vm1358_vm0, 0, %v13611_v0  ;;  %v1708_v43 = vrot.slane %v13609_v56, 4  ;;  %v13636_v45 = vpop.permute.xlu0 %1077  ;;  %v3633_v50 = vperm.slane %v3625_v60, %v12689_v21  ;;  %v11478_v8 = vpack.c.bf16 %v754_v22, %v752_v34  ;;  %v13641_v48 = vpop.permute.xlu1 %1139 }
 0x1fb   : > { %19265 = vst [vmem:[#allocation124_spill] sm:$0xff] %v13611_v0  ;;  %1119 = vrot.lane.b32.xlu2 %v13446_v15, %s12236_s19  ;;  %v3623_v56 = vsel %vm1358_vm0, %v3622_v41, %v3616_v24  ;;  %v3647_v52 = vperm.slane %v3191_v40, %v12672_v3  ;;  %v3673_v46 = vperm.slane %v3200_v59, %v12672_v3  ;;  %v756_v60 = vpop.f32.mrf.mxu1  ;;  %v19289_v42 = vrot.slane %v13559_v51, 4 }
 0x1fc   : > { %19268 = vst [vmem:[#allocation127_spill] sm:$0xff] %v13628_v18  ;;  %3040 = vrot.lane.b32.xlu1 %v13597_v55, %s12237_s3  ;;  %v13649_v32 = vperm.slane %v3623_v56, %v12689_v21  ;;  %v13651_v34 = vrot.slane %v3633_v50, 4  ;;  %v1247_v28 = vpack.i.b16 %v13586_v58, %v13351_v9  ;;  %v13659_v24 = vsel %vm1358_vm0, 0, %v1708_v43  ;;  %v13671_v50 = vpop.permute.xlu2 %1141 }
 0x1fd   : > { %11541 = vst [vmem:[#allocation3 + $0x28] sm:$0xff] %v11478_v8   ;;  %v3648_v41 = vrot.slane %v3647_v52, 4  ;;  %v3651_v40 = vsel %vm1358_vm0, %v3647_v52, %v3650_v23  ;;  %v3203_v56 = vpack.i.b16 %v3202_v14, %v3201_v38  ;;  %v3674_v22 = vrot.slane %v3673_v46, 4 }
 0x1fe   : > { %19270 = vst [vmem:[#allocation128_spill] sm:$0xff] %v13649_v32  ;;  %v3634_v8 = vrot.slane %v13649_v32, 4  ;;  %v3659_v59 = vperm.slane %v3651_v40, %v12689_v21  ;;  %v1249_v43 = vshrl.u32 %v13586_v58, 16  ;;  %v13675_v23 = vsel %vm1358_vm0, 0, %v13651_v34 }
 0x1ff   : > { %19271 = vst [vmem:[#allocation129_spill] sm:$0xff] %v13651_v34  ;;  %v3649_v38 = vsel %vm1358_vm0, %v3648_v41, %v13580_v19  ;;  %v19274_v52 = vrot.slane %v13337_v7, 4  ;;  %v3699_v40 = vperm.slane %v3203_v56, %v12672_v3  ;;  %v3675_v0 = vsel %vm1358_vm0, %v3674_v22, %v13337_v7 }
 0x200   : > { %19272 = vst [vmem:[#allocation130_spill] sm:$0xff] %v13659_v24  ;;  %4976 = vrot.lane.b32.xlu0 %v13656_v47, %s12237_s3  ;;  %v13684_v5 = vperm.slane %v3649_v38, %v12689_v21  ;;  %v13686_v58 = vrot.slane %v3659_v59, 4  ;;  %v1721_v18 = vperm.slane %v1247_v28, %v12672_v3  ;;  %v13692_v24 = vperm.slane %v3675_v0, %v12689_v21 }
 0x201   : > { %19273 = vst [vmem:[#allocation131_spill] sm:$0xff] %v13675_v23  ;;  %v3677_v14 = vsel %vm1358_vm0, %v3673_v46, %v19274_v52  ;;  %v3700_v41 = vrot.slane %v3699_v40, 4  ;;  %v19278_v46 = vrot.slane %v13363_v2, 4  ;;  %v13701_v59 = vsel %vm1358_vm0, 0, %v3634_v8 }
 0x202   : > { %19275 = vst [vmem:[#allocation132_spill] sm:$0xff] %v13684_v5  ;;  %v3685_v19 = vperm.slane %v3677_v14, %v12689_v21  ;;  %v13698_v52 = vpop.permute.xlu0 %3060  ;;  %v19280_v28 = vshrl.u32 %v13351_v9, 16  ;;  %v13707_v22 = vpop.permute.xlu1 %3028  ;;  %v13711_v14 = vsel %vm1358_vm0, 0, %v13686_v58  ;;  %v1267_v25 = vshrl.u32 %v13636_v45, 16 }
 0x203   : > { %3042 = vrot.lane.b32.xlu2 %v13662_v63, %s12237_s3  ;;  %19276 = vst [vmem:[#allocation133_spill] sm:$0xff] %v13686_v58  ;;  %v3703_v56 = vsel %vm1358_vm0, %v3699_v40, %v19278_v46  ;;  %v3686_v40 = vrot.slane %v13692_v24, 4  ;;  %v3701_v8 = vsel %vm1358_vm0, %v3700_v41, %v13363_v2 }
 0x204   : > { %19277 = vst [vmem:[#allocation134_spill] sm:$0xff] %v13692_v24  ;;  %v3711_v7 = vperm.slane %v3703_v56, %v12689_v21  ;;  %v1250_v0 = vpack.i.b16 %v1249_v43, %v19280_v28  ;;  %v13714_v46 = vrot.slane %v3685_v19, 4  ;;  %3074 = vrot.lane.b32.xlu1 %v13662_v63, %s12236_s19  ;;  %v13721_v56 = vperm.slane %v3701_v8, %v12689_v21  ;;  %v13762_v20 = vpop.permute.xlu2 %1143 }
 0x205   : > { %19279 = vst [vmem:[#allocation135_spill] sm:$0xff] %v13701_v59  ;;  %v1722_v43 = vrot.slane %v1721_v18, 4  ;;  %v19285_v28 = vrot.slane %v13537_v44, 4 }
 0x206   : > { %19281 = vst [vmem:[#allocation136_spill] sm:$0xff] %v13711_v14  ;;  %v13723_v9 = vrot.slane %v3711_v7, 4  ;;  %v13733_v2 = vsel %vm1358_vm0, 0, %v13714_v46  ;;  %v1747_v8 = vperm.slane %v1250_v0, %v12672_v3  ;;  %v757_v7 = vadd.f32 %v756_v60, %v12502_v16 }
 0x207   : > { %19282 = vst [vmem:[#allocation137_spill] sm:$0xff] %v13714_v46  ;;  %v1725_v38 = vsel %vm1358_vm0, %v1721_v18, %v19285_v28  ;;  %v13743_v18 = vsel %vm1358_vm0, 0, %v3686_v40  ;;  %v1723_v19 = vsel %vm1358_vm0, %v1722_v43, %v13537_v44  ;;  %v1265_v44 = vpack.i.b16 %v13636_v45, %v12705_v36  ;;  %v758_v43 = vpop.f32.mrf.mxu1 }
 0x208   : > { %19283 = vst [vmem:[#allocation138_spill] sm:$0xff] %v13721_v56  ;;  %v1733_v41 = vperm.slane %v1725_v38, %v12689_v21  ;;  %4982 = vrot.lane.b32.xlu0 %v13728_v17, %s12237_s3  ;;  %v13747_v28 = vsel %vm1358_vm0, 0, %v13723_v9  ;;  %v1729_v0 = vperm.slane %v1723_v19, %v12689_v21  ;;  %v1748_v39 = vrot.slane %v1747_v8, 4 }
 0x209   : > { %19284 = vst [vmem:[#allocation139_spill] sm:$0xff] %v13723_v9  ;;  %v1751_v57 = vsel %vm1358_vm0, %v1747_v8, %v19289_v42  ;;  %v1259_v60 = vpack.i.b16 %v13641_v48, %v13471_v4  ;;  %v759_v31 = vadd.f32 %v758_v43, %v12502_v16 }
 0x20a   : > { %19286 = vst [vmem:[#allocation140_spill] sm:$0xff] %v13733_v2  ;;  %v1736_v35 = vrot.slane %v1733_v41, 4  ;;  %v1734_v62 = vrot.slane %v1729_v0, 4  ;;  %v1749_v19 = vsel %vm1358_vm0, %v1748_v39, %v13559_v51  ;;  %v1759_v41 = vperm.slane %v1751_v57, %v12689_v21  ;;  %v13768_v38 = vpop.permute.xlu0 %3094 }
 0x20b   : > { %19287 = vst [vmem:[#allocation141_spill] sm:$0xff] %v13743_v18  ;;  %4974 = vrot.lane.b32.xlu2 %v13737_v54, %s12237_s3  ;;  %v13774_v42 = vperm.slane %v1749_v19, %v12689_v21  ;;  %v13780_v12 = vpop.permute.xlu1 %3062  ;;  %v13788_v51 = vperm.slane %v1265_v44, %v12672_v3  ;;  %v19294_v19 = vshrl.u32 %v12705_v36, 16 }
 0x20c   : > { %19288 = vst [vmem:[#allocation142_spill] sm:$0xff] %v13747_v28  ;;  %v13771_v40 = vsel %vm1358_vm0, 0, %v1736_v35  ;;  %v13782_v39 = vrot.slane %v1759_v41, 4  ;;  %v13785_v57 = vsel %vm1358_vm0, %v1736_v35, %v1729_v0  ;;  %4972 = vrot.lane.b32.xlu1 %v13778_v49, %s12237_s3  ;;  %v1261_v41 = vshrl.u32 %v13641_v48, 16 }
 0x20d   : > { %19290 = vst [vmem:[#allocation143_spill] sm:$0xff] %v13771_v40  ;;  %v1760_v45 = vrot.slane %v13774_v42, 4  ;;  %v1268_v8 = vpack.i.b16 %v1267_v25, %v19294_v19  ;;  %v13800_v35 = vsel %vm1358_vm0, 0, %v1734_v62  ;;  %v19298_v62 = vshrl.u32 %v13471_v4, 16 }
 0x20e   : > { %19291 = vst [vmem:[#allocation144_spill] sm:$0xff] %v13774_v42  ;;  %v13804_v0 = vsel %vm1358_vm0, 0, %v13782_v39 }
 0x20f   : > { %19292 = vst [vmem:[#allocation145_spill] sm:$0xff] %v13782_v39  ;;  %v13813_v36 = vsel %vm1358_vm0, 0, %v1760_v45  ;;  %v1262_v48 = vpack.i.b16 %v1261_v41, %v19298_v62  ;;  %v11483_v39 = vpack.c.bf16 %v759_v31, %v757_v7  ;;  %v3212_v45 = vpack.i.b16 %v13599_v11, %v13698_v52  ;;  %v761_v40 = vpop.f32.mrf.mxu1 }
 0x210   : > { %19293 = vst [vmem:[#allocation146_spill] sm:$0xff] %v13785_v57  ;;  %v1773_v57 = vperm.slane %v1259_v60, %v12672_v3  ;;  %3106 = vrot.lane.b32.xlu0 %v13662_v63, %s12238_s28  ;;  %v19299_v60 = vrot.slane %v13482_v6, 4  ;;  %v3213_v62 = vshrl.u32 %v13698_v52, 16  ;;  %v3208_v7 = vshrl.u32 %v13707_v22, 16 }
 0x211   : > { %19295 = vst [vmem:[#allocation147_spill] sm:$0xff] %v13800_v35  ;;  %v1799_v41 = vperm.slane %v1262_v48, %v12672_v3  ;;  %v3725_v25 = vperm.slane %v3212_v45, %v12672_v3  ;;  %v19300_v48 = vrot.slane %v13503_v29, 4  ;;  %v19302_v35 = vshrl.u32 %v12747_v27, 16 }
 0x212   : > { %19296 = vst [vmem:[#allocation148_spill] sm:$0xff] %v13804_v0  ;;  %v1774_v19 = vrot.slane %v1773_v57, 4  ;;  %v1777_v44 = vsel %vm1358_vm0, %v1773_v57, %v19299_v60  ;;  %v11934_v57 = vld [vmem:[#allocation2 + $0x20] sm:$0xf]  ;;  %v13837_v60 = vpop.permute.xlu0 %1109 }
 0x213   : > { %19297 = vst [vmem:[#allocation149_spill] sm:$0xff] %v13813_v36  ;;  %4980 = vrot.lane.b32.xlu2 %v13808_v26, %s12237_s3  ;;  %v13827_v36 = vperm.slane %v1268_v8, %v12672_v3  ;;  %v1785_v4 = vperm.slane %v1777_v44, %v12689_v21  ;;  %v3206_v31 = vpack.i.b16 %v13707_v22, %v11934_v57  ;;  %v1800_v42 = vrot.slane %v1799_v41, 4 }
 0x214   : > { %v1775_v43 = vsel %vm1358_vm0, %v1774_v19, %v13482_v6  ;;  %11542 = vst [vmem:[#allocation3 + $0x30] sm:$0xff] %v11483_v39   ;;  %v1803_v52 = vsel %vm1358_vm0, %v1799_v41, %v19300_v48  ;;  %v13843_v6 = vld [vmem:[#allocation3 + $0x1c] sm:$0xf]  ;;  %v1082_v39 = vpop.permute.xlu2 %1081  ;;  %v19301_v22 = vshrl.u32 %v13599_v11, 16  ;;  %v13855_v41 = vpop.permute.xlu1 %1079  ;;  %v3726_v19 = vrot.slane %v3725_v25, 4 }
 0x215   : > { %v1781_v8 = vperm.slane %v1775_v43, %v12689_v21  ;;  %v1788_v44 = vrot.slane %v1785_v4, 4  ;;  %v1811_v45 = vperm.slane %v1803_v52, %v12689_v21  ;;  %v3209_v43 = vpack.i.b16 %v3208_v7, %v19302_v35  ;;  %v13851_v4 = vld [vmem:[#allocation3 + $0x2c] sm:$0xf]  ;;  %4978 = vrot.lane.b32.xlu1 %v13843_v6, %s12237_s3 }
 0x216   : > { %v3215_v57 = vpack.i.b16 %v19301_v22, %v3213_v62  ;;  %v1801_v52 = vsel %vm1358_vm0, %v1800_v42, %v13503_v29  ;;  %v3720_v29 = vperm.slane %v3206_v31, %v12672_v3  ;;  %v762_v11 = vadd.f32 %v761_v40, %v12502_v16 }
 0x217   : > { %v1786_v48 = vrot.slane %v1781_v8, 4  ;;  %v13858_v28 = vsel %vm1358_vm0, 0, %v1788_v44  ;;  %v13864_v27 = vperm.slane %v1801_v52, %v12689_v21  ;;  %v13866_v35 = vrot.slane %v1811_v45, 4 }
 0x218   : > { %19303 = vst [vmem:[#allocation150_spill] sm:$0xff] %v13858_v28  ;;  %v3751_v62 = vperm.slane %v3215_v57, %v12672_v3  ;;  %1121 = vrot.lane.b32.xlu0 %v13493_v53, %s12236_s19  ;;  %v13872_v7 = vsel %vm1358_vm0, %v1788_v44, %v1781_v8  ;;  %v3746_v42 = vperm.slane %v3209_v43, %v12672_v3  ;;  %v3728_v31 = vrot.slane %v3720_v29, 4  ;;  %v13889_v43 = vld [vmem:[#allocation3 + $0x28] sm:$0xf] }
 0x219   : > { %19304 = vst [vmem:[#allocation151_spill] sm:$0xff] %v13864_v27  ;;  %v13880_v45 = vsel %vm1358_vm0, 0, %v1786_v48  ;;  %v1812_v57 = vrot.slane %v13864_v27, 4  ;;  %v13886_v8 = vsel %vm1358_vm0, 0, %v13866_v35  ;;  %v3727_v44 = vsel %vm1358_vm0, %v3726_v19, %v3720_v29 }
 0x21a   : > { %19305 = vst [vmem:[#allocation152_spill] sm:$0xff] %v13866_v35  ;;  %v3752_v52 = vrot.slane %v3751_v62, 4  ;;  %v3754_v22 = vrot.slane %v3746_v42, 4  ;;  %v3733_v28 = vperm.slane %v3727_v44, %v12689_v21  ;;  %v1289_v27 = vpack.i.b16 %v1082_v39, %v13021_v37 }
 0x21b   : > { %19306 = vst [vmem:[#allocation153_spill] sm:$0xff] %v13872_v7  ;;  %4986 = vrot.lane.b32.xlu2 %v13851_v4, %s12237_s3  ;;  %v13895_v7 = vpop.permute.xlu0 %1111  ;;  %v3729_v40 = vsel %vm1358_vm0, %v3725_v25, %v3728_v31  ;;  %v1291_v29 = vshrl.u32 %v1082_v39, 16  ;;  %v763_v39 = vpop.f32.mrf.mxu1  ;;  %v13914_v31 = vsel %vm1358_vm0, 0, %v1812_v57  ;;  %v19328_v23 = vrot.slane %v13827_v36, 4 }
 0x21c   : > { %19307 = vst [vmem:[#allocation154_spill] sm:$0xff] %v13880_v45  ;;  %v3753_v48 = vsel %vm1358_vm0, %v3752_v52, %v3746_v42  ;;  %v1290_v45 = vshrl.u32 %v13021_v37, 16  ;;  %v3755_v35 = vsel %vm1358_vm0, %v3751_v62, %v3754_v22  ;;  %v3737_v0 = vperm.slane %v3729_v40, %v12689_v21  ;;  %v3035_v52 = vpop.permute.xlu2 %3034  ;;  %v13919_v40 = vpop.permute.xlu1 %3032 }
 0x21d   : > { %19308 = vst [vmem:[#allocation155_spill] sm:$0xff] %v13886_v8  ;;  %v13900_v19 = vperm.slane %v3753_v48, %v12689_v21  ;;  %v3738_v9 = vrot.slane %v3733_v28, 4  ;;  %v3763_v44 = vperm.slane %v3755_v35, %v12689_v21  ;;  %v13905_v42 = vperm.slane %v1289_v27, %v12672_v3  ;;  %4984 = vrot.lane.b32.xlu1 %v13889_v43, %s12237_s3 }
 0x21e   : > { %v1292_v25 = vpack.i.b16 %v1291_v29, %v1290_v45  ;;  %v3226_v62 = vshrl.u32 %v13768_v38, 16  ;;  %v3224_v22 = vpack.i.b16 %v13768_v38, %v13780_v12  ;;  %19310 = vst [vmem:[#allocation157_spill] sm:$0xff] %v13914_v31  ;;  %v3740_v27 = vrot.slane %v3737_v0, 4 }
 0x21f   : > { %19309 = vst [vmem:[#allocation156_spill] sm:$0xff] %v13900_v19  ;;  %v3764_v37 = vrot.slane %v13900_v19, 4  ;;  %v13917_v48 = vrot.slane %v3763_v44, 4  ;;  %v13922_v2 = vsel %vm1358_vm0, 0, %v3738_v9  ;;  %v3225_v29 = vshrl.u32 %v13780_v12, 16 }
 0x220   : > { %19312 = vst [vmem:[#allocation159_spill] sm:$0xff] %v13922_v2  ;;  %v3777_v38 = vperm.slane %v3224_v22, %v12672_v3  ;;  %v13930_v57 = vsel %vm1358_vm0, 0, %v3740_v27  ;;  %v764_v9 = vadd.f32 %v763_v39, %v12502_v16  ;;  %v13941_v35 = vsel %vm1358_vm0, %v3740_v27, %v3733_v28  ;;  %v11935_v39 = vld [vmem:[#allocation2 + $0x2c] sm:$0xf] }
 0x221   : > { %19311 = vst [vmem:[#allocation158_spill] sm:$0xff] %v13917_v48  ;;  %v13933_v0 = vsel %vm1358_vm0, 0, %v3764_v37  ;;  %v13937_v44 = vsel %vm1358_vm0, 0, %v13917_v48  ;;  %v13945_v22 = vperm.slane %v1292_v25, %v12672_v3  ;;  %v19317_v37 = vrot.slane %v13576_v13, 4 }
 0x222   : > { %19313 = vst [vmem:[#allocation160_spill] sm:$0xff] %v13930_v57  ;;  %v3778_v8 = vrot.slane %v3777_v38, 4  ;;  %v11488_v18 = vpack.c.bf16 %v764_v9, %v762_v11  ;;  %v3242_v27 = vpack.i.b16 %v3035_v52, %v11935_v39  ;;  %v3244_v12 = vshrl.u32 %v3035_v52, 16 }
 0x223   : > { %3104 = vrot.lane.b32.xlu2 %v13597_v55, %s12238_s28  ;;  %19314 = vst [vmem:[#allocation161_spill] sm:$0xff] %v13933_v0  ;;  %v3227_v55 = vpack.i.b16 %v3226_v62, %v3225_v29  ;;  %v3781_v31 = vsel %vm1358_vm0, %v3777_v38, %v19317_v37  ;;  %v13951_v46 = vpop.permute.xlu0 %3064  ;;  %v3243_v62 = vshrl.u32 %v11935_v39, 16  ;;  %v1271_v29 = vpack.i.b16 %v13671_v50, %v13837_v60 }
 0x224   : > { %19315 = vst [vmem:[#allocation162_spill] sm:$0xff] %v13937_v44  ;;  %v3789_v16 = vperm.slane %v3781_v31, %v12689_v21  ;;  %v3779_v25 = vsel %vm1358_vm0, %v3778_v8, %v13576_v13  ;;  %v1272_v38 = vshrl.u32 %v13837_v60, 16  ;;  %v19321_v8 = vshrl.u32 %v13671_v50, 16 }
 0x225   : > { %19316 = vst [vmem:[#allocation163_spill] sm:$0xff] %v13941_v35  ;;  %v3803_v28 = vperm.slane %v3227_v55, %v12672_v3  ;;  %v13961_v11 = vperm.slane %v3779_v25, %v12689_v21  ;;  %v19320_v55 = vrot.slane %v13595_v33, 4  ;;  %v3245_v13 = vpack.i.b16 %v3244_v12, %v3243_v62  ;;  %v13984_v12 = vpop.permute.xlu2 %3096 }
 0x226   : > { %11543 = vst [vmem:[#allocation3 + $0x38] sm:$0xff] %v11488_v18   ;;  %v13963_v9 = vrot.slane %v3789_v16, 4  ;;  %v13970_v18 = vperm.slane %v3242_v27, %v12672_v3  ;;  %v1274_v39 = vpack.i.b16 %v19321_v8, %v1272_v38  ;;  %v1278_v38 = vshrl.u32 %v12853_v61, 16 }
 0x227   : > { %19318 = vst [vmem:[#allocation164_spill] sm:$0xff] %v13961_v11  ;;  %v3804_v31 = vrot.slane %v3803_v28, 4  ;;  %v3807_v52 = vsel %vm1358_vm0, %v3803_v28, %v19320_v55  ;;  %v3790_v60 = vrot.slane %v13961_v11, 4  ;;  %v1825_v28 = vperm.slane %v1271_v29, %v12672_v3  ;;  %v13993_v55 = vpop.permute.xlu1 %3066 }
 0x228   : > { %19319 = vst [vmem:[#allocation165_spill] sm:$0xff] %v13963_v9  ;;  %v3815_v37 = vperm.slane %v3807_v52, %v12689_v21  ;;  %v13977_v16 = vsel %vm1358_vm0, 0, %v13963_v9  ;;  %v19325_v52 = vrot.slane %v13788_v51, 4  ;;  %v1851_v27 = vperm.slane %v1274_v39, %v12672_v3 }
 0x229   : > { %19322 = vst [vmem:[#allocation166_spill] sm:$0xff] %v13977_v16  ;;  %v3805_v25 = vsel %vm1358_vm0, %v3804_v31, %v13595_v33  ;;  %v1826_v31 = vrot.slane %v1825_v28, 4  ;;  %v14012_v33 = vsel %vm1358_vm0, 0, %v3790_v60  ;;  %v1302_v11 = vshrl.u32 %v13218_v1, 16 }
 0x22a   : > { %v13988_v50 = vperm.slane %v3805_v25, %v12689_v21  ;;  %v13990_v62 = vrot.slane %v3815_v37, 4  ;;  %v1829_v8 = vsel %vm1358_vm0, %v1825_v28, %v19325_v52  ;;  %v14005_v37 = vperm.slane %v3245_v13, %v12672_v3  ;;  %19327 = vst [vmem:[#allocation170_spill] sm:$0xff] %v14012_v33 }
 0x22b   : > { %1153 = vrot.lane.b32.xlu2 %v13493_v53, %s12238_s28  ;;  %v1837_v25 = vperm.slane %v1829_v8, %v12689_v21  ;;  %v14009_v24 = vpop.permute.xlu0 %3098  ;;  %v1827_v28 = vsel %vm1358_vm0, %v1826_v31, %v13788_v51  ;;  %v1277_v52 = vpack.i.b16 %v13855_v41, %v12853_v61  ;;  %v1852_v39 = vrot.slane %v1851_v27, 4 }
 0x22c   : > { %19323 = vst [vmem:[#allocation167_spill] sm:$0xff] %v13988_v50  ;;  %v14002_v45 = vsel %vm1358_vm0, 0, %v13990_v62  ;;  %v1833_v8 = vperm.slane %v1827_v28, %v12689_v21  ;;  %v1855_v60 = vsel %vm1358_vm0, %v1851_v27, %v19328_v23  ;;  %v1279_v31 = vshrl.u32 %v13855_v41, 16 }
 0x22d   : > { %19324 = vst [vmem:[#allocation168_spill] sm:$0xff] %v13990_v62  ;;  %v4946_v14 = vld [vmem:[#allocation3 + $0x38] sm:$0xf]  ;;  %v14019_v13 = vld [vmem:[#allocation3 + $0x3c] sm:$0xf]  ;;  %v1840_v58 = vrot.slane %v1837_v25, 4  ;;  %v1863_v61 = vperm.slane %v1855_v60, %v12689_v21  ;;  %v1872_v29 = vperm.slane %v1277_v52, %v12672_v3  ;;  %v1853_v23 = vsel %vm1358_vm0, %v1852_v39, %v13827_v36 }
 0x22e   : > { %19326 = vst [vmem:[#allocation169_spill] sm:$0xff] %v14002_v45  ;;  %4992 = vrot.lane.b32.xlu0 %v4946_v14, %s12237_s3  ;;  %4994 = vrot.lane.b32.xlu1 %v14019_v13, %s12237_s3  ;;  %v1838_v28 = vrot.slane %v1833_v8, 4  ;;  %v14039_v27 = vperm.slane %v1853_v23, %v12689_v21  ;;  %v1280_v51 = vpack.i.b16 %v1279_v31, %v1278_v38  ;;  %v1284_v36 = vshrl.u32 %v13895_v7, 16 }
 0x22f   : > { %v14034_v59 = vsel %vm1358_vm0, 0, %v1840_v58  ;;  %v14041_v34 = vrot.slane %v1863_v61, 4  ;;  %v14046_v41 = vsel %vm1358_vm0, %v1840_v58, %v1833_v8  ;;  %v1283_v25 = vpack.i.b16 %v13762_v20, %v13895_v7 }
 0x230   : > { %19329 = vst [vmem:[#allocation171_spill] sm:$0xff] %v14034_v59  ;;  %v14053_v39 = vsel %vm1358_vm0, 0, %v1838_v28  ;;  %v1880_v61 = vrot.slane %v1872_v29, 4  ;;  %v1898_v31 = vperm.slane %v1280_v51, %v12672_v3  ;;  %v1864_v58 = vrot.slane %v14039_v27, 4  ;;  %v11936_v59 = vld [vmem:[#allocation2 + $0x28] sm:$0xf]  ;;  %v14065_v28 = vpop.permute.xlu1 %1113 }
 0x231   : > { %19330 = vst [vmem:[#allocation172_spill] sm:$0xff] %v14039_v27  ;;  %v14057_v38 = vsel %vm1358_vm0, 0, %v14041_v34  ;;  %v19335_v8 = vshrl.u32 %v13762_v20, 16  ;;  %v1877_v60 = vperm.slane %v1283_v25, %v12672_v3  ;;  %v3230_v7 = vpack.i.b16 %v13919_v40, %v11936_v59 }
 0x232   : > { %19331 = vst [vmem:[#allocation173_spill] sm:$0xff] %v14041_v34  ;;  %v3231_v32 = vshrl.u32 %v11936_v59, 16  ;;  %v3232_v51 = vshrl.u32 %v13919_v40, 16  ;;  %v3267_v25 = vshrl.u32 %v13374_v30, 16 }
 0x233   : > { %5024 = vrot.lane.b32.xlu2 %v4946_v14, %s12236_s19  ;;  %19332 = vst [vmem:[#allocation174_spill] sm:$0xff] %v14046_v41  ;;  %v1286_v52 = vpack.i.b16 %v19335_v8, %v1284_v36  ;;  %v1906_v41 = vrot.slane %v1898_v31, 4  ;;  %v1878_v56 = vrot.slane %v1877_v60, 4  ;;  %v1881_v27 = vsel %vm1358_vm0, %v1877_v60, %v1880_v61  ;;  %v14077_v36 = vld [vmem:[#allocation3 + $0x34] sm:$0xf] }
 0x234   : > { %19333 = vst [vmem:[#allocation175_spill] sm:$0xff] %v14053_v39  ;;  %v14067_v39 = vpop.permute.xlu0 %1145  ;;  %v1889_v8 = vperm.slane %v1881_v27, %v12689_v21  ;;  %v3233_v34 = vpack.i.b16 %v3232_v51, %v3231_v32  ;;  %v3824_v61 = vperm.slane %v3230_v7, %v12672_v3 }
 0x235   : > { %19334 = vst [vmem:[#allocation176_spill] sm:$0xff] %v14057_v38  ;;  %v3039_v23 = vpop.permute.xlu2 %3038  ;;  %v1903_v20 = vperm.slane %v1286_v52, %v12672_v3  ;;  %v1879_v38 = vsel %vm1358_vm0, %v1878_v56, %v1872_v29  ;;  %v3236_v29 = vpack.i.b16 %v13984_v12, %v13951_v46 }
 0x236   : > { %5026 = vrot.lane.b32.xlu0 %v14019_v13, %s12236_s19  ;;  %5056 = vrot.lane.b32.xlu1 %v4946_v14, %s12238_s28  ;;  %v3266_v59 = vpack.i.b16 %v3039_v23, %v13374_v30  ;;  %v3268_v40 = vshrl.u32 %v3039_v23, 16  ;;  %v1885_v5 = vperm.slane %v1879_v38, %v12689_v21  ;;  %v1892_v14 = vrot.slane %v1889_v8, 4  ;;  %v14103_v23 = vld [vmem:[#allocation3 + $0x30] sm:$0xf] }
 0x237   : > { %v1904_v60 = vrot.slane %v1903_v20, 4  ;;  %v1907_v52 = vsel %vm1358_vm0, %v1903_v20, %v1906_v41  ;;  %v3850_v62 = vperm.slane %v3233_v34, %v12672_v3  ;;  %v3249_v20 = vshrl.u32 %v13993_v55, 16 }
 0x238   : > { %v1915_v45 = vperm.slane %v1907_v52, %v12689_v21  ;;  %v3269_v32 = vpack.i.b16 %v3268_v40, %v3267_v25  ;;  %v14091_v56 = vperm.slane %v3266_v59, %v12672_v3  ;;  %v1890_v27 = vrot.slane %v1885_v5, 4 }
 0x239   : > { %v1905_v30 = vsel %vm1358_vm0, %v1904_v60, %v1898_v31  ;;  %v14096_v41 = vsel %vm1358_vm0, 0, %v1892_v14  ;;  %v14108_v31 = vsel %vm1358_vm0, 0, %v1864_v58  ;;  %v14111_v51 = vsel %vm1358_vm0, %v1892_v14, %v1885_v5 }
 0x23a   : > { %19336 = vst [vmem:[#allocation177_spill] sm:$0xff] %v14096_v41  ;;  %v14099_v38 = vperm.slane %v1905_v30, %v12689_v21  ;;  %v14101_v34 = vrot.slane %v1915_v45, 4  ;;  %v3832_v25 = vrot.slane %v3824_v61, 4  ;;  %v3858_v40 = vrot.slane %v3850_v62, 4  ;;  %v14134_v30 = vpop.permute.xlu1 %1115 }
 0x23b   : > { %5022 = vrot.lane.b32.xlu2 %v14077_v36, %s12236_s19  ;;  %19339 = vst [vmem:[#allocation180_spill] sm:$0xff] %v14108_v31  ;;  %v14122_v60 = vperm.slane %v3269_v32, %v12672_v3  ;;  %v14125_v58 = vsel %vm1358_vm0, 0, %v1890_v27  ;;  %v3237_v52 = vshrl.u32 %v13951_v46, 16  ;;  %v3829_v14 = vperm.slane %v3236_v29, %v12672_v3 }
 0x23c   : > { %19337 = vst [vmem:[#allocation178_spill] sm:$0xff] %v14099_v38  ;;  %v14114_v8 = vpop.permute.xlu0 %1083  ;;  %v1916_v59 = vrot.slane %v14099_v38, 4  ;;  %v14119_v45 = vsel %vm1358_vm0, 0, %v14101_v34  ;;  %v3248_v46 = vpack.i.b16 %v14009_v24, %v13993_v55  ;;  %v19344_v29 = vshrl.u32 %v13984_v12, 16 }
 0x23d   : > { %19338 = vst [vmem:[#allocation179_spill] sm:$0xff] %v14101_v34  ;;  %v14105_v7 = vpop.permute.xlu2 %3100  ;;  %v3830_v34 = vrot.slane %v3829_v14, 4  ;;  %v3250_v38 = vshrl.u32 %v14009_v24, 16 }
 0x23e   : > { %19340 = vst [vmem:[#allocation181_spill] sm:$0xff] %v14111_v51  ;;  %5058 = vrot.lane.b32.xlu0 %v14019_v13, %s12238_s28  ;;  %5020 = vrot.lane.b32.xlu1 %v14103_v23, %s12236_s19  ;;  %v14137_v32 = vsel %vm1358_vm0, 0, %v1916_v59  ;;  %v3239_v5 = vpack.i.b16 %v19344_v29, %v3237_v52  ;;  %v3833_v13 = vsel %vm1358_vm0, %v3829_v14, %v3832_v25  ;;  %v1296_v25 = vshrl.u32 %v14065_v28, 16 }
 0x23f   : > { %19341 = vst [vmem:[#allocation182_spill] sm:$0xff] %v14119_v45  ;;  %v3841_v59 = vperm.slane %v3833_v13, %v12689_v21  ;;  %v3881_v27 = vperm.slane %v3248_v46, %v12672_v3  ;;  %v3831_v55 = vsel %vm1358_vm0, %v3830_v34, %v3824_v61  ;;  %v3251_v52 = vpack.i.b16 %v3250_v38, %v3249_v20 }
 0x240   : > { %19342 = vst [vmem:[#allocation183_spill] sm:$0xff] %v14125_v58  ;;  %v3855_v12 = vperm.slane %v3239_v5, %v12672_v3  ;;  %v14157_v24 = vperm.slane %v3831_v55, %v12689_v21  ;;  %v19346_v13 = vrot.slane %v13970_v18, 4  ;;  %v19357_v58 = vrot.slane %v13905_v42, 4 }
 0x241   : > { %19343 = vst [vmem:[#allocation184_spill] sm:$0xff] %v14137_v32  ;;  %v14159_v14 = vrot.slane %v3841_v59, 4  ;;  %v3882_v29 = vrot.slane %v3881_v27, 4  ;;  %v3907_v38 = vperm.slane %v3251_v52, %v12672_v3  ;;  %v1295_v52 = vpack.i.b16 %v14067_v39, %v14065_v28 }
 0x242   : > { %v3885_v46 = vsel %vm1358_vm0, %v3881_v27, %v19346_v13  ;;  %v3856_v32 = vrot.slane %v3855_v12, 4  ;;  %v3859_v61 = vsel %vm1358_vm0, %v3855_v12, %v3858_v40  ;;  %v3842_v5 = vrot.slane %v14157_v24, 4 }
 0x243   : > { %5016 = vrot.lane.b32.xlu2 %v13889_v43, %s12236_s19  ;;  %19345 = vst [vmem:[#allocation185_spill] sm:$0xff] %v14159_v14  ;;  %v3893_v34 = vperm.slane %v3885_v46, %v12689_v21  ;;  %v14174_v59 = vsel %vm1358_vm0, 0, %v14159_v14  ;;  %v3867_v55 = vperm.slane %v3859_v61, %v12689_v21  ;;  %v3883_v27 = vsel %vm1358_vm0, %v3882_v29, %v13970_v18 }
 0x244   : > { %v14169_v20 = vpop.permute.xlu0 %1147  ;;  %19347 = vst [vmem:[#allocation186_spill] sm:$0xff] %v14174_v59  ;;  %v3857_v13 = vsel %vm1358_vm0, %v3856_v32, %v3850_v62  ;;  %v14181_v40 = vperm.slane %v3883_v27, %v12689_v21  ;;  %v3908_v62 = vrot.slane %v3907_v38, 4  ;;  %v1297_v32 = vshrl.u32 %v14067_v39, 16 }
 0x245   : > { %v14164_v41 = vpop.permute.xlu2 %1117  ;;  %v14183_v12 = vrot.slane %v3893_v34, 4  ;;  %v14192_v46 = vperm.slane %v3857_v13, %v12689_v21  ;;  %v14194_v18 = vrot.slane %v3867_v55, 4  ;;  %v14198_v29 = vsel %vm1358_vm0, 0, %v3842_v5  ;;  %v14205_v28 = vpop.permute.xlu1 %1085 }
 0x246   : > { %19348 = vst [vmem:[#allocation187_spill] sm:$0xff] %v14181_v40  ;;  %4988 = vrot.lane.b32.xlu0 %v14103_v23, %s12237_s3  ;;  %5054 = vrot.lane.b32.xlu1 %v14077_v36, %s12238_s28  ;;  %v3894_v34 = vrot.slane %v14181_v40, 4  ;;  %v19352_v27 = vrot.slane %v14005_v37, 4  ;;  %v3909_v5 = vsel %vm1358_vm0, %v3908_v62, %v14005_v37  ;;  %v1298_v37 = vpack.i.b16 %v1297_v32, %v1296_v25 }
 0x247   : > { %19349 = vst [vmem:[#allocation188_spill] sm:$0xff] %v14183_v12  ;;  %v14209_v55 = vsel %vm1358_vm0, 0, %v14194_v18  ;;  %v14213_v39 = vsel %vm1358_vm0, 0, %v14183_v12  ;;  %v14223_v61 = vperm.slane %v3909_v5, %v12689_v21  ;;  %v1308_v25 = vshrl.u32 %v14134_v30, 16 }
 0x248   : > { %19350 = vst [vmem:[#allocation189_spill] sm:$0xff] %v14194_v18  ;;  %v3911_v45 = vsel %vm1358_vm0, %v3907_v38, %v19352_v27  ;;  %v14227_v51 = vsel %vm1358_vm0, 0, %v3894_v34  ;;  %v1326_v38 = vshrl.u32 %v13446_v15, 16 }
 0x249   : > { %19351 = vst [vmem:[#allocation190_spill] sm:$0xff] %v14198_v29  ;;  %v3919_v13 = vperm.slane %v3911_v45, %v12689_v21  ;;  %v1929_v45 = vperm.slane %v1295_v52, %v12672_v3 }
 0x24a   : > { %19353 = vst [vmem:[#allocation191_spill] sm:$0xff] %v14209_v55 }
 0x24b   : > { %19354 = vst [vmem:[#allocation192_spill] sm:$0xff] %v14213_v39  ;;  %5048 = vrot.lane.b32.xlu2 %v13889_v43, %s12238_s28  ;;  %v14229_v31 = vrot.slane %v3919_v13, 4  ;;  %v1930_v33 = vrot.slane %v1929_v45, 4  ;;  %v1933_v34 = vsel %vm1358_vm0, %v1929_v45, %v19357_v58  ;;  %v1955_v13 = vperm.slane %v1298_v37, %v12672_v3 }
 0x24c   : > { %19355 = vst [vmem:[#allocation193_spill] sm:$0xff] %v14227_v51  ;;  %v19359_v45 = vrot.slane %v13945_v22, 4 }
 0x24d   : > { %19356 = vst [vmem:[#allocation194_spill] sm:$0xff] %v14229_v31  ;;  %v1088_v62 = vpop.permute.xlu2 %1087  ;;  %v14235_v5 = vpop.permute.xlu0 %3068  ;;  %v14245_v32 = vsel %vm1358_vm0, 0, %v14229_v31  ;;  %v1931_v58 = vsel %vm1358_vm0, %v1930_v33, %v13905_v42  ;;  %v1956_v37 = vrot.slane %v1955_v13, 4  ;;  %v1301_v33 = vpack.i.b16 %v14114_v8, %v13218_v1  ;;  %v11945_v31 = vld [vmem:[#allocation3 + $0x10] sm:$0xf] }
 0x24e   : > { %v1325_v27 = vpack.i.b16 %v1088_v62, %v13446_v15  ;;  %v1327_v16 = vshrl.u32 %v1088_v62, 16  ;;  %19358 = vst [vmem:[#allocation195_spill] sm:$0xff] %v14245_v32  ;;  %v1941_v15 = vperm.slane %v1933_v34, %v12689_v21  ;;  %4990 = vrot.lane.b32.xlu0 %v14077_v36, %s12237_s3  ;;  %5018 = vrot.lane.b32.xlu1 %v13851_v4, %s12236_s19  ;;  %v3037_v44 = vpop.permute.xlu1 %3036  ;;  %v1309_v1 = vshrl.u32 %v14169_v20, 16 }
 0x24f   : > { %v1959_v43 = vsel %vm1358_vm0, %v1955_v13, %v19359_v45  ;;  %v1937_v34 = vperm.slane %v1931_v58, %v12689_v21 }
 0x250   : > { %v1328_v62 = vpack.i.b16 %v1327_v16, %v1326_v38  ;;  %v14258_v52 = vperm.slane %v1325_v27, %v12672_v3  ;;  %v1944_v9 = vrot.slane %v1941_v15, 4  ;;  %v1967_v36 = vperm.slane %v1959_v43, %v12689_v21 }
 0x251   : > { %v1957_v16 = vsel %vm1358_vm0, %v1956_v37, %v13945_v22  ;;  %v1303_v38 = vshrl.u32 %v14114_v8, 16  ;;  %v1942_v27 = vrot.slane %v1937_v34, 4 }
 0x252   : > { %v14266_v42 = vperm.slane %v1328_v62, %v12672_v3  ;;  %v14274_v43 = vsel %vm1358_vm0, 0, %v1944_v9  ;;  %v14277_v13 = vperm.slane %v1957_v16, %v12689_v21  ;;  %v14279_v15 = vrot.slane %v1967_v36, 4 }
 0x253   : > { %5008 = vrot.lane.b32.xlu2 %v13656_v47, %s12236_s19  ;;  %19360 = vst [vmem:[#allocation196_spill] sm:$0xff] %v14274_v43  ;;  %v14283_v62 = vsel %vm1358_vm0, %v1944_v9, %v1937_v34  ;;  %v1304_v8 = vpack.i.b16 %v1303_v38, %v1302_v11  ;;  %v1976_v36 = vperm.slane %v1301_v33, %v12672_v3  ;;  %v14296_v22 = vsel %vm1358_vm0, 0, %v1942_v27  ;;  %v11937_v9 = vld [vmem:[#allocation2 + $0x30] sm:$0xf] }
 0x254   : > { %19361 = vst [vmem:[#allocation197_spill] sm:$0xff] %v14277_v13  ;;  %v1968_v37 = vrot.slane %v14277_v13, 4  ;;  %v14291_v45 = vsel %vm1358_vm0, 0, %v14279_v15  ;;  %v1313_v11 = vpack.i.b16 %v14205_v28, %v13340_v10  ;;  %v1315_v16 = vshrl.u32 %v14205_v28, 16 }
 0x255   : > { %19362 = vst [vmem:[#allocation198_spill] sm:$0xff] %v14279_v15  ;;  %v14286_v58 = vpop.permute.xlu2 %1119  ;;  %v2002_v34 = vperm.slane %v1304_v8, %v12672_v3  ;;  %v1314_v15 = vshrl.u32 %v13340_v10, 16  ;;  %v14312_v33 = vpop.permute.xlu0 %3102  ;;  %v1984_v27 = vrot.slane %v1976_v36, 4  ;;  %v3255_v28 = vshrl.u32 %v11937_v9, 16 }
 0x256   : > { %19363 = vst [vmem:[#allocation199_spill] sm:$0xff] %v14283_v62  ;;  %v14303_v38 = vsel %vm1358_vm0, 0, %v1968_v37  ;;  %5052 = vrot.lane.b32.xlu0 %v14103_v23, %s12238_s28  ;;  %5010 = vrot.lane.b32.xlu1 %v13843_v6, %s12236_s19  ;;  %v14315_v8 = vperm.slane %v1313_v11, %v12672_v3  ;;  %v1307_v37 = vpack.i.b16 %v14169_v20, %v14134_v30  ;;  %v14320_v23 = vpop.permute.xlu1 %3070 }
 0x257   : > { %19364 = vst [vmem:[#allocation200_spill] sm:$0xff] %v14291_v45  ;;  %v1316_v10 = vpack.i.b16 %v1315_v16, %v1314_v15  ;;  %v3254_v45 = vpack.i.b16 %v3037_v44, %v11937_v9  ;;  %v2010_v13 = vrot.slane %v2002_v34, 4  ;;  %v3291_v16 = vshrl.u32 %v13662_v63, 16 }
 0x258   : > { %19365 = vst [vmem:[#allocation201_spill] sm:$0xff] %v14296_v22  ;;  %v1310_v22 = vpack.i.b16 %v1309_v1, %v1308_v25  ;;  %v1981_v62 = vperm.slane %v1307_v37, %v12672_v3  ;;  %v3261_v25 = vshrl.u32 %v14235_v5, 16 }
 0x259   : > { %19366 = vst [vmem:[#allocation202_spill] sm:$0xff] %v14303_v38  ;;  %v3256_v38 = vshrl.u32 %v3037_v44, 16  ;;  %v14328_v20 = vperm.slane %v1316_v10, %v12672_v3  ;;  %v3260_v10 = vpack.i.b16 %v14105_v7, %v14235_v5 }
 0x25a   : > { %v1982_v44 = vrot.slane %v1981_v62, 4  ;;  %v1985_v9 = vsel %vm1358_vm0, %v1981_v62, %v1984_v27  ;;  %v2007_v11 = vperm.slane %v1310_v22, %v12672_v3 }
 0x25b   : > { %5040 = vrot.lane.b32.xlu2 %v13656_v47, %s12238_s28  ;;  %v3257_v15 = vpack.i.b16 %v3256_v38, %v3255_v28  ;;  %v1993_v1 = vperm.slane %v1985_v9, %v12689_v21  ;;  %v3928_v47 = vperm.slane %v3254_v45, %v12672_v3  ;;  %v19381_v57 = vrot.slane %v14328_v20, 4 }
 0x25c   : > { %v1983_v38 = vsel %vm1358_vm0, %v1982_v44, %v1976_v36  ;;  %v2008_v28 = vrot.slane %v2007_v11, 4  ;;  %v2011_v30 = vsel %vm1358_vm0, %v2007_v11, %v2010_v13 }
 0x25d   : > { %v3043_v43 = vpop.permute.xlu2 %3042  ;;  %v3954_v37 = vperm.slane %v3257_v15, %v12672_v3  ;;  %v1989_v27 = vperm.slane %v1983_v38, %v12689_v21  ;;  %v1996_v0 = vrot.slane %v1993_v1, 4  ;;  %v2019_v9 = vperm.slane %v2011_v30, %v12689_v21 }
 0x25e   : > { %v3290_v62 = vpack.i.b16 %v3043_v43, %v13662_v63  ;;  %5050 = vrot.lane.b32.xlu0 %v13851_v4, %s12238_s28  ;;  %5042 = vrot.lane.b32.xlu1 %v13843_v6, %s12238_s28  ;;  %v2009_v5 = vsel %vm1358_vm0, %v2008_v28, %v2002_v34  ;;  %v3292_v45 = vshrl.u32 %v3043_v43, 16  ;;  %v19367_v63 = vshrl.u32 %v14105_v7, 16  ;;  %v14363_v1 = vpop.permute.xlu1 %1149  ;;  %v14365_v6 = vpop.permute.xlu0 %1089 }
 0x25f   : > { %v1994_v15 = vrot.slane %v1989_v27, 4  ;;  %v14356_v44 = vsel %vm1358_vm0, 0, %v1996_v0  ;;  %v14359_v30 = vperm.slane %v2009_v5, %v12689_v21  ;;  %v14361_v11 = vrot.slane %v2019_v9, 4 }
 0x260   : > { %v14351_v13 = vperm.slane %v3290_v62, %v12672_v3  ;;  %v3263_v36 = vpack.i.b16 %v19367_v63, %v3261_v25  ;;  %19368 = vst [vmem:[#allocation203_spill] sm:$0xff] %v14356_v44  ;;  %v14368_v43 = vsel %vm1358_vm0, %v1996_v0, %v1989_v27  ;;  %v3936_v34 = vrot.slane %v3928_v47, 4 }
 0x261   : > { %19369 = vst [vmem:[#allocation204_spill] sm:$0xff] %v14359_v30  ;;  %v3962_v38 = vrot.slane %v3954_v37, 4  ;;  %v3293_v7 = vpack.i.b16 %v3292_v45, %v3291_v16  ;;  %v14374_v25 = vsel %vm1358_vm0, 0, %v14361_v11  ;;  %v3933_v9 = vperm.slane %v3260_v10, %v12672_v3 }
 0x262   : > { %19370 = vst [vmem:[#allocation205_spill] sm:$0xff] %v14361_v11  ;;  %v14380_v5 = vsel %vm1358_vm0, 0, %v1994_v15  ;;  %v2020_v0 = vrot.slane %v14359_v30, 4  ;;  %v3959_v27 = vperm.slane %v3263_v36, %v12672_v3  ;;  %v3273_v62 = vshrl.u32 %v14320_v23, 16 }
 0x263   : > { %19371 = vst [vmem:[#allocation206_spill] sm:$0xff] %v14368_v43  ;;  %5036 = vrot.lane.b32.xlu2 %v13778_v49, %s12238_s28  ;;  %v14386_v45 = vperm.slane %v3293_v7, %v12672_v3  ;;  %v3934_v63 = vrot.slane %v3933_v9, 4  ;;  %v3937_v28 = vsel %vm1358_vm0, %v3933_v9, %v3936_v34  ;;  %v5123_v43 = vshrl.u32 %v13737_v54, 16  ;;  %v14397_v7 = vld [vmem:[#allocation3 + $0x8] sm:$0xf] }
 0x264   : > { %19372 = vst [vmem:[#allocation207_spill] sm:$0xff] %v14374_v25  ;;  %v3945_v10 = vperm.slane %v3937_v28, %v12689_v21  ;;  %v3960_v22 = vrot.slane %v3959_v27, 4  ;;  %v3963_v15 = vsel %vm1358_vm0, %v3959_v27, %v3962_v38  ;;  %v3272_v27 = vpack.i.b16 %v14312_v33, %v14320_v23 }
 0x265   : > { %19373 = vst [vmem:[#allocation208_spill] sm:$0xff] %v14380_v5  ;;  %v4975_v49 = vpop.permute.xlu2 %4974  ;;  %v3935_v16 = vsel %vm1358_vm0, %v3934_v63, %v3928_v47  ;;  %v3971_v36 = vperm.slane %v3963_v15, %v12689_v21  ;;  %v1319_v44 = vpack.i.b16 %v14363_v1, %v14164_v41  ;;  %v1321_v5 = vshrl.u32 %v14363_v1, 16 }
 0x266   : > { %5012 = vrot.lane.b32.xlu0 %v13808_v26, %s12236_s19  ;;  %5000 = vrot.lane.b32.xlu1 %v14397_v7, %s12236_s19  ;;  %v5122_v34 = vpack.i.b16 %v4975_v49, %v13737_v54  ;;  %v5124_v28 = vshrl.u32 %v4975_v49, 16  ;;  %v14403_v9 = vperm.slane %v3935_v16, %v12689_v21  ;;  %v14405_v38 = vrot.slane %v3945_v10, 4  ;;  %v14418_v54 = vpop.permute.xlu1 %1151 }
 0x267   : > { %v3961_v47 = vsel %vm1358_vm0, %v3960_v22, %v3954_v37  ;;  %v14413_v15 = vrot.slane %v3971_v36, 4  ;;  %v3274_v37 = vshrl.u32 %v14312_v33, 16  ;;  %v3985_v23 = vperm.slane %v3272_v27, %v12672_v3  ;;  %v14427_v22 = vld [vmem:[#allocation3 + $0xc] sm:$0xf] }
 0x268   : > { %v14411_v63 = vperm.slane %v3961_v47, %v12689_v21  ;;  %v5125_v25 = vpack.i.b16 %v5124_v28, %v5123_v43  ;;  %v14416_v11 = vperm.slane %v5122_v34, %v12672_v3  ;;  %v3946_v16 = vrot.slane %v14403_v9, 4 }
 0x269   : > { %v14423_v49 = vsel %vm1358_vm0, 0, %v14405_v38  ;;  %v14432_v43 = vsel %vm1358_vm0, 0, %v2020_v0  ;;  %v14438_v34 = vsel %vm1358_vm0, 0, %v14413_v15  ;;  %v3275_v30 = vpack.i.b16 %v3274_v37, %v3273_v62 }
 0x26a   : > { %19374 = vst [vmem:[#allocation209_spill] sm:$0xff] %v14416_v11  ;;  %v14440_v28 = vpop.permute.xlu0 %3072  ;;  %v14445_v27 = vperm.slane %v5125_v25, %v12672_v3  ;;  %v19377_v10 = vrot.slane %v14091_v56, 4  ;;  %v14454_v48 = vsel %vm1358_vm0, 0, %v3946_v16  ;;  %v2033_v11 = vperm.slane %v1319_v44, %v12672_v3 }
 0x26b   : > { %5034 = vrot.lane.b32.xlu2 %v14427_v22, %s12238_s28  ;;  %19375 = vst [vmem:[#allocation210_spill] sm:$0xff] %v14432_v43  ;;  %v3986_v43 = vrot.slane %v3985_v23, 4  ;;  %v4011_v62 = vperm.slane %v3275_v30, %v12672_v3  ;;  %v19379_v30 = vrot.slane %v14122_v60, 4 }
 0x26c   : > { %19376 = vst [vmem:[#allocation211_spill] sm:$0xff] %v14445_v27  ;;  %v3989_v36 = vsel %vm1358_vm0, %v3985_v23, %v19377_v10  ;;  %v19378_v23 = vshrl.u32 %v14164_v41, 16  ;;  %v19380_v41 = vrot.slane %v14315_v8, 4 }
 0x26d   : > { %v4981_v0 = vpop.permute.xlu2 %4980  ;;  %v3997_v25 = vperm.slane %v3989_v36, %v12689_v21  ;;  %v3987_v33 = vsel %vm1358_vm0, %v3986_v43, %v14091_v56  ;;  %v4012_v36 = vrot.slane %v4011_v62, 4  ;;  %v4015_v37 = vsel %vm1358_vm0, %v4011_v62, %v19379_v30 }
 0x26e   : > { %v1322_v10 = vpack.i.b16 %v1321_v5, %v19378_v23  ;;  %5014 = vrot.lane.b32.xlu0 %v13728_v17, %s12236_s19  ;;  %v14468_v1 = vperm.slane %v3987_v33, %v12689_v21  ;;  %v4023_v56 = vperm.slane %v4015_v37, %v12689_v21  ;;  %v2034_v43 = vrot.slane %v2033_v11, 4  ;;  %v14480_v17 = vpop.permute.xlu1 %3040  ;;  %v14490_v23 = vld [vmem:[#allocation3] sm:$0xf] }
 0x26f   : > { %v14470_v16 = vrot.slane %v3997_v25, 4  ;;  %v2037_v44 = vsel %vm1358_vm0, %v2033_v11, %v19380_v41  ;;  %v4013_v62 = vsel %vm1358_vm0, %v4012_v36, %v14122_v60  ;;  %v5159_v41 = vshrl.u32 %v13808_v26, 16 }
 0x270   : > { %v2059_v5 = vperm.slane %v1322_v10, %v12672_v3  ;;  %v3998_v33 = vrot.slane %v14468_v1, 4  ;;  %v2045_v37 = vperm.slane %v2037_v44, %v12689_v21  ;;  %v14495_v11 = vperm.slane %v4013_v62, %v12689_v21 }
 0x271   : > { %v14485_v25 = vsel %vm1358_vm0, 0, %v14470_v16  ;;  %v14497_v10 = vrot.slane %v4023_v56, 4  ;;  %v2035_v30 = vsel %vm1358_vm0, %v2034_v43, %v14315_v8  ;;  %v5158_v27 = vpack.i.b16 %v4981_v0, %v13808_v26 }
 0x272   : > { %v14502_v47 = vpop.permute.xlu0 %4976  ;;  %v2041_v60 = vperm.slane %v2035_v30, %v12689_v21  ;;  %v2048_v36 = vrot.slane %v2045_v37, 4  ;;  %v2060_v44 = vrot.slane %v2059_v5, 4  ;;  %v2063_v8 = vsel %vm1358_vm0, %v2059_v5, %v19381_v57 }
 0x273   : > { %4996 = vrot.lane.b32.xlu2 %v14490_v23, %s12236_s19  ;;  %v14508_v62 = vsel %vm1358_vm0, 0, %v14497_v10  ;;  %v5160_v43 = vshrl.u32 %v4981_v0, 16  ;;  %v14515_v2 = vsel %vm1358_vm0, 0, %v3998_v33  ;;  %v2071_v57 = vperm.slane %v2063_v8, %v12689_v21 }
 0x274   : > { %v2046_v30 = vrot.slane %v2041_v60, 4  ;;  %v2061_v35 = vsel %vm1358_vm0, %v2060_v44, %v14328_v20  ;;  %v14522_v32 = vsel %vm1358_vm0, 0, %v2048_v36  ;;  %v14531_v0 = vsel %vm1358_vm0, %v2048_v36, %v2041_v60  ;;  %v14552_v36 = vld [vmem:[#allocation3 + $0x4] sm:$0xf] }
 0x275   : > { %v4987_v19 = vpop.permute.xlu2 %4986  ;;  %19382 = vst [vmem:[#allocation212_spill] sm:$0xff] %v14522_v32  ;;  %v14525_v56 = vperm.slane %v2061_v35, %v12689_v21  ;;  %v5161_v5 = vpack.i.b16 %v5160_v43, %v5159_v41  ;;  %v14534_v33 = vperm.slane %v5158_v27, %v12672_v3  ;;  %v1338_v20 = vshrl.u32 %v13493_v53, 16 }
 0x276   : > { %5044 = vrot.lane.b32.xlu0 %v13808_v26, %s12238_s28  ;;  %19384 = vst [vmem:[#allocation214_spill] sm:$0xff] %v14531_v0  ;;  %v14538_v50 = vrot.slane %v2071_v57, 4  ;;  %v1337_v35 = vpack.i.b16 %v14365_v6, %v13493_v53  ;;  %v1339_v8 = vshrl.u32 %v14365_v6, 16  ;;  %v14543_v37 = vpop.permute.xlu1 %3074  ;;  %v14546_v26 = vsel %vm1358_vm0, 0, %v2046_v30 }
 0x277   : > { %19383 = vst [vmem:[#allocation213_spill] sm:$0xff] %v14525_v56  ;;  %v2072_v44 = vrot.slane %v14525_v56, 4  ;;  %v1331_v27 = vpack.i.b16 %v14418_v54, %v14286_v58  ;;  %v1333_v60 = vshrl.u32 %v14418_v54, 16  ;;  %v14561_v6 = vperm.slane %v5161_v5, %v12672_v3 }
 0x278   : > { %19385 = vst [vmem:[#allocation215_spill] sm:$0xff] %v14534_v33  ;;  %v14558_v53 = vsel %vm1358_vm0, 0, %v14538_v50  ;;  %v1340_v43 = vpack.i.b16 %v1339_v8, %v1338_v20  ;;  %v14564_v30 = vperm.slane %v1337_v35, %v12672_v3  ;;  %v19391_v41 = vshrl.u32 %v14286_v58, 16 }
 0x279   : > { %19386 = vst [vmem:[#allocation216_spill] sm:$0xff] %v14538_v50  ;;  %v14567_v57 = vsel %vm1358_vm0, 0, %v2072_v44  ;;  %v2085_v56 = vperm.slane %v1331_v27, %v12672_v3  ;;  %v5195_v20 = vshrl.u32 %v13851_v4, 16  ;;  %v5194_v35 = vpack.i.b16 %v4987_v19, %v13851_v4  ;;  %v14591_v4 = vld [vmem:[#allocation3 + $0x24] sm:$0xf] }
 0x27a   : > { %19387 = vst [vmem:[#allocation217_spill] sm:$0xff] %v14546_v26  ;;  %v1334_v0 = vpack.i.b16 %v1333_v60, %v19391_v41  ;;  %v14575_v5 = vperm.slane %v1340_v43, %v12672_v3  ;;  %v14579_v8 = vpop.permute.xlu0 %4982  ;;  %v19392_v54 = vrot.slane %v14258_v52, 4  ;;  %v5196_v27 = vshrl.u32 %v4987_v19, 16 }
 0x27b   : > { %4998 = vrot.lane.b32.xlu2 %v14552_v36, %s12236_s19  ;;  %19388 = vst [vmem:[#allocation218_spill] sm:$0xff] %v14558_v53  ;;  %v2086_v44 = vrot.slane %v2085_v56, 4  ;;  %v14589_v53 = vperm.slane %v5194_v35, %v12672_v3  ;;  %v19394_v19 = vrot.slane %v14266_v42, 4 }
 0x27c   : > { %19389 = vst [vmem:[#allocation219_spill] sm:$0xff] %v14561_v6  ;;  %v2089_v58 = vsel %vm1358_vm0, %v2085_v56, %v19392_v54  ;;  %v2111_v41 = vperm.slane %v1334_v0, %v12672_v3  ;;  %v5197_v60 = vpack.i.b16 %v5196_v27, %v5195_v20 }
 0x27d   : > { %19390 = vst [vmem:[#allocation220_spill] sm:$0xff] %v14567_v57  ;;  %v3105_v32 = vpop.permute.xlu2 %3104  ;;  %v2097_v43 = vperm.slane %v2089_v58, %v12689_v21  ;;  %v2087_v56 = vsel %vm1358_vm0, %v2086_v44, %v14258_v52  ;;  %v3285_v52 = vshrl.u32 %v14440_v28, 16  ;;  %v11943_v44 = vld [vmem:[#allocation2 + $0x38] sm:$0xf] }
 0x27e   : > { %19393 = vst [vmem:[#allocation221_spill] sm:$0xff] %v14589_v53  ;;  %5046 = vrot.lane.b32.xlu0 %v14591_v4, %s12238_s28  ;;  %v2112_v54 = vrot.slane %v2111_v41, 4  ;;  %v2115_v0 = vsel %vm1358_vm0, %v2111_v41, %v19394_v19  ;;  %v2093_v58 = vperm.slane %v2087_v56, %v12689_v21  ;;  %v14606_v6 = vperm.slane %v5197_v60, %v12672_v3  ;;  %v11944_v53 = vld [vmem:[#allocation3 + $0x18] sm:$0xf] }
 0x27f   : > { %v2100_v35 = vrot.slane %v2097_v43, 4  ;;  %v2123_v57 = vperm.slane %v2115_v0, %v12689_v21  ;;  %v3278_v33 = vpack.i.b16 %v14480_v17, %v11943_v44  ;;  %v3280_v19 = vshrl.u32 %v14480_v17, 16 }
 0x280   : > { %v2113_v26 = vsel %vm1358_vm0, %v2112_v54, %v14266_v42  ;;  %19395 = vst [vmem:[#allocation222_spill] sm:$0xff] %v14606_v6  ;;  %v2098_v20 = vrot.slane %v2093_v58, 4  ;;  %v14620_v42 = vpop.permute.xlu1 %4972  ;;  %v3279_v54 = vshrl.u32 %v11943_v44, 16  ;;  %v3284_v56 = vpack.i.b16 %v3105_v32, %v14440_v28 }
 0x281   : > { %v14613_v41 = vsel %vm1358_vm0, 0, %v2100_v35  ;;  %v14616_v27 = vperm.slane %v2113_v26, %v12689_v21  ;;  %v14618_v43 = vrot.slane %v2123_v57, 4  ;;  %v14623_v60 = vsel %vm1358_vm0, %v2100_v35, %v2093_v58 }
 0x282   : > { %19396 = vst [vmem:[#allocation223_spill] sm:$0xff] %v14613_v41  ;;  %v4032_v50 = vperm.slane %v3278_v33, %v12672_v3  ;;  %v3281_v35 = vpack.i.b16 %v3280_v19, %v3279_v54  ;;  %v3286_v44 = vshrl.u32 %v3105_v32, 16  ;;  %v14639_v17 = vsel %vm1358_vm0, 0, %v2098_v20  ;;  %v14644_v57 = vpop.permute.xlu0 %3106 }
 0x283   : > { %5028 = vrot.lane.b32.xlu2 %v14490_v23, %s12238_s28  ;;  %19397 = vst [vmem:[#allocation224_spill] sm:$0xff] %v14616_v27  ;;  %v2124_v0 = vrot.slane %v14616_v27, 4  ;;  %v14632_v26 = vsel %vm1358_vm0, 0, %v14618_v43  ;;  %v4037_v28 = vperm.slane %v3284_v56, %v12672_v3  ;;  %v5136_v32 = vshrl.u32 %v14502_v47, 16 }
 0x284   : > { %19398 = vst [vmem:[#allocation225_spill] sm:$0xff] %v14618_v43  ;;  %v4040_v27 = vrot.slane %v4032_v50, 4  ;;  %v5134_v43 = vpack.i.b16 %v14502_v47, %v11944_v53  ;;  %v4058_v33 = vperm.slane %v3281_v35, %v12672_v3  ;;  %v3287_v54 = vpack.i.b16 %v3286_v44, %v3285_v52 }
 0x285   : > { %19399 = vst [vmem:[#allocation226_spill] sm:$0xff] %v14623_v60  ;;  %v14627_v23 = vpop.permute.xlu2 %1153  ;;  %v14650_v20 = vsel %vm1358_vm0, 0, %v2124_v0  ;;  %v5135_v19 = vshrl.u32 %v11944_v53, 16  ;;  %v3297_v58 = vshrl.u32 %v14543_v37, 16  ;;  %v4038_v41 = vrot.slane %v4037_v28, 4 }
 0x286   : > { %19400 = vst [vmem:[#allocation227_spill] sm:$0xff] %v14632_v26  ;;  %5004 = vrot.lane.b32.xlu0 %v11945_v31, %s12236_s19  ;;  %v14653_v60 = vperm.slane %v5134_v43, %v12672_v3  ;;  %v4066_v26 = vrot.slane %v4058_v33, 4  ;;  %v4063_v35 = vperm.slane %v3287_v54, %v12672_v3  ;;  %v5171_v56 = vshrl.u32 %v14591_v4, 16 }
 0x287   : > { %19401 = vst [vmem:[#allocation228_spill] sm:$0xff] %v14639_v17  ;;  %v4041_v17 = vsel %vm1358_vm0, %v4037_v28, %v4040_v27  ;;  %v5137_v52 = vpack.i.b16 %v5136_v32, %v5135_v19  ;;  %v5170_v53 = vpack.i.b16 %v14579_v8, %v14591_v4  ;;  %v4039_v43 = vsel %vm1358_vm0, %v4038_v41, %v4032_v50 }
 0x288   : > { %19402 = vst [vmem:[#allocation229_spill] sm:$0xff] %v14650_v20  ;;  %v4049_v47 = vperm.slane %v4041_v17, %v12689_v21  ;;  %v4064_v0 = vrot.slane %v4063_v35, 4  ;;  %v4067_v44 = vsel %vm1358_vm0, %v4063_v35, %v4066_v26  ;;  %v5172_v27 = vshrl.u32 %v14579_v8, 16  ;;  %v4979_v4 = vpop.permute.xlu1 %4978 }
 0x289   : > { %v14670_v54 = vperm.slane %v4039_v43, %v12689_v21  ;;  %v4075_v17 = vperm.slane %v4067_v44, %v12689_v21  ;;  %v14676_v32 = vperm.slane %v5137_v52, %v12672_v3  ;;  %v1345_v41 = vshrl.u32 %v14627_v23, 16  ;;  %v11946_v43 = vld [vmem:[#allocation3 + $0x14] sm:$0xf] }
 0x28a   : > { %v4065_v50 = vsel %vm1358_vm0, %v4064_v0, %v4058_v33  ;;  %v5173_v26 = vpack.i.b16 %v5172_v27, %v5171_v56  ;;  %v14681_v8 = vperm.slane %v5170_v53, %v12672_v3  ;;  %v5111_v0 = vshrl.u32 %v11945_v31, 16  ;;  %v1122_v20 = vpop.permute.xlu0 %1121 }
 0x28b   : > { %5030 = vrot.lane.b32.xlu2 %v14552_v36, %s12238_s28  ;;  %v14672_v36 = vrot.slane %v4049_v47, 4  ;;  %v4050_v19 = vrot.slane %v14670_v54, 4  ;;  %v14689_v47 = vperm.slane %v4065_v50, %v12689_v21  ;;  %v14691_v52 = vrot.slane %v4075_v17, 4 }
 0x28c   : > { %19403 = vst [vmem:[#allocation230_spill] sm:$0xff] %v14681_v8  ;;  %v14703_v50 = vperm.slane %v5173_v26, %v12672_v3  ;;  %v5110_v17 = vpack.i.b16 %v14620_v42, %v11945_v31  ;;  %v5112_v33 = vshrl.u32 %v14620_v42, 16  ;;  %v3296_v27 = vpack.i.b16 %v14644_v57, %v14543_v37  ;;  %v11947_v8 = vld [vmem:[#allocation3 + $0x1c] sm:$0xf] }
 0x28d   : > { %v14667_v28 = vpop.permute.xlu2 %5024  ;;  %v14686_v35 = vsel %vm1358_vm0, 0, %v14672_v36  ;;  %v14699_v44 = vsel %vm1358_vm0, 0, %v14691_v52  ;;  %v14707_v6 = vsel %vm1358_vm0, 0, %v4050_v19  ;;  %v3298_v26 = vshrl.u32 %v14644_v57, 16 }
 0x28e   : > { %5006 = vrot.lane.b32.xlu0 %v11946_v43, %s12236_s19  ;;  %19404 = vst [vmem:[#allocation231_spill] sm:$0xff] %v14703_v50  ;;  %v14713_v39 = vperm.slane %v5110_v17, %v12672_v3  ;;  %v5147_v31 = vshrl.u32 %v11947_v8, 16  ;;  %v5113_v51 = vpack.i.b16 %v5112_v33, %v5111_v0  ;;  %v5146_v12 = vpack.i.b16 %v4979_v4, %v11947_v8 }
 0x28f   : > { %v5148_v19 = vshrl.u32 %v4979_v4, 16  ;;  %v1343_v56 = vpack.i.b16 %v14627_v23, %v1122_v20  ;;  %v3299_v17 = vpack.i.b16 %v3298_v26, %v3297_v58  ;;  %v4089_v55 = vperm.slane %v3296_v27, %v12672_v3 }
 0x290   : > { %19405 = vst [vmem:[#allocation232_spill] sm:$0xff] %v14713_v39  ;;  %v14726_v57 = vperm.slane %v5113_v51, %v12672_v3  ;;  %v1344_v33 = vshrl.u32 %v1122_v20, 16  ;;  %v19407_v4 = vrot.slane %v14351_v13, 4  ;;  %v4985_v26 = vpop.permute.xlu1 %4984  ;;  %v14737_v51 = vperm.slane %v5146_v12, %v12672_v3 }
 0x291   : > { %v5149_v18 = vpack.i.b16 %v5148_v19, %v5147_v31  ;;  %v4090_v8 = vrot.slane %v4089_v55, 4  ;;  %v4115_v23 = vperm.slane %v3299_v17, %v12672_v3  ;;  %v2137_v58 = vperm.slane %v1343_v56, %v12672_v3 }
 0x292   : > { %19406 = vst [vmem:[#allocation233_spill] sm:$0xff] %v14726_v57  ;;  %v4093_v0 = vsel %vm1358_vm0, %v4089_v55, %v19407_v4  ;;  %v19409_v19 = vrot.slane %v14386_v45, 4  ;;  %v1346_v17 = vpack.i.b16 %v1345_v41, %v1344_v33 }
 0x293   : > { %v4101_v37 = vperm.slane %v4093_v0, %v12689_v21  ;;  %19408 = vst [vmem:[#allocation234_spill] sm:$0xff] %v14737_v51  ;;  %v4091_v31 = vsel %vm1358_vm0, %v4090_v8, %v14351_v13  ;;  %v4116_v55 = vrot.slane %v4115_v23, 4  ;;  %v14752_v12 = vperm.slane %v5149_v18, %v12672_v3  ;;  %v11949_v51 = vld [vmem:[#allocation3 + $0x38] sm:$0xf] }
 0x294   : > { %v14746_v56 = vperm.slane %v4091_v31, %v12689_v21  ;;  %v2138_v13 = vrot.slane %v2137_v58, 4  ;;  %v19411_v8 = vrot.slane %v14564_v30, 4  ;;  %v2163_v41 = vperm.slane %v1346_v17, %v12672_v3  ;;  %v11948_v17 = vld [vmem:[#allocation3 + $0x28] sm:$0xf] }
 0x295   : > { %v14718_v40 = vpop.permute.xlu2 %5022  ;;  %v14748_v4 = vrot.slane %v4101_v37, 4  ;;  %19410 = vst [vmem:[#allocation235_spill] sm:$0xff] %v14752_v12  ;;  %v4117_v27 = vsel %vm1358_vm0, %v4116_v55, %v14386_v45  ;;  %v5182_v42 = vpack.i.b16 %v4985_v26, %v11948_v17 }
 0x296   : > { %5038 = vrot.lane.b32.xlu0 %v11946_v43, %s12238_s28  ;;  %v4119_v43 = vsel %vm1358_vm0, %v4115_v23, %v19409_v19  ;;  %v2141_v53 = vsel %vm1358_vm0, %v2137_v58, %v19411_v8  ;;  %v4102_v33 = vrot.slane %v14746_v56, 4  ;;  %v14766_v23 = vperm.slane %v4117_v27, %v12689_v21 }
 0x297   : > { %v4127_v0 = vperm.slane %v4119_v43, %v12689_v21  ;;  %v14763_v37 = vsel %vm1358_vm0, 0, %v14748_v4  ;;  %v2139_v55 = vsel %vm1358_vm0, %v2138_v13, %v14564_v30  ;;  %v2149_v58 = vperm.slane %v2141_v53, %v12689_v21 }
 0x298   : > { %v2164_v19 = vrot.slane %v2163_v41, 4  ;;  %v14775_v43 = vsel %vm1358_vm0, 0, %v4102_v33  ;;  %v2145_v27 = vperm.slane %v2139_v55, %v12689_v21  ;;  %v19412_v53 = vrot.slane %v14575_v5, 4 }
 0x299   : > { %v14768_v18 = vrot.slane %v4127_v0, 4  ;;  %v2152_v45 = vrot.slane %v2149_v58, 4  ;;  %v4128_v33 = vrot.slane %v14766_v23, 4  ;;  %v5776_v12 = vperm.slane %v5182_v42, %v12672_v3 }
 0x29a   : > { %v2165_v30 = vsel %vm1358_vm0, %v2164_v19, %v14575_v5  ;;  %v2167_v13 = vsel %vm1358_vm0, %v2163_v41, %v19412_v53  ;;  %v2150_v8 = vrot.slane %v2145_v27, 4  ;;  %v5183_v19 = vshrl.u32 %v11948_v17, 16 }
 0x29b   : > { %v14782_v0 = vsel %vm1358_vm0, 0, %v14768_v18  ;;  %v14793_v55 = vperm.slane %v2165_v30, %v12689_v21  ;;  %v2175_v20 = vperm.slane %v2167_v13, %v12689_v21  ;;  %v14797_v58 = vsel %vm1358_vm0, 0, %v2152_v45 }
 0x29c   : > { %19414 = vst [vmem:[#allocation237_spill] sm:$0xff] %v14797_v58  ;;  %v5184_v5 = vshrl.u32 %v4985_v26, 16  ;;  %v14804_v30 = vsel %vm1358_vm0, %v2152_v45, %v2145_v27  ;;  %v14807_v13 = vsel %vm1358_vm0, 0, %v2150_v8  ;;  %v5231_v17 = vshrl.u32 %v11949_v51, 16  ;;  %v11950_v27 = vld [vmem:[#allocation3 + $0x3c] sm:$0xf] }
 0x29d   : > { %v5017_v31 = vpop.permute.xlu2 %5016  ;;  %19413 = vst [vmem:[#allocation236_spill] sm:$0xff] %v14793_v55  ;;  %v14801_v39 = vrot.slane %v2175_v20, 4 }
 0x29e   : > { %5002 = vrot.lane.b32.xlu0 %v14427_v22, %s12236_s19  ;;  %v2176_v22 = vrot.slane %v14793_v55, 4  ;;  %19416 = vst [vmem:[#allocation239_spill] sm:$0xff] %v14804_v30  ;;  %v5185_v50 = vpack.i.b16 %v5184_v5, %v5183_v19  ;;  %v5189_v59 = vshrl.u32 %v5017_v31, 16  ;;  %v5243_v19 = vshrl.u32 %v11950_v27, 16 }
 0x29f   : > { %19415 = vst [vmem:[#allocation238_spill] sm:$0xff] %v14801_v39  ;;  %v14816_v45 = vsel %vm1358_vm0, 0, %v14801_v39  ;;  %v5784_v30 = vrot.slane %v5776_v12, 4 }
 0x2a0   : > { %v4993_v57 = vpop.permute.xlu0 %4992  ;;  %v4995_v41 = vpop.permute.xlu1 %4994  ;;  %19417 = vst [vmem:[#allocation240_spill] sm:$0xff] %v14807_v13  ;;  %v14812_v20 = vsel %vm1358_vm0, 0, %v2176_v22  ;;  %v5802_v8 = vperm.slane %v5185_v50, %v12672_v3  ;;  %v19420_v50 = vrot.slane %v14689_v47, 4 }
 0x2a1   : > { %v5230_v29 = vpack.i.b16 %v4993_v57, %v11949_v51  ;;  %v5232_v53 = vshrl.u32 %v4993_v57, 16  ;;  %19418 = vst [vmem:[#allocation241_spill] sm:$0xff] %v14812_v20  ;;  %v5242_v55 = vpack.i.b16 %v4995_v41, %v11950_v27  ;;  %v5244_v26 = vshrl.u32 %v4995_v41, 16 }
 0x2a2   : > { %19419 = vst [vmem:[#allocation242_spill] sm:$0xff] %v14816_v45  ;;  %v5810_v51 = vrot.slane %v5802_v8, 4  ;;  %v14831_v27 = vsel %vm1358_vm0, 0, %v4128_v33 }
 0x2a3   : > { %v5233_v42 = vpack.i.b16 %v5232_v53, %v5231_v17  ;;  %v5984_v5 = vperm.slane %v5230_v29, %v12672_v3  ;;  %v5245_v39 = vpack.i.b16 %v5244_v26, %v5243_v19  ;;  %v14824_v58 = vperm.slane %v5242_v55, %v12672_v3 }
 0x2a4   : > { %v4077_v53 = vsel %vm1358_vm0, 0, %v19420_v50  ;;  %v4664_v55 = vsel %vm1358_vm0, %v14672_v36, %v14670_v54 }
 0x2a5   : > { %v5049_v14 = vpop.permute.xlu2 %5048  ;;  %v6010_v20 = vperm.slane %v5233_v42, %v12672_v3  ;;  %v5992_v29 = vrot.slane %v5984_v5, 4 }
 0x2a6   : > { %5032 = vrot.lane.b32.xlu0 %v14397_v7, %s12238_s28  ;;  %v5188_v57 = vpack.i.b16 %v5049_v14, %v5017_v31  ;;  %v5190_v22 = vshrl.u32 %v5049_v14, 16  ;;  %v14835_v31 = vperm.slane %v5245_v39, %v12672_v3 }
 0x2a7   : > { %v6018_v7 = vrot.slane %v6010_v20, 4 }
 0x2a8   : > { %v5191_v17 = vpack.i.b16 %v5190_v22, %v5189_v59  ;;  %v5781_v41 = vperm.slane %v5188_v57, %v12672_v3  ;;  %v5057_v26 = vpop.permute.xlu1 %5056  ;;  %v14842_v57 = vpop.permute.xlu0 %5026  ;;  %v19423_v22 = vshrl.u32 %v14667_v28, 16 }
 0x2a9   : > { %v5236_v33 = vpack.i.b16 %v5057_v26, %v14667_v28  ;;  %v5238_v14 = vshrl.u32 %v5057_v26, 16 }
 0x2aa   : > { %v5782_v19 = vrot.slane %v5781_v41, 4  ;;  %v5785_v42 = vsel %vm1358_vm0, %v5781_v41, %v5784_v30  ;;  %v5807_v59 = vperm.slane %v5191_v17, %v12672_v3 }
 0x2ab   : > { %v5793_v50 = vperm.slane %v5785_v42, %v12689_v21  ;;  %v5989_v36 = vperm.slane %v5236_v33, %v12672_v3  ;;  %v5239_v42 = vpack.i.b16 %v5238_v14, %v19423_v22 }
 0x2ac   : > { %v5783_v13 = vsel %vm1358_vm0, %v5782_v19, %v5776_v12  ;;  %v5808_v45 = vrot.slane %v5807_v59, 4  ;;  %v5811_v54 = vsel %vm1358_vm0, %v5807_v59, %v5810_v51  ;;  %v4668_v19 = vperm.slane %v4664_v55, %v12672_v3 }
 0x2ad   : > { %v14852_v30 = vperm.slane %v5783_v13, %v12689_v21  ;;  %v14854_v17 = vrot.slane %v5793_v50, 4  ;;  %v5819_v41 = vperm.slane %v5811_v54, %v12689_v21  ;;  %v5990_v26 = vrot.slane %v5989_v36, 4 }
 0x2ae   : > { %v5809_v39 = vsel %vm1358_vm0, %v5808_v45, %v5802_v8  ;;  %v5993_v12 = vsel %vm1358_vm0, %v5989_v36, %v5992_v29  ;;  %v6015_v8 = vperm.slane %v5239_v42, %v12672_v3  ;;  %v19427_v29 = vrot.slane %v14686_v35, 4 }
 0x2af   : > { %19421 = vst [vmem:[#allocation243_spill] sm:$0xff] %v14852_v30  ;;  %v5794_v51 = vrot.slane %v14852_v30, 4  ;;  %v14865_v13 = vsel %vm1358_vm0, 0, %v14854_v17  ;;  %v14868_v59 = vperm.slane %v5809_v39, %v12689_v21  ;;  %v14870_v33 = vrot.slane %v5819_v41, 4 }
 0x2b0   : > { %19422 = vst [vmem:[#allocation244_spill] sm:$0xff] %v14854_v17  ;;  %v5991_v28 = vsel %vm1358_vm0, %v5990_v26, %v5984_v5  ;;  %v6001_v45 = vperm.slane %v5993_v12, %v12689_v21  ;;  %v4670_v14 = vsel %vm1358_vm0, %v19427_v29, %v14707_v6  ;;  %v6016_v36 = vrot.slane %v6015_v8, 4  ;;  %v14953_v50 = vpop.permute.xlu1 %5020 }
 0x2b1   : > { %19424 = vst [vmem:[#allocation245_spill] sm:$0xff] %v14865_v13  ;;  %v14880_v55 = vsel %vm1358_vm0, 0, %v5794_v51  ;;  %v14884_v22 = vsel %vm1358_vm0, 0, %v14870_v33  ;;  %v14888_v5 = vperm.slane %v5991_v28, %v12689_v21  ;;  %v6019_v35 = vsel %vm1358_vm0, %v6015_v8, %v6018_v7 }
 0x2b2   : > { %19425 = vst [vmem:[#allocation246_spill] sm:$0xff] %v14868_v59  ;;  %v14891_v54 = vrot.slane %v6001_v45, 4  ;;  %v6027_v41 = vperm.slane %v6019_v35, %v12689_v21  ;;  %v4674_v42 = vperm.slane %v4670_v14, %v12672_v3  ;;  %v4683_v26 = vsel %vm1358_vm0, %v14691_v52, %v14689_v47 }
 0x2b3   : > { %19426 = vst [vmem:[#allocation247_spill] sm:$0xff] %v14870_v33  ;;  %v6002_v6 = vrot.slane %v14888_v5, 4  ;;  %v6017_v28 = vsel %vm1358_vm0, %v6016_v36, %v6010_v20  ;;  %v19430_v7 = vrot.slane %v14699_v44, 4  ;;  %v4687_v47 = vperm.slane %v4683_v26, %v12672_v3  ;;  %v14933_v26 = vpop.permute.xlu2 %5008 }
 0x2b4   : > { %19428 = vst [vmem:[#allocation248_spill] sm:$0xff] %v14880_v55  ;;  %v14903_v51 = vsel %vm1358_vm0, 0, %v14891_v54  ;;  %v14913_v29 = vperm.slane %v6017_v28, %v12689_v21  ;;  %v14915_v14 = vrot.slane %v6027_v41, 4  ;;  %v4675_v52 = vrot.slane %v4674_v42, 4 }
 0x2b5   : > { %19429 = vst [vmem:[#allocation249_spill] sm:$0xff] %v14884_v22  ;;  %v4689_v45 = vsel %vm1358_vm0, %v19430_v7, %v4077_v53  ;;  %v14910_v8 = vsel %vm1358_vm0, 0, %v6002_v6  ;;  %v4702_v20 = vsel %vm1358_vm0, %v14748_v4, %v14746_v56  ;;  %v19431_v44 = vrot.slane %v14763_v37, 4 }
 0x2b6   : > { %v4693_v35 = vperm.slane %v4689_v45, %v12672_v3  ;;  %v14929_v6 = vsel %vm1358_vm0, 0, %v14915_v14  ;;  %v4676_v28 = vsel %vm1358_vm0, %v4675_v52, %v4668_v19  ;;  %v4706_v4 = vperm.slane %v4702_v20, %v12672_v3  ;;  %v5059_v20 = vpop.permute.xlu0 %5058 }
 0x2b7   : > { %v4708_v53 = vsel %vm1358_vm0, %v19431_v44, %v14775_v43  ;;  %v4721_v37 = vsel %vm1358_vm0, %v14768_v18, %v14766_v23  ;;  %v4680_v7 = vperm.slane %v4676_v28, %v12689_v21  ;;  %v19432_v44 = vrot.slane %v14782_v0, 4 }
 0x2b8   : > { %v4712_v42 = vperm.slane %v4708_v53, %v12672_v3  ;;  %v4694_v56 = vrot.slane %v4693_v35, 4  ;;  %v4725_v19 = vperm.slane %v4721_v37, %v12672_v3  ;;  %v5250_v28 = vshrl.u32 %v5059_v20, 16 }
 0x2b9   : > { %v4727_v53 = vsel %vm1358_vm0, %v19432_v44, %v14831_v27  ;;  %v19433_v44 = vshrl.u32 %v14842_v57, 16  ;;  %v19434_v36 = vrot.slane %v14824_v58, 4  ;;  %v19437_v33 = vrot.slane %v14495_v11, 4 }
 0x2ba   : > { %v4713_v45 = vrot.slane %v4712_v42, 4  ;;  %v4695_v12 = vsel %vm1358_vm0, %v4694_v56, %v4687_v47  ;;  %v4731_v52 = vperm.slane %v4727_v53, %v12672_v3  ;;  %v5248_v42 = vpack.i.b16 %v5059_v20, %v14842_v57 }
 0x2bb   : > { %v4699_v23 = vperm.slane %v4695_v12, %v12689_v21  ;;  %v4911_v47 = vshrl.u32 %v4680_v7, 16  ;;  %v5251_v53 = vpack.i.b16 %v5250_v28, %v19433_v44  ;;  %v4681_v20 = vrot.slane %v4680_v7, 4 }
 0x2bc   : > { %v4714_v18 = vsel %vm1358_vm0, %v4713_v45, %v4706_v4  ;;  %v4732_v27 = vrot.slane %v4731_v52, 4  ;;  %v6041_v39 = vperm.slane %v5248_v42, %v12672_v3 }
 0x2bd   : > { %v4718_v0 = vperm.slane %v4714_v18, %v12689_v21  ;;  %v4910_v37 = vpack.i.b16 %v4699_v23, %v4680_v7  ;;  %v4912_v12 = vshrl.u32 %v4699_v23, 16  ;;  %v4700_v43 = vrot.slane %v4699_v23, 4 }
 0x2be   : > { %v4733_v4 = vsel %vm1358_vm0, %v4732_v27, %v4725_v19  ;;  %v6042_v52 = vrot.slane %v6041_v39, 4  ;;  %v6045_v56 = vsel %vm1358_vm0, %v6041_v39, %v19434_v36  ;;  %v6067_v28 = vperm.slane %v5251_v53, %v12672_v3 }
 0x2bf   : > { %v4923_v45 = vshrl.u32 %v4718_v0, 16  ;;  %v4737_v41 = vperm.slane %v4733_v4, %v12689_v21  ;;  %v6922_v18 = vunpack.c.l.b16 %v4910_v37  ;;  %v6053_v57 = vperm.slane %v6045_v56, %v12689_v21 }
 0x2c0   : > { %v4913_v42 = vpack.i.b16 %v4912_v12, %v4911_v47  ;;  %v4682_v44 = vsel %vm1358_vm0, 0, %v4681_v20  ;;  %v6043_v7 = vsel %vm1358_vm0, %v6042_v52, %v14824_v58  ;;  %v4701_v27 = vsel %vm1358_vm0, 0, %v4700_v43 }
 0x2c1   : > { %v4922_v19 = vpack.i.b16 %v4737_v41, %v4718_v0  ;;  %v4924_v23 = vshrl.u32 %v4737_v41, 16  ;;  %v14972_v37 = vperm.slane %v6043_v7, %v12689_v21  ;;  %v14974_v4 = vrot.slane %v6053_v57, 4 }
 0x2c2   : > { %v6068_v39 = vrot.slane %v6067_v28, 4  ;;  %v19435_v36 = vrot.slane %v14835_v31, 4  ;;  %v7068_v20 = vunpack.c.l.b16 %v4913_v42  ;;  %v4719_v57 = vrot.slane %v4718_v0, 4 }
 0x2c3   : > { %v6923_v47 = vunpack.c.l.b16 %v4922_v19  ;;  %v4925_v12 = vpack.i.b16 %v4924_v23, %v4923_v45  ;;  %v6054_v58 = vrot.slane %v14972_v37, 4  ;;  %v14983_v43 = vsel %vm1358_vm0, 0, %v14974_v4 }
 0x2c4   : > { %v6071_v56 = vsel %vm1358_vm0, %v6067_v28, %v19435_v36  ;;  %v6069_v52 = vsel %vm1358_vm0, %v6068_v39, %v14835_v31  ;;  %v4720_v23 = vsel %vm1358_vm0, 0, %v4719_v57  ;;  %v4738_v36 = vrot.slane %v4737_v41, 4  ;;  %v19476_v39 = vld [vmem:[#allocation160_spill] sm:$0xff] }
 0x2c5   : > { %v6079_v53 = vperm.slane %v6071_v56, %v12689_v21  ;;  %v6931_v7 = vpack.c.b16 %v6923_v47, %v6922_v18  ;;  %v14988_v35 = vperm.slane %v6069_v52, %v12689_v21  ;;  %v14994_v45 = vsel %vm1358_vm0, 0, %v6054_v58 }
 0x2c6   : > { %v7069_v42 = vunpack.c.l.b16 %v4925_v12  ;;  %v4916_v18 = vpack.i.b16 %v4701_v27, %v4682_v44  ;;  %v4917_v58 = vshrl.u32 %v4682_v44, 16  ;;  %v4918_v57 = vshrl.u32 %v4701_v27, 16 }
 0x2c7   : > { %v14990_v28 = vrot.slane %v6079_v53, 4  ;;  %v6979_v56 = vsel %vm6932_vm1, %v6931_v7, 0  ;;  %v4739_v53 = vsel %vm1358_vm0, 0, %v4738_v36  ;;  %v4929_v41 = vshrl.u32 %v4720_v23, 16 }
 0x2c8   : > { %6981 = vmatpush.bf16.xpose.msra.mxu3 %v6979_v56  ;;  %v7077_v47 = vpack.c.b16 %v7069_v42, %v7068_v20  ;;  %v4928_v12 = vpack.i.b16 %v4739_v53, %v4720_v23  ;;  %v7213_v52 = vunpack.c.l.b16 %v4916_v18  ;;  %v4930_v19 = vshrl.u32 %v4739_v53, 16 }
 0x2c9   : > { %v15001_v0 = vsel %vm1358_vm0, 0, %v14990_v28  ;;  %v19436_v31 = vrot.slane %v14411_v63, 4  ;;  %v4025_v56 = vsel %vm1358_vm0, 0, %v19437_v33  ;;  %v4919_v42 = vpack.i.b16 %v4918_v57, %v4917_v58  ;;  %v5041_v57 = vpop.permute.xlu2 %5040 }
 0x2ca   : > { %v7124_v7 = vsel %vm6932_vm1, %v7077_v47, 0  ;;  %v7214_v20 = vunpack.c.l.b16 %v4928_v12  ;;  %v4588_v44 = vsel %vm1358_vm0, %v14405_v38, %v14403_v9  ;;  %v19438_v27 = vrot.slane %v14423_v49, 4 }
 0x2cb   : > { %v3973_v22 = vsel %vm1358_vm0, 0, %v19436_v31  ;;  %7126 = vmatpush.bf16.xpose.msrb.mxu0 %v7124_v7  ;;  %v4931_v36 = vpack.i.b16 %v4930_v19, %v4929_v41  ;;  %v4592_v18 = vperm.slane %v4588_v44, %v12672_v3  ;;  %v4607_v33 = vsel %vm1358_vm0, %v14413_v15, %v14411_v63 }
 0x2cc   : > { %v4594_v23 = vsel %vm1358_vm0, %v19438_v27, %v14454_v48  ;;  %v7222_v47 = vpack.c.b16 %v7214_v20, %v7213_v52  ;;  %v7358_v53 = vunpack.c.l.b16 %v4919_v42  ;;  %v4611_v58 = vperm.slane %v4607_v33, %v12672_v3  ;;  %v11951_v33 = vld [vmem:[#allocation3 + $0x30] sm:$0xf] }
 0x2cd   : > { %v4598_v31 = vperm.slane %v4594_v23, %v12672_v3  ;;  %v19439_v9 = vrot.slane %v14438_v34, 4  ;;  %v7359_v49 = vunpack.c.l.b16 %v4931_v36  ;;  %v4626_v19 = vsel %vm1358_vm0, %v14470_v16, %v14468_v1 }
 0x2ce   : > { %v7269_v41 = vsel %vm6932_vm1, %v7222_v47, 0  ;;  %v4630_v63 = vperm.slane %v4626_v19, %v12672_v3  ;;  %v19440_v15 = vrot.slane %v14485_v25, 4  ;;  %v19441_v25 = vrot.slane %v14508_v62, 4  ;;  %v4989_v47 = vpop.permute.xlu0 %4988 }
 0x2cf   : > { %v4613_v38 = vsel %vm1358_vm0, %v19439_v9, %v3973_v22  ;;  %v4599_v12 = vrot.slane %v4598_v31, 4  ;;  %v4645_v22 = vsel %vm1358_vm0, %v14497_v10, %v14495_v11  ;;  %7271 = vmatpush.bf16.xpose.msrb.mxu1 %v7269_v41  ;;  %v7367_v52 = vpack.c.b16 %v7359_v49, %v7358_v53 }
 0x2d0   : > { %v4617_v48 = vperm.slane %v4613_v38, %v12672_v3  ;;  %v4632_v34 = vsel %vm1358_vm0, %v19440_v15, %v14515_v2  ;;  %v4649_v42 = vperm.slane %v4645_v22, %v12672_v3  ;;  %v4651_v2 = vsel %vm1358_vm0, %v19441_v25, %v4025_v56 }
 0x2d1   : > { %v4600_v7 = vsel %vm1358_vm0, %v4599_v12, %v4592_v18  ;;  %v4636_v1 = vperm.slane %v4632_v34, %v12672_v3  ;;  %v5140_v44 = vpack.i.b16 %v5041_v57, %v14933_v26  ;;  %v7414_v11 = vsel %vm6932_vm1, %v7367_v52, 0 }
 0x2d2   : > { %v4618_v20 = vrot.slane %v4617_v48, 4  ;;  %v15044_v16 = vperm.slane %v4600_v7, %v12689_v21  ;;  %v4655_v23 = vperm.slane %v4651_v2, %v12672_v3  ;;  %7416 = vmatpush.bf16.xpose.msrb.mxu2 %v7414_v11  ;;  %v5142_v18 = vshrl.u32 %v5041_v57, 16 }
 0x2d3   : > { %v4637_v27 = vrot.slane %v4636_v1, 4  ;;  %v5573_v31 = vperm.slane %v5140_v44, %v12672_v3  ;;  %v5207_v62 = vshrl.u32 %v11951_v33, 16  ;;  %v5206_v9 = vpack.i.b16 %v4989_v47, %v11951_v33 }
 0x2d4   : > { %v4619_v10 = vsel %vm1358_vm0, %v4618_v20, %v4611_v58  ;;  %v4656_v53 = vrot.slane %v4655_v23, 4  ;;  %v5208_v38 = vshrl.u32 %v4989_v47, 16  ;;  %v19442_v12 = vshrl.u32 %v14933_v26, 16 }
 0x2d5   : > { %v15055_v36 = vperm.slane %v4619_v10, %v12689_v21  ;;  %v4638_v56 = vsel %vm1358_vm0, %v4637_v27, %v4630_v63  ;;  %v5574_v19 = vrot.slane %v5573_v31, 4  ;;  %v19443_v41 = vrot.slane %v14653_v60, 4 }
 0x2d6   : > { %v4642_v58 = vperm.slane %v4638_v56, %v12689_v21  ;;  %v5143_v48 = vpack.i.b16 %v5142_v18, %v19442_v12  ;;  %v4657_v57 = vsel %vm1358_vm0, %v4656_v53, %v4649_v42  ;;  %v5209_v34 = vpack.i.b16 %v5208_v38, %v5207_v62  ;;  %v19457_v38 = vld [vmem:[#allocation186_spill] sm:$0xff] }
 0x2d7   : > { %v4886_v49 = vpack.i.b16 %v15055_v36, %v15044_v16  ;;  %v5577_v15 = vsel %vm1358_vm0, %v5573_v31, %v19443_v41  ;;  %v15069_v63 = vperm.slane %v5206_v9, %v12672_v3  ;;  %v4661_v22 = vperm.slane %v4657_v57, %v12689_v21  ;;  %v5055_v41 = vpop.permute.xlu1 %5054  ;;  %v19478_v31 = vld [vmem:[#allocation156_spill] sm:$0xff]  ;;  %v19479_v42 = vld [vmem:[#allocation158_spill] sm:$0xff] }
 0x2d8   : > { %v5575_v7 = vsel %vm1358_vm0, %v5574_v19, %v14653_v60  ;;  %v5585_v26 = vperm.slane %v5577_v15, %v12689_v21  ;;  %v5599_v1 = vperm.slane %v5143_v48, %v12672_v3  ;;  %v15081_v25 = vperm.slane %v5209_v34, %v12672_v3 }
 0x2d9   : > { %v6920_v52 = vunpack.c.l.b16 %v4886_v49  ;;  %v15076_v20 = vperm.slane %v5575_v7, %v12689_v21  ;;  %v4898_v2 = vpack.i.b16 %v4661_v22, %v4642_v58  ;;  %v4887_v11 = vshrl.u32 %v15044_v16, 16 }
 0x2da   : > { %v15083_v44 = vrot.slane %v5585_v26, 4  ;;  %v4888_v10 = vshrl.u32 %v15055_v36, 16  ;;  %v5600_v27 = vrot.slane %v5599_v1, 4  ;;  %v19446_v23 = vrot.slane %v14676_v32, 4 }
 0x2db   : > { %19444 = vst [vmem:[#allocation250_spill] sm:$0xff] %v15076_v20  ;;  %v5586_v60 = vrot.slane %v15076_v20, 4  ;;  %v6921_v33 = vunpack.c.l.b16 %v4898_v2  ;;  %v4899_v49 = vshrl.u32 %v4642_v58, 16  ;;  %v4900_v57 = vshrl.u32 %v4661_v22, 16  ;;  %v19500_v20 = vld [vmem:[#allocation129_spill] sm:$0xff] }
 0x2dc   : > { %19445 = vst [vmem:[#allocation251_spill] sm:$0xff] %v15083_v44  ;;  %v5603_v18 = vsel %vm1358_vm0, %v5599_v1, %v19446_v23  ;;  %v15094_v62 = vsel %vm1358_vm0, 0, %v15083_v44  ;;  %v4889_v56 = vpack.i.b16 %v4888_v10, %v4887_v11  ;;  %v5601_v9 = vsel %vm1358_vm0, %v5600_v27, %v14676_v32 }
 0x2dd   : > { %19447 = vst [vmem:[#allocation252_spill] sm:$0xff] %v15094_v62  ;;  %v5611_v47 = vperm.slane %v5603_v18, %v12689_v21  ;;  %v15098_v53 = vsel %vm1358_vm0, 0, %v5586_v60  ;;  %v6930_v12 = vpack.c.b16 %v6921_v33, %v6920_v52  ;;  %v15104_v48 = vperm.slane %v5601_v9, %v12689_v21  ;;  %v19484_v62 = vld [vmem:[#allocation165_spill] sm:$0xff] }
 0x2de   : > { %19448 = vst [vmem:[#allocation253_spill] sm:$0xff] %v15098_v53  ;;  %v7066_v15 = vunpack.c.l.b16 %v4889_v56  ;;  %v5224_v34 = vpack.i.b16 %v5055_v41, %v14718_v40  ;;  %v5226_v7 = vshrl.u32 %v5055_v41, 16  ;;  %v4605_v26 = vrot.slane %v15044_v16, 4 }
 0x2df   : > { %19449 = vst [vmem:[#allocation254_spill] sm:$0xff] %v15104_v48  ;;  %v15106_v19 = vrot.slane %v5611_v47, 4  ;;  %v6976_v1 = vsel %vm6932_vm1, %v6930_v12, 0  ;;  %v4901_v2 = vpack.i.b16 %v4900_v57, %v4899_v49  ;;  %v19452_v10 = vshrl.u32 %v14718_v40, 16 }
 0x2e0   : > { %6982 = vmatpush.bf16.xpose.msra.mxu3 %v6976_v1  ;;  %v15120_v27 = vperm.slane %v5224_v34, %v12672_v3  ;;  %v4606_v16 = vsel %vm1358_vm0, 0, %v4605_v26  ;;  %v4624_v18 = vrot.slane %v15055_v36, 4  ;;  %v4643_v33 = vrot.slane %v4642_v58, 4 }
 0x2e1   : > { %19450 = vst [vmem:[#allocation255_spill] sm:$0xff] %v15106_v19  ;;  %v15114_v52 = vsel %vm1358_vm0, 0, %v15106_v19  ;;  %v5227_v60 = vpack.i.b16 %v5226_v7, %v19452_v10  ;;  %v7067_v23 = vunpack.c.l.b16 %v4901_v2  ;;  %v4662_v47 = vrot.slane %v4661_v22, 4 }
 0x2e2   : > { %19451 = vst [vmem:[#allocation256_spill] sm:$0xff] %v15114_v52  ;;  %v5938_v56 = vrot.slane %v15120_v27, 4  ;;  %v4893_v49 = vshrl.u32 %v4606_v16, 16  ;;  %v19453_v12 = vrot.slane %v14192_v46, 4  ;;  %v4625_v41 = vsel %vm1358_vm0, 0, %v4624_v18  ;;  %v19480_v52 = vld [vmem:[#allocation161_spill] sm:$0xff] }
 0x2e3   : > { %v15126_v9 = vperm.slane %v5227_v60, %v12672_v3  ;;  %v7076_v57 = vpack.c.b16 %v7067_v23, %v7066_v15  ;;  %v4644_v34 = vsel %vm1358_vm0, 0, %v4643_v33  ;;  %v4663_v7 = vsel %vm1358_vm0, 0, %v4662_v47  ;;  %v19455_v33 = vld [vmem:[#allocation185_spill] sm:$0xff] }
 0x2e4   : > { %v3869_v40 = vsel %vm1358_vm0, 0, %v19453_v12  ;;  %v4892_v58 = vpack.i.b16 %v4625_v41, %v4606_v16  ;;  %v4904_v22 = vpack.i.b16 %v4663_v7, %v4644_v34  ;;  %v4894_v26 = vshrl.u32 %v4625_v41, 16  ;;  %v19456_v41 = vld [vmem:[#allocation190_spill] sm:$0xff] }
 0x2e5   : > { %v5964_v36 = vrot.slane %v15126_v9, 4  ;;  %v7121_v1 = vsel %vm6932_vm1, %v7076_v57, 0  ;;  %v4905_v2 = vshrl.u32 %v4644_v34, 16  ;;  %v4906_v10 = vshrl.u32 %v4663_v7, 16  ;;  %v19459_v7 = vld [vmem:[#allocation189_spill] sm:$0xff] }
 0x2e6   : > { %v19454_v60 = vrot.slane %v14223_v61, 4  ;;  %7127 = vmatpush.bf16.xpose.msrb.mxu0 %v7121_v1  ;;  %v7211_v15 = vunpack.c.l.b16 %v4892_v58  ;;  %v7212_v23 = vunpack.c.l.b16 %v4904_v22  ;;  %v4895_v18 = vpack.i.b16 %v4894_v26, %v4893_v49 }
 0x2e7   : > { %v4512_v47 = vsel %vm1358_vm0, %v19455_v33, %v14157_v24  ;;  %v4907_v11 = vpack.i.b16 %v4906_v10, %v4905_v2  ;;  %v19458_v57 = vrot.slane %v19457_v38, 4  ;;  %v19460_v24 = vld [vmem:[#allocation191_spill] sm:$0xff] }
 0x2e8   : > { %v3921_v12 = vsel %vm1358_vm0, 0, %v19454_v60  ;;  %v4516_v16 = vperm.slane %v4512_v47, %v12672_v3  ;;  %v4531_v60 = vsel %vm1358_vm0, %v19459_v7, %v14192_v46  ;;  %v7221_v1 = vpack.c.b16 %v7212_v23, %v7211_v15  ;;  %v19462_v33 = vld [vmem:[#allocation187_spill] sm:$0xff]  ;;  %v19463_v47 = vld [vmem:[#allocation188_spill] sm:$0xff] }
 0x2e9   : > { %v4518_v34 = vsel %vm1358_vm0, %v19458_v57, %v19456_v41  ;;  %v7356_v58 = vunpack.c.l.b16 %v4895_v18  ;;  %v4535_v22 = vperm.slane %v4531_v60, %v12672_v3  ;;  %v7357_v26 = vunpack.c.l.b16 %v4907_v11  ;;  %v19464_v41 = vld [vmem:[#allocation193_spill] sm:$0xff]  ;;  %v19465_v57 = vld [vmem:[#allocation192_spill] sm:$0xff]  ;;  %v19468_v60 = vld [vmem:[#allocation194_spill] sm:$0xff] }
 0x2ea   : > { %v4522_v49 = vperm.slane %v4518_v34, %v12672_v3  ;;  %v19461_v2 = vrot.slane %v19460_v24, 4  ;;  %v4550_v38 = vsel %vm1358_vm0, %v19463_v47, %v19462_v33  ;;  %v19466_v32 = vrot.slane %v19465_v57, 4  ;;  %v15165_v34 = vpop.permute.xlu2 %5036 }
 0x2eb   : > { %v7266_v15 = vsel %vm6932_vm1, %v7221_v1, 0  ;;  %v4554_v11 = vperm.slane %v4550_v38, %v12672_v3  ;;  %19467 = vst [vmem:[#allocation185_spill] sm:$0xff] %v15165_v34  ;;  %v4569_v24 = vsel %vm1358_vm0, %v19468_v60, %v14223_v61  ;;  %v4991_v1 = vpop.permute.xlu0 %4990  ;;  %v15180_v61 = vpop.permute.xlu1 %5018 }
 0x2ec   : > { %v4537_v10 = vsel %vm1358_vm0, %v19461_v2, %v3869_v40  ;;  %v4556_v46 = vsel %vm1358_vm0, %v19466_v32, %v19464_v41  ;;  %v4523_v23 = vrot.slane %v4522_v49, 4  ;;  %7272 = vmatpush.bf16.xpose.msrb.mxu1 %v7266_v15  ;;  %v7366_v40 = vpack.c.b16 %v7357_v26, %v7356_v58  ;;  %v19469_v2 = vld [vmem:[#allocation195_spill] sm:$0xff]  ;;  %v11952_v15 = vld [vmem:[#allocation3 + $0x34] sm:$0xf] }
 0x2ed   : > { %v4541_v18 = vperm.slane %v4537_v10, %v12672_v3  ;;  %v4560_v7 = vperm.slane %v4556_v46, %v12672_v3  ;;  %v19470_v33 = vrot.slane %v19469_v2, 4  ;;  %v4573_v47 = vperm.slane %v4569_v24, %v12672_v3 }
 0x2ee   : > { %v4524_v49 = vsel %vm1358_vm0, %v4523_v23, %v4516_v16  ;;  %v7411_v58 = vsel %vm6932_vm1, %v7366_v40, 0  ;;  %v5219_v16 = vshrl.u32 %v11952_v15, 16  ;;  %v5218_v23 = vpack.i.b16 %v4991_v1, %v11952_v15 }
 0x2ef   : > { %v4575_v32 = vsel %vm1358_vm0, %v19470_v33, %v3921_v12  ;;  %v4542_v10 = vrot.slane %v4541_v18, 4  ;;  %v4528_v26 = vperm.slane %v4524_v49, %v12689_v21  ;;  %v4561_v41 = vrot.slane %v4560_v7, 4  ;;  %7417 = vmatpush.bf16.xpose.msrb.mxu2 %v7411_v58 }
 0x2f0   : > { %v4579_v38 = vperm.slane %v4575_v32, %v12672_v3  ;;  %v5220_v24 = vshrl.u32 %v4991_v1, 16  ;;  %v5932_v33 = vperm.slane %v5218_v23, %v12672_v3  ;;  %v19477_v32 = vrot.slane %v19476_v39, 4 }
 0x2f1   : > { %v4543_v12 = vsel %vm1358_vm0, %v4542_v10, %v4535_v22  ;;  %v4562_v60 = vsel %vm1358_vm0, %v4561_v41, %v4554_v11  ;;  %v4863_v40 = vshrl.u32 %v4528_v26, 16  ;;  %v4529_v41 = vrot.slane %v4528_v26, 4 }
 0x2f2   : > { %v4580_v46 = vrot.slane %v4579_v38, 4  ;;  %v4547_v18 = vperm.slane %v4543_v12, %v12689_v21  ;;  %v4566_v2 = vperm.slane %v4562_v60, %v12689_v21  ;;  %v5221_v10 = vpack.i.b16 %v5220_v24, %v5219_v16 }
 0x2f3   : > { %v5939_v58 = vsel %vm1358_vm0, %v5938_v56, %v5932_v33  ;;  %v5940_v11 = vrot.slane %v5932_v33, 4  ;;  %v4530_v24 = vsel %vm1358_vm0, 0, %v4529_v41  ;;  %v5053_v44 = vpop.permute.xlu0 %5052 }
 0x2f4   : > { %v4581_v7 = vsel %vm1358_vm0, %v4580_v46, %v4573_v47  ;;  %v4862_v49 = vpack.i.b16 %v4547_v18, %v4528_v26  ;;  %v4864_v38 = vshrl.u32 %v4547_v18, 16  ;;  %v4875_v1 = vshrl.u32 %v4566_v2, 16 }
 0x2f5   : > { %v4585_v22 = vperm.slane %v4581_v7, %v12689_v21  ;;  %v15194_v47 = vperm.slane %v5939_v58, %v12689_v21  ;;  %v5958_v46 = vperm.slane %v5221_v10, %v12672_v3  ;;  %v5941_v23 = vsel %vm1358_vm0, %v15120_v27, %v5940_v11 }
 0x2f6   : > { %v6918_v15 = vunpack.c.l.b16 %v4862_v49  ;;  %v4865_v60 = vpack.i.b16 %v4864_v38, %v4863_v40  ;;  %v5949_v56 = vperm.slane %v5941_v23, %v12689_v21  ;;  %v4548_v11 = vrot.slane %v4547_v18, 4 }
 0x2f7   : > { %v4874_v12 = vpack.i.b16 %v4585_v22, %v4566_v2  ;;  %v4876_v16 = vshrl.u32 %v4585_v22, 16  ;;  %v5950_v33 = vrot.slane %v15194_v47, 4  ;;  %v5965_v26 = vsel %vm1358_vm0, %v5964_v36, %v5958_v46 }
 0x2f8   : > { %v5966_v49 = vrot.slane %v5958_v46, 4  ;;  %v15206_v58 = vperm.slane %v5965_v26, %v12689_v21  ;;  %v7064_v57 = vunpack.c.l.b16 %v4865_v60  ;;  %v15211_v38 = vrot.slane %v5949_v56, 4 }
 0x2f9   : > { %v6919_v7 = vunpack.c.l.b16 %v4874_v12  ;;  %v4877_v10 = vpack.i.b16 %v4876_v16, %v4875_v1  ;;  %v15209_v40 = vsel %vm1358_vm0, 0, %v5950_v33  ;;  %v4567_v36 = vrot.slane %v4566_v2, 4 }
 0x2fa   : > { %v5967_v41 = vsel %vm1358_vm0, %v15126_v9, %v5966_v49  ;;  %v5976_v12 = vrot.slane %v15206_v58, 4  ;;  %v15219_v1 = vsel %vm1358_vm0, 0, %v15211_v38  ;;  %v4549_v60 = vsel %vm1358_vm0, 0, %v4548_v11  ;;  %v19475_v9 = vld [vmem:[#allocation159_spill] sm:$0xff] }
 0x2fb   : > { %v6929_v27 = vpack.c.b16 %v6919_v7, %v6918_v15  ;;  %v7065_v23 = vunpack.c.l.b16 %v4877_v10  ;;  %v5975_v15 = vperm.slane %v5967_v41, %v12689_v21  ;;  %v4568_v7 = vsel %vm1358_vm0, 0, %v4567_v36  ;;  %v19471_v41 = vld [vmem:[#allocation167_spill] sm:$0xff] }
 0x2fc   : > { %v15224_v18 = vsel %vm1358_vm0, 0, %v5976_v12  ;;  %v4586_v56 = vrot.slane %v4585_v22, 4  ;;  %v4868_v33 = vpack.i.b16 %v4549_v60, %v4530_v24  ;;  %v4869_v26 = vshrl.u32 %v4530_v24, 16  ;;  %v19474_v22 = vld [vmem:[#allocation163_spill] sm:$0xff]  ;;  %v15257_v24 = vpop.permute.xlu2 %5034 }
 0x2fd   : > { %v6973_v46 = vsel %vm6932_vm1, %v6929_v27, 0  ;;  %v7075_v16 = vpack.c.b16 %v7065_v23, %v7064_v57  ;;  %v15228_v2 = vrot.slane %v5975_v15, 4  ;;  %v4870_v10 = vshrl.u32 %v4549_v60, 16  ;;  %19485 = vst [vmem:[#allocation186_spill] sm:$0xff] %v15257_v24 }
 0x2fe   : > { %6983 = vmatpush.bf16.xpose.msra.mxu3 %v6973_v46  ;;  %v4881_v27 = vshrl.u32 %v4568_v7, 16  ;;  %v19472_v11 = vrot.slane %v19471_v41, 4  ;;  %v4587_v57 = vsel %vm1358_vm0, 0, %v4586_v56  ;;  %v7209_v23 = vunpack.c.l.b16 %v4868_v33  ;;  %v19481_v56 = vld [vmem:[#allocation162_spill] sm:$0xff] }
 0x2ff   : > { %v7118_v49 = vsel %vm6932_vm1, %v7075_v16, 0  ;;  %v15236_v12 = vsel %vm1358_vm0, 0, %v15228_v2  ;;  %v4440_v36 = vperm.slane %v19474_v22, %v12672_v3  ;;  %v4880_v15 = vpack.i.b16 %v4587_v57, %v4568_v7  ;;  %v19483_v22 = vld [vmem:[#allocation164_spill] sm:$0xff] }
 0x300   : > { %v3817_v46 = vsel %vm1358_vm0, 0, %v19472_v11  ;;  %19473 = vst [vmem:[#allocation190_spill] sm:$0xff] %v15236_v12  ;;  %7128 = vmatpush.bf16.xpose.msrb.mxu0 %v7118_v49  ;;  %v4871_v60 = vpack.i.b16 %v4870_v10, %v4869_v26  ;;  %v4882_v16 = vshrl.u32 %v4587_v57, 16  ;;  %v4442_v11 = vsel %vm1358_vm0, %v19477_v32, %v19475_v9  ;;  %v19486_v9 = vld [vmem:[#allocation170_spill] sm:$0xff] }
 0x301   : > { %v4455_v49 = vsel %vm1358_vm0, %v19479_v42, %v19478_v31  ;;  %v19482_v33 = vrot.slane %v19481_v56, 4  ;;  %v4474_v7 = vsel %vm1358_vm0, %v19484_v62, %v19483_v22  ;;  %v7210_v26 = vunpack.c.l.b16 %v4880_v15  ;;  %v19487_v56 = vld [vmem:[#allocation166_spill] sm:$0xff] }
 0x302   : > { %v4883_v10 = vpack.i.b16 %v4882_v16, %v4881_v27  ;;  %v7354_v57 = vunpack.c.l.b16 %v4871_v60  ;;  %v4446_v39 = vperm.slane %v4442_v11, %v12672_v3  ;;  %v4459_v32 = vperm.slane %v4455_v49, %v12672_v3  ;;  %v19489_v16 = vld [vmem:[#allocation168_spill] sm:$0xff]  ;;  %v19490_v49 = vld [vmem:[#allocation169_spill] sm:$0xff] }
 0x303   : > { %v4461_v19 = vsel %vm1358_vm0, %v19482_v33, %v19480_v52  ;;  %v4478_v31 = vperm.slane %v4474_v7, %v12672_v3  ;;  %v19488_v52 = vrot.slane %v19487_v56, 4  ;;  %v7220_v53 = vpack.c.b16 %v7210_v26, %v7209_v23 }
 0x304   : > { %v4465_v42 = vperm.slane %v4461_v19, %v12672_v3  ;;  %v7355_v62 = vunpack.c.l.b16 %v4883_v10  ;;  %v4447_v15 = vrot.slane %v4446_v39, 4  ;;  %v4493_v11 = vsel %vm1358_vm0, %v19489_v16, %v19471_v41 }
 0x305   : > { %v4480_v33 = vsel %vm1358_vm0, %v19488_v52, %v19486_v9  ;;  %v19491_v22 = vrot.slane %v19490_v49, 4  ;;  %v7263_v56 = vsel %vm6932_vm1, %v7220_v53, 0  ;;  %v4497_v41 = vperm.slane %v4493_v11, %v12672_v3  ;;  %v15280_v52 = vpop.permute.xlu1 %5010 }
 0x306   : > { %v4484_v27 = vperm.slane %v4480_v33, %v12672_v3  ;;  %v4466_v60 = vrot.slane %v4465_v42, 4  ;;  %v7365_v9 = vpack.c.b16 %v7355_v62, %v7354_v57  ;;  %v4448_v23 = vsel %vm1358_vm0, %v4447_v15, %v4440_v36  ;;  %7273 = vmatpush.bf16.xpose.msrb.mxu1 %v7263_v56 }
 0x307   : > { %v4499_v19 = vsel %vm1358_vm0, %v19491_v22, %v3817_v46  ;;  %v4452_v10 = vperm.slane %v4448_v23, %v12689_v21  ;;  %v5212_v36 = vpack.i.b16 %v5053_v44, %v14953_v50  ;;  %v5214_v15 = vshrl.u32 %v5053_v44, 16 }
 0x308   : > { %v4485_v26 = vrot.slane %v4484_v27, 4  ;;  %v4467_v39 = vsel %vm1358_vm0, %v4466_v60, %v4459_v32  ;;  %v4503_v42 = vperm.slane %v4499_v19, %v12672_v3  ;;  %v7408_v46 = vsel %vm6932_vm1, %v7365_v9, 0 }
 0x309   : > { %v4471_v33 = vperm.slane %v4467_v39, %v12689_v21  ;;  %7418 = vmatpush.bf16.xpose.msrb.mxu2 %v7408_v46  ;;  %v4839_v32 = vshrl.u32 %v4452_v10, 16  ;;  %v5885_v60 = vperm.slane %v5212_v36, %v12672_v3  ;;  %v19492_v22 = vshrl.u32 %v14953_v50, 16 }
 0x30a   : > { %v4486_v53 = vsel %vm1358_vm0, %v4485_v26, %v4478_v31  ;;  %v4504_v62 = vrot.slane %v4503_v42, 4  ;;  %v4453_v56 = vrot.slane %v4452_v10, 4  ;;  %v19493_v44 = vrot.slane %v15069_v63, 4 }
 0x30b   : > { %v4490_v57 = vperm.slane %v4486_v53, %v12689_v21  ;;  %v4838_v27 = vpack.i.b16 %v4471_v33, %v4452_v10  ;;  %v4840_v16 = vshrl.u32 %v4471_v33, 16  ;;  %v5215_v19 = vpack.i.b16 %v5214_v15, %v19492_v22 }
 0x30c   : > { %v4505_v49 = vsel %vm1358_vm0, %v4504_v62, %v4497_v41  ;;  %v5886_v26 = vrot.slane %v5885_v60, 4  ;;  %v5889_v39 = vsel %vm1358_vm0, %v5885_v60, %v19493_v44  ;;  %v4454_v41 = vsel %vm1358_vm0, 0, %v4453_v56 }
 0x30d   : > { %v4851_v31 = vshrl.u32 %v4490_v57, 16  ;;  %v4509_v9 = vperm.slane %v4505_v49, %v12689_v21  ;;  %v6916_v23 = vunpack.c.l.b16 %v4838_v27  ;;  %v5897_v42 = vperm.slane %v5889_v39, %v12689_v21 }
 0x30e   : > { %v5911_v46 = vperm.slane %v5215_v19, %v12672_v3  ;;  %v4841_v53 = vpack.i.b16 %v4840_v16, %v4839_v32  ;;  %v5887_v50 = vsel %vm1358_vm0, %v5886_v26, %v15069_v63  ;;  %v4472_v62 = vrot.slane %v4471_v33, 4 }
 0x30f   : > { %v4850_v36 = vpack.i.b16 %v4509_v9, %v4490_v57  ;;  %v4852_v10 = vshrl.u32 %v4509_v9, 16  ;;  %v15302_v15 = vperm.slane %v5887_v50, %v12689_v21  ;;  %v15304_v27 = vrot.slane %v5897_v42, 4 }
 0x310   : > { %v5912_v49 = vrot.slane %v5911_v46, 4  ;;  %v19494_v60 = vrot.slane %v15081_v25, 4  ;;  %v7062_v56 = vunpack.c.l.b16 %v4841_v53  ;;  %v4473_v26 = vsel %vm1358_vm0, 0, %v4472_v62 }
 0x311   : > { %v6917_v19 = vunpack.c.l.b16 %v4850_v36  ;;  %v4853_v16 = vpack.i.b16 %v4852_v10, %v4851_v31  ;;  %v5898_v44 = vrot.slane %v15302_v15, 4  ;;  %v15313_v63 = vsel %vm1358_vm0, 0, %v15304_v27  ;;  %v19495_v31 = vld [vmem:[#allocation132_spill] sm:$0xff] }
 0x312   : > { %v5915_v22 = vsel %vm1358_vm0, %v5911_v46, %v19494_v60  ;;  %v5913_v33 = vsel %vm1358_vm0, %v5912_v49, %v15081_v25  ;;  %v4491_v50 = vrot.slane %v4490_v57, 4  ;;  %v4510_v10 = vrot.slane %v4509_v9, 4 }
 0x313   : > { %v5923_v32 = vperm.slane %v5915_v22, %v12689_v21  ;;  %v6928_v39 = vpack.c.b16 %v6917_v19, %v6916_v23  ;;  %v15319_v42 = vperm.slane %v5913_v33, %v12689_v21  ;;  %v15325_v53 = vsel %vm1358_vm0, 0, %v5898_v44 }
 0x314   : > { %v7063_v36 = vunpack.c.l.b16 %v4853_v16  ;;  %v4844_v62 = vpack.i.b16 %v4473_v26, %v4454_v41  ;;  %v4492_v19 = vsel %vm1358_vm0, 0, %v4491_v50  ;;  %v4845_v9 = vshrl.u32 %v4454_v41, 16 }
 0x315   : > { %v15321_v46 = vrot.slane %v5923_v32, 4  ;;  %v6970_v60 = vsel %vm6932_vm1, %v6928_v39, 0  ;;  %v4511_v32 = vsel %vm1358_vm0, 0, %v4510_v10  ;;  %v4846_v44 = vshrl.u32 %v4473_v26, 16  ;;  %v19499_v10 = vld [vmem:[#allocation128_spill] sm:$0xff] }
 0x316   : > { %6984 = vmatpush.bf16.xpose.msra.mxu3 %v6970_v60  ;;  %v7074_v22 = vpack.c.b16 %v7063_v36, %v7062_v56  ;;  %v4856_v16 = vpack.i.b16 %v4511_v32, %v4492_v19  ;;  %v7207_v57 = vunpack.c.l.b16 %v4844_v62  ;;  %v4857_v39 = vshrl.u32 %v4492_v19, 16  ;;  %v19497_v56 = vld [vmem:[#allocation138_spill] sm:$0xff]  ;;  %v19502_v19 = vld [vmem:[#allocation131_spill] sm:$0xff] }
 0x317   : > { %v15331_v23 = vsel %vm1358_vm0, 0, %v15321_v46  ;;  %v4858_v7 = vshrl.u32 %v4511_v32, 16  ;;  %v19496_v25 = vrot.slane %v19495_v31, 4  ;;  %v4847_v49 = vpack.i.b16 %v4846_v44, %v4845_v9 }
 0x318   : > { %v7115_v33 = vsel %vm6932_vm1, %v7074_v22, 0  ;;  %v7208_v60 = vunpack.c.l.b16 %v4856_v16  ;;  %v19498_v36 = vrot.slane %v19497_v56, 4  ;;  %v4360_v41 = vsel %vm1358_vm0, %v19500_v20, %v19499_v10  ;;  %v19501_v22 = vld [vmem:[#allocation135_spill] sm:$0xff]  ;;  %v19505_v20 = vld [vmem:[#allocation136_spill] sm:$0xff]  ;;  %v19507_v10 = vld [vmem:[#allocation134_spill] sm:$0xff] }
 0x319   : > { %v3661_v11 = vsel %vm1358_vm0, 0, %v19496_v25  ;;  %7129 = vmatpush.bf16.xpose.msrb.mxu0 %v7115_v33  ;;  %v4859_v26 = vpack.i.b16 %v4858_v7, %v4857_v39  ;;  %v4364_v62 = vperm.slane %v4360_v41, %v12672_v3  ;;  %v19503_v32 = vrot.slane %v19502_v19, 4  ;;  %v19504_v25 = vld [vmem:[#allocation133_spill] sm:$0xff] }
 0x31a   : > { %v3713_v50 = vsel %vm1358_vm0, 0, %v19498_v36  ;;  %v4379_v16 = vsel %vm1358_vm0, %v19504_v25, %v19495_v31  ;;  %v7219_v9 = vpack.c.b16 %v7208_v60, %v7207_v57  ;;  %v7352_v44 = vunpack.c.l.b16 %v4847_v49  ;;  %v19508_v41 = vld [vmem:[#allocation137_spill] sm:$0xff] }
 0x31b   : > { %v4366_v48 = vsel %vm1358_vm0, %v19503_v32, %v19501_v22  ;;  %v4383_v36 = vperm.slane %v4379_v16, %v12672_v3  ;;  %v7353_v24 = vunpack.c.l.b16 %v4859_v26  ;;  %v19506_v7 = vrot.slane %v19505_v20, 4  ;;  %v19509_v22 = vld [vmem:[#allocation141_spill] sm:$0xff]  ;;  %v19510_v32 = vld [vmem:[#allocation140_spill] sm:$0xff]  ;;  %v15369_v26 = vpop.permute.xlu2 %4996  ;;  %v19512_v16 = vld [vmem:[#allocation139_spill] sm:$0xff] }
 0x31c   : > { %v4370_v33 = vperm.slane %v4366_v48, %v12672_v3  ;;  %v4398_v19 = vsel %vm1358_vm0, %v19508_v41, %v19507_v10  ;;  %v19511_v34 = vrot.slane %v19510_v32, 4  ;;  %v7260_v49 = vsel %vm6932_vm1, %v7219_v9, 0  ;;  %v5051_v9 = vpop.permute.xlu0 %5050 }
 0x31d   : > { %v4385_v39 = vsel %vm1358_vm0, %v19506_v7, %v3661_v11  ;;  %v4402_v60 = vperm.slane %v4398_v19, %v12672_v3  ;;  %7274 = vmatpush.bf16.xpose.msrb.mxu1 %v7260_v49  ;;  %v7364_v11 = vpack.c.b16 %v7353_v24, %v7352_v44  ;;  %v4417_v20 = vsel %vm1358_vm0, %v19512_v16, %v19497_v56  ;;  %v19513_v7 = vld [vmem:[#allocation142_spill] sm:$0xff] }
 0x31e   : > { %v4404_v31 = vsel %vm1358_vm0, %v19511_v34, %v19509_v22  ;;  %v4371_v57 = vrot.slane %v4370_v33, 4  ;;  %v4389_v48 = vperm.slane %v4385_v39, %v12672_v3  ;;  %v19514_v10 = vrot.slane %v19513_v7, 4  ;;  %v5043_v22 = vpop.permute.xlu1 %5042 }
 0x31f   : > { %v4408_v25 = vperm.slane %v4404_v31, %v12672_v3  ;;  %v4421_v41 = vperm.slane %v4417_v20, %v12672_v3  ;;  %v7405_v24 = vsel %vm6932_vm1, %v7364_v11, 0  ;;  %v5202_v49 = vshrl.u32 %v5051_v9, 16 }
 0x320   : > { %v4423_v34 = vsel %vm1358_vm0, %v19514_v10, %v3713_v50  ;;  %v4372_v33 = vsel %vm1358_vm0, %v4371_v57, %v4364_v62  ;;  %v4390_v39 = vrot.slane %v4389_v48, 4  ;;  %7419 = vmatpush.bf16.xpose.msrb.mxu2 %v7405_v24  ;;  %v5200_v62 = vpack.i.b16 %v5051_v9, %v15180_v61 }
 0x321   : > { %v4427_v19 = vperm.slane %v4423_v34, %v12672_v3  ;;  %v15383_v44 = vperm.slane %v4372_v33, %v12689_v21  ;;  %v4409_v32 = vrot.slane %v4408_v25, 4  ;;  %v5152_v16 = vpack.i.b16 %v5043_v22, %v15280_v52 }
 0x322   : > { %v4391_v50 = vsel %vm1358_vm0, %v4390_v39, %v4383_v36  ;;  %v19515_v36 = vshrl.u32 %v15180_v61, 16  ;;  %v5833_v10 = vperm.slane %v5200_v62, %v12672_v3  ;;  %v5154_v33 = vshrl.u32 %v5043_v22, 16 }
 0x323   : > { %v4428_v31 = vrot.slane %v4427_v19, 4  ;;  %v15389_v57 = vperm.slane %v4391_v50, %v12689_v21  ;;  %v4410_v48 = vsel %vm1358_vm0, %v4409_v32, %v4402_v60  ;;  %v4815_v11 = vshrl.u32 %v15383_v44, 16  ;;  %v19516_v19 = vld [vmem:[#allocation221_spill] sm:$0xff] }
 0x324   : > { %v15395_v25 = vperm.slane %v4410_v48, %v12689_v21  ;;  %v5203_v7 = vpack.i.b16 %v5202_v49, %v19515_v36  ;;  %v5834_v39 = vrot.slane %v5833_v10, 4  ;;  %v19517_v24 = vrot.slane %v19516_v19, 4 }
 0x325   : > { %v4429_v20 = vsel %vm1358_vm0, %v4428_v31, %v4421_v41  ;;  %v4814_v60 = vpack.i.b16 %v15389_v57, %v15383_v44  ;;  %v4816_v9 = vshrl.u32 %v15389_v57, 16 }
 0x326   : > { %v15402_v34 = vperm.slane %v4429_v20, %v12689_v21  ;;  %v5837_v32 = vsel %vm1358_vm0, %v5833_v10, %v19517_v24  ;;  %v5859_v41 = vperm.slane %v5203_v7, %v12672_v3  ;;  %v4827_v61 = vshrl.u32 %v15395_v25, 16  ;;  %v19518_v20 = vld [vmem:[#allocation222_spill] sm:$0xff] }
 0x327   : > { %v6914_v31 = vunpack.c.l.b16 %v4814_v60  ;;  %v5845_v62 = vperm.slane %v5837_v32, %v12689_v21  ;;  %v4817_v49 = vpack.i.b16 %v4816_v9, %v4815_v11  ;;  %v5835_v48 = vsel %vm1358_vm0, %v5834_v39, %v19516_v19 }
 0x328   : > { %v4826_v50 = vpack.i.b16 %v15402_v34, %v15395_v25  ;;  %v5860_v22 = vrot.slane %v5859_v41, 4  ;;  %v19519_v36 = vrot.slane %v19518_v20, 4  ;;  %v4828_v10 = vshrl.u32 %v15402_v34, 16 }
 0x329   : > { %v15422_v24 = vperm.slane %v5835_v48, %v12689_v21  ;;  %v15424_v13 = vrot.slane %v5845_v62, 4  ;;  %v7060_v39 = vunpack.c.l.b16 %v4817_v49  ;;  %v19522_v19 = vshrl.u32 %v15280_v52, 16 }
 0x32a   : > { %v5863_v56 = vsel %vm1358_vm0, %v5859_v41, %v19519_v36  ;;  %v6915_v7 = vunpack.c.l.b16 %v4826_v50  ;;  %v5861_v11 = vsel %vm1358_vm0, %v5860_v22, %v19518_v20  ;;  %v4829_v9 = vpack.i.b16 %v4828_v10, %v4827_v61 }
 0x32b   : > { %19520 = vst [vmem:[#allocation189_spill] sm:$0xff] %v15422_v24  ;;  %v5871_v60 = vperm.slane %v5863_v56, %v12689_v21  ;;  %v5155_v32 = vpack.i.b16 %v5154_v33, %v19522_v19  ;;  %v5846_v41 = vrot.slane %v15422_v24, 4  ;;  %v15434_v50 = vsel %vm1358_vm0, 0, %v15424_v13  ;;  %v19530_v19 = vld [vmem:[#allocation235_spill] sm:$0xff] }
 0x32c   : > { %19521 = vst [vmem:[#allocation191_spill] sm:$0xff] %v15424_v13  ;;  %v6927_v55 = vpack.c.b16 %v6915_v7, %v6914_v31  ;;  %v15437_v62 = vperm.slane %v5861_v11, %v12689_v21  ;;  %v7061_v22 = vunpack.c.l.b16 %v4829_v9  ;;  %v5625_v61 = vperm.slane %v5152_v16, %v12672_v3  ;;  %v19528_v7 = vld [vmem:[#allocation234_spill] sm:$0xff] }
 0x32d   : > { %19523 = vst [vmem:[#allocation187_spill] sm:$0xff] %v15434_v50  ;;  %v15439_v48 = vrot.slane %v5871_v60, 4  ;;  %v15445_v33 = vsel %vm1358_vm0, 0, %v5846_v41  ;;  %v5651_v49 = vperm.slane %v5155_v32, %v12672_v3  ;;  %v19529_v60 = vrot.slane %v19528_v7, 4  ;;  %v19549_v50 = vld [vmem:[#allocation108_spill] sm:$0xff] }
 0x32e   : > { %19524 = vst [vmem:[#allocation188_spill] sm:$0xff] %v15437_v62  ;;  %v6967_v52 = vsel %vm6932_vm1, %v6927_v55, 0  ;;  %v7073_v36 = vpack.c.b16 %v7061_v22, %v7060_v39  ;;  %v5626_v10 = vrot.slane %v5625_v61, 4  ;;  %v19531_v41 = vrot.slane %v19530_v19, 4 }
 0x32f   : > { %19525 = vst [vmem:[#allocation193_spill] sm:$0xff] %v15439_v48  ;;  %6985 = vmatpush.bf16.xpose.msra.mxu3 %v6967_v52  ;;  %v15451_v20 = vsel %vm1358_vm0, 0, %v15439_v48  ;;  %v5629_v16 = vsel %vm1358_vm0, %v5625_v61, %v19529_v60  ;;  %v5652_v9 = vrot.slane %v5651_v49, 4  ;;  %v4377_v22 = vrot.slane %v15383_v44, 4  ;;  %v19548_v48 = vld [vmem:[#allocation105_spill] sm:$0xff] }
 0x330   : > { %19526 = vst [vmem:[#allocation192_spill] sm:$0xff] %v15445_v33  ;;  %v5637_v11 = vperm.slane %v5629_v16, %v12689_v21  ;;  %v5655_v32 = vsel %vm1358_vm0, %v5651_v49, %v19531_v41  ;;  %v7112_v52 = vsel %vm6932_vm1, %v7073_v36, 0  ;;  %v5627_v56 = vsel %vm1358_vm0, %v5626_v10, %v19528_v7 }
 0x331   : > { %19527 = vst [vmem:[#allocation194_spill] sm:$0xff] %v15451_v20  ;;  %v5663_v39 = vperm.slane %v5655_v32, %v12689_v21  ;;  %7130 = vmatpush.bf16.xpose.msrb.mxu0 %v7112_v52  ;;  %v15467_v61 = vperm.slane %v5627_v56, %v12689_v21  ;;  %v5653_v16 = vsel %vm1358_vm0, %v5652_v9, %v19530_v19  ;;  %v4396_v49 = vrot.slane %v15389_v57, 4  ;;  %v19545_v20 = vld [vmem:[#allocation109_spill] sm:$0xff] }
 0x332   : > { %v15469_v60 = vrot.slane %v5637_v11, 4  ;;  %v15475_v36 = vperm.slane %v5653_v16, %v12689_v21  ;;  %v4378_v10 = vsel %vm1358_vm0, 0, %v4377_v22  ;;  %v4415_v44 = vrot.slane %v15395_v25, 4 }
 0x333   : > { %19532 = vst [vmem:[#allocation195_spill] sm:$0xff] %v15467_v61  ;;  %v15477_v41 = vrot.slane %v5663_v39, 4  ;;  %v5638_v7 = vrot.slane %v15467_v61, 4  ;;  %v4397_v11 = vsel %vm1358_vm0, 0, %v4396_v49  ;;  %v4434_v9 = vrot.slane %v15402_v34, 4  ;;  %v19543_v39 = vld [vmem:[#allocation101_spill] sm:$0xff] }
 0x334   : > { %19533 = vst [vmem:[#allocation167_spill] sm:$0xff] %v15469_v60  ;;  %v15484_v56 = vsel %vm1358_vm0, 0, %v15469_v60  ;;  %v4416_v25 = vsel %vm1358_vm0, 0, %v4415_v44  ;;  %v4820_v16 = vpack.i.b16 %v4397_v11, %v4378_v10  ;;  %v4821_v34 = vshrl.u32 %v4378_v10, 16  ;;  %v19546_v10 = vld [vmem:[#allocation103_spill] sm:$0xff] }
 0x335   : > { %19534 = vst [vmem:[#allocation163_spill] sm:$0xff] %v15475_v36  ;;  %v15491_v19 = vsel %vm1358_vm0, 0, %v15477_v41  ;;  %v15496_v52 = vsel %vm1358_vm0, 0, %v5638_v7  ;;  %v4435_v22 = vsel %vm1358_vm0, 0, %v4434_v9  ;;  %v4822_v55 = vshrl.u32 %v4397_v11, 16 }
 0x336   : > { %19535 = vst [vmem:[#allocation159_spill] sm:$0xff] %v15477_v41  ;;  %v4832_v49 = vpack.i.b16 %v4435_v22, %v4416_v25  ;;  %v4833_v57 = vshrl.u32 %v4416_v25, 16  ;;  %v7205_v31 = vunpack.c.l.b16 %v4820_v16  ;;  %v4834_v60 = vshrl.u32 %v4435_v22, 16  ;;  %v19539_v41 = vld [vmem:[#allocation104_spill] sm:$0xff] }
 0x337   : > { %19536 = vst [vmem:[#allocation160_spill] sm:$0xff] %v15484_v56  ;;  %v19540_v61 = vrot.slane %v19539_v41, 4  ;;  %v19541_v56 = vld [vmem:[#allocation112_spill] sm:$0xff]  ;;  %v4823_v36 = vpack.i.b16 %v4822_v55, %v4821_v34  ;;  %v19547_v11 = vrot.slane %v19546_v10, 4 }
 0x338   : > { %19537 = vst [vmem:[#allocation156_spill] sm:$0xff] %v15491_v19  ;;  %v19542_v44 = vrot.slane %v19541_v56, 4  ;;  %v19544_v19 = vld [vmem:[#allocation102_spill] sm:$0xff]  ;;  %v4835_v22 = vpack.i.b16 %v4834_v60, %v4833_v57  ;;  %v19552_v57 = vld [vmem:[#allocation107_spill] sm:$0xff] }
 0x339   : > { %19538 = vst [vmem:[#allocation158_spill] sm:$0xff] %v15496_v52  ;;  %v3557_v32 = vsel %vm1358_vm0, 0, %v19540_v61  ;;  %v7206_v52 = vunpack.c.l.b16 %v4832_v49  ;;  %v4284_v9 = vsel %vm1358_vm0, %v19544_v19, %v19543_v39  ;;  %v4290_v25 = vsel %vm1358_vm0, %v19547_v11, %v19545_v20  ;;  %v19551_v60 = vld [vmem:[#allocation106_spill] sm:$0xff]  ;;  %v15526_v11 = vpop.permute.xlu2 %4998 }
 0x33a   : > { %v3609_v7 = vsel %vm1358_vm0, 0, %v19542_v44  ;;  %v4288_v16 = vperm.slane %v4284_v9, %v12672_v3  ;;  %v4294_v61 = vperm.slane %v4290_v25, %v12672_v3  ;;  %v4303_v44 = vsel %vm1358_vm0, %v19548_v48, %v19539_v41  ;;  %v19554_v41 = vld [vmem:[#allocation110_spill] sm:$0xff] }
 0x33b   : > { %v7218_v49 = vpack.c.b16 %v7206_v52, %v7205_v31  ;;  %v7350_v55 = vunpack.c.l.b16 %v4823_v36  ;;  %v4307_v34 = vperm.slane %v4303_v44, %v12672_v3  ;;  %v19550_v19 = vrot.slane %v19549_v50, 4  ;;  %v19553_v36 = vld [vmem:[#allocation111_spill] sm:$0xff] }
 0x33c   : > { %v7351_v10 = vunpack.c.l.b16 %v4835_v22  ;;  %v4295_v33 = vrot.slane %v4294_v61, 4  ;;  %v4322_v9 = vsel %vm1358_vm0, %v19552_v57, %v19551_v60  ;;  %v19555_v52 = vrot.slane %v19554_v41, 4 }
 0x33d   : > { %v4309_v39 = vsel %vm1358_vm0, %v19550_v19, %v3557_v32  ;;  %v7257_v48 = vsel %vm6932_vm1, %v7218_v49, 0  ;;  %v4326_v31 = vperm.slane %v4322_v9, %v12672_v3  ;;  %v19556_v32 = vld [vmem:[#allocation113_spill] sm:$0xff]  ;;  %v15541_v49 = vpop.permute.xlu1 %5000  ;;  %v19558_v9 = vld [vmem:[#allocation114_spill] sm:$0xff] }
 0x33e   : > { %v4313_v20 = vperm.slane %v4309_v39, %v12672_v3  ;;  %v4328_v50 = vsel %vm1358_vm0, %v19555_v52, %v19553_v36  ;;  %v4341_v25 = vsel %vm1358_vm0, %v19556_v32, %v19541_v56  ;;  %7275 = vmatpush.bf16.xpose.msrb.mxu1 %v7257_v48  ;;  %v7363_v22 = vpack.c.b16 %v7351_v10, %v7350_v55  ;;  %v15539_v39 = vpop.permute.xlu0 %5012 }
 0x33f   : > { %v4296_v61 = vsel %vm1358_vm0, %v4295_v33, %v4288_v16  ;;  %v4332_v19 = vperm.slane %v4328_v50, %v12672_v3  ;;  %19557 = vst [vmem:[#allocation161_spill] sm:$0xff] %v15541_v49  ;;  %v4345_v57 = vperm.slane %v4341_v25, %v12672_v3  ;;  %v19559_v36 = vrot.slane %v19558_v9, 4 }
 0x340   : > { %v4314_v44 = vrot.slane %v4313_v20, 4  ;;  %v4300_v60 = vperm.slane %v4296_v61, %v12689_v21  ;;  %v7402_v55 = vsel %vm6932_vm1, %v7363_v22, 0  ;;  %v19560_v61 = vld [vmem:[#allocation90_spill] sm:$0xff] }
 0x341   : > { %v4347_v41 = vsel %vm1358_vm0, %v19559_v36, %v3609_v7  ;;  %v4333_v16 = vrot.slane %v4332_v19, 4  ;;  %7420 = vmatpush.bf16.xpose.msrb.mxu2 %v7402_v55  ;;  %v19561_v9 = vrot.slane %v19560_v61, 4 }
 0x342   : > { %v4315_v33 = vsel %vm1358_vm0, %v4314_v44, %v4307_v34  ;;  %v4351_v10 = vperm.slane %v4347_v41, %v12672_v3  ;;  %v4791_v52 = vshrl.u32 %v4300_v60, 16  ;;  %v4301_v25 = vrot.slane %v4300_v60, 4 }
 0x343   : > { %v4319_v20 = vperm.slane %v4315_v33, %v12689_v21  ;;  %v4334_v32 = vsel %vm1358_vm0, %v4333_v16, %v4326_v31  ;;  %v15559_v22 = vsel %vm1358_vm0, 0, %v19561_v9  ;;  %v19562_v33 = vld [vmem:[#allocation82_spill] sm:$0xff]  ;;  %v19563_v31 = vld [vmem:[#allocation80_spill] sm:$0xff]  ;;  %v19564_v16 = vld [vmem:[#allocation79_spill] sm:$0xff] }
 0x344   : > { %v4352_v7 = vrot.slane %v4351_v10, 4  ;;  %v4338_v34 = vperm.slane %v4334_v32, %v12689_v21  ;;  %v4302_v55 = vsel %vm1358_vm0, 0, %v4301_v25  ;;  %v4212_v50 = vperm.slane %v19562_v33, %v12672_v3 }
 0x345   : > { %v4790_v44 = vpack.i.b16 %v4319_v20, %v4300_v60  ;;  %v4792_v19 = vshrl.u32 %v4319_v20, 16  ;;  %v4320_v36 = vrot.slane %v4319_v20, 4  ;;  %v19565_v10 = vrot.slane %v19564_v16, 4 }
 0x346   : > { %v4353_v41 = vsel %vm1358_vm0, %v4352_v7, %v4345_v57  ;;  %v4803_v32 = vshrl.u32 %v4338_v34, 16  ;;  %v4339_v20 = vrot.slane %v4338_v34, 4  ;;  %v4797_v13 = vshrl.u32 %v4302_v55, 16 }
 0x347   : > { %v4214_v48 = vsel %vm1358_vm0, %v19565_v10, %v19563_v31  ;;  %v4357_v9 = vperm.slane %v4353_v41, %v12689_v21  ;;  %v6912_v56 = vunpack.c.l.b16 %v4790_v44  ;;  %v4793_v49 = vpack.i.b16 %v4792_v19, %v4791_v52 }
 0x348   : > { %v4321_v60 = vsel %vm1358_vm0, 0, %v4320_v36  ;;  %v4218_v57 = vperm.slane %v4214_v48, %v12672_v3  ;;  %v4340_v17 = vsel %vm1358_vm0, 0, %v4339_v20 }
 0x349   : > { %v4802_v7 = vpack.i.b16 %v4357_v9, %v4338_v34  ;;  %v4804_v25 = vshrl.u32 %v4357_v9, 16  ;;  %v7058_v24 = vunpack.c.l.b16 %v4793_v49  ;;  %v4358_v33 = vrot.slane %v4357_v9, 4  ;;  %v19566_v49 = vld [vmem:[#allocation77_spill] sm:$0xff] }
 0x34a   : > { %v4796_v16 = vpack.i.b16 %v4321_v60, %v4302_v55  ;;  %v4798_v30 = vshrl.u32 %v4321_v60, 16  ;;  %v4219_v31 = vrot.slane %v4218_v57, 4  ;;  %v4809_v44 = vshrl.u32 %v4340_v17, 16  ;;  %v19567_v9 = vld [vmem:[#allocation81_spill] sm:$0xff] }
 0x34b   : > { %v6913_v10 = vunpack.c.l.b16 %v4802_v7  ;;  %v4805_v41 = vpack.i.b16 %v4804_v25, %v4803_v32  ;;  %v4359_v52 = vsel %vm1358_vm0, 0, %v4358_v33  ;;  %v4227_v20 = vsel %vm1358_vm0, %v19567_v9, %v19566_v49 }
 0x34c   : > { %v4808_v19 = vpack.i.b16 %v4359_v52, %v4340_v17  ;;  %v7203_v36 = vunpack.c.l.b16 %v4796_v16  ;;  %v4799_v62 = vpack.i.b16 %v4798_v30, %v4797_v13  ;;  %v4810_v59 = vshrl.u32 %v4359_v52, 16  ;;  %v19568_v13 = vld [vmem:[#allocation84_spill] sm:$0xff]  ;;  %v19573_v52 = vld [vmem:[#allocation93_spill] sm:$0xff] }
 0x34d   : > { %v6926_v12 = vpack.c.b16 %v6913_v10, %v6912_v56  ;;  %v7059_v48 = vunpack.c.l.b16 %v4805_v41  ;;  %v4220_v34 = vsel %vm1358_vm0, %v4219_v31, %v4212_v50  ;;  %v4231_v30 = vperm.slane %v4227_v20, %v12672_v3  ;;  %v19569_v56 = vld [vmem:[#allocation85_spill] sm:$0xff]  ;;  %v5029_v41 = vpop.permute.xlu2 %5028 }
 0x34e   : > { %v7204_v55 = vunpack.c.l.b16 %v4808_v19  ;;  %v4811_v60 = vpack.i.b16 %v4810_v59, %v4809_v44  ;;  %v7348_v57 = vunpack.c.l.b16 %v4799_v62  ;;  %v15580_v32 = vperm.slane %v4220_v34, %v12689_v21  ;;  %v19571_v59 = vld [vmem:[#allocation87_spill] sm:$0xff]  ;;  %v19572_v62 = vld [vmem:[#allocation88_spill] sm:$0xff]  ;;  %v19574_v44 = vld [vmem:[#allocation89_spill] sm:$0xff] }
 0x34f   : > { %v6964_v7 = vsel %vm6932_vm1, %v6926_v12, 0  ;;  %v7072_v17 = vpack.c.b16 %v7059_v48, %v7058_v24  ;;  %v19570_v25 = vrot.slane %v19569_v56, 4  ;;  %v4246_v10 = vsel %vm1358_vm0, %v19572_v62, %v19571_v59  ;;  %v19576_v34 = vld [vmem:[#allocation91_spill] sm:$0xff] }
 0x350   : > { %6986 = vmatpush.bf16.xpose.msra.mxu3 %v6964_v7  ;;  %v7217_v33 = vpack.c.b16 %v7204_v55, %v7203_v36  ;;  %v7349_v16 = vunpack.c.l.b16 %v4811_v60  ;;  %v4250_v24 = vperm.slane %v4246_v10, %v12672_v3  ;;  %v19575_v19 = vrot.slane %v19574_v44, 4  ;;  %v15603_v60 = vpop.permute.xlu0 %5014 }
 0x351   : > { %v4233_v50 = vsel %vm1358_vm0, %v19570_v25, %v19568_v13  ;;  %v7109_v12 = vsel %vm6932_vm1, %v7072_v17, 0  ;;  %v4265_v36 = vsel %vm1358_vm0, %v19576_v34, %v19560_v61  ;;  %v19577_v17 = vld [vmem:[#allocation92_spill] sm:$0xff]  ;;  %v5068_v25 = vpack.i.b16 %v5029_v41, %v15369_v26  ;;  %v19580_v34 = vld [vmem:[#allocation61_spill] sm:$0xff] }
 0x352   : > { %v4237_v31 = vperm.slane %v4233_v50, %v12672_v3  ;;  %v4252_v48 = vsel %vm1358_vm0, %v19575_v19, %v19573_v52  ;;  %7131 = vmatpush.bf16.xpose.msrb.mxu0 %v7109_v12  ;;  %v7254_v49 = vsel %vm6932_vm1, %v7217_v33, 0  ;;  %v7362_v9 = vpack.c.b16 %v7349_v16, %v7348_v57 }
 0x353   : > { %v4256_v55 = vperm.slane %v4252_v48, %v12672_v3  ;;  %7276 = vmatpush.bf16.xpose.msrb.mxu1 %v7254_v49  ;;  %v4269_v7 = vperm.slane %v4265_v36, %v12672_v3  ;;  %v19578_v13 = vrot.slane %v19577_v17, 4  ;;  %v5070_v61 = vshrl.u32 %v5029_v41, 16 }
 0x354   : > { %v4238_v20 = vrot.slane %v4237_v31, 4  ;;  %v7399_v50 = vsel %vm6932_vm1, %v7362_v9, 0  ;;  %v19579_v59 = vshrl.u32 %v15369_v26, 16  ;;  %v5261_v10 = vperm.slane %v5068_v25, %v12672_v3 }
 0x355   : > { %v4271_v56 = vsel %vm1358_vm0, %v19578_v13, %v15559_v22  ;;  %v4257_v33 = vrot.slane %v4256_v55, 4  ;;  %7421 = vmatpush.bf16.xpose.msrb.mxu2 %v7399_v50  ;;  %v4767_v52 = vshrl.u32 %v15580_v32, 16  ;;  %v19581_v36 = vrot.slane %v19580_v34, 4  ;;  %v19582_v50 = vld [vmem:[#allocation63_spill] sm:$0xff] }
 0x356   : > { %v4239_v57 = vsel %vm1358_vm0, %v4238_v20, %v4231_v30  ;;  %v4275_v16 = vperm.slane %v4271_v56, %v12672_v3  ;;  %v5071_v62 = vpack.i.b16 %v5070_v61, %v19579_v59  ;;  %v4225_v30 = vrot.slane %v15580_v32, 4 }
 0x357   : > { %v4243_v31 = vperm.slane %v4239_v57, %v12689_v21  ;;  %v4258_v12 = vsel %vm1358_vm0, %v4257_v33, %v4250_v24  ;;  %v5262_v48 = vrot.slane %v5261_v10, 4  ;;  %v5265_v26 = vsel %vm1358_vm0, %v5261_v10, %v19581_v36 }
 0x358   : > { %v4276_v41 = vrot.slane %v4275_v16, 4  ;;  %v4262_v44 = vperm.slane %v4258_v12, %v12689_v21  ;;  %v5273_v9 = vperm.slane %v5265_v26, %v12689_v21  ;;  %v5287_v24 = vperm.slane %v5071_v62, %v12672_v3 }
 0x359   : > { %v4766_v19 = vpack.i.b16 %v4243_v31, %v15580_v32  ;;  %v4768_v20 = vshrl.u32 %v4243_v31, 16  ;;  %v5263_v13 = vsel %vm1358_vm0, %v5262_v48, %v19580_v34 }
 0x35a   : > { %v4277_v49 = vsel %vm1358_vm0, %v4276_v41, %v4269_v7  ;;  %v4779_v56 = vshrl.u32 %v4262_v44, 16  ;;  %v15634_v32 = vperm.slane %v5263_v13, %v12689_v21  ;;  %v15636_v25 = vrot.slane %v5273_v9, 4  ;;  %v19588_v13 = vld [vmem:[#allocation57_spill] sm:$0xff] }
 0x35b   : > { %v4281_v55 = vperm.slane %v4277_v49, %v12689_v21  ;;  %v6910_v17 = vunpack.c.l.b16 %v4766_v19  ;;  %v5288_v61 = vrot.slane %v5287_v24, 4  ;;  %v19583_v7 = vrot.slane %v19582_v50, 4 }
 0x35c   : > { %v4769_v59 = vpack.i.b16 %v4768_v20, %v4767_v52  ;;  %v5274_v10 = vrot.slane %v15634_v32, 4  ;;  %v15645_v12 = vsel %vm1358_vm0, 0, %v15636_v25  ;;  %v4226_v19 = vsel %vm1358_vm0, 0, %v4225_v30 }
 0x35d   : > { %v5291_v57 = vsel %vm1358_vm0, %v5287_v24, %v19583_v7  ;;  %v4778_v33 = vpack.i.b16 %v4281_v55, %v4262_v44  ;;  %v4780_v62 = vshrl.u32 %v4281_v55, 16  ;;  %v5289_v41 = vsel %vm1358_vm0, %v5288_v61, %v19582_v50  ;;  %v19586_v50 = vld [vmem:[#allocation40_spill] sm:$0xff] }
 0x35e   : > { %v5299_v16 = vperm.slane %v5291_v57, %v12689_v21  ;;  %v15651_v34 = vperm.slane %v5289_v41, %v12689_v21  ;;  %v15657_v26 = vsel %vm1358_vm0, 0, %v5274_v10  ;;  %v7056_v9 = vunpack.c.l.b16 %v4769_v59 }
 0x35f   : > { %v6911_v48 = vunpack.c.l.b16 %v4778_v33  ;;  %v4781_v49 = vpack.i.b16 %v4780_v62, %v4779_v56  ;;  %v4244_v24 = vrot.slane %v4243_v31, 4  ;;  %v4263_v61 = vrot.slane %v4262_v44, 4 }
 0x360   : > { %v15653_v36 = vrot.slane %v5299_v16, 4  ;;  %v4282_v33 = vrot.slane %v4281_v55, 4  ;;  %v4773_v31 = vshrl.u32 %v4226_v19, 16 }
 0x361   : > { %v6925_v20 = vpack.c.b16 %v6911_v48, %v6910_v17  ;;  %v7057_v7 = vunpack.c.l.b16 %v4781_v49  ;;  %v4245_v57 = vsel %vm1358_vm0, 0, %v4244_v24  ;;  %v4264_v56 = vsel %vm1358_vm0, 0, %v4263_v61 }
 0x362   : > { %19584 = vst [vmem:[#allocation162_spill] sm:$0xff] %v15653_v36  ;;  %v15662_v30 = vsel %vm1358_vm0, 0, %v15653_v36  ;;  %v4772_v59 = vpack.i.b16 %v4245_v57, %v4226_v19  ;;  %v4283_v62 = vsel %vm1358_vm0, 0, %v4282_v33  ;;  %v4774_v10 = vshrl.u32 %v4245_v57, 16 }
 0x363   : > { %19585 = vst [vmem:[#allocation164_spill] sm:$0xff] %v15662_v30  ;;  %v6961_v16 = vsel %vm6932_vm1, %v6925_v20, 0  ;;  %v7071_v17 = vpack.c.b16 %v7057_v7, %v7056_v9  ;;  %v4785_v41 = vshrl.u32 %v4264_v56, 16  ;;  %v4784_v48 = vpack.i.b16 %v4283_v62, %v4264_v56  ;;  %v19591_v9 = vld [vmem:[#allocation38_spill] sm:$0xff] }
 0x364   : > { %6987 = vmatpush.bf16.xpose.msra.mxu3 %v6961_v16  ;;  %v7201_v44 = vunpack.c.l.b16 %v4772_v59  ;;  %v4786_v52 = vshrl.u32 %v4283_v62, 16  ;;  %v19587_v49 = vrot.slane %v19586_v50, 4  ;;  %v4775_v20 = vpack.i.b16 %v4774_v10, %v4773_v31  ;;  %v19590_v16 = vld [vmem:[#allocation37_spill] sm:$0xff]  ;;  %v19592_v59 = vld [vmem:[#allocation43_spill] sm:$0xff]  ;;  %v19596_v30 = vld [vmem:[#allocation42_spill] sm:$0xff] }
 0x365   : > { %v7106_v55 = vsel %vm6932_vm1, %v7071_v17, 0  ;;  %v19589_v61 = vrot.slane %v19588_v13, 4  ;;  %v4132_v7 = vsel %vm1358_vm0, %v19591_v9, %v19590_v16  ;;  %v7202_v57 = vunpack.c.l.b16 %v4784_v48  ;;  %v19593_v62 = vld [vmem:[#allocation39_spill] sm:$0xff]  ;;  %v19595_v10 = vld [vmem:[#allocation41_spill] sm:$0xff] }
 0x366   : > { %v3349_v24 = vsel %vm1358_vm0, 0, %v19587_v49  ;;  %7132 = vmatpush.bf16.xpose.msrb.mxu0 %v7106_v55  ;;  %v4787_v33 = vpack.i.b16 %v4786_v52, %v4785_v41  ;;  %v4136_v56 = vperm.slane %v4132_v7, %v12672_v3  ;;  %v19594_v22 = vrot.slane %v19593_v62, 4  ;;  %v19598_v7 = vld [vmem:[#allocation53_spill] sm:$0xff]  ;;  %v19601_v62 = vld [vmem:[#allocation56_spill] sm:$0xff] }
 0x367   : > { %v3401_v19 = vsel %vm1358_vm0, 0, %v19589_v61  ;;  %v7346_v17 = vunpack.c.l.b16 %v4775_v20  ;;  %v4151_v61 = vsel %vm1358_vm0, %v19595_v10, %v19586_v50  ;;  %v19597_v36 = vrot.slane %v19596_v30, 4  ;;  %v19603_v30 = vld [vmem:[#allocation58_spill] sm:$0xff] }
 0x368   : > { %v4138_v49 = vsel %vm1358_vm0, %v19594_v22, %v19592_v59  ;;  %v7216_v48 = vpack.c.b16 %v7202_v57, %v7201_v44  ;;  %v7347_v52 = vunpack.c.l.b16 %v4787_v33  ;;  %v4155_v41 = vperm.slane %v4151_v61, %v12672_v3  ;;  %v19599_v22 = vld [vmem:[#allocation54_spill] sm:$0xff] }
 0x369   : > { %v4142_v31 = vperm.slane %v4138_v49, %v12672_v3  ;;  %v4157_v55 = vsel %vm1358_vm0, %v19597_v36, %v3349_v24  ;;  %v4170_v20 = vsel %vm1358_vm0, %v19599_v22, %v19598_v7  ;;  %v19600_v59 = vld [vmem:[#allocation62_spill] sm:$0xff]  ;;  %v19602_v49 = vrot.slane %v19601_v62, 4 }
 0x36a   : > { %v4161_v16 = vperm.slane %v4157_v55, %v12672_v3  ;;  %v4189_v36 = vsel %vm1358_vm0, %v19603_v30, %v19588_v13  ;;  %v7251_v44 = vsel %vm6932_vm1, %v7216_v48, 0  ;;  %v7361_v24 = vpack.c.b16 %v7347_v52, %v7346_v17  ;;  %v19604_v55 = vld [vmem:[#allocation60_spill] sm:$0xff] }
 0x36b   : > { %v4143_v9 = vrot.slane %v4142_v31, 4  ;;  %v4176_v50 = vsel %vm1358_vm0, %v19602_v49, %v19600_v59  ;;  %v4174_v33 = vperm.slane %v4170_v20, %v12672_v3  ;;  %7277 = vmatpush.bf16.xpose.msrb.mxu1 %v7251_v44  ;;  %v4193_v61 = vperm.slane %v4189_v36, %v12672_v3 }
 0x36c   : > { %v4162_v57 = vrot.slane %v4161_v16, 4  ;;  %v4180_v10 = vperm.slane %v4176_v50, %v12672_v3  ;;  %v19605_v7 = vrot.slane %v19604_v55, 4  ;;  %v7396_v59 = vsel %vm6932_vm1, %v7361_v24, 0 }
 0x36d   : > { %v4144_v31 = vsel %vm1358_vm0, %v4143_v9, %v4136_v56  ;;  %7422 = vmatpush.bf16.xpose.msrb.mxu2 %v7396_v59  ;;  %v19606_v16 = vrot.slane %v14913_v29, 4  ;;  %v19608_v49 = vrot.slane %v14903_v51, 4  ;;  %v6635_v30 = vsel %vm1358_vm0, %v14915_v14, %v14913_v29 }
 0x36e   : > { %v4195_v22 = vsel %vm1358_vm0, %v19605_v7, %v3401_v19  ;;  %v15713_v13 = vperm.slane %v4144_v31, %v12689_v21  ;;  %v4163_v17 = vsel %vm1358_vm0, %v4162_v57, %v4155_v41  ;;  %v4181_v52 = vrot.slane %v4180_v10, 4 }
 0x36f   : > { %v4199_v48 = vperm.slane %v4195_v22, %v12672_v3  ;;  %v15718_v56 = vperm.slane %v4163_v17, %v12689_v21  ;;  %v6029_v9 = vsel %vm1358_vm0, 0, %v19606_v16  ;;  %v19607_v19 = vrot.slane %v14988_v35, 4  ;;  %v5031_v17 = vpop.permute.xlu2 %5030 }
 0x370   : > { %v6616_v41 = vsel %vm1358_vm0, %v14891_v54, %v14888_v5  ;;  %v6622_v50 = vsel %vm1358_vm0, %v19608_v49, %v14910_v8  ;;  %v4182_v36 = vsel %vm1358_vm0, %v4181_v52, %v4174_v33  ;;  %v6639_v51 = vperm.slane %v6635_v30, %v12672_v3 }
 0x371   : > { %v6081_v20 = vsel %vm1358_vm0, 0, %v19607_v19  ;;  %v4200_v62 = vrot.slane %v4199_v48, 4  ;;  %v4742_v44 = vpack.i.b16 %v15718_v56, %v15713_v13  ;;  %v6620_v24 = vperm.slane %v6616_v41, %v12672_v3 }
 0x372   : > { %v6626_v57 = vperm.slane %v6622_v50, %v12672_v3  ;;  %v15742_v5 = vperm.slane %v4182_v36, %v12689_v21  ;;  %v19609_v8 = vrot.slane %v14929_v6, 4  ;;  %v6654_v55 = vsel %vm1358_vm0, %v14974_v4, %v14972_v37 }
 0x373   : > { %v4201_v54 = vsel %vm1358_vm0, %v4200_v62, %v4193_v61  ;;  %v6908_v33 = vunpack.c.l.b16 %v4742_v44  ;;  %v19610_v61 = vrot.slane %v14983_v43, 4  ;;  %v6673_v6 = vsel %vm1358_vm0, %v14990_v28, %v14988_v35  ;;  %v5045_v43 = vpop.permute.xlu0 %5044 }
 0x374   : > { %v6641_v29 = vsel %vm1358_vm0, %v19609_v8, %v6029_v9  ;;  %v15750_v14 = vperm.slane %v4201_v54, %v12689_v21  ;;  %v6627_v31 = vrot.slane %v6626_v57, 4  ;;  %v19611_v22 = vrot.slane %v15001_v0, 4 }
 0x375   : > { %v6645_v10 = vperm.slane %v6641_v29, %v12672_v3  ;;  %v6660_v7 = vsel %vm1358_vm0, %v19610_v61, %v14994_v45  ;;  %v6658_v4 = vperm.slane %v6654_v55, %v12672_v3  ;;  %v6677_v35 = vperm.slane %v6673_v6, %v12672_v3  ;;  %v19613_v61 = vld [vmem:[#allocation51_spill] sm:$0xff] }
 0x376   : > { %v6679_v59 = vsel %vm1358_vm0, %v19611_v22, %v6081_v20  ;;  %v4754_v48 = vpack.i.b16 %v15750_v14, %v15742_v5  ;;  %v6628_v52 = vsel %vm1358_vm0, %v6627_v31, %v6620_v24  ;;  %v6664_v16 = vperm.slane %v6660_v7, %v12672_v3 }
 0x377   : > { %v6646_v37 = vrot.slane %v6645_v10, 4  ;;  %v15771_v45 = vperm.slane %v6628_v52, %v12689_v21  ;;  %v6683_v28 = vperm.slane %v6679_v59, %v12672_v3  ;;  %v5080_v19 = vpack.i.b16 %v5031_v17, %v15526_v11 }
 0x378   : > { %v6909_v0 = vunpack.c.l.b16 %v4754_v48  ;;  %v5082_v20 = vshrl.u32 %v5031_v17, 16  ;;  %v6665_v41 = vrot.slane %v6664_v16, 4  ;;  %v5164_v50 = vpack.i.b16 %v5045_v43, %v15539_v39 }
 0x379   : > { %v6647_v9 = vsel %vm1358_vm0, %v6646_v37, %v6639_v51  ;;  %v6684_v49 = vrot.slane %v6683_v28, 4  ;;  %v19612_v36 = vshrl.u32 %v15526_v11, 16  ;;  %v5313_v24 = vperm.slane %v5080_v19, %v12672_v3 }
 0x37a   : > { %v15779_v62 = vperm.slane %v6647_v9, %v12689_v21  ;;  %v6924_v30 = vpack.c.b16 %v6909_v0, %v6908_v33  ;;  %v5166_v57 = vshrl.u32 %v5045_v43, 16  ;;  %v6666_v54 = vsel %vm1358_vm0, %v6665_v41, %v6658_v4  ;;  %v19618_v9 = vld [vmem:[#allocation215_spill] sm:$0xff] }
 0x37b   : > { %v5083_v44 = vpack.i.b16 %v5082_v20, %v19612_v36  ;;  %v6685_v51 = vsel %vm1358_vm0, %v6684_v49, %v6677_v35  ;;  %v5677_v29 = vperm.slane %v5164_v50, %v12672_v3  ;;  %v15792_v10 = vperm.slane %v6666_v54, %v12689_v21  ;;  %v19616_v35 = vld [vmem:[#allocation52_spill] sm:$0xff] }
 0x37c   : > { %v6862_v8 = vpack.i.b16 %v15779_v62, %v15771_v45  ;;  %v6958_v31 = vsel %vm6932_vm1, %v6924_v30, 0  ;;  %v15795_v11 = vperm.slane %v6685_v51, %v12689_v21  ;;  %v5314_v33 = vrot.slane %v5313_v24, 4 }
 0x37d   : > { %6988 = vmatpush.bf16.xpose.msra.mxu3 %v6958_v31  ;;  %v19614_v7 = vrot.slane %v19613_v61, 4  ;;  %v5339_v22 = vperm.slane %v5083_v44, %v12672_v3  ;;  %v19615_v59 = vshrl.u32 %v15539_v39, 16  ;;  %v5678_v4 = vrot.slane %v5677_v29, 4 }
 0x37e   : > { %v8236_v55 = vunpack.c.l.b16 %v6862_v8  ;;  %v6874_v48 = vpack.i.b16 %v15795_v11, %v15792_v10  ;;  %v5315_v52 = vsel %vm1358_vm0, %v5314_v33, %v19613_v61  ;;  %v19617_v28 = vrot.slane %v19616_v35, 4 }
 0x37f   : > { %v5317_v6 = vsel %vm1358_vm0, %v5313_v24, %v19614_v7  ;;  %v5167_v17 = vpack.i.b16 %v5166_v57, %v19615_v59  ;;  %v15809_v43 = vperm.slane %v5315_v52, %v12689_v21  ;;  %v5340_v16 = vrot.slane %v5339_v22, 4 }
 0x380   : > { %v5325_v37 = vperm.slane %v5317_v6, %v12689_v21  ;;  %v5343_v0 = vsel %vm1358_vm0, %v5339_v22, %v19617_v28  ;;  %v19619_v39 = vrot.slane %v19618_v9, 4  ;;  %v8237_v20 = vunpack.c.l.b16 %v6874_v48 }
 0x381   : > { %v5351_v49 = vperm.slane %v5343_v0, %v12689_v21  ;;  %v5679_v50 = vsel %vm1358_vm0, %v5678_v4, %v19618_v9  ;;  %v5326_v30 = vrot.slane %v15809_v43, 4  ;;  %v5341_v36 = vsel %vm1358_vm0, %v5340_v16, %v19616_v35  ;;  %v19623_v16 = vld [vmem:[#allocation219_spill] sm:$0xff] }
 0x382   : > { %v5681_v19 = vsel %vm1358_vm0, %v5677_v29, %v19619_v39  ;;  %v15817_v41 = vrot.slane %v5325_v37, 4  ;;  %v15826_v44 = vperm.slane %v5679_v50, %v12689_v21  ;;  %v8245_v57 = vpack.c.b16 %v8237_v20, %v8236_v55 }
 0x383   : > { %v5689_v24 = vperm.slane %v5681_v19, %v12689_v21  ;;  %v15834_v51 = vperm.slane %v5341_v36, %v12689_v21  ;;  %v15836_v8 = vrot.slane %v5351_v49, 4  ;;  %v15839_v29 = vsel %vm1358_vm0, 0, %v5326_v30 }
 0x384   : > { %v15831_v54 = vsel %vm1358_vm0, 0, %v15817_v41  ;;  %v5690_v33 = vrot.slane %v15826_v44, 4  ;;  %v5703_v6 = vperm.slane %v5167_v17, %v12672_v3  ;;  %v4743_v22 = vshrl.u32 %v15713_v13, 16 }
 0x385   : > { %19620 = vst [vmem:[#allocation165_spill] sm:$0xff] %v15831_v54  ;;  %v15843_v61 = vrot.slane %v5689_v24, 4  ;;  %8254 = vmatpush.bf16.msrb.mxu3 %v8245_v57  ;;  %v15848_v7 = vsel %vm1358_vm0, 0, %v15836_v8  ;;  %v4744_v37 = vshrl.u32 %v15718_v56, 16  ;;  %v19624_v35 = vrot.slane %v19623_v16, 4 }
 0x386   : > { %19621 = vst [vmem:[#allocation170_spill] sm:$0xff] %v15836_v8  ;;  %v15854_v48 = vsel %vm1358_vm0, 0, %v5690_v33  ;;  %v5704_v4 = vrot.slane %v5703_v6, 4  ;;  %v4755_v0 = vshrl.u32 %v15742_v5, 16  ;;  %v4756_v19 = vshrl.u32 %v15750_v14, 16  ;;  %v19747_v8 = vld [vmem:[#allocation160_spill] sm:$0xff] }
 0x387   : > { %19622 = vst [vmem:[#allocation166_spill] sm:$0xff] %v15848_v7  ;;  %v15858_v52 = vsel %vm1358_vm0, 0, %v15843_v61  ;;  %v5707_v28 = vsel %vm1358_vm0, %v5703_v6, %v19624_v35  ;;  %v4745_v39 = vpack.i.b16 %v4744_v37, %v4743_v22  ;;  %v4149_v20 = vrot.slane %v15713_v13, 4  ;;  %v19744_v7 = vld [vmem:[#allocation195_spill] sm:$0xff] }
 0x388   : > { %v5715_v9 = vperm.slane %v5707_v28, %v12689_v21  ;;  %v5705_v49 = vsel %vm1358_vm0, %v5704_v4, %v19623_v16  ;;  %v4168_v50 = vrot.slane %v15718_v56, 4  ;;  %v4187_v30 = vrot.slane %v15742_v5, 4 }
 0x389   : > { %v4206_v36 = vrot.slane %v15750_v14, 4  ;;  %v15875_v24 = vperm.slane %v5705_v49, %v12689_v21  ;;  %v4757_v33 = vpack.i.b16 %v4756_v19, %v4755_v0  ;;  %v7054_v6 = vunpack.c.l.b16 %v4745_v39 }
 0x38a   : > { %v15877_v57 = vrot.slane %v5715_v9, 4  ;;  %v4150_v22 = vsel %vm1358_vm0, 0, %v4149_v20  ;;  %v4169_v13 = vsel %vm1358_vm0, 0, %v4168_v50  ;;  %v4188_v37 = vsel %vm1358_vm0, 0, %v4187_v30 }
 0x38b   : > { %v4207_v4 = vsel %vm1358_vm0, 0, %v4206_v36  ;;  %v7055_v14 = vunpack.c.l.b16 %v4757_v33  ;;  %v4748_v16 = vpack.i.b16 %v4169_v13, %v4150_v22  ;;  %v6863_v0 = vshrl.u32 %v15771_v45, 16 }
 0x38c   : > { %v15886_v5 = vsel %vm1358_vm0, 0, %v15877_v57  ;;  %v4760_v28 = vpack.i.b16 %v4207_v4, %v4188_v37  ;;  %v6864_v9 = vshrl.u32 %v15779_v62, 16  ;;  %v6875_v20 = vshrl.u32 %v15792_v10, 16 }
 0x38d   : > { %v7070_v39 = vpack.c.b16 %v7055_v14, %v7054_v6  ;;  %v7199_v19 = vunpack.c.l.b16 %v4748_v16  ;;  %v6876_v49 = vshrl.u32 %v15795_v11, 16  ;;  %v6633_v36 = vrot.slane %v15771_v45, 4 }
 0x38e   : > { %v7200_v50 = vunpack.c.l.b16 %v4760_v28  ;;  %v6865_v30 = vpack.i.b16 %v6864_v9, %v6863_v0  ;;  %v6652_v33 = vrot.slane %v15779_v62, 4  ;;  %v6671_v55 = vrot.slane %v15792_v10, 4 }
 0x38f   : > { %v7103_v59 = vsel %vm6932_vm1, %v7070_v39, 0  ;;  %v6877_v31 = vpack.i.b16 %v6876_v49, %v6875_v20  ;;  %v6690_v35 = vrot.slane %v15795_v11, 4  ;;  %v6634_v16 = vsel %vm1358_vm0, 0, %v6633_v36 }
 0x390   : > { %7133 = vmatpush.bf16.xpose.msrb.mxu0 %v7103_v59  ;;  %v7215_v6 = vpack.c.b16 %v7200_v50, %v7199_v19  ;;  %v8365_v14 = vunpack.c.l.b16 %v6865_v30  ;;  %v6653_v17 = vsel %vm1358_vm0, 0, %v6652_v33  ;;  %v6672_v0 = vsel %vm1358_vm0, 0, %v6671_v55 }
 0x391   : > { %v8366_v28 = vunpack.c.l.b16 %v6877_v31  ;;  %v6691_v45 = vsel %vm1358_vm0, 0, %v6690_v35  ;;  %v6868_v62 = vpack.i.b16 %v6653_v17, %v6634_v16  ;;  %v4749_v20 = vshrl.u32 %v4150_v22, 16 }
 0x392   : > { %v7248_v9 = vsel %vm6932_vm1, %v7215_v6, 0  ;;  %v6880_v39 = vpack.i.b16 %v6691_v45, %v6672_v0  ;;  %v4750_v10 = vshrl.u32 %v4169_v13, 16  ;;  %v4761_v19 = vshrl.u32 %v4188_v37, 16 }
 0x393   : > { %7278 = vmatpush.bf16.xpose.msrb.mxu1 %v7248_v9  ;;  %v8374_v11 = vpack.c.b16 %v8366_v28, %v8365_v14  ;;  %v8494_v59 = vunpack.c.l.b16 %v6868_v62  ;;  %v4762_v49 = vshrl.u32 %v4207_v4, 16  ;;  %v19625_v36 = vrot.slane %v15319_v42, 4 }
 0x394   : > { %v8495_v50 = vunpack.c.l.b16 %v6880_v39  ;;  %v4751_v30 = vpack.i.b16 %v4750_v10, %v4749_v20  ;;  %v6540_v55 = vsel %vm1358_vm0, %v15304_v27, %v15302_v15  ;;  %v19626_v13 = vrot.slane %v15313_v63, 4 }
 0x395   : > { %v5925_v31 = vsel %vm1358_vm0, 0, %v19625_v36  ;;  %v4763_v35 = vpack.i.b16 %v4762_v49, %v4761_v19  ;;  %v6544_v22 = vperm.slane %v6540_v55, %v12672_v3  ;;  %v6559_v4 = vsel %vm1358_vm0, %v15321_v46, %v15319_v42 }
 0x396   : > { %v6546_v37 = vsel %vm1358_vm0, %v19626_v13, %v15325_v53  ;;  %v8503_v33 = vpack.c.b16 %v8495_v50, %v8494_v59  ;;  %v7344_v6 = vunpack.c.l.b16 %v4751_v30  ;;  %v6563_v28 = vperm.slane %v6559_v4, %v12672_v3  ;;  %v19631_v4 = vld [vmem:[#allocation35_spill] sm:$0xff] }
 0x397   : > { %v6550_v14 = vperm.slane %v6546_v37, %v12672_v3  ;;  %v7345_v15 = vunpack.c.l.b16 %v4763_v35  ;;  %v19627_v27 = vrot.slane %v15331_v23, 4  ;;  %v6578_v63 = vsel %vm1358_vm0, %v15211_v38, %v15194_v47  ;;  %v19629_v47 = vld [vmem:[#allocation190_spill] sm:$0xff] }
 0x398   : > { %8383 = vmatpush.bf16.msra.mxu0 %v8374_v11  ;;  %v19628_v53 = vrot.slane %v15219_v1, 4  ;;  %v6582_v39 = vperm.slane %v6578_v63, %v12672_v3  ;;  %v6597_v10 = vsel %vm1358_vm0, %v15228_v2, %v15206_v58  ;;  %v19630_v38 = vrot.slane %v19629_v47, 4 }
 0x399   : > { %v6565_v62 = vsel %vm1358_vm0, %v19627_v27, %v5925_v31  ;;  %v6551_v46 = vrot.slane %v6550_v14, 4  ;;  %v7360_v23 = vpack.c.b16 %v7345_v15, %v7344_v6  ;;  %v6869_v11 = vshrl.u32 %v6634_v16, 16  ;;  %v19632_v6 = vld [vmem:[#allocation34_spill] sm:$0xff]  ;;  %v19633_v14 = vld [vmem:[#allocation32_spill] sm:$0xff]  ;;  %v19636_v27 = vld [vmem:[#allocation31_spill] sm:$0xff] }
 0x39a   : > { %v6584_v42 = vsel %vm1358_vm0, %v19628_v53, %v15209_v40  ;;  %v6569_v9 = vperm.slane %v6565_v62, %v12672_v3  ;;  %v6603_v1 = vsel %vm1358_vm0, %v19630_v38, %v15224_v18  ;;  %v6601_v49 = vperm.slane %v6597_v10, %v12672_v3 }
 0x39b   : > { %8512 = vmatpush.bf16.msra.mxu1 %v8503_v33  ;;  %v6588_v20 = vperm.slane %v6584_v42, %v12672_v3  ;;  %v6552_v40 = vsel %vm1358_vm0, %v6551_v46, %v6544_v22  ;;  %v7393_v50 = vsel %vm6932_vm1, %v7360_v23, 0  ;;  %v6607_v36 = vperm.slane %v6603_v1, %v12672_v3 }
 0x39c   : > { %v6570_v59 = vrot.slane %v6569_v9, 4  ;;  %v6556_v30 = vperm.slane %v6552_v40, %v12689_v21  ;;  %v6870_v31 = vshrl.u32 %v6653_v17, 16  ;;  %7423 = vmatpush.bf16.xpose.msrb.mxu2 %v7393_v50  ;;  %v6881_v18 = vshrl.u32 %v6672_v0, 16  ;;  %v19642_v50 = vld [vmem:[#allocation44_spill] sm:$0xff] }
 0x39d   : > { %v6589_v19 = vrot.slane %v6588_v20, 4  ;;  %v6882_v16 = vshrl.u32 %v6691_v45, 16  ;;  %v6608_v22 = vrot.slane %v6607_v36, 4  ;;  %v2184_v33 = vperm.slane %v19631_v4, %v12672_v3  ;;  %v19638_v20 = vld [vmem:[#allocation33_spill] sm:$0xff] }
 0x39e   : > { %v6571_v58 = vsel %vm1358_vm0, %v6570_v59, %v6563_v28  ;;  %v6871_v13 = vpack.i.b16 %v6870_v31, %v6869_v11  ;;  %v19634_v17 = vrot.slane %v19633_v14, 4  ;;  %v19635_v28 = vld [vmem:[#allocation30_spill] sm:$0xff]  ;;  %v19639_v23 = vrot.slane %v19638_v20, 4  ;;  %v19640_v11 = vld [vmem:[#allocation48_spill] sm:$0xff] }
 0x39f   : > { %v6590_v2 = vsel %vm1358_vm0, %v6589_v19, %v6582_v39  ;;  %v6575_v55 = vperm.slane %v6571_v58, %v12689_v21  ;;  %v6883_v37 = vpack.i.b16 %v6882_v16, %v6881_v18  ;;  %v2199_v0 = vsel %vm1358_vm0, %v19636_v27, %v19635_v28  ;;  %v19637_v39 = vld [vmem:[#allocation36_spill] sm:$0xff]  ;;  %v19644_v58 = vld [vmem:[#allocation45_spill] sm:$0xff]  ;;  %v19646_v14 = vld [vmem:[#allocation50_spill] sm:$0xff] }
 0x3a0   : > { %v6594_v35 = vperm.slane %v6590_v2, %v12689_v21  ;;  %v2186_v15 = vsel %vm1358_vm0, %v19634_v17, %v19632_v6  ;;  %v6609_v45 = vsel %vm1358_vm0, %v6608_v22, %v6601_v49  ;;  %v8623_v63 = vunpack.c.l.b16 %v6871_v13  ;;  %v19641_v49 = vld [vmem:[#allocation46_spill] sm:$0xff]  ;;  %v19645_v2 = vld [vmem:[#allocation47_spill] sm:$0xff]  ;;  %v19647_v17 = vld [vmem:[#allocation49_spill] sm:$0xff] }
 0x3a1   : > { %v6838_v62 = vpack.i.b16 %v6575_v55, %v6556_v30  ;;  %v2190_v53 = vperm.slane %v2186_v15, %v12672_v3  ;;  %v6613_v42 = vperm.slane %v6609_v45, %v12689_v21  ;;  %v8624_v46 = vunpack.c.l.b16 %v6883_v37 }
 0x3a2   : > { %v2203_v9 = vperm.slane %v2199_v0, %v12672_v3  ;;  %v2205_v10 = vsel %vm1358_vm0, %v19639_v23, %v19637_v39  ;;  %v2222_v40 = vperm.slane %v19640_v11, %v12672_v3  ;;  %v19643_v36 = vrot.slane %v19642_v50, 4 }
 0x3a3   : > { %v8234_v47 = vunpack.c.l.b16 %v6838_v62  ;;  %v2191_v38 = vrot.slane %v2190_v53, 4  ;;  %v2209_v1 = vperm.slane %v2205_v10, %v12672_v3  ;;  %v6850_v59 = vpack.i.b16 %v6613_v42, %v6594_v35 }
 0x3a4   : > { %v8632_v19 = vpack.c.b16 %v8624_v46, %v8623_v63  ;;  %v2224_v31 = vsel %vm1358_vm0, %v19643_v36, %v19641_v49  ;;  %v2237_v18 = vsel %vm1358_vm0, %v19645_v2, %v19644_v58  ;;  %v19648_v15 = vrot.slane %v19647_v17, 4 }
 0x3a5   : > { %v2192_v16 = vsel %vm1358_vm0, %v2191_v38, %v2184_v33  ;;  %v2210_v22 = vrot.slane %v2209_v1, 4  ;;  %v2228_v13 = vperm.slane %v2224_v31, %v12672_v3  ;;  %v2241_v37 = vperm.slane %v2237_v18, %v12672_v3 }
 0x3a6   : > { %v8235_v4 = vunpack.c.l.b16 %v6850_v59  ;;  %8641 = vmatpush.bf16.msra.mxu2 %v8632_v19  ;;  %v15979_v6 = vperm.slane %v2192_v16, %v12689_v21  ;;  %v2243_v28 = vsel %vm1358_vm0, %v19648_v15, %v19646_v14  ;;  %v6839_v27 = vshrl.u32 %v6556_v30, 16 }
 0x3a7   : > { %v2211_v0 = vsel %vm1358_vm0, %v2210_v22, %v2203_v9  ;;  %v2229_v45 = vrot.slane %v2228_v13, 4  ;;  %v2247_v33 = vperm.slane %v2243_v28, %v12672_v3  ;;  %v6840_v62 = vshrl.u32 %v6575_v55, 16 }
 0x3a8   : > { %v8244_v63 = vpack.c.b16 %v8235_v4, %v8234_v47  ;;  %v15988_v53 = vperm.slane %v2211_v0, %v12689_v21  ;;  %v6851_v46 = vshrl.u32 %v6594_v35, 16  ;;  %v6852_v39 = vshrl.u32 %v6613_v42, 16 }
 0x3a9   : > { %v2230_v20 = vsel %vm1358_vm0, %v2229_v45, %v2222_v40  ;;  %v2248_v23 = vrot.slane %v2247_v33, 4  ;;  %v6841_v10 = vpack.i.b16 %v6840_v62, %v6839_v27  ;;  %v6557_v38 = vrot.slane %v6556_v30, 4  ;;  %v19651_v45 = vld [vmem:[#allocation188_spill] sm:$0xff] }
 0x3aa   : > { %8255 = vmatpush.bf16.msrb.mxu3 %v8244_v63  ;;  %v15992_v1 = vperm.slane %v2230_v20, %v12689_v21  ;;  %v2790_v9 = vpack.i.b16 %v15988_v53, %v15979_v6  ;;  %v6853_v11 = vpack.i.b16 %v6852_v39, %v6851_v46  ;;  %v6576_v59 = vrot.slane %v6575_v55, 4  ;;  %v19653_v46 = vld [vmem:[#allocation243_spill] sm:$0xff]  ;;  %v19654_v39 = vld [vmem:[#allocation244_spill] sm:$0xff] }
 0x3ab   : > { %v2249_v47 = vsel %vm1358_vm0, %v2248_v23, %v2241_v37  ;;  %v8363_v19 = vunpack.c.l.b16 %v6841_v10  ;;  %v15998_v49 = vsel %vm1358_vm0, 0, %v6557_v38  ;;  %v6595_v50 = vrot.slane %v6594_v35, 4  ;;  %v19655_v23 = vld [vmem:[#allocation248_spill] sm:$0xff]  ;;  %v19656_v10 = vld [vmem:[#allocation245_spill] sm:$0xff] }
 0x3ac   : > { %v16001_v40 = vperm.slane %v2249_v47, %v12689_v21  ;;  %v6884_v30 = vunpack.c.l.b16 %v2790_v9  ;;  %v8364_v36 = vunpack.c.l.b16 %v6853_v11  ;;  %v16004_v31 = vsel %vm1358_vm0, 0, %v6576_v59  ;;  %v19658_v11 = vld [vmem:[#allocation247_spill] sm:$0xff] }
 0x3ad   : > { %v16007_v58 = vsel %vm1358_vm0, 0, %v6595_v50  ;;  %v6614_v2 = vrot.slane %v6613_v42, 4  ;;  %v6844_v55 = vpack.i.b16 %v16004_v31, %v15998_v49  ;;  %v2791_v18 = vshrl.u32 %v15979_v6, 16  ;;  %v19649_v42 = vld [vmem:[#allocation246_spill] sm:$0xff] }
 0x3ae   : > { %v2802_v35 = vpack.i.b16 %v16001_v40, %v15992_v1  ;;  %v8373_v16 = vpack.c.b16 %v8364_v36, %v8363_v19  ;;  %v2792_v22 = vshrl.u32 %v15988_v53, 16  ;;  %v2803_v13 = vshrl.u32 %v15992_v1, 16 }
 0x3af   : > { %v16017_v37 = vsel %vm1358_vm0, 0, %v6614_v2  ;;  %v8492_v4 = vunpack.c.l.b16 %v6844_v55  ;;  %v2804_v14 = vshrl.u32 %v16001_v40, 16  ;;  %v19650_v17 = vrot.slane %v19649_v42, 4 }
 0x3b0   : > { %v6885_v28 = vunpack.c.l.b16 %v2802_v35  ;;  %8384 = vmatpush.bf16.msra.mxu0 %v8373_v16  ;;  %v6856_v27 = vpack.i.b16 %v16017_v37, %v16007_v58  ;;  %v2793_v0 = vpack.i.b16 %v2792_v22, %v2791_v18  ;;  %v19652_v33 = vrot.slane %v19651_v45, 4  ;;  %v19659_v35 = vld [vmem:[#allocation249_spill] sm:$0xff] }
 0x3b1   : > { %v5821_v15 = vsel %vm1358_vm0, 0, %v19650_v17  ;;  %v2805_v63 = vpack.i.b16 %v2804_v14, %v2803_v13  ;;  %v6464_v20 = vsel %vm1358_vm0, %v19654_v39, %v19653_v46  ;;  %v19657_v38 = vrot.slane %v19656_v10, 4  ;;  %v5047_v13 = vpop.permute.xlu0 %5046  ;;  %v19662_v17 = vld [vmem:[#allocation191_spill] sm:$0xff] }
 0x3b2   : > { %v5873_v62 = vsel %vm1358_vm0, 0, %v19652_v33  ;;  %v6483_v59 = vsel %vm1358_vm0, %v19658_v11, %v19649_v42  ;;  %v6900_v47 = vpack.c.b16 %v6885_v28, %v6884_v30  ;;  %v8493_v19 = vunpack.c.l.b16 %v6856_v27  ;;  %v19661_v30 = vld [vmem:[#allocation189_spill] sm:$0xff]  ;;  %v19663_v27 = vld [vmem:[#allocation192_spill] sm:$0xff] }
 0x3b3   : > { %v6470_v9 = vsel %vm1358_vm0, %v19657_v38, %v19655_v23  ;;  %v7030_v50 = vunpack.c.l.b16 %v2793_v0  ;;  %v6468_v36 = vperm.slane %v6464_v20, %v12672_v3  ;;  %v7031_v2 = vunpack.c.l.b16 %v2805_v63  ;;  %v19664_v0 = vld [vmem:[#allocation187_spill] sm:$0xff]  ;;  %v19667_v38 = vld [vmem:[#allocation194_spill] sm:$0xff] }
 0x3b4   : > { %v6474_v55 = vperm.slane %v6470_v9, %v12672_v3  ;;  %v6487_v18 = vperm.slane %v6483_v59, %v12672_v3  ;;  %v19660_v16 = vrot.slane %v19659_v35, 4  ;;  %11290 = vmatmul.msk.bf16.vlgmr.msra.gmra.mxu3 %vm6932_vm1, %v6900_v47  ;;  %v8502_v14 = vpack.c.b16 %v8493_v19, %v8492_v4  ;;  %v19666_v4 = vld [vmem:[#allocation193_spill] sm:$0xff] }
 0x3b5   : > { %v6502_v28 = vsel %vm1358_vm0, %v19662_v17, %v19661_v30  ;;  %v19665_v33 = vrot.slane %v19664_v0, 4  ;;  %v7046_v46 = vpack.c.b16 %v7031_v2, %v7030_v50  ;;  %v6521_v10 = vsel %vm1358_vm0, %v19666_v4, %v19651_v45 }
 0x3b6   : > { %v6489_v22 = vsel %vm1358_vm0, %v19660_v16, %v5821_v15  ;;  %v6475_v39 = vrot.slane %v6474_v55, 4  ;;  %v6506_v20 = vperm.slane %v6502_v28, %v12672_v3  ;;  %8513 = vmatpush.bf16.msra.mxu1 %v8502_v14  ;;  %v19668_v9 = vrot.slane %v19667_v38, 4 }
 0x3b7   : > { %v6493_v42 = vperm.slane %v6489_v22, %v12672_v3  ;;  %v6508_v63 = vsel %vm1358_vm0, %v19665_v33, %v19663_v27  ;;  %v5176_v59 = vpack.i.b16 %v5047_v13, %v15603_v60  ;;  %11298 = vmatmul.msk.bf16.vlgmr.msrb.gmra.mxu0 %vm6932_vm1, %v7046_v46  ;;  %v6525_v50 = vperm.slane %v6521_v10, %v12672_v3  ;;  %v19670_v27 = vld [vmem:[#allocation230_spill] sm:$0xff] }
 0x3b8   : > { %v6512_v15 = vperm.slane %v6508_v63, %v12672_v3  ;;  %v6527_v11 = vsel %vm1358_vm0, %v19668_v9, %v5873_v62  ;;  %v6476_v47 = vsel %vm1358_vm0, %v6475_v39, %v6468_v36  ;;  %v5178_v35 = vshrl.u32 %v5047_v13, 16 }
 0x3b9   : > { %v6494_v23 = vrot.slane %v6493_v42, 4  ;;  %v6531_v2 = vperm.slane %v6527_v11, %v12672_v3  ;;  %v16067_v55 = vperm.slane %v6476_v47, %v12689_v21  ;;  %v5729_v16 = vperm.slane %v5176_v59, %v12672_v3  ;;  %v19672_v11 = vld [vmem:[#allocation231_spill] sm:$0xff] }
 0x3ba   : > { %v6513_v19 = vrot.slane %v6512_v15, 4  ;;  %v2197_v36 = vrot.slane %v15979_v6, 4  ;;  %v19669_v30 = vshrl.u32 %v15603_v60, 16  ;;  %v2235_v10 = vrot.slane %v15992_v1, 4 }
 0x3bb   : > { %v6495_v45 = vsel %vm1358_vm0, %v6494_v23, %v6487_v18  ;;  %v6532_v14 = vrot.slane %v6531_v2, 4  ;;  %v5730_v28 = vrot.slane %v5729_v16, 4  ;;  %v19671_v18 = vrot.slane %v19670_v27, 4 }
 0x3bc   : > { %v16072_v62 = vperm.slane %v6495_v45, %v12689_v21  ;;  %v6514_v22 = vsel %vm1358_vm0, %v6513_v19, %v6506_v20  ;;  %v5179_v17 = vpack.i.b16 %v5178_v35, %v19669_v30  ;;  %v2198_v6 = vsel %vm1358_vm0, 0, %v2197_v36 }
 0x3bd   : > { %v16077_v42 = vperm.slane %v6514_v22, %v12689_v21  ;;  %v5733_v13 = vsel %vm1358_vm0, %v5729_v16, %v19671_v18  ;;  %v6533_v0 = vsel %vm1358_vm0, %v6532_v14, %v6525_v50  ;;  %v5731_v60 = vsel %vm1358_vm0, %v5730_v28, %v19670_v27 }
 0x3be   : > { %v6814_v33 = vpack.i.b16 %v16072_v62, %v16067_v55  ;;  %v5741_v63 = vperm.slane %v5733_v13, %v12689_v21  ;;  %v16090_v46 = vperm.slane %v6533_v0, %v12689_v21  ;;  %v5755_v39 = vperm.slane %v5179_v17, %v12672_v3 }
 0x3bf   : > { %v2216_v20 = vrot.slane %v15988_v53, 4  ;;  %v16097_v23 = vperm.slane %v5731_v60, %v12689_v21  ;;  %v19673_v59 = vrot.slane %v19672_v11, 4  ;;  %v2236_v1 = vsel %vm1358_vm0, 0, %v2235_v10 }
 0x3c0   : > { %v8232_v15 = vunpack.c.l.b16 %v6814_v33  ;;  %v16099_v4 = vrot.slane %v5741_v63, 4  ;;  %v6826_v38 = vpack.i.b16 %v16090_v46, %v16077_v42  ;;  %v5756_v9 = vrot.slane %v5755_v39, 4 }
 0x3c1   : > { %v5759_v47 = vsel %vm1358_vm0, %v5755_v39, %v19673_v59  ;;  %v2217_v19 = vsel %vm1358_vm0, 0, %v2216_v20  ;;  %v5742_v53 = vrot.slane %v16097_v23, 4  ;;  %v2254_v22 = vrot.slane %v16001_v40, 4 }
 0x3c2   : > { %v16111_v50 = vsel %vm1358_vm0, 0, %v16099_v4  ;;  %v5767_v2 = vperm.slane %v5759_v47, %v12689_v21  ;;  %v8233_v45 = vunpack.c.l.b16 %v6826_v38  ;;  %v5757_v35 = vsel %vm1358_vm0, %v5756_v9, %v19672_v11 }
 0x3c3   : > { %v16120_v14 = vsel %vm1358_vm0, 0, %v5742_v53  ;;  %v16123_v36 = vperm.slane %v5757_v35, %v12689_v21  ;;  %v2796_v17 = vpack.i.b16 %v2217_v19, %v2198_v6  ;;  %v2255_v27 = vsel %vm1358_vm0, 0, %v2254_v22  ;;  %v5005_v53 = vpop.permute.xlu0 %5004 }
 0x3c4   : > { %v16125_v30 = vrot.slane %v5767_v2, 4  ;;  %v8243_v28 = vpack.c.b16 %v8233_v45, %v8232_v15  ;;  %v6845_v18 = vshrl.u32 %v15998_v49, 16  ;;  %v6846_v13 = vshrl.u32 %v16004_v31, 16 }
 0x3c5   : > { %v2808_v33 = vpack.i.b16 %v2255_v27, %v2236_v1  ;;  %v7175_v63 = vunpack.c.l.b16 %v2796_v17  ;;  %v6857_v20 = vshrl.u32 %v16007_v58, 16  ;;  %v6858_v15 = vshrl.u32 %v16017_v37, 16 }
 0x3c6   : > { %v16133_v40 = vsel %vm1358_vm0, 0, %v16125_v30  ;;  %8256 = vmatpush.bf16.msrb.mxu3 %v8243_v28  ;;  %v6847_v39 = vpack.i.b16 %v6846_v13, %v6845_v18  ;;  %v6815_v49 = vshrl.u32 %v16067_v55, 16  ;;  %v6816_v31 = vshrl.u32 %v16072_v62, 16 }
 0x3c7   : > { %v7176_v10 = vunpack.c.l.b16 %v2808_v33  ;;  %v6827_v38 = vshrl.u32 %v16077_v42, 16  ;;  %v6859_v9 = vpack.i.b16 %v6858_v15, %v6857_v20  ;;  %v6828_v59 = vshrl.u32 %v16090_v46, 16 }
 0x3c8   : > { %v8621_v11 = vunpack.c.l.b16 %v6847_v39  ;;  %v2797_v47 = vshrl.u32 %v2198_v6, 16  ;;  %v6817_v45 = vpack.i.b16 %v6816_v31, %v6815_v49  ;;  %v2798_v35 = vshrl.u32 %v2217_v19, 16 }
 0x3c9   : > { %v7191_v2 = vpack.c.b16 %v7176_v10, %v7175_v63  ;;  %v2809_v22 = vshrl.u32 %v2236_v1, 16  ;;  %v8622_v58 = vunpack.c.l.b16 %v6859_v9  ;;  %v6829_v17 = vpack.i.b16 %v6828_v59, %v6827_v38 }
 0x3ca   : > { %v2810_v37 = vshrl.u32 %v2255_v27, 16  ;;  %v6481_v28 = vrot.slane %v16067_v55, 4  ;;  %v8361_v18 = vunpack.c.l.b16 %v6817_v45  ;;  %v2799_v13 = vpack.i.b16 %v2798_v35, %v2797_v47 }
 0x3cb   : > { %11306 = vmatmul.msk.bf16.vlgmr.msrb.gmra.mxu1 %vm6932_vm1, %v7191_v2  ;;  %v6500_v33 = vrot.slane %v16072_v62, 4  ;;  %v6519_v39 = vrot.slane %v16077_v42, 4  ;;  %v8631_v20 = vpack.c.b16 %v8622_v58, %v8621_v11  ;;  %v8362_v6 = vunpack.c.l.b16 %v6829_v17  ;;  %v19674_v11 = vld [vmem:[#allocation185_spill] sm:$0xff]  ;;  %v19675_v17 = vld [vmem:[#allocation67_spill] sm:$0xff] }
 0x3cc   : > { %v2811_v15 = vpack.i.b16 %v2810_v37, %v2809_v22  ;;  %v6482_v63 = vsel %vm1358_vm0, 0, %v6481_v28  ;;  %v7320_v19 = vunpack.c.l.b16 %v2799_v13  ;;  %v6538_v55 = vrot.slane %v16090_v46, 4  ;;  %v19676_v13 = vld [vmem:[#allocation68_spill] sm:$0xff] }
 0x3cd   : > { %v6501_v1 = vsel %vm1358_vm0, 0, %v6500_v33  ;;  %v6520_v27 = vsel %vm1358_vm0, 0, %v6519_v39  ;;  %8642 = vmatpush.bf16.msra.mxu2 %v8631_v20  ;;  %v8372_v10 = vpack.c.b16 %v8362_v6, %v8361_v18  ;;  %v6821_v38 = vshrl.u32 %v6482_v63, 16  ;;  %v19677_v33 = vld [vmem:[#allocation64_spill] sm:$0xff]  ;;  %v19679_v6 = vld [vmem:[#allocation65_spill] sm:$0xff] }
 0x3ce   : > { %v7321_v49 = vunpack.c.l.b16 %v2811_v15  ;;  %v6820_v31 = vpack.i.b16 %v6501_v1, %v6482_v63  ;;  %v6539_v62 = vsel %vm1358_vm0, 0, %v6538_v55  ;;  %v6822_v42 = vshrl.u32 %v6501_v1, 16  ;;  %v19680_v15 = vld [vmem:[#allocation66_spill] sm:$0xff] }
 0x3cf   : > { %v6833_v9 = vshrl.u32 %v6520_v27, 16  ;;  %v5116_v59 = vpack.i.b16 %v19674_v11, %v5005_v53  ;;  %8385 = vmatpush.bf16.msra.mxu0 %v8372_v10  ;;  %v6832_v2 = vpack.i.b16 %v6539_v62, %v6520_v27  ;;  %v6834_v35 = vshrl.u32 %v6539_v62, 16  ;;  %v19682_v10 = vld [vmem:[#allocation232_spill] sm:$0xff] }
 0x3d0   : > { %v7336_v47 = vpack.c.b16 %v7321_v49, %v7320_v19  ;;  %v8490_v45 = vunpack.c.l.b16 %v6820_v31  ;;  %v6823_v22 = vpack.i.b16 %v6822_v42, %v6821_v38  ;;  %v5117_v58 = vshrl.u32 %v5005_v53, 16  ;;  %v16163_v19 = vpop.permute.xlu0 %5006 }
 0x3d1   : > { %v5469_v46 = vperm.slane %v5116_v59, %v12672_v3  ;;  %v2260_v37 = vperm.slane %v19675_v17, %v12672_v3  ;;  %v8491_v28 = vunpack.c.l.b16 %v6832_v2  ;;  %v6835_v18 = vpack.i.b16 %v6834_v35, %v6833_v9  ;;  %v19685_v35 = vld [vmem:[#allocation69_spill] sm:$0xff] }
 0x3d2   : > { %11314 = vmatmul.msk.bf16.vlgmr.msrb.gmra.mxu2 %vm6932_vm1, %v7336_v47  ;;  %v19678_v39 = vrot.slane %v19677_v33, 4  ;;  %v2275_v63 = vsel %vm1358_vm0, %v19680_v15, %v19679_v6  ;;  %v8619_v53 = vunpack.c.l.b16 %v6823_v22  ;;  %v19681_v1 = vshrl.u32 %v19674_v11, 16  ;;  %v19684_v11 = vld [vmem:[#allocation70_spill] sm:$0xff]  ;;  %v19689_v6 = vld [vmem:[#allocation75_spill] sm:$0xff] }
 0x3d3   : > { %v5470_v55 = vrot.slane %v5469_v46, 4  ;;  %v19683_v49 = vrot.slane %v19682_v10, 4  ;;  %v8501_v38 = vpack.c.b16 %v8491_v28, %v8490_v45  ;;  %v8620_v62 = vunpack.c.l.b16 %v6835_v18 }
 0x3d4   : > { %v2262_v20 = vsel %vm1358_vm0, %v19678_v39, %v19676_v13  ;;  %v5119_v27 = vpack.i.b16 %v19681_v1, %v5117_v58  ;;  %v2279_v2 = vperm.slane %v2275_v63, %v12672_v3  ;;  %v19686_v22 = vrot.slane %v19685_v35, 4  ;;  %v19687_v13 = vld [vmem:[#allocation233_spill] sm:$0xff] }
 0x3d5   : > { %v5473_v31 = vsel %vm1358_vm0, %v5469_v46, %v19683_v49  ;;  %v2266_v9 = vperm.slane %v2262_v20, %v12672_v3  ;;  %v5471_v59 = vsel %vm1358_vm0, %v5470_v55, %v19682_v10  ;;  %8514 = vmatpush.bf16.msra.mxu1 %v8501_v38  ;;  %v8630_v46 = vpack.c.b16 %v8620_v62, %v8619_v53 }
 0x3d6   : > { %v5481_v42 = vperm.slane %v5473_v31, %v12689_v21  ;;  %v5495_v47 = vperm.slane %v5119_v27, %v12672_v3  ;;  %v2281_v58 = vsel %vm1358_vm0, %v19686_v22, %v19684_v11  ;;  %v16181_v45 = vperm.slane %v5471_v59, %v12689_v21  ;;  %v19691_v59 = vld [vmem:[#allocation71_spill] sm:$0xff]  ;;  %v19693_v22 = vld [vmem:[#allocation72_spill] sm:$0xff] }
 0x3d7   : > { %v2267_v28 = vrot.slane %v2266_v9, 4  ;;  %v19688_v33 = vrot.slane %v19687_v13, 4  ;;  %v2285_v20 = vperm.slane %v2281_v58, %v12672_v3  ;;  %v2298_v15 = vperm.slane %v19689_v6, %v12672_v3  ;;  %8643 = vmatpush.bf16.msra.mxu2 %v8630_v46  ;;  %v19690_v9 = vld [vmem:[#allocation76_spill] sm:$0xff]  ;;  %v19694_v58 = vld [vmem:[#allocation73_spill] sm:$0xff] }
 0x3d8   : > { %v16183_v17 = vrot.slane %v5481_v42, 4  ;;  %v5496_v18 = vrot.slane %v5495_v47, 4  ;;  %v5482_v63 = vrot.slane %v16181_v45, 4  ;;  %v2313_v46 = vsel %vm1358_vm0, %v19694_v58, %v19693_v22 }
 0x3d9   : > { %v5499_v39 = vsel %vm1358_vm0, %v5495_v47, %v19688_v33  ;;  %v2268_v27 = vsel %vm1358_vm0, %v2267_v28, %v2260_v37  ;;  %v2286_v31 = vrot.slane %v2285_v20, 4  ;;  %v19692_v47 = vrot.slane %v19691_v59, 4  ;;  %v19695_v28 = vld [vmem:[#allocation78_spill] sm:$0xff] }
 0x3da   : > { %v16194_v53 = vsel %vm1358_vm0, 0, %v16183_v17  ;;  %v5507_v1 = vperm.slane %v5499_v39, %v12689_v21  ;;  %v5497_v55 = vsel %vm1358_vm0, %v5496_v18, %v19687_v13  ;;  %v2272_v49 = vperm.slane %v2268_v27, %v12689_v21  ;;  %v19696_v18 = vld [vmem:[#allocation74_spill] sm:$0xff] }
 0x3db   : > { %v16203_v38 = vsel %vm1358_vm0, 0, %v5482_v63  ;;  %v16206_v62 = vperm.slane %v5497_v55, %v12689_v21  ;;  %v2300_v37 = vsel %vm1358_vm0, %v19692_v47, %v19690_v9  ;;  %v2287_v11 = vsel %vm1358_vm0, %v2286_v31, %v2279_v2  ;;  %v5039_v63 = vpop.permute.xlu0 %5038 }
 0x3dc   : > { %v16208_v42 = vrot.slane %v5507_v1, 4  ;;  %v2304_v35 = vperm.slane %v2300_v37, %v12672_v3  ;;  %v19697_v13 = vrot.slane %v19696_v18, 4  ;;  %v2291_v6 = vperm.slane %v2287_v11, %v12689_v21 }
 0x3dd   : > { %v2317_v2 = vperm.slane %v2313_v46, %v12672_v3  ;;  %v2815_v31 = vshrl.u32 %v2272_v49, 16  ;;  %v5129_v47 = vshrl.u32 %v16163_v19, 16  ;;  %v2273_v37 = vrot.slane %v2272_v49, 4 }
 0x3de   : > { %v2319_v33 = vsel %vm1358_vm0, %v19697_v13, %v19695_v28  ;;  %v16226_v20 = vsel %vm1358_vm0, 0, %v16208_v42  ;;  %v2305_v27 = vrot.slane %v2304_v35, 4  ;;  %v2814_v9 = vpack.i.b16 %v2291_v6, %v2272_v49 }
 0x3df   : > { %v2323_v55 = vperm.slane %v2319_v33, %v12672_v3  ;;  %v2816_v59 = vshrl.u32 %v2291_v6, 16  ;;  %v2292_v28 = vrot.slane %v2291_v6, 4  ;;  %v5128_v11 = vpack.i.b16 %v5039_v63, %v16163_v19 }
 0x3e0   : > { %v2306_v22 = vsel %vm1358_vm0, %v2305_v27, %v2298_v15  ;;  %v6886_v18 = vunpack.c.l.b16 %v2814_v9  ;;  %v2274_v35 = vsel %vm1358_vm0, 0, %v2273_v37  ;;  %v5130_v39 = vshrl.u32 %v5039_v63, 16 }
 0x3e1   : > { %v2324_v58 = vrot.slane %v2323_v55, 4  ;;  %v2310_v46 = vperm.slane %v2306_v22, %v12689_v21  ;;  %v2817_v13 = vpack.i.b16 %v2816_v59, %v2815_v31  ;;  %v2293_v1 = vsel %vm1358_vm0, 0, %v2292_v28 }
 0x3e2   : > { %v2821_v10 = vshrl.u32 %v2274_v35, 16  ;;  %v2820_v6 = vpack.i.b16 %v2293_v1, %v2274_v35  ;;  %v2822_v55 = vshrl.u32 %v2293_v1, 16  ;;  %v5131_v19 = vpack.i.b16 %v5130_v39, %v5129_v47 }
 0x3e3   : > { %v2325_v33 = vsel %vm1358_vm0, %v2324_v58, %v2317_v2  ;;  %v2827_v60 = vshrl.u32 %v2310_v46, 16  ;;  %v7032_v15 = vunpack.c.l.b16 %v2817_v13  ;;  %v2311_v27 = vrot.slane %v2310_v46, 4  ;;  %v19698_v13 = vld [vmem:[#allocation209_spill] sm:$0xff] }
 0x3e4   : > { %v2329_v49 = vperm.slane %v2325_v33, %v12689_v21  ;;  %v5521_v22 = vperm.slane %v5128_v11, %v12672_v3  ;;  %v7177_v2 = vunpack.c.l.b16 %v2820_v6  ;;  %v2823_v58 = vpack.i.b16 %v2822_v55, %v2821_v10 }
 0x3e5   : > { %v2312_v59 = vsel %vm1358_vm0, 0, %v2311_v27  ;;  %v19699_v56 = vrot.slane %v19698_v13, 4  ;;  %v5547_v55 = vperm.slane %v5131_v19, %v12672_v3  ;;  %v19748_v54 = vrot.slane %v19747_v8, 4 }
 0x3e6   : > { %v2826_v9 = vpack.i.b16 %v2329_v49, %v2310_v46  ;;  %v2828_v31 = vshrl.u32 %v2329_v49, 16  ;;  %v2330_v37 = vrot.slane %v2329_v49, 4  ;;  %v2833_v28 = vshrl.u32 %v2312_v59, 16 }
 0x3e7   : > { %v5522_v16 = vrot.slane %v5521_v22, 4  ;;  %v5525_v1 = vsel %vm1358_vm0, %v5521_v22, %v19699_v56  ;;  %v7322_v11 = vunpack.c.l.b16 %v2823_v58 }
 0x3e8   : > { %v6887_v63 = vunpack.c.l.b16 %v2826_v9  ;;  %v2829_v0 = vpack.i.b16 %v2828_v31, %v2827_v60  ;;  %v2331_v33 = vsel %vm1358_vm0, 0, %v2330_v37  ;;  %v5533_v27 = vperm.slane %v5525_v1, %v12689_v21  ;;  %v19700_v9 = vld [vmem:[#allocation98_spill] sm:$0xff] }
 0x3e9   : > { %v2832_v39 = vpack.i.b16 %v2331_v33, %v2312_v59  ;;  %v2834_v47 = vshrl.u32 %v2331_v33, 16  ;;  %v5523_v46 = vsel %vm1358_vm0, %v5522_v16, %v19698_v13  ;;  %v2336_v56 = vperm.slane %v19700_v9, %v12672_v3  ;;  %v19704_v33 = vld [vmem:[#allocation211_spill] sm:$0xff] }
 0x3ea   : > { %v6901_v35 = vpack.c.b16 %v6887_v63, %v6886_v18  ;;  %v7033_v49 = vunpack.c.l.b16 %v2829_v0  ;;  %v16249_v10 = vperm.slane %v5523_v46, %v12689_v21  ;;  %v16257_v16 = vrot.slane %v5533_v27, 4  ;;  %v19701_v0 = vld [vmem:[#allocation97_spill] sm:$0xff]  ;;  %v19702_v18 = vld [vmem:[#allocation94_spill] sm:$0xff]  ;;  %v19707_v27 = vld [vmem:[#allocation96_spill] sm:$0xff] }
 0x3eb   : > { %v7178_v60 = vunpack.c.l.b16 %v2832_v39  ;;  %v2835_v6 = vpack.i.b16 %v2834_v47, %v2833_v28  ;;  %v19703_v59 = vrot.slane %v19702_v18, 4  ;;  %v5548_v28 = vrot.slane %v5547_v55, 4 }
 0x3ec   : > { %11291 = vmatmul.msk.bf16.gmra.mxu3 %vm6932_vm1, %v6901_v35  ;;  %v7047_v22 = vpack.c.b16 %v7033_v49, %v7032_v15  ;;  %v5534_v31 = vrot.slane %v16249_v10, 4  ;;  %v19705_v19 = vrot.slane %v19704_v33, 4  ;;  %v16272_v1 = vsel %vm1358_vm0, 0, %v16257_v16  ;;  %v19706_v49 = vld [vmem:[#allocation95_spill] sm:$0xff] }
 0x3ed   : > { %v2338_v37 = vsel %vm1358_vm0, %v19703_v59, %v19701_v0  ;;  %v7192_v58 = vpack.c.b16 %v7178_v60, %v7177_v2  ;;  %v7323_v63 = vunpack.c.l.b16 %v2835_v6  ;;  %v5549_v46 = vsel %vm1358_vm0, %v5548_v28, %v19704_v33  ;;  %v19711_v59 = vld [vmem:[#allocation118_spill] sm:$0xff] }
 0x3ee   : > { %v5551_v13 = vsel %vm1358_vm0, %v5547_v55, %v19705_v19  ;;  %11299 = vmatmul.msk.bf16.gmra.mxu0 %vm6932_vm1, %v7047_v22  ;;  %v16268_v15 = vsel %vm1358_vm0, 0, %v5534_v31  ;;  %v2342_v47 = vperm.slane %v2338_v37, %v12672_v3  ;;  %v2351_v60 = vsel %vm1358_vm0, %v19707_v27, %v19706_v49  ;;  %v19709_v31 = vld [vmem:[#allocation99_spill] sm:$0xff]  ;;  %v19715_v19 = vld [vmem:[#allocation116_spill] sm:$0xff] }
 0x3ef   : > { %v5559_v39 = vperm.slane %v5551_v13, %v12689_v21  ;;  %11307 = vmatmul.msk.bf16.gmra.mxu1 %vm6932_vm1, %v7192_v58  ;;  %v7337_v2 = vpack.c.b16 %v7323_v63, %v7322_v11  ;;  %v16284_v6 = vperm.slane %v5549_v46, %v12689_v21  ;;  %v2355_v22 = vperm.slane %v2351_v60, %v12672_v3  ;;  %v19708_v11 = vld [vmem:[#allocation100_spill] sm:$0xff]  ;;  %v19713_v63 = vld [vmem:[#allocation115_spill] sm:$0xff]  ;;  %v19716_v13 = vld [vmem:[#allocation117_spill] sm:$0xff] }
 0x3f0   : > { %v2343_v9 = vrot.slane %v2342_v47, 4  ;;  %v19710_v0 = vrot.slane %v19709_v31, 4  ;;  %v2374_v37 = vperm.slane %v19711_v59, %v12672_v3  ;;  %v19712_v58 = vld [vmem:[#allocation120_spill] sm:$0xff]  ;;  %v19714_v28 = vrot.slane %v19713_v63, 4  ;;  %v19717_v59 = vld [vmem:[#allocation121_spill] sm:$0xff]  ;;  %v19741_v27 = vld [vmem:[#allocation255_spill] sm:$0xff] }
 0x3f1   : > { %v16286_v55 = vrot.slane %v5559_v39, 4  ;;  %11315 = vmatmul.msk.bf16.gmra.mxu2 %vm6932_vm1, %v7337_v2  ;;  %v2389_v39 = vsel %vm1358_vm0, %v19716_v13, %v19715_v19  ;;  %v19720_v19 = vrot.slane %v15875_v24, 4 }
 0x3f2   : > { %v2357_v18 = vsel %vm1358_vm0, %v19710_v0, %v19708_v11  ;;  %v2376_v33 = vsel %vm1358_vm0, %v19714_v28, %v19712_v58  ;;  %v2344_v46 = vsel %vm1358_vm0, %v2343_v9, %v2336_v56  ;;  %v2393_v31 = vperm.slane %v2389_v39, %v12672_v3  ;;  %v19718_v58 = vld [vmem:[#allocation119_spill] sm:$0xff] }
 0x3f3   : > { %v16306_v2 = vsel %vm1358_vm0, 0, %v16286_v55  ;;  %v2361_v49 = vperm.slane %v2357_v18, %v12672_v3  ;;  %v16312_v60 = vperm.slane %v2344_v46, %v12689_v21  ;;  %v2380_v11 = vperm.slane %v2376_v33, %v12672_v3 }
 0x3f4   : > { %v19719_v63 = vrot.slane %v19718_v58, 4  ;;  %v5717_v56 = vsel %vm1358_vm0, 0, %v19720_v19  ;;  %v19721_v9 = vrot.slane %v16123_v36, 4  ;;  %v6388_v33 = vsel %vm1358_vm0, %v15843_v61, %v15826_v44 }
 0x3f5   : > { %v2362_v0 = vrot.slane %v2361_v49, 4  ;;  %v2381_v13 = vrot.slane %v2380_v11, 4  ;;  %v19722_v39 = vrot.slane %v15858_v52, 4  ;;  %v6392_v58 = vperm.slane %v6388_v33, %v12672_v3 }
 0x3f6   : > { %v2395_v28 = vsel %vm1358_vm0, %v19719_v63, %v19717_v59  ;;  %v5769_v18 = vsel %vm1358_vm0, 0, %v19721_v9  ;;  %v6407_v11 = vsel %vm1358_vm0, %v15877_v57, %v15875_v24  ;;  %v6426_v24 = vsel %vm1358_vm0, %v16099_v4, %v16097_v23 }
 0x3f7   : > { %v2399_v46 = vperm.slane %v2395_v28, %v12672_v3  ;;  %v6394_v49 = vsel %vm1358_vm0, %v19722_v39, %v15854_v48  ;;  %v2363_v59 = vsel %vm1358_vm0, %v2362_v0, %v2355_v22  ;;  %v2382_v44 = vsel %vm1358_vm0, %v2381_v13, %v2374_v37 }
 0x3f8   : > { %v6398_v63 = vperm.slane %v6394_v49, %v12672_v3  ;;  %v16341_v28 = vperm.slane %v2363_v59, %v12689_v21  ;;  %v6411_v52 = vperm.slane %v6407_v11, %v12672_v3  ;;  %v16346_v48 = vperm.slane %v2382_v44, %v12689_v21 }
 0x3f9   : > { %v2400_v61 = vrot.slane %v2399_v46, 4  ;;  %v19723_v0 = vrot.slane %v15886_v5, 4  ;;  %v6430_v13 = vperm.slane %v6426_v24, %v12672_v3  ;;  %v6445_v23 = vsel %vm1358_vm0, %v16125_v30, %v16123_v36 }
 0x3fa   : > { %v6399_v22 = vrot.slane %v6398_v63, 4  ;;  %v2838_v37 = vpack.i.b16 %v16341_v28, %v16312_v60  ;;  %v2839_v63 = vshrl.u32 %v16312_v60, 16  ;;  %v2840_v44 = vshrl.u32 %v16341_v28, 16 }
 0x3fb   : > { %v6413_v19 = vsel %vm1358_vm0, %v19723_v0, %v5717_v56  ;;  %v2401_v57 = vsel %vm1358_vm0, %v2400_v61, %v2393_v31  ;;  %v19724_v56 = vrot.slane %v16111_v50, 4  ;;  %v19725_v50 = vrot.slane %v16133_v40, 4  ;;  %v5003_v40 = vpop.permute.xlu0 %5002 }
 0x3fc   : > { %v6417_v9 = vperm.slane %v6413_v19, %v12672_v3  ;;  %v16360_v46 = vperm.slane %v2401_v57, %v12689_v21  ;;  %v6400_v5 = vsel %vm1358_vm0, %v6399_v22, %v6392_v58  ;;  %v6888_v4 = vunpack.c.l.b16 %v2838_v37 }
 0x3fd   : > { %v6432_v33 = vsel %vm1358_vm0, %v19724_v56, %v16120_v14  ;;  %v16371_v31 = vperm.slane %v6400_v5, %v12689_v21  ;;  %v6449_v58 = vperm.slane %v6445_v23, %v12672_v3  ;;  %v6451_v14 = vsel %vm1358_vm0, %v19725_v50, %v5769_v18 }
 0x3fe   : > { %v6418_v39 = vrot.slane %v6417_v9, 4  ;;  %v6436_v49 = vperm.slane %v6432_v33, %v12672_v3  ;;  %v2850_v59 = vpack.i.b16 %v16360_v46, %v16346_v48  ;;  %v6455_v11 = vperm.slane %v6451_v14, %v12672_v3 }
 0x3ff   : > { %v2851_v0 = vshrl.u32 %v16346_v48, 16  ;;  %v2852_v19 = vshrl.u32 %v16360_v46, 16  ;;  %v2841_v57 = vpack.i.b16 %v2840_v44, %v2839_v63 }
 0x400   : > { %v6419_v36 = vsel %vm1358_vm0, %v6418_v39, %v6411_v52  ;;  %v6437_v30 = vrot.slane %v6436_v49, 4  ;;  %v6889_v61 = vunpack.c.l.b16 %v2850_v59  ;;  %v6456_v24 = vrot.slane %v6455_v11, 4  ;;  %v19726_v49 = vld [vmem:[#allocation186_spill] sm:$0xff] }
 0x401   : > { %v16385_v22 = vperm.slane %v6419_v36, %v12689_v21  ;;  %v6791_v52 = vshrl.u32 %v16371_v31, 16  ;;  %v2853_v56 = vpack.i.b16 %v2852_v19, %v2851_v0  ;;  %v7034_v23 = vunpack.c.l.b16 %v2841_v57 }
 0x402   : > { %v6438_v18 = vsel %vm1358_vm0, %v6437_v30, %v6430_v13  ;;  %v6902_v37 = vpack.c.b16 %v6889_v61, %v6888_v4  ;;  %v6457_v33 = vsel %vm1358_vm0, %v6456_v24, %v6449_v58  ;;  %v5104_v59 = vpack.i.b16 %v19726_v49, %v5003_v40 }
 0x403   : > { %v16392_v9 = vperm.slane %v6438_v18, %v12689_v21  ;;  %v6790_v5 = vpack.i.b16 %v16385_v22, %v16371_v31  ;;  %v6792_v39 = vshrl.u32 %v16385_v22, 16  ;;  %v6461_v13 = vperm.slane %v6457_v33, %v12689_v21 }
 0x404   : > { %11292 = vmatmul.msk.bf16.gmra.mxu3 %vm6932_vm1, %v6902_v37  ;;  %v7035_v4 = vunpack.c.l.b16 %v2853_v56  ;;  %v5105_v36 = vshrl.u32 %v5003_v40, 16  ;;  %v5417_v30 = vperm.slane %v5104_v59, %v12672_v3  ;;  %v2349_v11 = vrot.slane %v16312_v60, 4  ;;  %v19728_v37 = vld [vmem:[#allocation83_spill] sm:$0xff] }
 0x405   : > { %v8230_v50 = vunpack.c.l.b16 %v6790_v5  ;;  %v6803_v14 = vshrl.u32 %v16392_v9, 16  ;;  %v6793_v63 = vpack.i.b16 %v6792_v39, %v6791_v52  ;;  %v6802_v58 = vpack.i.b16 %v6461_v13, %v16392_v9 }
 0x406   : > { %v7048_v44 = vpack.c.b16 %v7035_v4, %v7034_v23  ;;  %v6804_v61 = vshrl.u32 %v6461_v13, 16  ;;  %v2368_v0 = vrot.slane %v16341_v28, 4  ;;  %v19727_v18 = vshrl.u32 %v19726_v49, 16 }
 0x407   : > { %v8359_v19 = vunpack.c.l.b16 %v6793_v63  ;;  %v5418_v57 = vrot.slane %v5417_v30, 4  ;;  %v19729_v5 = vrot.slane %v19728_v37, 4  ;;  %v8231_v40 = vunpack.c.l.b16 %v6802_v58 }
 0x408   : > { %v5107_v24 = vpack.i.b16 %v19727_v18, %v5105_v36  ;;  %11300 = vmatmul.msk.bf16.gmra.mxu0 %vm6932_vm1, %v7048_v44  ;;  %v6805_v56 = vpack.i.b16 %v6804_v61, %v6803_v14  ;;  %v16414_v33 = vsel %vm1358_vm0, 0, %v2349_v11  ;;  %v16420_v39 = vsel %vm1358_vm0, 0, %v2368_v0 }
 0x409   : > { %v5421_v52 = vsel %vm1358_vm0, %v5417_v30, %v19729_v5  ;;  %v5419_v28 = vsel %vm1358_vm0, %v5418_v57, %v19728_v37  ;;  %v2387_v49 = vrot.slane %v16346_v48, 4  ;;  %v8242_v59 = vpack.c.b16 %v8231_v40, %v8230_v50  ;;  %v19730_v30 = vld [vmem:[#allocation86_spill] sm:$0xff]  ;;  %v19737_v57 = vld [vmem:[#allocation251_spill] sm:$0xff] }
 0x40a   : > { %v5429_v60 = vperm.slane %v5421_v52, %v12689_v21  ;;  %v5443_v23 = vperm.slane %v5107_v24, %v12672_v3  ;;  %v8360_v4 = vunpack.c.l.b16 %v6805_v56  ;;  %v16424_v63 = vperm.slane %v5419_v28, %v12689_v21 }
 0x40b   : > { %v19731_v11 = vrot.slane %v19730_v30, 4  ;;  %v16432_v44 = vsel %vm1358_vm0, 0, %v2387_v49  ;;  %v2406_v61 = vrot.slane %v16360_v46, 4  ;;  %8257 = vmatpush.bf16.msrb.mxu3 %v8242_v59  ;;  %v2844_v46 = vpack.i.b16 %v16420_v39, %v16414_v33  ;;  %v19739_v49 = vld [vmem:[#allocation252_spill] sm:$0xff] }
 0x40c   : > { %v16426_v14 = vrot.slane %v5429_v60, 4  ;;  %v5444_v36 = vrot.slane %v5443_v23, 4  ;;  %v8371_v0 = vpack.c.b16 %v8360_v4, %v8359_v19  ;;  %v5430_v48 = vrot.slane %v16424_v63, 4 }
 0x40d   : > { %v5447_v58 = vsel %vm1358_vm0, %v5443_v23, %v19731_v11  ;;  %v16445_v37 = vsel %vm1358_vm0, 0, %v2406_v61  ;;  %v7179_v56 = vunpack.c.l.b16 %v2844_v46  ;;  %v6405_v60 = vrot.slane %v16371_v31, 4  ;;  %v19734_v46 = vld [vmem:[#allocation163_spill] sm:$0xff] }
 0x40e   : > { %v16438_v50 = vsel %vm1358_vm0, 0, %v16426_v14  ;;  %v5455_v18 = vperm.slane %v5447_v58, %v12689_v21  ;;  %v5445_v24 = vsel %vm1358_vm0, %v5444_v36, %v19730_v30  ;;  %8386 = vmatpush.bf16.msra.mxu0 %v8371_v0  ;;  %v16450_v19 = vsel %vm1358_vm0, 0, %v5430_v48  ;;  %v19732_v0 = vld [vmem:[#allocation254_spill] sm:$0xff] }
 0x40f   : > { %v16453_v5 = vperm.slane %v5445_v24, %v12689_v21  ;;  %v2856_v40 = vpack.i.b16 %v16445_v37, %v16432_v44  ;;  %v6424_v28 = vrot.slane %v16385_v22, 4  ;;  %v6443_v23 = vrot.slane %v16392_v9, 4  ;;  %v19736_v30 = vld [vmem:[#allocation250_spill] sm:$0xff] }
 0x410   : > { %v16455_v52 = vrot.slane %v5455_v18, 4  ;;  %v6462_v36 = vrot.slane %v6461_v13, 4  ;;  %v6406_v11 = vsel %vm1358_vm0, 0, %v6405_v60  ;;  %v19733_v48 = vrot.slane %v19732_v0, 4 }
 0x411   : > { %v7180_v4 = vunpack.c.l.b16 %v2856_v40  ;;  %v6425_v58 = vsel %vm1358_vm0, 0, %v6424_v28  ;;  %v6444_v31 = vsel %vm1358_vm0, 0, %v6443_v23  ;;  %v19735_v40 = vrot.slane %v19734_v46, 4  ;;  %v19738_v28 = vld [vmem:[#allocation253_spill] sm:$0xff] }
 0x412   : > { %v16465_v59 = vsel %vm1358_vm0, 0, %v16455_v52  ;;  %v6463_v22 = vsel %vm1358_vm0, 0, %v6462_v36  ;;  %v6796_v9 = vpack.i.b16 %v6425_v58, %v6406_v11  ;;  %v5613_v18 = vsel %vm1358_vm0, 0, %v19733_v48 }
 0x413   : > { %v7193_v61 = vpack.c.b16 %v7180_v4, %v7179_v56  ;;  %v6808_v24 = vpack.i.b16 %v6463_v22, %v6444_v31  ;;  %v5665_v13 = vsel %vm1358_vm0, 0, %v19735_v40  ;;  %v6312_v60 = vsel %vm1358_vm0, %v19737_v57, %v19736_v30  ;;  %v19742_v57 = vld [vmem:[#allocation256_spill] sm:$0xff] }
 0x414   : > { %v19740_v23 = vrot.slane %v19739_v49, 4  ;;  %v8488_v4 = vunpack.c.l.b16 %v6796_v9  ;;  %v6316_v36 = vperm.slane %v6312_v60, %v12672_v3  ;;  %v6331_v40 = vsel %vm1358_vm0, %v19741_v27, %v19732_v0 }
 0x415   : > { %11308 = vmatmul.msk.bf16.gmra.mxu1 %vm6932_vm1, %v7193_v61  ;;  %v8489_v35 = vunpack.c.l.b16 %v6808_v24  ;;  %v6335_v47 = vperm.slane %v6331_v40, %v12672_v3  ;;  %v19743_v30 = vrot.slane %v19742_v57, 4  ;;  %v19749_v40 = vld [vmem:[#allocation159_spill] sm:$0xff]  ;;  %v19750_v57 = vld [vmem:[#allocation156_spill] sm:$0xff] }
 0x416   : > { %v6318_v56 = vsel %vm1358_vm0, %v19740_v23, %v19738_v28  ;;  %v19745_v28 = vld [vmem:[#allocation167_spill] sm:$0xff] }
 0x417   : > { %v6322_v48 = vperm.slane %v6318_v56, %v12672_v3  ;;  %v6337_v49 = vsel %vm1358_vm0, %v19743_v30, %v5613_v18  ;;  %v6350_v61 = vsel %vm1358_vm0, %v19745_v28, %v19744_v7  ;;  %v19746_v56 = vld [vmem:[#allocation158_spill] sm:$0xff]  ;;  %v8500_v0 = vpack.c.b16 %v8489_v35, %v8488_v4 }
 0x418   : > { %v6341_v60 = vperm.slane %v6337_v49, %v12672_v3  ;;  %v6354_v23 = vperm.slane %v6350_v61, %v12672_v3  ;;  %v6356_v27 = vsel %vm1358_vm0, %v19748_v54, %v19746_v56  ;;  %v6369_v18 = vsel %vm1358_vm0, %v19749_v40, %v19734_v46 }
 0x419   : > { %v6323_v9 = vrot.slane %v6322_v48, 4  ;;  %v6360_v24 = vperm.slane %v6356_v27, %v12672_v3  ;;  %v19751_v30 = vrot.slane %v19750_v57, 4  ;;  %v6373_v28 = vperm.slane %v6369_v18, %v12672_v3  ;;  %8515 = vmatpush.bf16.msra.mxu1 %v8500_v0 }
 0x41a   : > { %v6342_v49 = vrot.slane %v6341_v60, 4  ;;  %v2845_v4 = vshrl.u32 %v16414_v33, 16  ;;  %v2846_v61 = vshrl.u32 %v16420_v39, 16  ;;  %v6797_v0 = vshrl.u32 %v6406_v11, 16 }
 0x41b   : > { %v6375_v7 = vsel %vm1358_vm0, %v19751_v30, %v5665_v13  ;;  %v6324_v48 = vsel %vm1358_vm0, %v6323_v9, %v6316_v36  ;;  %v6361_v35 = vrot.slane %v6360_v24, 4  ;;  %v2857_v13 = vshrl.u32 %v16432_v44, 16 }
 0x41c   : > { %v6379_v8 = vperm.slane %v6375_v7, %v12672_v3  ;;  %v6328_v54 = vperm.slane %v6324_v48, %v12689_v21  ;;  %v6343_v46 = vsel %vm1358_vm0, %v6342_v49, %v6335_v47  ;;  %v2858_v36 = vshrl.u32 %v16445_v37, 16 }
 0x41d   : > { %v6347_v9 = vperm.slane %v6343_v46, %v12689_v21  ;;  %v6362_v60 = vsel %vm1358_vm0, %v6361_v35, %v6354_v23  ;;  %v2847_v27 = vpack.i.b16 %v2846_v61, %v2845_v4  ;;  %v6798_v18 = vshrl.u32 %v6425_v58, 16 }
 0x41e   : > { %v6380_v56 = vrot.slane %v6379_v8, 4  ;;  %v6366_v40 = vperm.slane %v6362_v60, %v12689_v21  ;;  %v2859_v33 = vpack.i.b16 %v2858_v36, %v2857_v13  ;;  %v6809_v30 = vshrl.u32 %v6444_v31, 16 }
 0x41f   : > { %v6766_v47 = vpack.i.b16 %v6347_v9, %v6328_v54  ;;  %v7324_v57 = vunpack.c.l.b16 %v2847_v27  ;;  %v6799_v7 = vpack.i.b16 %v6798_v18, %v6797_v0  ;;  %v6810_v37 = vshrl.u32 %v6463_v22, 16  ;;  %v5033_v18 = vpop.permute.xlu0 %5032 }
 0x420   : > { %v6381_v24 = vsel %vm1358_vm0, %v6380_v56, %v6373_v28  ;;  %v7325_v44 = vunpack.c.l.b16 %v2859_v33  ;;  %v6767_v48 = vshrl.u32 %v6328_v54, 16  ;;  %v6768_v23 = vshrl.u32 %v6347_v9, 16 }
 0x421   : > { %v6385_v39 = vperm.slane %v6381_v24, %v12689_v21  ;;  %v8228_v8 = vunpack.c.l.b16 %v6766_v47  ;;  %v6779_v35 = vshrl.u32 %v6366_v40, 16  ;;  %v6811_v4 = vpack.i.b16 %v6810_v37, %v6809_v30 }
 0x422   : > { %v7338_v11 = vpack.c.b16 %v7325_v44, %v7324_v57  ;;  %v8617_v61 = vunpack.c.l.b16 %v6799_v7  ;;  %v6769_v56 = vpack.i.b16 %v6768_v23, %v6767_v48  ;;  %v6329_v58 = vrot.slane %v6328_v54, 4 }
 0x423   : > { %v6778_v49 = vpack.i.b16 %v6385_v39, %v6366_v40  ;;  %v6780_v46 = vshrl.u32 %v6385_v39, 16  ;;  %v6348_v13 = vrot.slane %v6347_v9, 4  ;;  %v8618_v36 = vunpack.c.l.b16 %v6811_v4 }
 0x424   : > { %11316 = vmatmul.msk.bf16.gmra.mxu2 %vm6932_vm1, %v7338_v11  ;;  %v6367_v60 = vrot.slane %v6366_v40, 4  ;;  %v6386_v27 = vrot.slane %v6385_v39, 4  ;;  %v8357_v0 = vunpack.c.l.b16 %v6769_v56  ;;  %v6330_v24 = vsel %vm1358_vm0, 0, %v6329_v58  ;;  %v19754_v58 = vld [vmem:[#allocation126_spill] sm:$0xff] }
 0x425   : > { %v8229_v28 = vunpack.c.l.b16 %v6778_v49  ;;  %v6781_v31 = vpack.i.b16 %v6780_v46, %v6779_v35  ;;  %v6349_v33 = vsel %vm1358_vm0, 0, %v6348_v13  ;;  %v8629_v47 = vpack.c.b16 %v8618_v36, %v8617_v61  ;;  %v19752_v49 = vld [vmem:[#allocation161_spill] sm:$0xff]  ;;  %v19755_v13 = vld [vmem:[#allocation122_spill] sm:$0xff] }
 0x426   : > { %v6368_v30 = vsel %vm1358_vm0, 0, %v6367_v60  ;;  %v6387_v54 = vsel %vm1358_vm0, 0, %v6386_v27  ;;  %v6772_v9 = vpack.i.b16 %v6349_v33, %v6330_v24  ;;  %v6773_v7 = vshrl.u32 %v6330_v24, 16 }
 0x427   : > { %v8241_v22 = vpack.c.b16 %v8229_v28, %v8228_v8  ;;  %v8358_v57 = vunpack.c.l.b16 %v6781_v31  ;;  %v6784_v44 = vpack.i.b16 %v6387_v54, %v6368_v30  ;;  %v6774_v37 = vshrl.u32 %v6349_v33, 16  ;;  %8644 = vmatpush.bf16.msra.mxu2 %v8629_v47  ;;  %v19753_v28 = vld [vmem:[#allocation125_spill] sm:$0xff]  ;;  %v19758_v47 = vld [vmem:[#allocation55_spill] sm:$0xff] }
 0x428   : > { %v6785_v39 = vshrl.u32 %v6368_v30, 16  ;;  %v6786_v48 = vshrl.u32 %v6387_v54, 16  ;;  %v5092_v8 = vpack.i.b16 %v5033_v18, %v19752_v49  ;;  %v8486_v23 = vunpack.c.l.b16 %v6772_v9  ;;  %v19760_v54 = vld [vmem:[#allocation123_spill] sm:$0xff]  ;;  %v19761_v9 = vld [vmem:[#allocation124_spill] sm:$0xff] }
 0x429   : > { %8258 = vmatpush.bf16.msrb.mxu3 %v8241_v22  ;;  %v8370_v40 = vpack.c.b16 %v8358_v57, %v8357_v0  ;;  %v8487_v35 = vunpack.c.l.b16 %v6784_v44  ;;  %v6775_v11 = vpack.i.b16 %v6774_v37, %v6773_v7  ;;  %v5094_v4 = vshrl.u32 %v5033_v18, 16 }
 0x42a   : > { %v6787_v61 = vpack.i.b16 %v6786_v48, %v6785_v39  ;;  %v5365_v46 = vperm.slane %v5092_v8, %v12672_v3  ;;  %v2412_v56 = vperm.slane %v19753_v28, %v12672_v3  ;;  %v19756_v36 = vrot.slane %v19755_v13, 4  ;;  %v19762_v8 = vld [vmem:[#allocation130_spill] sm:$0xff]  ;;  %v19766_v13 = vld [vmem:[#allocation59_spill] sm:$0xff] }
 0x42b   : > { %8387 = vmatpush.bf16.msra.mxu0 %v8370_v40  ;;  %v8499_v60 = vpack.c.b16 %v8487_v35, %v8486_v23  ;;  %v8615_v27 = vunpack.c.l.b16 %v6775_v11  ;;  %v19757_v22 = vshrl.u32 %v19752_v49, 16  ;;  %v19759_v57 = vrot.slane %v19758_v47, 4  ;;  %v19763_v23 = vld [vmem:[#allocation127_spill] sm:$0xff] }
 0x42c   : > { %v2414_v31 = vsel %vm1358_vm0, %v19756_v36, %v19754_v58  ;;  %v8616_v33 = vunpack.c.l.b16 %v6787_v61  ;;  %v5366_v18 = vrot.slane %v5365_v46, 4  ;;  %v2427_v44 = vsel %vm1358_vm0, %v19761_v9, %v19760_v54 }
 0x42d   : > { %v5095_v0 = vpack.i.b16 %v5094_v4, %v19757_v22  ;;  %v2418_v24 = vperm.slane %v2414_v31, %v12672_v3  ;;  %v5369_v30 = vsel %vm1358_vm0, %v5365_v46, %v19759_v57  ;;  %8516 = vmatpush.bf16.msra.mxu1 %v8499_v60  ;;  %v2431_v39 = vperm.slane %v2427_v44, %v12672_v3  ;;  %v19765_v4 = vld [vmem:[#allocation146_spill] sm:$0xff] }
 0x42e   : > { %v5377_v7 = vperm.slane %v5369_v30, %v12689_v21  ;;  %v8628_v48 = vpack.c.b16 %v8616_v33, %v8615_v27  ;;  %v5367_v49 = vsel %vm1358_vm0, %v5366_v18, %v19758_v47  ;;  %v19764_v35 = vrot.slane %v19763_v23, 4  ;;  %v19773_v23 = vld [vmem:[#allocation149_spill] sm:$0xff] }
 0x42f   : > { %v5391_v37 = vperm.slane %v5095_v0, %v12672_v3  ;;  %v2419_v40 = vrot.slane %v2418_v24, 4  ;;  %v2450_v61 = vperm.slane %v19765_v4, %v12672_v3  ;;  %v16559_v46 = vperm.slane %v5367_v49, %v12689_v21  ;;  %v19768_v0 = vld [vmem:[#allocation147_spill] sm:$0xff]  ;;  %v19772_v49 = vld [vmem:[#allocation145_spill] sm:$0xff] }
 0x430   : > { %v2433_v11 = vsel %vm1358_vm0, %v19764_v35, %v19762_v8  ;;  %v16561_v28 = vrot.slane %v5377_v7, 4  ;;  %v19767_v36 = vrot.slane %v19766_v13, 4  ;;  %8645 = vmatpush.bf16.msra.mxu2 %v8628_v48  ;;  %v19769_v24 = vld [vmem:[#allocation143_spill] sm:$0xff]  ;;  %v19771_v48 = vld [vmem:[#allocation144_spill] sm:$0xff] }
 0x431   : > { %v5392_v58 = vrot.slane %v5391_v37, 4  ;;  %v2420_v27 = vsel %vm1358_vm0, %v2419_v40, %v2412_v56  ;;  %v2437_v22 = vperm.slane %v2433_v11, %v12672_v3  ;;  %v19770_v33 = vrot.slane %v19769_v24, 4  ;;  %v19774_v35 = vld [vmem:[#allocation148_spill] sm:$0xff] }
 0x432   : > { %v5395_v31 = vsel %vm1358_vm0, %v5391_v37, %v19767_v36  ;;  %v5378_v47 = vrot.slane %v16559_v46, 4  ;;  %v16576_v57 = vsel %vm1358_vm0, 0, %v16561_v28  ;;  %v2424_v54 = vperm.slane %v2420_v27, %v12689_v21 }
 0x433   : > { %v5403_v60 = vperm.slane %v5395_v31, %v12689_v21  ;;  %v2452_v18 = vsel %vm1358_vm0, %v19770_v33, %v19768_v0  ;;  %v5393_v30 = vsel %vm1358_vm0, %v5392_v58, %v19766_v13  ;;  %v2438_v7 = vrot.slane %v2437_v22, 4 }
 0x434   : > { %v16582_v56 = vperm.slane %v5393_v30, %v12689_v21  ;;  %v16588_v37 = vsel %vm1358_vm0, 0, %v5378_v47  ;;  %v2456_v40 = vperm.slane %v2452_v18, %v12672_v3  ;;  %v2465_v8 = vsel %vm1358_vm0, %v19772_v49, %v19771_v48 }
 0x435   : > { %v16584_v9 = vrot.slane %v5403_v60, 4  ;;  %v19775_v11 = vrot.slane %v19774_v35, 4  ;;  %v2439_v36 = vsel %vm1358_vm0, %v2438_v7, %v2431_v39  ;;  %v2469_v31 = vperm.slane %v2465_v8, %v12672_v3 }
 0x436   : > { %v2443_v27 = vperm.slane %v2439_v36, %v12689_v21  ;;  %v2457_v22 = vrot.slane %v2456_v40, 4  ;;  %v2863_v24 = vshrl.u32 %v2424_v54, 16  ;;  %v2425_v33 = vrot.slane %v2424_v54, 4 }
 0x437   : > { %v2471_v4 = vsel %vm1358_vm0, %v19775_v11, %v19773_v23  ;;  %v16601_v13 = vsel %vm1358_vm0, 0, %v16584_v9  ;;  %v19776_v18 = vrot.slane %v16206_v62, 4  ;;  %v19777_v30 = vrot.slane %v16284_v6, 4 }
 0x438   : > { %v2475_v0 = vperm.slane %v2471_v4, %v12672_v3  ;;  %v2458_v39 = vsel %vm1358_vm0, %v2457_v22, %v2450_v61  ;;  %v2862_v49 = vpack.i.b16 %v2443_v27, %v2424_v54  ;;  %v2864_v8 = vshrl.u32 %v2443_v27, 16 }
 0x439   : > { %v5509_v47 = vsel %vm1358_vm0, 0, %v19776_v18  ;;  %v5561_v48 = vsel %vm1358_vm0, 0, %v19777_v30  ;;  %v2462_v23 = vperm.slane %v2458_v39, %v12689_v21  ;;  %v2426_v40 = vsel %vm1358_vm0, 0, %v2425_v33 }
 0x43a   : > { %v2476_v7 = vrot.slane %v2475_v0, 4  ;;  %v2444_v35 = vrot.slane %v2443_v27, 4  ;;  %v6236_v11 = vsel %vm1358_vm0, %v16183_v17, %v16181_v45  ;;  %v6890_v36 = vunpack.c.l.b16 %v2862_v49 }
 0x43b   : > { %v2865_v18 = vpack.i.b16 %v2864_v8, %v2863_v24  ;;  %v2869_v60 = vshrl.u32 %v2426_v40, 16  ;;  %v2875_v61 = vshrl.u32 %v2462_v23, 16  ;;  %v2463_v22 = vrot.slane %v2462_v23, 4 }
 0x43c   : > { %v2477_v4 = vsel %vm1358_vm0, %v2476_v7, %v2469_v31  ;;  %v2445_v54 = vsel %vm1358_vm0, 0, %v2444_v35  ;;  %v6240_v27 = vperm.slane %v6236_v11, %v12672_v3  ;;  %v19778_v49 = vrot.slane %v16194_v53, 4 }
 0x43d   : > { %v2481_v30 = vperm.slane %v2477_v4, %v12689_v21  ;;  %v7036_v0 = vunpack.c.l.b16 %v2865_v18  ;;  %v2868_v39 = vpack.i.b16 %v2445_v54, %v2426_v40  ;;  %v2870_v44 = vshrl.u32 %v2445_v54, 16 }
 0x43e   : > { %v2464_v45 = vsel %vm1358_vm0, 0, %v2463_v22  ;;  %v6242_v8 = vsel %vm1358_vm0, %v19778_v49, %v16203_v38 }
 0x43f   : > { %v2874_v33 = vpack.i.b16 %v2481_v30, %v2462_v23  ;;  %v2876_v58 = vshrl.u32 %v2481_v30, 16  ;;  %v2482_v17 = vrot.slane %v2481_v30, 4  ;;  %v7181_v31 = vunpack.c.l.b16 %v2868_v39 }
 0x440   : > { %v2871_v7 = vpack.i.b16 %v2870_v44, %v2869_v60  ;;  %v2881_v24 = vshrl.u32 %v2464_v45, 16  ;;  %v6246_v18 = vperm.slane %v6242_v8, %v12672_v3  ;;  %v6255_v30 = vsel %vm1358_vm0, %v16208_v42, %v16206_v62 }
 0x441   : > { %v6891_v35 = vunpack.c.l.b16 %v2874_v33  ;;  %v2877_v4 = vpack.i.b16 %v2876_v58, %v2875_v61  ;;  %v2483_v40 = vsel %vm1358_vm0, 0, %v2482_v17  ;;  %v6259_v53 = vperm.slane %v6255_v30, %v12672_v3  ;;  %v19786_v30 = vld [vmem:[#allocation151_spill] sm:$0xff] }
 0x442   : > { %v2880_v11 = vpack.i.b16 %v2483_v40, %v2464_v45  ;;  %v2882_v23 = vshrl.u32 %v2483_v40, 16  ;;  %v7326_v54 = vunpack.c.l.b16 %v2871_v7  ;;  %v6247_v22 = vrot.slane %v6246_v18, 4  ;;  %v19782_v18 = vld [vmem:[#allocation153_spill] sm:$0xff] }
 0x443   : > { %v6903_v44 = vpack.c.b16 %v6891_v35, %v6890_v36  ;;  %v7037_v60 = vunpack.c.l.b16 %v2877_v4  ;;  %v19779_v58 = vrot.slane %v16226_v20, 4  ;;  %v6274_v33 = vsel %vm1358_vm0, %v16257_v16, %v16249_v10 }
 0x444   : > { %v7182_v39 = vunpack.c.l.b16 %v2880_v11  ;;  %v2883_v38 = vpack.i.b16 %v2882_v23, %v2881_v24  ;;  %v6248_v62 = vsel %vm1358_vm0, %v6247_v22, %v6240_v27  ;;  %v6278_v36 = vperm.slane %v6274_v33, %v12672_v3 }
 0x445   : > { %v6261_v61 = vsel %vm1358_vm0, %v19779_v58, %v5509_v47  ;;  %11293 = vmatmul.msk.bf16.gmra.mxu3 %vm6932_vm1, %v6903_v44  ;;  %v7049_v45 = vpack.c.b16 %v7037_v60, %v7036_v0  ;;  %v6252_v24 = vperm.slane %v6248_v62, %v12689_v21  ;;  %v19780_v20 = vrot.slane %v16272_v1, 4  ;;  %v19787_v44 = vld [vmem:[#allocation152_spill] sm:$0xff] }
 0x446   : > { %v6265_v42 = vperm.slane %v6261_v61, %v12672_v3  ;;  %v7194_v17 = vpack.c.b16 %v7182_v39, %v7181_v31  ;;  %v7327_v7 = vunpack.c.l.b16 %v2883_v38  ;;  %v6293_v0 = vsel %vm1358_vm0, %v16286_v55, %v16284_v6 }
 0x447   : > { %v6280_v47 = vsel %vm1358_vm0, %v19780_v20, %v16268_v15  ;;  %11301 = vmatmul.msk.bf16.gmra.mxu0 %vm6932_vm1, %v7049_v45  ;;  %v19781_v27 = vrot.slane %v16306_v2, 4  ;;  %v6297_v1 = vperm.slane %v6293_v0, %v12672_v3  ;;  %v6743_v8 = vshrl.u32 %v6252_v24, 16  ;;  %v19783_v2 = vld [vmem:[#allocation154_spill] sm:$0xff] }
 0x448   : > { %v6266_v10 = vrot.slane %v6265_v42, 4  ;;  %v6284_v16 = vperm.slane %v6280_v47, %v12672_v3  ;;  %11309 = vmatmul.msk.bf16.gmra.mxu1 %vm6932_vm1, %v7194_v17  ;;  %v7339_v49 = vpack.c.b16 %v7327_v7, %v7326_v54  ;;  %v6253_v40 = vrot.slane %v6252_v24, 4 }
 0x449   : > { %v6299_v31 = vsel %vm1358_vm0, %v19781_v27, %v5561_v48  ;;  %v2488_v11 = vperm.slane %v19782_v18, %v12672_v3  ;;  %v19784_v48 = vld [vmem:[#allocation150_spill] sm:$0xff]  ;;  %v2503_v60 = vsel %vm1358_vm0, %v19787_v44, %v19786_v30  ;;  %v19788_v30 = vld [vmem:[#allocation157_spill] sm:$0xff]  ;;  %v19789_v44 = vld [vmem:[#allocation155_spill] sm:$0xff] }
 0x44a   : > { %v6303_v15 = vperm.slane %v6299_v31, %v12672_v3  ;;  %v6267_v35 = vsel %vm1358_vm0, %v6266_v10, %v6259_v53  ;;  %v6285_v4 = vrot.slane %v6284_v16, 4  ;;  %11317 = vmatmul.msk.bf16.gmra.mxu2 %vm6932_vm1, %v7339_v49  ;;  %v19785_v23 = vrot.slane %v19784_v48, 4 }
 0x44b   : > { %v6271_v6 = vperm.slane %v6267_v35, %v12689_v21  ;;  %v6254_v53 = vsel %vm1358_vm0, 0, %v6253_v40  ;;  %v2507_v38 = vperm.slane %v2503_v60, %v12672_v3  ;;  %v19790_v60 = vrot.slane %v19789_v44, 4 }
 0x44c   : > { %v6304_v55 = vrot.slane %v6303_v15, 4  ;;  %v2490_v54 = vsel %vm1358_vm0, %v19785_v23, %v19783_v2  ;;  %v6286_v22 = vsel %vm1358_vm0, %v6285_v4, %v6278_v36  ;;  %v6749_v17 = vshrl.u32 %v6254_v53, 16 }
 0x44d   : > { %v2494_v39 = vperm.slane %v2490_v54, %v12672_v3  ;;  %v6290_v58 = vperm.slane %v6286_v22, %v12689_v21  ;;  %v6742_v33 = vpack.i.b16 %v6271_v6, %v6252_v24  ;;  %v6744_v45 = vshrl.u32 %v6271_v6, 16 }
 0x44e   : > { %v6305_v61 = vsel %vm1358_vm0, %v6304_v55, %v6297_v1  ;;  %v6272_v42 = vrot.slane %v6271_v6, 4  ;;  %v2509_v22 = vsel %vm1358_vm0, %v19790_v60, %v19788_v30  ;;  %v6160_v30 = vsel %vm1358_vm0, %v16561_v28, %v16559_v46 }
 0x44f   : > { %v6309_v62 = vperm.slane %v6305_v61, %v12689_v21  ;;  %v2495_v7 = vrot.slane %v2494_v39, 4  ;;  %v8226_v20 = vunpack.c.l.b16 %v6742_v33  ;;  %v6745_v47 = vpack.i.b16 %v6744_v45, %v6743_v8 }
 0x450   : > { %v6755_v36 = vshrl.u32 %v6290_v58, 16  ;;  %v6291_v10 = vrot.slane %v6290_v58, 4  ;;  %v6273_v27 = vsel %vm1358_vm0, 0, %v6272_v42  ;;  %v2513_v45 = vperm.slane %v2509_v22, %v12672_v3 }
 0x451   : > { %v6754_v16 = vpack.i.b16 %v6309_v62, %v6290_v58  ;;  %v6756_v0 = vshrl.u32 %v6309_v62, 16  ;;  %v6310_v31 = vrot.slane %v6309_v62, 4  ;;  %v8355_v49 = vunpack.c.l.b16 %v6745_v47  ;;  %v19791_v62 = vld [vmem:[#allocation174_spill] sm:$0xff] }
 0x452   : > { %v6292_v15 = vsel %vm1358_vm0, 0, %v6291_v10  ;;  %v6748_v1 = vpack.i.b16 %v6273_v27, %v6254_v53  ;;  %v6750_v24 = vshrl.u32 %v6273_v27, 16  ;;  %v2496_v54 = vsel %vm1358_vm0, %v2495_v7, %v2488_v11 }
 0x453   : > { %v8227_v35 = vunpack.c.l.b16 %v6754_v16  ;;  %v6757_v4 = vpack.i.b16 %v6756_v0, %v6755_v36  ;;  %v6311_v40 = vsel %vm1358_vm0, 0, %v6310_v31  ;;  %v6761_v18 = vshrl.u32 %v6292_v15, 16  ;;  %v19795_v16 = vld [vmem:[#allocation172_spill] sm:$0xff]  ;;  %v19796_v0 = vld [vmem:[#allocation173_spill] sm:$0xff] }
 0x454   : > { %v6760_v6 = vpack.i.b16 %v6311_v40, %v6292_v15  ;;  %v8484_v55 = vunpack.c.l.b16 %v6748_v1  ;;  %v6751_v8 = vpack.i.b16 %v6750_v24, %v6749_v17  ;;  %v6762_v2 = vshrl.u32 %v6311_v40, 16  ;;  %v19792_v17 = vld [vmem:[#allocation175_spill] sm:$0xff]  ;;  %v19797_v15 = vld [vmem:[#allocation180_spill] sm:$0xff] }
 0x455   : > { %v8240_v48 = vpack.c.b16 %v8227_v35, %v8226_v20  ;;  %v8356_v23 = vunpack.c.l.b16 %v6757_v4  ;;  %v2500_v61 = vperm.slane %v2496_v54, %v12689_v21  ;;  %v2526_v42 = vperm.slane %v19791_v62, %v12672_v3  ;;  %v19793_v20 = vld [vmem:[#allocation171_spill] sm:$0xff]  ;;  %v19798_v1 = vld [vmem:[#allocation176_spill] sm:$0xff] }
 0x456   : > { %v8485_v53 = vunpack.c.l.b16 %v6760_v6  ;;  %v6763_v39 = vpack.i.b16 %v6762_v2, %v6761_v18  ;;  %v8613_v58 = vunpack.c.l.b16 %v6751_v8  ;;  %v19794_v11 = vrot.slane %v19793_v20, 4 }
 0x457   : > { %8259 = vmatpush.bf16.msrb.mxu3 %v8240_v48  ;;  %v8369_v33 = vpack.c.b16 %v8356_v23, %v8355_v49  ;;  %v2541_v27 = vsel %vm1358_vm0, %v19796_v0, %v19795_v16  ;;  %v2514_v31 = vrot.slane %v2513_v45, 4  ;;  %v19799_v24 = vrot.slane %v19798_v1, 4 }
 0x458   : > { %v2528_v7 = vsel %vm1358_vm0, %v19794_v11, %v19792_v17  ;;  %v8498_v47 = vpack.c.b16 %v8485_v53, %v8484_v55  ;;  %v8614_v36 = vunpack.c.l.b16 %v6763_v39  ;;  %v2545_v49 = vperm.slane %v2541_v27, %v12672_v3 }
 0x459   : > { %v2532_v10 = vperm.slane %v2528_v7, %v12672_v3  ;;  %8388 = vmatpush.bf16.msra.mxu0 %v8369_v33  ;;  %v2547_v35 = vsel %vm1358_vm0, %v19799_v24, %v19797_v15  ;;  %v2887_v4 = vshrl.u32 %v2500_v61, 16  ;;  %v2501_v55 = vrot.slane %v2500_v61, 4 }
 0x45a   : > { %8517 = vmatpush.bf16.msra.mxu1 %v8498_v47  ;;  %v8627_v40 = vpack.c.b16 %v8614_v36, %v8613_v58  ;;  %v2551_v6 = vperm.slane %v2547_v35, %v12672_v3  ;;  %v2515_v8 = vsel %vm1358_vm0, %v2514_v31, %v2507_v38  ;;  %v19800_v2 = vrot.slane %v16582_v56, 4 }
 0x45b   : > { %v2533_v18 = vrot.slane %v2532_v10, 4  ;;  %v19801_v23 = vrot.slane %v16453_v5, 4  ;;  %v2519_v44 = vperm.slane %v2515_v8, %v12689_v21  ;;  %v2502_v38 = vsel %vm1358_vm0, 0, %v2501_v55 }
 0x45c   : > { %v5405_v48 = vsel %vm1358_vm0, 0, %v19800_v2  ;;  %8646 = vmatpush.bf16.msra.mxu2 %v8627_v40  ;;  %v2552_v22 = vrot.slane %v2551_v6, 4  ;;  %v2893_v39 = vshrl.u32 %v2502_v38, 16  ;;  %v6164_v58 = vperm.slane %v6160_v30, %v12672_v3 }
 0x45d   : > { %v5457_v54 = vsel %vm1358_vm0, 0, %v19801_v23  ;;  %v2534_v60 = vsel %vm1358_vm0, %v2533_v18, %v2526_v42  ;;  %v19802_v33 = vrot.slane %v16576_v57, 4  ;;  %v2886_v28 = vpack.i.b16 %v2519_v44, %v2500_v61 }
 0x45e   : > { %v2538_v53 = vperm.slane %v2534_v60, %v12689_v21  ;;  %v2553_v46 = vsel %vm1358_vm0, %v2552_v22, %v2545_v49  ;;  %v2888_v62 = vshrl.u32 %v2519_v44, 16  ;;  %v2520_v17 = vrot.slane %v2519_v44, 4 }
 0x45f   : > { %v6166_v45 = vsel %vm1358_vm0, %v19802_v33, %v16588_v37  ;;  %v2557_v42 = vperm.slane %v2553_v46, %v12689_v21  ;;  %v6892_v47 = vunpack.c.l.b16 %v2886_v28  ;;  %v6179_v57 = vsel %vm1358_vm0, %v16584_v9, %v16582_v56 }
 0x460   : > { %v2899_v20 = vshrl.u32 %v2538_v53, 16  ;;  %v2539_v11 = vrot.slane %v2538_v53, 4  ;;  %v6170_v7 = vperm.slane %v6166_v45, %v12672_v3  ;;  %v2889_v36 = vpack.i.b16 %v2888_v62, %v2887_v4 }
 0x461   : > { %v2521_v10 = vsel %vm1358_vm0, 0, %v2520_v17  ;;  %v2898_v37 = vpack.i.b16 %v2557_v42, %v2538_v53  ;;  %v2900_v16 = vshrl.u32 %v2557_v42, 16  ;;  %v2558_v0 = vrot.slane %v2557_v42, 4 }
 0x462   : > { %v2540_v61 = vsel %vm1358_vm0, 0, %v2539_v11  ;;  %v7038_v27 = vunpack.c.l.b16 %v2889_v36  ;;  %v2892_v31 = vpack.i.b16 %v2521_v10, %v2502_v38  ;;  %v2894_v49 = vshrl.u32 %v2521_v10, 16 }
 0x463   : > { %v2905_v15 = vshrl.u32 %v2540_v61, 16  ;;  %v6893_v1 = vunpack.c.l.b16 %v2898_v37  ;;  %v2901_v24 = vpack.i.b16 %v2900_v16, %v2899_v20  ;;  %v2559_v35 = vsel %vm1358_vm0, 0, %v2558_v0 }
 0x464   : > { %v6171_v4 = vrot.slane %v6170_v7, 4  ;;  %v2904_v40 = vpack.i.b16 %v2559_v35, %v2540_v61  ;;  %v7183_v18 = vunpack.c.l.b16 %v2892_v31  ;;  %v2895_v6 = vpack.i.b16 %v2894_v49, %v2893_v39 }
 0x465   : > { %v2906_v55 = vshrl.u32 %v2559_v35, 16  ;;  %v6904_v8 = vpack.c.b16 %v6893_v1, %v6892_v47  ;;  %v7039_v56 = vunpack.c.l.b16 %v2901_v24  ;;  %v6183_v2 = vperm.slane %v6179_v57, %v12672_v3 }
 0x466   : > { %v6172_v9 = vsel %vm1358_vm0, %v6171_v4, %v6164_v58  ;;  %v7184_v23 = vunpack.c.l.b16 %v2904_v40  ;;  %v7328_v44 = vunpack.c.l.b16 %v2895_v6  ;;  %v19803_v38 = vrot.slane %v16601_v13, 4 }
 0x467   : > { %v2907_v30 = vpack.i.b16 %v2906_v55, %v2905_v15  ;;  %v6176_v60 = vperm.slane %v6172_v9, %v12689_v21  ;;  %11294 = vmatmul.msk.bf16.gmra.mxu3 %vm6932_vm1, %v6904_v8  ;;  %v7050_v22 = vpack.c.b16 %v7039_v56, %v7038_v27  ;;  %v6198_v39 = vsel %vm1358_vm0, %v16426_v14, %v16424_v63 }
 0x468   : > { %v6185_v53 = vsel %vm1358_vm0, %v19803_v38, %v5405_v48  ;;  %v19804_v58 = vrot.slane %v16438_v50, 4  ;;  %v7195_v45 = vpack.c.b16 %v7184_v23, %v7183_v18  ;;  %v6202_v62 = vperm.slane %v6198_v39, %v12672_v3  ;;  %v19810_v39 = vld [vmem:[#allocation164_spill] sm:$0xff] }
 0x469   : > { %v7329_v46 = vunpack.c.l.b16 %v2907_v30  ;;  %v6189_v28 = vperm.slane %v6185_v53, %v12672_v3  ;;  %11302 = vmatmul.msk.bf16.gmra.mxu0 %vm6932_vm1, %v7050_v22  ;;  %v6217_v48 = vsel %vm1358_vm0, %v16455_v52, %v16453_v5  ;;  %v19805_v63 = vrot.slane %v16465_v59, 4 }
 0x46a   : > { %v6204_v33 = vsel %vm1358_vm0, %v19804_v58, %v16450_v19  ;;  %v6719_v50 = vshrl.u32 %v6176_v60, 16  ;;  %11310 = vmatmul.msk.bf16.gmra.mxu1 %vm6932_vm1, %v7195_v45  ;;  %v6221_v42 = vperm.slane %v6217_v48, %v12672_v3  ;;  %v6177_v7 = vrot.slane %v6176_v60, 4 }
 0x46b   : > { %v6208_v13 = vperm.slane %v6204_v33, %v12672_v3  ;;  %v6223_v14 = vsel %vm1358_vm0, %v19805_v63, %v5457_v54  ;;  %v7340_v19 = vpack.c.b16 %v7329_v46, %v7328_v44  ;;  %v6190_v17 = vrot.slane %v6189_v28, 4 }
 0x46c   : > { %v6227_v20 = vperm.slane %v6223_v14, %v12672_v3  ;;  %v19806_v47 = vrot.slane %v15651_v34, 4  ;;  %v19807_v5 = vrot.slane %v15834_v51, 4  ;;  %v6084_v10 = vsel %vm1358_vm0, %v15636_v25, %v15634_v32  ;;  %v19809_v32 = vld [vmem:[#allocation162_spill] sm:$0xff]  ;;  %v19812_v14 = vld [vmem:[#allocation165_spill] sm:$0xff] }
 0x46d   : > { %v6209_v11 = vrot.slane %v6208_v13, 4  ;;  %11318 = vmatmul.msk.bf16.gmra.mxu2 %vm6932_vm1, %v7340_v19  ;;  %v6191_v59 = vsel %vm1358_vm0, %v6190_v17, %v6183_v2  ;;  %v19808_v57 = vrot.slane %v15645_v12, 4  ;;  %v6178_v0 = vsel %vm1358_vm0, 0, %v6177_v7  ;;  %v19814_v17 = vld [vmem:[#allocation170_spill] sm:$0xff] }
 0x46e   : > { %v5301_v36 = vsel %vm1358_vm0, 0, %v19806_v47  ;;  %v5353_v52 = vsel %vm1358_vm0, 0, %v19807_v5  ;;  %v6228_v54 = vrot.slane %v6227_v20, 4  ;;  %v6195_v16 = vperm.slane %v6191_v59, %v12689_v21  ;;  %v19815_v47 = vld [vmem:[#allocation166_spill] sm:$0xff] }
 0x46f   : > { %v6090_v37 = vsel %vm1358_vm0, %v19808_v57, %v15657_v26  ;;  %v6210_v61 = vsel %vm1358_vm0, %v6209_v11, %v6202_v62  ;;  %v6088_v27 = vperm.slane %v6084_v10, %v12672_v3  ;;  %v6103_v25 = vsel %vm1358_vm0, %v19809_v32, %v15651_v34 }
 0x470   : > { %v6214_v31 = vperm.slane %v6210_v61, %v12689_v21  ;;  %v6229_v49 = vsel %vm1358_vm0, %v6228_v54, %v6221_v42  ;;  %v6094_v15 = vperm.slane %v6090_v37, %v12672_v3  ;;  %v6718_v26 = vpack.i.b16 %v6195_v16, %v6176_v60 }
 0x471   : > { %v6233_v12 = vperm.slane %v6229_v49, %v12689_v21  ;;  %v6720_v1 = vshrl.u32 %v6195_v16, 16  ;;  %v6196_v24 = vrot.slane %v6195_v16, 4  ;;  %v6107_v18 = vperm.slane %v6103_v25, %v12672_v3 }
 0x472   : > { %v6731_v35 = vshrl.u32 %v6214_v31, 16  ;;  %v6215_v4 = vrot.slane %v6214_v31, 4  ;;  %v6095_v40 = vrot.slane %v6094_v15, 4  ;;  %v8224_v55 = vunpack.c.l.b16 %v6718_v26 }
 0x473   : > { %v6730_v6 = vpack.i.b16 %v6233_v12, %v6214_v31  ;;  %v6721_v8 = vpack.i.b16 %v6720_v1, %v6719_v50  ;;  %v6732_v56 = vshrl.u32 %v6233_v12, 16  ;;  %v6197_v9 = vsel %vm1358_vm0, 0, %v6196_v24 }
 0x474   : > { %v6216_v2 = vsel %vm1358_vm0, 0, %v6215_v4  ;;  %v6234_v23 = vrot.slane %v6233_v12, 4  ;;  %v6096_v34 = vsel %vm1358_vm0, %v6095_v40, %v6088_v27  ;;  %v6724_v22 = vpack.i.b16 %v6197_v9, %v6178_v0  ;;  %v19817_v12 = vld [vmem:[#allocation181_spill] sm:$0xff] }
 0x475   : > { %v8225_v30 = vunpack.c.l.b16 %v6730_v6  ;;  %v6733_v44 = vpack.i.b16 %v6732_v56, %v6731_v35  ;;  %v8353_v60 = vunpack.c.l.b16 %v6721_v8  ;;  %v6100_v53 = vperm.slane %v6096_v34, %v12689_v21 }
 0x476   : > { %v6235_v38 = vsel %vm1358_vm0, 0, %v6234_v23  ;;  %v19811_v58 = vrot.slane %v19810_v39, 4  ;;  %v6122_v45 = vsel %vm1358_vm0, %v15817_v41, %v15809_v43  ;;  %v8482_v13 = vunpack.c.l.b16 %v6724_v22  ;;  %v19819_v23 = vld [vmem:[#allocation177_spill] sm:$0xff] }
 0x477   : > { %v8239_v46 = vpack.c.b16 %v8225_v30, %v8224_v55  ;;  %v8354_v28 = vunpack.c.l.b16 %v6733_v44  ;;  %v6736_v62 = vpack.i.b16 %v6235_v38, %v6216_v2  ;;  %v6126_v63 = vperm.slane %v6122_v45, %v12672_v3 }
 0x478   : > { %v6109_v33 = vsel %vm1358_vm0, %v19811_v58, %v5301_v36  ;;  %v19813_v50 = vrot.slane %v19812_v14, 4  ;;  %v6141_v42 = vsel %vm1358_vm0, %v19814_v17, %v15834_v51  ;;  %v19816_v36 = vrot.slane %v19815_v47, 4  ;;  %v19824_v17 = vld [vmem:[#allocation182_spill] sm:$0xff] }
 0x479   : > { %v6113_v48 = vperm.slane %v6109_v33, %v12672_v3  ;;  %8260 = vmatpush.bf16.msrb.mxu3 %v8239_v46  ;;  %v8368_v20 = vpack.c.b16 %v8354_v28, %v8353_v60  ;;  %v8483_v43 = vunpack.c.l.b16 %v6736_v62  ;;  %v6145_v11 = vperm.slane %v6141_v42, %v12672_v3  ;;  %v19821_v62 = vld [vmem:[#allocation178_spill] sm:$0xff] }
 0x47a   : > { %v6128_v19 = vsel %vm1358_vm0, %v19813_v50, %v15839_v29  ;;  %v6147_v5 = vsel %vm1358_vm0, %v19816_v36, %v5353_v52  ;;  %v6725_v59 = vshrl.u32 %v6178_v0, 16  ;;  %v6726_v54 = vshrl.u32 %v6197_v9, 16  ;;  %v19826_v36 = vld [vmem:[#allocation199_spill] sm:$0xff] }
 0x47b   : > { %v6132_v41 = vperm.slane %v6128_v19, %v12672_v3  ;;  %v6114_v7 = vrot.slane %v6113_v48, 4  ;;  %8389 = vmatpush.bf16.msra.mxu0 %v8368_v20  ;;  %v8497_v29 = vpack.c.b16 %v8483_v43, %v8482_v13  ;;  %v6151_v57 = vperm.slane %v6147_v5, %v12672_v3  ;;  %v19822_v13 = vld [vmem:[#allocation179_spill] sm:$0xff]  ;;  %v19823_v19 = vld [vmem:[#allocation184_spill] sm:$0xff] }
 0x47c   : > { %v6737_v51 = vshrl.u32 %v6216_v2, 16  ;;  %v6727_v16 = vpack.i.b16 %v6726_v54, %v6725_v59  ;;  %v6738_v61 = vshrl.u32 %v6235_v38, 16  ;;  %v6695_v27 = vshrl.u32 %v6100_v53, 16  ;;  %v19818_v2 = vld [vmem:[#allocation183_spill] sm:$0xff]  ;;  %v19827_v59 = vld [vmem:[#allocation201_spill] sm:$0xff]  ;;  %v19828_v54 = vld [vmem:[#allocation196_spill] sm:$0xff] }
 0x47d   : > { %v6133_v10 = vrot.slane %v6132_v41, 4  ;;  %v6115_v37 = vsel %vm1358_vm0, %v6114_v7, %v6107_v18  ;;  %8518 = vmatpush.bf16.msra.mxu1 %v8497_v29  ;;  %v6152_v15 = vrot.slane %v6151_v57, 4  ;;  %v6101_v52 = vrot.slane %v6100_v53, 4  ;;  %v19830_v57 = vld [vmem:[#allocation197_spill] sm:$0xff] }
 0x47e   : > { %v6119_v31 = vperm.slane %v6115_v37, %v12689_v21  ;;  %v6739_v32 = vpack.i.b16 %v6738_v61, %v6737_v51  ;;  %v8611_v25 = vunpack.c.l.b16 %v6727_v16  ;;  %v2564_v26 = vperm.slane %v19817_v12, %v12672_v3  ;;  %v19831_v51 = vld [vmem:[#allocation198_spill] sm:$0xff] }
 0x47f   : > { %v6134_v49 = vsel %vm1358_vm0, %v6133_v10, %v6126_v63  ;;  %v6153_v1 = vsel %vm1358_vm0, %v6152_v15, %v6145_v11  ;;  %v6102_v4 = vsel %vm1358_vm0, 0, %v6101_v52  ;;  %v19820_v34 = vrot.slane %v19819_v23, 4 }
 0x480   : > { %v6138_v0 = vperm.slane %v6134_v49, %v12689_v21  ;;  %v6694_v24 = vpack.i.b16 %v6119_v31, %v6100_v53  ;;  %v6696_v35 = vshrl.u32 %v6119_v31, 16  ;;  %v6157_v40 = vperm.slane %v6153_v1, %v12689_v21 }
 0x481   : > { %v8612_v18 = vunpack.c.l.b16 %v6739_v32  ;;  %v6120_v55 = vrot.slane %v6119_v31, 4  ;;  %v2566_v30 = vsel %vm1358_vm0, %v19820_v34, %v19818_v2  ;;  %v2579_v48 = vsel %vm1358_vm0, %v19822_v13, %v19821_v62  ;;  %v19833_v32 = vld [vmem:[#allocation200_spill] sm:$0xff] }
 0x482   : > { %v6707_v6 = vshrl.u32 %v6138_v0, 16  ;;  %v8222_v8 = vunpack.c.l.b16 %v6694_v24  ;;  %v6697_v56 = vpack.i.b16 %v6696_v35, %v6695_v27  ;;  %v6139_v9 = vrot.slane %v6138_v0, 4 }
 0x483   : > { %v6706_v44 = vpack.i.b16 %v6157_v40, %v6138_v0  ;;  %v8626_v60 = vpack.c.b16 %v8612_v18, %v8611_v25  ;;  %v6708_v22 = vshrl.u32 %v6157_v40, 16  ;;  %v6121_v38 = vsel %vm1358_vm0, 0, %v6120_v55  ;;  %v19832_v0 = vld [vmem:[#allocation202_spill] sm:$0xff] }
 0x484   : > { %v8351_v53 = vunpack.c.l.b16 %v6697_v56  ;;  %v6140_v39 = vsel %vm1358_vm0, 0, %v6139_v9  ;;  %v6158_v58 = vrot.slane %v6157_v40, 4  ;;  %v6700_v33 = vpack.i.b16 %v6121_v38, %v6102_v4 }
 0x485   : > { %v8223_v45 = vunpack.c.l.b16 %v6706_v44  ;;  %8647 = vmatpush.bf16.msra.mxu2 %v8626_v60  ;;  %v6709_v46 = vpack.i.b16 %v6708_v22, %v6707_v6  ;;  %v2570_v28 = vperm.slane %v2566_v30, %v12672_v3  ;;  %v2583_v50 = vperm.slane %v2579_v48, %v12672_v3 }
 0x486   : > { %v6159_v63 = vsel %vm1358_vm0, 0, %v6158_v58  ;;  %v8480_v14 = vunpack.c.l.b16 %v6700_v33  ;;  %v19825_v42 = vrot.slane %v19824_v17, 4  ;;  %v2602_v5 = vperm.slane %v19826_v36, %v12672_v3 }
 0x487   : > { %v8238_v43 = vpack.c.b16 %v8223_v45, %v8222_v8  ;;  %v8352_v41 = vunpack.c.l.b16 %v6709_v46  ;;  %v6712_v11 = vpack.i.b16 %v6159_v63, %v6140_v39  ;;  %v2571_v7 = vrot.slane %v2570_v28, 4 }
 0x488   : > { %v2585_v20 = vsel %vm1358_vm0, %v19825_v42, %v19823_v19  ;;  %v19829_v29 = vrot.slane %v19828_v54, 4  ;;  %v2617_v37 = vsel %vm1358_vm0, %v19831_v51, %v19830_v57  ;;  %v19834_v25 = vrot.slane %v19833_v32, 4 }
 0x489   : > { %v2589_v47 = vperm.slane %v2585_v20, %v12672_v3  ;;  %8261 = vmatpush.bf16.msrb.mxu3 %v8238_v43  ;;  %v8367_v16 = vpack.c.b16 %v8352_v41, %v8351_v53  ;;  %v8481_v61 = vunpack.c.l.b16 %v6712_v11  ;;  %v2572_v27 = vsel %vm1358_vm0, %v2571_v7, %v2564_v26 }
 0x48a   : > { %v2604_v10 = vsel %vm1358_vm0, %v19829_v29, %v19827_v59  ;;  %v2576_v49 = vperm.slane %v2572_v27, %v12689_v21  ;;  %v2621_v52 = vperm.slane %v2617_v37, %v12672_v3  ;;  %v2623_v12 = vsel %vm1358_vm0, %v19834_v25, %v19832_v0  ;;  %v19836_v37 = vld [vmem:[#allocation208_spill] sm:$0xff]  ;;  %v19842_v0 = vld [vmem:[#allocation207_spill] sm:$0xff] }
 0x48b   : > { %v2608_v31 = vperm.slane %v2604_v10, %v12672_v3  ;;  %v2590_v15 = vrot.slane %v2589_v47, 4  ;;  %8390 = vmatpush.bf16.msra.mxu0 %v8367_v16  ;;  %v8496_v1 = vpack.c.b16 %v8481_v61, %v8480_v14  ;;  %v2627_v35 = vperm.slane %v2623_v12, %v12672_v3  ;;  %v19837_v16 = vld [vmem:[#allocation203_spill] sm:$0xff] }
 0x48c   : > { %v6701_v40 = vshrl.u32 %v6102_v4, 16  ;;  %v6702_v18 = vshrl.u32 %v6121_v38, 16  ;;  %v6713_v6 = vshrl.u32 %v6140_v39, 16  ;;  %v6714_v55 = vshrl.u32 %v6159_v63, 16  ;;  %v19835_v38 = vld [vmem:[#allocation242_spill] sm:$0xff] }
 0x48d   : > { %v2609_v24 = vrot.slane %v2608_v31, 4  ;;  %v2591_v26 = vsel %vm1358_vm0, %v2590_v15, %v2583_v50  ;;  %8519 = vmatpush.bf16.msra.mxu1 %v8496_v1  ;;  %v2628_v9 = vrot.slane %v2627_v35, 4  ;;  %v2911_v2 = vshrl.u32 %v2576_v49, 16  ;;  %v19839_v31 = vld [vmem:[#allocation204_spill] sm:$0xff] }
 0x48e   : > { %v2595_v8 = vperm.slane %v2591_v26, %v12689_v21  ;;  %v6703_v34 = vpack.i.b16 %v6702_v18, %v6701_v40  ;;  %v6715_v30 = vpack.i.b16 %v6714_v55, %v6713_v6  ;;  %v2577_v44 = vrot.slane %v2576_v49, 4 }
 0x48f   : > { %v2610_v56 = vsel %vm1358_vm0, %v2609_v24, %v2602_v5  ;;  %v2629_v60 = vsel %vm1358_vm0, %v2628_v9, %v2621_v52  ;;  %v2774_v39 = vrot.slane %v19835_v38, 4  ;;  %v19838_v61 = vrot.slane %v19837_v16, 4  ;;  %v19841_v52 = vld [vmem:[#allocation210_spill] sm:$0xff]  ;;  %v19845_v9 = vld [vmem:[#allocation217_spill] sm:$0xff] }
 0x490   : > { %v2614_v23 = vperm.slane %v2610_v56, %v12689_v21  ;;  %v2910_v4 = vpack.i.b16 %v2595_v8, %v2576_v49  ;;  %v2912_v22 = vshrl.u32 %v2595_v8, 16  ;;  %v2596_v53 = vrot.slane %v2595_v8, 4  ;;  %v19840_v49 = vld [vmem:[#allocation205_spill] sm:$0xff]  ;;  %v19844_v24 = vld [vmem:[#allocation206_spill] sm:$0xff] }
 0x491   : > { %v2633_v58 = vperm.slane %v2629_v60, %v12689_v21  ;;  %v8609_v33 = vunpack.c.l.b16 %v6703_v34  ;;  %v8610_v45 = vunpack.c.l.b16 %v6715_v30  ;;  %v2578_v62 = vsel %vm1358_vm0, 0, %v2577_v44  ;;  %v19848_v30 = vld [vmem:[#allocation213_spill] sm:$0xff]  ;;  %v19849_v44 = vld [vmem:[#allocation216_spill] sm:$0xff] }
 0x492   : > { %v2913_v46 = vpack.i.b16 %v2912_v22, %v2911_v2  ;;  %v2923_v28 = vshrl.u32 %v2614_v23, 16  ;;  %v2597_v13 = vsel %vm1358_vm0, 0, %v2596_v53  ;;  %v2615_v50 = vrot.slane %v2614_v23, 4  ;;  %v19846_v2 = vld [vmem:[#allocation212_spill] sm:$0xff]  ;;  %v19850_v53 = vld [vmem:[#allocation214_spill] sm:$0xff] }
 0x493   : > { %v2922_v48 = vpack.i.b16 %v2633_v58, %v2614_v23  ;;  %v8625_v63 = vpack.c.b16 %v8610_v45, %v8609_v33  ;;  %v2924_v14 = vshrl.u32 %v2633_v58, 16  ;;  %v6894_v19 = vunpack.c.l.b16 %v2910_v4 }
 0x494   : > { %v2634_v17 = vrot.slane %v2633_v58, 4  ;;  %v2916_v42 = vpack.i.b16 %v2597_v13, %v2578_v62  ;;  %v2917_v20 = vshrl.u32 %v2578_v62, 16  ;;  %v2616_v11 = vsel %vm1358_vm0, 0, %v2615_v50  ;;  %v19852_v62 = vld [vmem:[#allocation218_spill] sm:$0xff] }
 0x495   : > { %v6895_v43 = vunpack.c.l.b16 %v2922_v48  ;;  %8648 = vmatpush.bf16.msra.mxu2 %v8625_v63  ;;  %v2925_v41 = vpack.i.b16 %v2924_v14, %v2923_v28  ;;  %v2918_v7 = vshrl.u32 %v2597_v13, 16  ;;  %v7040_v47 = vunpack.c.l.b16 %v2913_v46  ;;  %v19851_v28 = vld [vmem:[#allocation220_spill] sm:$0xff]  ;;  %v19855_v14 = vld [vmem:[#allocation223_spill] sm:$0xff] }
 0x496   : > { %v2635_v36 = vsel %vm1358_vm0, 0, %v2634_v17  ;;  %v7185_v5 = vunpack.c.l.b16 %v2916_v42  ;;  %v2929_v59 = vshrl.u32 %v2616_v11, 16  ;;  %v2642_v27 = vsel %vm1358_vm0, %v19838_v61, %v19836_v37  ;;  %v19854_v63 = vld [vmem:[#allocation228_spill] sm:$0xff] }
 0x497   : > { %v6905_v54 = vpack.c.b16 %v6895_v43, %v6894_v19  ;;  %v7041_v29 = vunpack.c.l.b16 %v2925_v41  ;;  %v2928_v10 = vpack.i.b16 %v2635_v36, %v2616_v11  ;;  %v2919_v57 = vpack.i.b16 %v2918_v7, %v2917_v20 }
 0x498   : > { %v2930_v51 = vshrl.u32 %v2635_v36, 16  ;;  %v2655_v15 = vsel %vm1358_vm0, %v19840_v49, %v19839_v31  ;;  %v19843_v32 = vrot.slane %v19842_v0, 4  ;;  %v2640_v35 = vperm.slane %v19844_v24, %v12672_v3  ;;  %v19858_v36 = vld [vmem:[#allocation225_spill] sm:$0xff] }
 0x499   : > { %11295 = vmatmul.msk.bf16.gmra.mxu3 %vm6932_vm1, %v6905_v54  ;;  %v7051_v12 = vpack.c.b16 %v7041_v29, %v7040_v47  ;;  %v7186_v1 = vunpack.c.l.b16 %v2928_v10  ;;  %v2646_v40 = vperm.slane %v2642_v27, %v12672_v3  ;;  %v7330_v18 = vunpack.c.l.b16 %v2919_v57  ;;  %v19857_v47 = vld [vmem:[#allocation224_spill] sm:$0xff]  ;;  %v19859_v10 = vld [vmem:[#allocation226_spill] sm:$0xff] }
 0x49a   : > { %v2661_v25 = vsel %vm1358_vm0, %v19843_v32, %v19841_v52  ;;  %v2931_v26 = vpack.i.b16 %v2930_v51, %v2929_v59  ;;  %v2659_v6 = vperm.slane %v2655_v15, %v12672_v3  ;;  %v19847_v23 = vrot.slane %v19846_v2, 4 }
 0x49b   : > { %v2665_v55 = vperm.slane %v2661_v25, %v12672_v3  ;;  %11303 = vmatmul.msk.bf16.gmra.mxu0 %vm6932_vm1, %v7051_v12  ;;  %v7196_v8 = vpack.c.b16 %v7186_v1, %v7185_v5  ;;  %v2647_v56 = vrot.slane %v2646_v40, 4  ;;  %v2693_v60 = vsel %vm1358_vm0, %v19849_v44, %v19848_v30  ;;  %v19860_v25 = vld [vmem:[#allocation229_spill] sm:$0xff]  ;;  %v19861_v12 = vld [vmem:[#allocation227_spill] sm:$0xff] }
 0x49c   : > { %v2680_v34 = vsel %vm1358_vm0, %v19847_v23, %v19845_v9  ;;  %v7331_v4 = vunpack.c.l.b16 %v2931_v26  ;;  %v2678_v58 = vperm.slane %v19850_v53, %v12672_v3  ;;  %v2697_v46 = vperm.slane %v2693_v60, %v12672_v3 }
 0x49d   : > { %v2666_v22 = vrot.slane %v2665_v55, 4  ;;  %v2684_v33 = vperm.slane %v2680_v34, %v12672_v3  ;;  %11311 = vmatmul.msk.bf16.gmra.mxu1 %vm6932_vm1, %v7196_v8  ;;  %v2648_v45 = vsel %vm1358_vm0, %v2647_v56, %v2640_v35  ;;  %v19853_v13 = vrot.slane %v19852_v62, 4  ;;  %v16932_v55 = vpop.f32.mrf.mxu3 }
 0x49e   : > { %v19856_v50 = vrot.slane %v19855_v14, 4  ;;  %v7341_v17 = vpack.c.b16 %v7331_v4, %v7330_v18  ;;  %v2652_v42 = vperm.slane %v2648_v45, %v12689_v21  ;;  %v2731_v5 = vsel %vm1358_vm0, %v19858_v36, %v19857_v47 }
 0x49f   : > { %v2699_v48 = vsel %vm1358_vm0, %v19853_v13, %v19851_v28  ;;  %v2667_v20 = vsel %vm1358_vm0, %v2666_v22, %v2659_v6  ;;  %v2685_v43 = vrot.slane %v2684_v33, 4  ;;  %v2716_v57 = vperm.slane %v19859_v10, %v12672_v3  ;;  %v16930_v6 = vpop.f32.mrf.mxu0  ;;  %v19869_v10 = vld [vmem:[#allocation241_spill] sm:$0xff] }
 0x4a0   : > { %v2718_v19 = vsel %vm1358_vm0, %v19856_v50, %v19854_v63  ;;  %v2671_v41 = vperm.slane %v2667_v20, %v12689_v21  ;;  %v2703_v11 = vperm.slane %v2699_v48, %v12672_v3  ;;  %11319 = vmatmul.msk.bf16.gmra.mxu2 %vm6932_vm1, %v7341_v17  ;;  %v2935_v54 = vshrl.u32 %v2652_v42, 16  ;;  %v19864_v17 = vld [vmem:[#allocation237_spill] sm:$0xff] }
 0x4a1   : > { %v2722_v7 = vperm.slane %v2718_v19, %v12672_v3  ;;  %v2686_v59 = vsel %vm1358_vm0, %v2685_v43, %v2678_v58  ;;  %v2653_v29 = vrot.slane %v2652_v42, 4  ;;  %v2735_v15 = vperm.slane %v2731_v5, %v12672_v3  ;;  %v19863_v19 = vld [vmem:[#allocation240_spill] sm:$0xff] }
 0x4a2   : > { %v2690_v51 = vperm.slane %v2686_v59, %v12689_v21  ;;  %v2704_v37 = vrot.slane %v2703_v11, 4  ;;  %v2934_v16 = vpack.i.b16 %v2671_v41, %v2652_v42  ;;  %v2936_v61 = vshrl.u32 %v2671_v41, 16  ;;  %v19866_v11 = vld [vmem:[#allocation239_spill] sm:$0xff]  ;;  %v19867_v59 = vld [vmem:[#allocation236_spill] sm:$0xff] }
 0x4a3   : > { %v2654_v27 = vsel %vm1358_vm0, 0, %v2653_v29  ;;  %v2672_v31 = vrot.slane %v2671_v41, 4  ;;  %v2723_v49 = vrot.slane %v2722_v7, 4  ;;  %v19862_v1 = vrot.slane %v19861_v12, 4 }
 0x4a4   : > { %v2705_v52 = vsel %vm1358_vm0, %v2704_v37, %v2697_v46  ;;  %v6896_v0 = vunpack.c.l.b16 %v2934_v16  ;;  %v2937_v32 = vpack.i.b16 %v2936_v61, %v2935_v54  ;;  %v2947_v40 = vshrl.u32 %v2690_v51, 16  ;;  %v19868_v54 = vld [vmem:[#allocation238_spill] sm:$0xff] }
 0x4a5   : > { %v2737_v24 = vsel %vm1358_vm0, %v19862_v1, %v19860_v25  ;;  %v2709_v35 = vperm.slane %v2705_v52, %v12689_v21  ;;  %v2673_v26 = vsel %vm1358_vm0, 0, %v2672_v31  ;;  %v2691_v18 = vrot.slane %v2690_v51, 4  ;;  %v7465_v31 = vld [vmem:[%s435_s29] sm:$0x1]  ;;  %s12149_s29 = scalar_lea.hbm %s12148_s24, 64 }
 0x4a6   : > { %v2940_v8 = vpack.i.b16 %v2673_v26, %v2654_v27  ;;  %v2941_v56 = vshrl.u32 %v2654_v27, 16  ;;  %v2942_v9 = vshrl.u32 %v2673_v26, 16  ;;  %v2724_v2 = vsel %vm1358_vm0, %v2723_v49, %v2716_v57  ;;  %p12150_p1 = scmp.ne.s32.totalorder %s12148_s24, %s12149_s29  ;;  %p12155_p10 = scmp.lt.s32.totalorder %s12153_s21, %s12149_s29 }
 0x4a7   : > { %v2946_v23 = vpack.i.b16 %v2709_v35, %v2690_v51  ;;  %v2948_v34 = vshrl.u32 %v2709_v35, 16  ;;  %v2692_v30 = vsel %vm1358_vm0, 0, %v2691_v18  ;;  %v2710_v44 = vrot.slane %v2709_v35, 4  ;;  %v7137_v49 = vpop.f32.mrf.mxu0  ;;  %v7280_v18 = vpop.f32.mrf.mxu1 }
 0x4a8   : > { %v7042_v60 = vunpack.c.l.b16 %v2937_v32  ;;  %v7187_v4 = vunpack.c.l.b16 %v2940_v8  ;;  %v2943_v22 = vpack.i.b16 %v2942_v9, %v2941_v56  ;;  %v2953_v53 = vshrl.u32 %v2692_v30, 16  ;;  %p12151_p2 = pnand %p12150_p1, %p12373_p5  ;;  %p12156_p13 = por %p12155_p10, %p12154_p8 }
 0x4a9   : > { %v6897_v58 = vunpack.c.l.b16 %v2946_v23  ;;  %v2949_v33 = vpack.i.b16 %v2948_v34, %v2947_v40  ;;  %v2711_v45 = vsel %vm1358_vm0, 0, %v2710_v44  ;;  %v2741_v46 = vperm.slane %v2737_v24, %v12672_v3 }
 0x4aa   : > { %v2952_v28 = vpack.i.b16 %v2711_v45, %v2692_v30  ;;  %v2954_v62 = vshrl.u32 %v2711_v45, 16  ;;  %v7332_v13 = vunpack.c.l.b16 %v2943_v22  ;;  %v2728_v48 = vperm.slane %v2724_v2, %v12689_v21  ;;  %p12152_p4 = pneg %p12151_p2 }
 0x4ab   : > { %v6906_v63 = vpack.c.b16 %v6897_v58, %v6896_v0  ;;  %v7043_v14 = vunpack.c.l.b16 %v2949_v33  ;;  %v2742_v50 = vrot.slane %v2741_v46, 4  ;;  %v19865_v42 = vrot.slane %v19864_v17, 4 }
 0x4ac   : > { %v7188_v43 = vunpack.c.l.b16 %v2952_v28  ;;  %v2955_v41 = vpack.i.b16 %v2954_v62, %v2953_v53  ;;  %v2754_v7 = vperm.slane %v19866_v11, %v12672_v3  ;;  %v2769_v29 = vsel %vm1358_vm0, %v19868_v54, %v19867_v59  ;;  %p12157_p0 = pnand %p12156_p13, %p12152_p4 }
 0x4ad   : > { %v2756_v20 = vsel %vm1358_vm0, %v19865_v42, %v19863_v19  ;;  %11296 = vmatmul.msk.bf16.gmra.mxu3 %vm6932_vm1, %v6906_v63  ;;  %v7052_v36 = vpack.c.b16 %v7043_v14, %v7042_v60  ;;  %v2743_v5 = vsel %vm1358_vm0, %v2742_v50, %v2735_v15  ;;  %v2775_v57 = vsel %vm1358_vm0, %v2774_v39, %v19869_v10  ;;  %v16960_v15 = vpop.f32.mrf.mxu3 }
 0x4ae   : > { %v2760_v47 = vperm.slane %v2756_v20, %v12672_v3  ;;  %v7197_v51 = vpack.c.b16 %v7188_v43, %v7187_v4  ;;  %v7333_v37 = vunpack.c.l.b16 %v2955_v41  ;;  %v2747_v16 = vperm.slane %v2743_v5, %v12689_v21  ;;  %v7425_v5 = vpop.f32.mrf.mxu2 }
 0x4af   : > { %11304 = vmatmul.msk.bf16.gmra.mxu0 %vm6932_vm1, %v7052_v36  ;;  %v2779_v27 = vperm.slane %v2775_v57, %v12672_v3  ;;  %v2729_v39 = vrot.slane %v2728_v48, 4  ;;  %v2773_v32 = vperm.slane %v2769_v29, %v12672_v3  ;;  %vm7466_vm2 = vcmp.eq.f32.partialorder %v7465_v31, 0.0  ;;  %v7140_v19 = vpop.f32.mrf.mxu0 }
 0x4b0   : > { %v2761_v61 = vrot.slane %v2760_v47, 4  ;;  %11312 = vmatmul.msk.bf16.gmra.mxu1 %vm6932_vm1, %v7197_v51  ;;  %v7342_v52 = vpack.c.b16 %v7333_v37, %v7332_v13  ;;  %v2748_v12 = vrot.slane %v2747_v16, 4  ;;  %v2958_v1 = vpack.i.b16 %v2747_v16, %v2728_v48 }
 0x4b1   : > { %v2780_v25 = vrot.slane %v2779_v27, 4  ;;  %v2960_v35 = vshrl.u32 %v2747_v16, 16  ;;  %v2730_v56 = vsel %vm1358_vm0, 0, %v2729_v39  ;;  %v2959_v9 = vshrl.u32 %v2728_v48, 16 }
 0x4b2   : > { %v2762_v38 = vsel %vm1358_vm0, %v2761_v61, %v2754_v7  ;;  %11320 = vmatmul.msk.bf16.gmra.mxu2 %vm6932_vm1, %v7342_v52  ;;  %v2749_v40 = vsel %vm1358_vm0, 0, %v2748_v12  ;;  %v12241_v34 = vmov 0   ;;  %v6898_v53 = vunpack.c.l.b16 %v2958_v1 }
 0x4b3   : > { %v2766_v0 = vperm.slane %v2762_v38, %v12689_v21  ;;  %v2781_v24 = vsel %vm1358_vm0, %v2780_v25, %v2773_v32  ;;  %v2966_v23 = vshrl.u32 %v2749_v40, 16  ;;  %v7467_v30 = vsel %vm7466_vm2, 1, %v12241_v34 }
 0x4b4   : > { %v2785_v8 = vperm.slane %v2781_v24, %v12689_v21  ;;  %v2961_v58 = vpack.i.b16 %v2960_v35, %v2959_v9  ;;  %v2965_v33 = vshrl.u32 %v2730_v56, 16  ;;  %v7468_v45 = vperm.slane %v7467_v30, 0 }
 0x4b5   : > { %v2767_v26 = vrot.slane %v2766_v0, 4  ;;  %v2971_v2 = vshrl.u32 %v2766_v0, 16  ;;  %v2964_v13 = vpack.i.b16 %v2749_v40, %v2730_v56  ;;  %v6995_v17 = vpop.f32.mrf.mxu3 }
 0x4b6   : > { %v2970_v44 = vpack.i.b16 %v2785_v8, %v2766_v0  ;;  %v2972_v60 = vshrl.u32 %v2785_v8, 16  ;;  %v2786_v22 = vrot.slane %v2785_v8, 4  ;;  %vm16973_vm3 = vcmp.eq.s32.totalorder %v7468_v45, 1  ;;  %v7427_v52 = vpop.f32.mrf.mxu2 }
 0x4b7   : > { %v2768_v4 = vsel %vm1358_vm0, 0, %v2767_v26  ;;  %v2967_v20 = vpack.i.b16 %v2966_v23, %v2965_v33  ;;  %v16979_v43 = vsel %vm16973_vm3, -1e+09, %v7280_v18  ;;  %v16984_v41 = vsel %vm16973_vm3, -1e+09, %v16930_v6  ;;  %v7282_v6 = vpop.f32.mrf.mxu1  ;;  %v7142_v27 = vpop.f32.mrf.mxu0 }
 0x4b8   : > { %v6899_v46 = vunpack.c.l.b16 %v2970_v44  ;;  %v2973_v28 = vpack.i.b16 %v2972_v60, %v2971_v2  ;;  %v2787_v62 = vsel %vm1358_vm0, 0, %v2786_v22  ;;  %v2977_v48 = vshrl.u32 %v2768_v4, 16  ;;  %7566 = vmax.xlane.f32.xlu2 %v16984_v41  ;;  %7598 = vmax.xlane.f32.xlu0 %v16979_v43 }
 0x4b9   : > { %v2976_v63 = vpack.i.b16 %v2787_v62, %v2768_v4  ;;  %v2978_v14 = vshrl.u32 %v2787_v62, 16  ;;  %v7044_v7 = vunpack.c.l.b16 %v2961_v58  ;;  %v7189_v59 = vunpack.c.l.b16 %v2964_v13 }
 0x4ba   : > { %v7045_v42 = vunpack.c.l.b16 %v2973_v28  ;;  %v6907_v11 = vpack.c.b16 %v6899_v46, %v6898_v53  ;;  %v16990_v54 = vsel %vm16973_vm3, -1e+09, %v7137_v49  ;;  %v7334_v51 = vunpack.c.l.b16 %v2967_v20 }
 0x4bb   : > { %v7190_v47 = vunpack.c.l.b16 %v2976_v63  ;;  %v2979_v36 = vpack.i.b16 %v2978_v14, %v2977_v48  ;;  %7568 = vmax.xlane.f32.xlu1 %v16990_v54  ;;  %v16998_v16 = vsel %vm16973_vm3, -1e+09, %v7425_v5  ;;  %v17004_v61 = vsel %vm16973_vm3, -1e+09, %v16932_v55 }
 0x4bc   : > { %v7053_v29 = vpack.c.b16 %v7045_v42, %v7044_v7  ;;  %v17011_v49 = vsel %vm16973_vm3, -1e+09, %v16960_v15  ;;  %v17016_v39 = vsel %vm16973_vm3, -1e+09, %v7142_v27  ;;  %v17020_v55 = vsel %vm16973_vm3, -1e+09, %v7282_v6 }
 0x4bd   : > { %11297 = vmatmul.msk.bf16.gmra.mxu3 %vm6932_vm1, %v6907_v11  ;;  %v7335_v10 = vunpack.c.l.b16 %v2979_v36  ;;  %v7198_v57 = vpack.c.b16 %v7190_v47, %v7189_v59  ;;  %v6997_v31 = vpop.f32.mrf.mxu3  ;;  %v17031_v1 = vsel %vm16973_vm3, -1e+09, %v7140_v19  ;;  %v17041_v35 = vsel %vm16973_vm3, -1e+09, %v6995_v17 }
 0x4be   : > { %v7430_v25 = vpop.f32.mrf.mxu2  ;;  %v17046_v18 = vsel %vm16973_vm3, -1e+09, %v7427_v52  ;;  %v17065_v44 = vsel %vm16973_vm3, -1e+09, %v6997_v31 }
 0x4bf   : > { %11305 = vmatmul.msk.bf16.gmra.mxu0 %vm6932_vm1, %v7053_v29  ;;  %v7343_v37 = vpack.c.b16 %v7335_v10, %v7334_v51  ;;  %v7285_v38 = vpop.f32.mrf.mxu1  ;;  %v7145_v0 = vpop.f32.mrf.mxu0  ;;  %v17035_v24 = vsel %vm16973_vm3, -1e+09, %v7430_v25 }
 0x4c0   : > { %11313 = vmatmul.msk.bf16.gmra.mxu1 %vm6932_vm1, %v7198_v57  ;;  %7630 = vmax.xlane.f32.xlu2 %v16998_v16  ;;  %v17026_v15 = vsel %vm16973_vm3, -1e+09, %v7285_v38  ;;  %v17056_v9 = vsel %vm16973_vm3, -1e+09, %v7145_v0 }
 0x4c1   : > { %7534 = vmax.xlane.f32.xlu0 %v17004_v61 }
 0x4c2   : > { %11321 = vmatmul.msk.bf16.gmra.mxu2 %vm6932_vm1, %v7343_v37 }
 0x4c3   : > { %7536 = vmax.xlane.f32.xlu1 %v17011_v49 }
 0x4c5   : > { %v7000_v32 = vpop.f32.mrf.mxu3 }
 0x4c6   : > { %v7432_v2 = vpop.f32.mrf.mxu2  ;;  %v17061_v30 = vsel %vm16973_vm3, -1e+09, %v7000_v32 }
 0x4c7   : > { %v7287_v12 = vpop.f32.mrf.mxu1  ;;  %v7147_v40 = vpop.f32.mrf.mxu0  ;;  %v17071_v60 = vsel %vm16973_vm3, -1e+09, %v7432_v2 }
 0x4c8   : > { %7600 = vmax.xlane.f32.xlu2 %v17020_v55  ;;  %v17050_v8 = vsel %vm16973_vm3, -1e+09, %v7287_v12  ;;  %v17080_v58 = vsel %vm16973_vm3, -1e+09, %v7147_v40 }
 0x4c9   : > { %7572 = vmax.xlane.f32.xlu0 %v17016_v39 }
 0x4cb   : > { %7602 = vmax.xlane.f32.xlu1 %v17026_v15 }
 0x4cd   : > { %v7002_v26 = vpop.f32.mrf.mxu3 }
 0x4ce   : > { %v7435_v22 = vpop.f32.mrf.mxu2  ;;  %v17101_v48 = vsel %vm16973_vm3, -1e+09, %v7002_v26 }
 0x4cf   : > { %v7290_v56 = vpop.f32.mrf.mxu1  ;;  %v7150_v23 = vpop.f32.mrf.mxu0  ;;  %v17076_v53 = vsel %vm16973_vm3, -1e+09, %v7435_v22 }
 0x4d0   : > { %7570 = vmax.xlane.f32.xlu2 %v17031_v1  ;;  %v17086_v46 = vsel %vm16973_vm3, -1e+09, %v7290_v56  ;;  %v17116_v20 = vsel %vm16973_vm3, -1e+09, %v7150_v23 }
 0x4d1   : > { %7634 = vmax.xlane.f32.xlu0 %v17035_v24 }
 0x4d3   : > { %7538 = vmax.xlane.f32.xlu1 %v17041_v35 }
 0x4d5   : > { %v7005_v34 = vpop.f32.mrf.mxu3 }
 0x4d6   : > { %v7437_v63 = vpop.f32.mrf.mxu2  ;;  %v17131_v5 = vsel %vm16973_vm3, -1e+09, %v7005_v34 }
 0x4d7   : > { %v7292_v4 = vpop.f32.mrf.mxu1  ;;  %v7152_v33 = vpop.f32.mrf.mxu0  ;;  %v17110_v42 = vsel %vm16973_vm3, -1e+09, %v7437_v63 }
 0x4d8   : > { %7632 = vmax.xlane.f32.xlu2 %v17046_v18  ;;  %v17095_v13 = vsel %vm16973_vm3, -1e+09, %v7292_v4  ;;  %v17125_v36 = vsel %vm16973_vm3, -1e+09, %v7152_v33 }
 0x4d9   : > { %7604 = vmax.xlane.f32.xlu0 %v17050_v8 }
 0x4db   : > { %7574 = vmax.xlane.f32.xlu1 %v17056_v9 }
 0x4dd   : > { %v7007_v45 = vpop.f32.mrf.mxu3 }
 0x4de   : > { %v7440_v11 = vpop.f32.mrf.mxu2  ;;  %v17136_v10 = vsel %vm16973_vm3, -1e+09, %v7007_v45 }
 0x4df   : > { %v7295_v28 = vpop.f32.mrf.mxu1  ;;  %v17141_v6 = vsel %vm16973_vm3, -1e+09, %v7440_v11 }
 0x4e0   : > { %7540 = vmax.xlane.f32.xlu2 %v17065_v44  ;;  %v17091_v62 = vsel %vm16973_vm3, -1e+09, %v7295_v28 }
 0x4e1   : > { %7542 = vmax.xlane.f32.xlu0 %v17061_v30 }
 0x4e3   : > { %7636 = vmax.xlane.f32.xlu1 %v17071_v60 }
 0x4e6   : > { %v7155_v14 = vpop.f32.mrf.mxu0  ;;  %v7442_v29 = vpop.f32.mrf.mxu2 }
 0x4e7   : > { %v7297_v59 = vpop.f32.mrf.mxu1  ;;  %v17146_v51 = vsel %vm16973_vm3, -1e+09, %v7155_v14  ;;  %v17160_v32 = vsel %vm16973_vm3, -1e+09, %v7442_v29 }
 0x4e8   : > { %7638 = vmax.xlane.f32.xlu2 %v17076_v53  ;;  %v17151_v27 = vsel %vm16973_vm3, -1e+09, %v7297_v59 }
 0x4e9   : > { %7576 = vmax.xlane.f32.xlu0 %v17080_v58 }
 0x4ea   : > { %v7010_v19 = vpop.f32.mrf.mxu3 }
 0x4eb   : > { %7606 = vmax.xlane.f32.xlu1 %v17086_v46  ;;  %v17106_v17 = vsel %vm16973_vm3, -1e+09, %v7010_v19 }
 0x4ee   : > { %v7157_v7 = vpop.f32.mrf.mxu0 }
 0x4ef   : > { %v17121_v47 = vsel %vm16973_vm3, -1e+09, %v7157_v7  ;;  %v7300_v57 = vpop.f32.mrf.mxu1 }
 0x4f0   : > { %7610 = vmax.xlane.f32.xlu2 %v17091_v62  ;;  %v7445_v37 = vpop.f32.mrf.mxu2  ;;  %v17166_v25 = vsel %vm16973_vm3, -1e+09, %v7300_v57 }
 0x4f1   : > { %7608 = vmax.xlane.f32.xlu0 %v17095_v13  ;;  %v17171_v26 = vsel %vm16973_vm3, -1e+09, %v7445_v37 }
 0x4f2   : > { %v7012_v31 = vpop.f32.mrf.mxu3 }
 0x4f3   : > { %7544 = vmax.xlane.f32.xlu1 %v17101_v48  ;;  %v17181_v23 = vsel %vm16973_vm3, -1e+09, %v7012_v31 }
 0x4f7   : > { %v7302_v52 = vpop.f32.mrf.mxu1 }
 0x4f8   : > { %7550 = vmax.xlane.f32.xlu2 %v17106_v17  ;;  %v7447_v12 = vpop.f32.mrf.mxu2  ;;  %v17186_v4 = vsel %vm16973_vm3, -1e+09, %v7302_v52 }
 0x4f9   : > { %7640 = vmax.xlane.f32.xlu0 %v17110_v42  ;;  %v17175_v56 = vsel %vm16973_vm3, -1e+09, %v7447_v12 }
 0x4fb   : > { %7578 = vmax.xlane.f32.xlu1 %v17116_v20 }
 0x500   : > { %7584 = vmax.xlane.f32.xlu2 %v17121_v47 }
 0x501   : > { %7580 = vmax.xlane.f32.xlu0 %v17125_v36 }
 0x503   : > { %7546 = vmax.xlane.f32.xlu1 %v17131_v5 }
 0x509   : > { %7548 = vmax.xlane.f32.xlu0 %v17136_v10 }
 0x50b   : > { %7642 = vmax.xlane.f32.xlu1 %v17141_v6 }
 0x511   : > { %7582 = vmax.xlane.f32.xlu0 %v17146_v51 }
 0x513   : > { %7612 = vmax.xlane.f32.xlu1 %v17151_v27 }
 0x518   : > { %v7160_v38 = vpop.f32.mrf.mxu0 }
 0x519   : > { %v17156_v0 = vsel %vm16973_vm3, -1e+09, %v7160_v38  ;;  %7644 = vmax.xlane.f32.xlu0 %v17160_v32 }
 0x51a   : > { %19872 = vst [vmem:[#allocation168_spill] sm:$0xff] %v17156_v0  ;;  %7586 = vmax.xlane.f32.xlu2 %v17156_v0  ;;  %v7305_v2 = vpop.f32.mrf.mxu1 }
 0x51b   : > { %7614 = vmax.xlane.f32.xlu1 %v17166_v25  ;;  %v17201_v7 = vsel %vm16973_vm3, -1e+09, %v7305_v2 }
 0x51c   : > { %v7015_v40 = vpop.f32.mrf.mxu3  ;;  %19873 = vst [vmem:[#allocation169_spill] sm:$0xff] %v17201_v7 }
 0x51d   : > { %v17196_v45 = vsel %vm16973_vm3, -1e+09, %v7015_v40 }
 0x520   : > { %v7162_v19 = vpop.f32.mrf.mxu0 }
 0x521   : > { %7646 = vmax.xlane.f32.xlu0 %v17171_v26  ;;  %v17211_v29 = vsel %vm16973_vm3, -1e+09, %v7162_v19 }
 0x522   : > { %7648 = vmax.xlane.f32.xlu2 %v17175_v56  ;;  %v7307_v28 = vpop.f32.mrf.mxu1 }
 0x523   : > { %7552 = vmax.xlane.f32.xlu1 %v17181_v23  ;;  %v7450_v34 = vpop.f32.mrf.mxu2  ;;  %v17205_v59 = vsel %vm16973_vm3, -1e+09, %v7307_v28 }
 0x524   : > { %v17190_v22 = vsel %vm16973_vm3, -1e+09, %v7450_v34  ;;  %v7017_v33 = vpop.f32.mrf.mxu3  ;;  %19874 = vst [vmem:[#allocation132_spill] sm:$0xff] %v17205_v59 }
 0x525   : > { %v17223_v34 = vsel %vm16973_vm3, -1e+09, %v7017_v33 }
 0x526   : > { %19876 = vst [vmem:[#allocation128_spill] sm:$0xff] %v17223_v34 }
 0x529   : > { %7616 = vmax.xlane.f32.xlu0 %v17186_v4 }
 0x52a   : > { %7650 = vmax.xlane.f32.xlu2 %v17190_v22 }
 0x52b   : > { %7554 = vmax.xlane.f32.xlu1 %v17196_v45  ;;  %v7567_v63 = vpop.xlane.xlu2 %7566  ;;  %v7599_v14 = vpop.xlane.xlu0 %7598 }
 0x52c   : > { %v7165_v12 = vpop.f32.mrf.mxu0  ;;  %v7452_v28 = vpop.f32.mrf.mxu2 }
 0x52d   : > { %v7310_v52 = vpop.f32.mrf.mxu1  ;;  %v17229_v19 = vsel %vm16973_vm3, -1e+09, %v7165_v12  ;;  %v17250_v12 = vsel %vm16973_vm3, -1e+09, %v7452_v28 }
 0x52e   : > { %v7569_v11 = vpop.xlane.xlu1 %7568  ;;  %v17218_v40 = vsel %vm16973_vm3, -1e+09, %v7310_v52  ;;  %19877 = vst [vmem:[#allocation129_spill] sm:$0xff] %v17229_v19 }
 0x52f   : > { %19875 = vst [vmem:[#allocation138_spill] sm:$0xff] %v17218_v40 }
 0x530   : > { %v7020_v57 = vpop.f32.mrf.mxu3 }
 0x531   : > { %7618 = vmax.xlane.f32.xlu0 %v17201_v7  ;;  %v17240_v33 = vsel %vm16973_vm3, -1e+09, %v7020_v57  ;;  %v7694_v57 = vsub.f32 %v16979_v43, %v7599_v14 }
 0x532   : > { %7620 = vmax.xlane.f32.xlu2 %v17205_v59  ;;  %19878 = vst [vmem:[#allocation135_spill] sm:$0xff] %v17240_v33 }
 0x533   : > { %7588 = vmax.xlane.f32.xlu1 %v17211_v29  ;;  %v17214_v37 = vpop.xlane.xlu2 %7630  ;;  %v7790_v28 = vmul.f32 1.442695, %v7694_v57 }
 0x534   : > { %v7535_v31 = vpop.xlane.xlu0 %7534  ;;  %v7167_v7 = vpop.f32.mrf.mxu0 }
 0x535   : > { %v7662_v2 = vsub.f32 %v17004_v61, %v7535_v31 }
 0x536   : > { %v7537_v38 = vpop.xlane.xlu1 %7536 }
 0x537   : > { %v7726_v21 = vmul.f32 1.442695, %v7662_v2  ;;  %v7679_v2 = vsub.f32 %v16990_v54, %v7569_v11  ;;  %v7678_v54 = vsub.f32 %v16984_v41, %v7567_v63  ;;  %v7663_v14 = vsub.f32 %v17011_v49, %v7537_v38 }
 0x538   : > { %v7022_v61 = vpop.f32.mrf.mxu3 }
 0x539   : > { %7556 = vmax.xlane.f32.xlu0 %v17223_v34  ;;  %11675 = vpow2.f32 %v7726_v21  ;;  %v7760_v0 = vmul.f32 1.442695, %v7679_v2  ;;  %v7758_v57 = vmul.f32 1.442695, %v7678_v54 }
 0x53a   : > { %7622 = vmax.xlane.f32.xlu2 %v17218_v40  ;;  %v17244_v40 = vsel %vm16973_vm3, -1e+09, %v7022_v61 }
 0x53b   : > { %7590 = vmax.xlane.f32.xlu1 %v17229_v19  ;;  %v17232_v52 = vpop.xlane.xlu2 %7600  ;;  %19879 = vst [vmem:[#allocation131_spill] sm:$0xff] %v17244_v40  ;;  %v7455_v19 = vpop.f32.mrf.mxu2  ;;  %11677 = vpow2.f32 %v7760_v0  ;;  %v7710_v0 = vsub.f32 %v16998_v16, %v17214_v37 }
 0x53c   : > { %v17234_v3 = vpop.xlane.xlu0 %7572  ;;  %v17266_v43 = vsel %vm16973_vm3, -1e+09, %v7455_v19  ;;  %11679 = vpow2.f32 %v7790_v28 }
 0x53d   : > { %v7681_v37 = vsub.f32 %v17016_v39, %v17234_v3 }
 0x53e   : > { %v17236_v31 = vpop.xlane.xlu1 %7602 }
 0x53f   : > { %v17255_v61 = vpop.eup %11675 }
 0x540   : > { %19880 = vst [vmem:[#allocation133_spill] sm:$0xff] %v17255_v61 }
 0x541   : > { %7558 = vmax.xlane.f32.xlu0 %v17240_v33  ;;  %v17259_v33 = vsel %vm16973_vm3, -1e+09, %v7167_v7 }
 0x542   : > { %7560 = vmax.xlane.f32.xlu2 %v17244_v40  ;;  %19881 = vst [vmem:[#allocation136_spill] sm:$0xff] %v17259_v33 }
 0x543   : > { %7652 = vmax.xlane.f32.xlu1 %v17250_v12  ;;  %v7571_v21 = vpop.xlane.xlu2 %7570  ;;  %v7457_v2 = vpop.f32.mrf.mxu2 }
 0x544   : > { %v7635_v59 = vpop.xlane.xlu0 %7634  ;;  %v7680_v34 = vsub.f32 %v17031_v1, %v7571_v21  ;;  %v17275_v19 = vsel %vm16973_vm3, -1e+09, %v7457_v2  ;;  %v7695_v2 = vsub.f32 %v17020_v55, %v17232_v52 }
 0x546   : > { %v7539_v40 = vpop.xlane.xlu1 %7538  ;;  %v7762_v11 = vmul.f32 1.442695, %v7680_v34 }
 0x547   : > { %v7664_v63 = vsub.f32 %v17041_v35, %v7539_v40  ;;  %v7712_v35 = vsub.f32 %v17035_v24, %v7635_v59  ;;  %v7696_v24 = vsub.f32 %v17026_v15, %v17236_v31 }
 0x548   : > { %11681 = vpow2.f32 %v7762_v11 }
 0x549   : > { %7592 = vmax.xlane.f32.xlu0 %v17259_v33  ;;  %v7728_v33 = vmul.f32 1.442695, %v7663_v14  ;;  %11683 = vpow2.f32 %v7758_v57  ;;  %v7730_v11 = vmul.f32 1.442695, %v7664_v63  ;;  %v7826_v52 = vmul.f32 1.442695, %v7712_v35 }
 0x54a   : > { %7854 = vadd.xlane.f32.xlu2 %v17255_v61  ;;  %v17271_v61 = vpop.eup %11677 }
 0x54b   : > { %7654 = vmax.xlane.f32.xlu1 %v17266_v43  ;;  %v7633_v1 = vpop.xlane.xlu2 %7632  ;;  %v17280_v49 = vpop.eup %11679  ;;  %11685 = vpow2.f32 %v7728_v33 }
 0x54c   : > { %v7605_v7 = vpop.xlane.xlu0 %7604  ;;  %v7711_v41 = vsub.f32 %v17046_v18, %v7633_v1  ;;  %v7822_v18 = vmul.f32 1.442695, %v7710_v0  ;;  %v7792_v1 = vmul.f32 1.442695, %v7695_v2  ;;  %v7764_v0 = vmul.f32 1.442695, %v7681_v37 }
 0x54d   : > { %v7697_v39 = vsub.f32 %v17050_v8, %v7605_v7 }
 0x54e   : > { %v7575_v21 = vpop.xlane.xlu1 %7574  ;;  %v7824_v38 = vmul.f32 1.442695, %v7711_v41  ;;  %v17288_v28 = vpop.eup %11681 }
 0x54f   : > { %v17290_v14 = vpop.eup %11683  ;;  %v7682_v59 = vsub.f32 %v17056_v9, %v7575_v21 }
 0x550   : > { %11687 = vpow2.f32 %v7824_v38  ;;  %v7794_v38 = vmul.f32 1.442695, %v7696_v24 }
 0x551   : > { %7656 = vmax.xlane.f32.xlu0 %v17275_v19  ;;  %v17296_v16 = vpop.eup %11685  ;;  %11689 = vpow2.f32 %v7822_v18  ;;  %v7796_v18 = vmul.f32 1.442695, %v7697_v39  ;;  %v7766_v35 = vmul.f32 1.442695, %v7682_v59 }
 0x552   : > { %7888 = vadd.xlane.f32.xlu2 %v17271_v61  ;;  %11691 = vpow2.f32 %v7730_v11 }
 0x553   : > { %7918 = vadd.xlane.f32.xlu1 %v17280_v49  ;;  %v7541_v40 = vpop.xlane.xlu2 %7540  ;;  %11693 = vpow2.f32 %v7792_v1 }
 0x554   : > { %v17286_v34 = vpop.xlane.xlu0 %7542  ;;  %11695 = vpow2.f32 %v7826_v52  ;;  %v7665_v9 = vsub.f32 %v17065_v44, %v7541_v40 }
 0x555   : > { %11697 = vpow2.f32 %v7764_v0 }
 0x556   : > { %v7637_v54 = vpop.xlane.xlu1 %7636  ;;  %v17304_v55 = vpop.eup %11687  ;;  %11699 = vpow2.f32 %v7794_v38  ;;  %v7732_v52 = vmul.f32 1.442695, %v7665_v9 }
 0x557   : > { %v17306_v41 = vpop.eup %11689  ;;  %11701 = vpow2.f32 %v7796_v18  ;;  %v7713_v7 = vsub.f32 %v17071_v60, %v7637_v54  ;;  %v7666_v54 = vsub.f32 %v17061_v30, %v17286_v34 }
 0x558   : > { %v17312_v3 = vpop.eup %11691  ;;  %11703 = vpow2.f32 %v7766_v35 }
 0x559   : > { %7886 = vadd.xlane.f32.xlu0 %v17290_v14  ;;  %v17317_v15 = vpop.eup %11693  ;;  %v7828_v24 = vmul.f32 1.442695, %v7713_v7 }
 0x55a   : > { %7890 = vadd.xlane.f32.xlu2 %v17288_v28  ;;  %v17319_v31 = vpop.eup %11695 }
 0x55b   : > { %7856 = vadd.xlane.f32.xlu1 %v17296_v16  ;;  %v7639_v11 = vpop.xlane.xlu2 %7638  ;;  %v17324_v8 = vpop.eup %11697 }
 0x55c   : > { %v17302_v33 = vpop.xlane.xlu0 %7576  ;;  %v7714_v40 = vsub.f32 %v17076_v53, %v7639_v11 }
 0x55d   : > { %v7683_v53 = vsub.f32 %v17080_v58, %v17302_v33 }
 0x55e   : > { %v7607_v57 = vpop.xlane.xlu1 %7606 }
 0x55f   : > { %v7698_v37 = vsub.f32 %v17086_v46, %v7607_v57  ;;  %v17331_v57 = vpop.eup %11699 }
 0x560   : > { %v17333_v0 = vpop.eup %11701 }
 0x561   : > { %7950 = vadd.xlane.f32.xlu0 %v17306_v41  ;;  %v7798_v21 = vmul.f32 1.442695, %v7698_v37  ;;  %v17340_v60 = vpop.eup %11703  ;;  %v7830_v37 = vmul.f32 1.442695, %v7714_v40 }
 0x562   : > { %7952 = vadd.xlane.f32.xlu2 %v17304_v55 }
 0x563   : > { %7858 = vadd.xlane.f32.xlu1 %v17312_v3  ;;  %11705 = vpow2.f32 %v7798_v21  ;;  %v17335_v39 = vpop.xlane.xlu2 %7610 }
 0x564   : > { %v7609_v63 = vpop.xlane.xlu0 %7608  ;;  %11707 = vpow2.f32 %v7732_v52 }
 0x565   : > { %11709 = vpow2.f32 %v7828_v24  ;;  %v7699_v34 = vsub.f32 %v17095_v13, %v7609_v63 }
 0x566   : > { %v7545_v2 = vpop.xlane.xlu1 %7544 }
 0x567   : > { %v7667_v44 = vsub.f32 %v17101_v48, %v7545_v2  ;;  %v7734_v48 = vmul.f32 1.442695, %v7666_v54  ;;  %v7800_v54 = vmul.f32 1.442695, %v7699_v34 }
 0x569   : > { %7920 = vadd.xlane.f32.xlu0 %v17317_v15  ;;  %v7736_v59 = vmul.f32 1.442695, %v7667_v44  ;;  %v17346_v18 = vpop.eup %11705 }
 0x56a   : > { %7954 = vadd.xlane.f32.xlu2 %v17319_v31  ;;  %v17348_v35 = vpop.eup %11707 }
 0x56b   : > { %7892 = vadd.xlane.f32.xlu1 %v17324_v8  ;;  %11711 = vpow2.f32 %v7736_v59  ;;  %v17350_v9 = vpop.xlane.xlu2 %7550  ;;  %v17355_v30 = vpop.eup %11709 }
 0x56c   : > { %v17329_v1 = vpop.xlane.xlu0 %7640  ;;  %11713 = vpow2.f32 %v7734_v48 }
 0x56d   : > { %11715 = vpow2.f32 %v7830_v37 }
 0x56e   : > { %v7579_v46 = vpop.xlane.xlu1 %7578 }
 0x56f   : > { %v7684_v40 = vsub.f32 %v17116_v20, %v7579_v46 }
 0x571   : > { %7922 = vadd.xlane.f32.xlu0 %v17331_v57  ;;  %v17361_v52 = vpop.eup %11711  ;;  %v7770_v59 = vmul.f32 1.442695, %v7684_v40 }
 0x572   : > { %7924 = vadd.xlane.f32.xlu2 %v17333_v0  ;;  %v17363_v44 = vpop.eup %11713 }
 0x573   : > { %7894 = vadd.xlane.f32.xlu1 %v17340_v60  ;;  %v17368_v58 = vpop.eup %11715  ;;  %v17370_v13 = vpop.xlane.xlu2 %7584 }
 0x574   : > { %v7581_v38 = vpop.xlane.xlu0 %7580 }
 0x575   : > { %v7685_v33 = vsub.f32 %v17125_v36, %v7581_v38  ;;  %v7715_v36 = vsub.f32 %v17110_v42, %v17329_v1  ;;  %v7700_v38 = vsub.f32 %v17091_v62, %v17335_v39 }
 0x576   : > { %v7547_v2 = vpop.xlane.xlu1 %7546 }
 0x577   : > { %v7668_v7 = vsub.f32 %v17131_v5, %v7547_v2  ;;  %v7768_v5 = vmul.f32 1.442695, %v7683_v53  ;;  %v7772_v20 = vmul.f32 1.442695, %v7685_v33  ;;  %v7832_v34 = vmul.f32 1.442695, %v7715_v36 }
 0x578   : > { %v7802_v33 = vmul.f32 1.442695, %v7700_v38 }
 0x579   : > { %7860 = vadd.xlane.f32.xlu0 %v17348_v35  ;;  %v7738_v11 = vmul.f32 1.442695, %v7668_v7 }
 0x57a   : > { %7926 = vadd.xlane.f32.xlu2 %v17346_v18 }
 0x57b   : > { %7956 = vadd.xlane.f32.xlu1 %v17355_v30  ;;  %11717 = vpow2.f32 %v7738_v11 }
 0x57c   : > { %v7549_v21 = vpop.xlane.xlu0 %7548  ;;  %11719 = vpow2.f32 %v7768_v5 }
 0x57d   : > { %11721 = vpow2.f32 %v7800_v54  ;;  %v7312_v54 = vpop.f32.mrf.mxu1  ;;  %v7669_v39 = vsub.f32 %v17136_v10, %v7549_v21  ;;  %v7460_v21 = vpop.f32.mrf.mxu2 }
 0x57e   : > { %v7643_v24 = vpop.xlane.xlu1 %7642  ;;  %11723 = vpow2.f32 %v7770_v59  ;;  %v17402_v62 = vsel %vm16973_vm3, -1e+09, %v7312_v54 }
 0x57f   : > { %11725 = vpow2.f32 %v7772_v20  ;;  %v7716_v1 = vsub.f32 %v17141_v6, %v7643_v24 }
 0x580   : > { %11727 = vpow2.f32 %v7832_v34  ;;  %v7740_v34 = vmul.f32 1.442695, %v7669_v39 }
 0x581   : > { %7862 = vadd.xlane.f32.xlu0 %v17363_v44  ;;  %v17376_v48 = vpop.eup %11717  ;;  %11729 = vpow2.f32 %v7802_v33  ;;  %v7834_v38 = vmul.f32 1.442695, %v7716_v1 }
 0x582   : > { %7864 = vadd.xlane.f32.xlu2 %v17361_v52  ;;  %19882 = vst [vmem:[#allocation134_spill] sm:$0xff] %v17376_v48  ;;  %v17378_v2 = vpop.eup %11719 }
 0x583   : > { %7958 = vadd.xlane.f32.xlu1 %v17368_v58  ;;  %v17382_v37 = vpop.eup %11721 }
 0x584   : > { %v17374_v63 = vpop.xlane.xlu0 %7582  ;;  %v17393_v5 = vpop.eup %11723 }
 0x585   : > { %v17395_v40 = vpop.eup %11725 }
 0x586   : > { %v7613_v46 = vpop.xlane.xlu1 %7612 }
 0x587   : > { %v7701_v10 = vsub.f32 %v17151_v27, %v7613_v46  ;;  %v7670_v46 = vsub.f32 %v17106_v17, %v17350_v9 }
 0x589   : > { %7896 = vadd.xlane.f32.xlu0 %v17378_v2  ;;  %v7804_v1 = vmul.f32 1.442695, %v7701_v10  ;;  %v7462_v10 = vpop.f32.mrf.mxu2 }
 0x58a   : > { %7866 = vadd.xlane.f32.xlu2 %v17376_v48  ;;  %v17407_v48 = vpop.eup %11727 }
 0x58b   : > { %7928 = vadd.xlane.f32.xlu1 %v17382_v37  ;;  %19883 = vst [vmem:[#allocation137_spill] sm:$0xff] %v17407_v48  ;;  %v17415_v6 = vpop.eup %11729 }
 0x58c   : > { %v7645_v53 = vpop.xlane.xlu0 %7644  ;;  %19884 = vst [vmem:[#allocation141_spill] sm:$0xff] %v17415_v6 }
 0x58d   : > { %v17389_v7 = vpop.xlane.xlu2 %7586  ;;  %v7717_v42 = vsub.f32 %v17160_v32, %v7645_v53  ;;  %v7025_v32 = vpop.f32.mrf.mxu3 }
 0x58e   : > { %v17391_v11 = vpop.xlane.xlu1 %7614  ;;  %v17411_v54 = vsel %vm16973_vm3, -1e+09, %v7025_v32 }
 0x58f   : > { %v7836_v20 = vmul.f32 1.442695, %v7717_v42 }
 0x591   : > { %7898 = vadd.xlane.f32.xlu0 %v17393_v5  ;;  %11731 = vpow2.f32 %v7836_v20 }
 0x592   : > { %7900 = vadd.xlane.f32.xlu2 %v17395_v40  ;;  %11733 = vpow2.f32 %v7834_v38 }
 0x593   : > { %7624 = vmax.xlane.f32.xlu1 %v17402_v62  ;;  %11735 = vpow2.f32 %v7740_v34 }
 0x594   : > { %v7647_v36 = vpop.xlane.xlu0 %7646  ;;  %11737 = vpow2.f32 %v7804_v1  ;;  %v17445_v1 = vsel %vm16973_vm3, -1e+09, %v7462_v10 }
 0x595   : > { %v7649_v59 = vpop.xlane.xlu2 %7648  ;;  %v7718_v27 = vsub.f32 %v17171_v26, %v7647_v36  ;;  %19889 = vst [vmem:[#allocation222_spill] sm:$0xff] %v17445_v1  ;;  %v7742_v26 = vmul.f32 1.442695, %v7670_v46  ;;  %v7170_v36 = vpop.f32.mrf.mxu0 }
 0x596   : > { %v7553_v53 = vpop.xlane.xlu1 %7552 }
 0x597   : > { %v17421_v42 = vpop.eup %11731  ;;  %v7671_v17 = vsub.f32 %v17181_v23, %v7553_v53  ;;  %v17466_v23 = vsel %vm16973_vm3, -1e+09, %v7460_v21 }
 0x598   : > { %19885 = vst [vmem:[#allocation140_spill] sm:$0xff] %v17421_v42  ;;  %v17425_v20 = vpop.eup %11733 }
 0x599   : > { %7960 = vadd.xlane.f32.xlu0 %v17407_v48  ;;  %19886 = vst [vmem:[#allocation139_spill] sm:$0xff] %v17425_v20  ;;  %v17429_v32 = vpop.eup %11735 }
 0x59a   : > { %7562 = vmax.xlane.f32.xlu2 %v17411_v54  ;;  %19887 = vst [vmem:[#allocation142_spill] sm:$0xff] %v17429_v32 }
 0x59b   : > { %7930 = vadd.xlane.f32.xlu1 %v17415_v6  ;;  %v7838_v6 = vmul.f32 1.442695, %v7718_v27  ;;  %v7719_v27 = vsub.f32 %v17175_v56, %v7649_v59  ;;  %19891 = vst [vmem:[#allocation235_spill] sm:$0xff] %v17466_v23  ;;  %v7686_v56 = vsub.f32 %v17146_v51, %v17374_v63 }
 0x59c   : > { %v7617_v33 = vpop.xlane.xlu0 %7616 }
 0x59d   : > { %v17419_v24 = vpop.xlane.xlu2 %7650  ;;  %11739 = vpow2.f32 %v7838_v6  ;;  %v7840_v53 = vmul.f32 1.442695, %v7719_v27  ;;  %v7172_v21 = vpop.f32.mrf.mxu0  ;;  %v7703_v63 = vsub.f32 %v17186_v4, %v7617_v33  ;;  %v17503_v4 = vsel %vm16973_vm3, -1e+09, %v7170_v36 }
 0x59e   : > { %v17423_v39 = vpop.xlane.xlu1 %7554  ;;  %11741 = vpow2.f32 %v7742_v26 }
 0x5a1   : > { %7962 = vadd.xlane.f32.xlu0 %v17425_v20  ;;  %v17441_v20 = vpop.eup %11737 }
 0x5a2   : > { %7964 = vadd.xlane.f32.xlu2 %v17421_v42  ;;  %v7027_v42 = vpop.f32.mrf.mxu3  ;;  %19888 = vst [vmem:[#allocation221_spill] sm:$0xff] %v17441_v20 }
 0x5a3   : > { %7868 = vadd.xlane.f32.xlu1 %v17429_v32  ;;  %v17452_v9 = vsel %vm16973_vm3, -1e+09, %v7027_v42  ;;  %v7744_v32 = vmul.f32 1.442695, %v7671_v17  ;;  %v17462_v6 = vpop.eup %11739  ;;  %v7774_v17 = vmul.f32 1.442695, %v7686_v56 }
 0x5a4   : > { %v17437_v34 = vpop.xlane.xlu0 %7618  ;;  %19890 = vst [vmem:[#allocation234_spill] sm:$0xff] %v17462_v6  ;;  %v17470_v42 = vpop.eup %11741 }
 0x5a5   : > { %v17435_v38 = vpop.xlane.xlu2 %7620  ;;  %19892 = vst [vmem:[#allocation104_spill] sm:$0xff] %v17470_v42  ;;  %11743 = vpow2.f32 %v7744_v32  ;;  %v7315_v32 = vpop.f32.mrf.mxu1 }
 0x5a6   : > { %v17439_v48 = vpop.xlane.xlu1 %7588  ;;  %11745 = vpow2.f32 %v7840_v53  ;;  %v7687_v53 = vsub.f32 %v17121_v47, %v17370_v13  ;;  %v17509_v47 = vsel %vm16973_vm3, -1e+09, %v7315_v32  ;;  %v7720_v13 = vsub.f32 %v17190_v22, %v17419_v24 }
 0x5a7   : > { %11747 = vpow2.f32 %v7774_v17 }
 0x5a8   : > { %v7776_v33 = vmul.f32 1.442695, %v7687_v53  ;;  %v7842_v53 = vmul.f32 1.442695, %v7720_v13 }
 0x5a9   : > { %7932 = vadd.xlane.f32.xlu0 %v17441_v20 }
 0x5aa   : > { %7660 = vmax.xlane.f32.xlu2 %v17445_v1 }
 0x5ab   : > { %7564 = vmax.xlane.f32.xlu1 %v17452_v9  ;;  %v17479_v20 = vpop.eup %11743 }
 0x5ac   : > { %v17458_v46 = vpop.xlane.xlu0 %7556  ;;  %19893 = vst [vmem:[#allocation112_spill] sm:$0xff] %v17479_v20  ;;  %v17487_v51 = vpop.eup %11745 }
 0x5ad   : > { %v17456_v10 = vpop.xlane.xlu2 %7622 }
 0x5ae   : > { %v17460_v1 = vpop.xlane.xlu1 %7590 }
 0x5b1   : > { %7658 = vmax.xlane.f32.xlu0 %v17466_v23 }
 0x5b2   : > { %7966 = vadd.xlane.f32.xlu2 %v17462_v6  ;;  %v17483_v6 = vsel %vm16973_vm3, -1e+09, %v7172_v21  ;;  %v7808_v21 = vmul.f32 1.442695, %v7703_v63  ;;  %v7317_v63 = vpop.f32.mrf.mxu1 }
 0x5b3   : > { %7870 = vadd.xlane.f32.xlu1 %v17470_v42  ;;  %19894 = vst [vmem:[#allocation101_spill] sm:$0xff] %v17483_v6  ;;  %v17522_v22 = vsel %vm16973_vm3, -1e+09, %v7317_v63  ;;  %v19899_v63 = vld [vmem:[#allocation168_spill] sm:$0xff] }
 0x5b4   : > { %v17477_v26 = vpop.xlane.xlu0 %7558  ;;  %11749 = vpow2.f32 %v7808_v21 }
 0x5b5   : > { %v17475_v59 = vpop.xlane.xlu2 %7560  ;;  %11751 = vpow2.f32 %v7776_v33 }
 0x5b6   : > { %v7653_v27 = vpop.xlane.xlu1 %7652 }
 0x5b7   : > { %v7721_v50 = vsub.f32 %v17250_v12, %v7653_v27 }
 0x5b9   : > { %7872 = vadd.xlane.f32.xlu0 %v17479_v20  ;;  %v7702_v20 = vsub.f32 %v17166_v25, %v17391_v11  ;;  %v7672_v11 = vsub.f32 %v17196_v45, %v17423_v39  ;;  %v19897_v39 = vld [vmem:[#allocation128_spill] sm:$0xff] }
 0x5ba   : > { %7596 = vmax.xlane.f32.xlu2 %v17483_v6  ;;  %v17499_v6 = vpop.eup %11747  ;;  %v7673_v21 = vsub.f32 %v19897_v39, %v17458_v46  ;;  %v7844_v39 = vmul.f32 1.442695, %v7721_v50  ;;  %v19903_v50 = vld [vmem:[#allocation169_spill] sm:$0xff] }
 0x5bb   : > { %7968 = vadd.xlane.f32.xlu1 %v17487_v51  ;;  %19895 = vst [vmem:[#allocation102_spill] sm:$0xff] %v17499_v6  ;;  %v7806_v25 = vmul.f32 1.442695, %v7702_v20  ;;  %v17518_v32 = vpop.eup %11749  ;;  %v7746_v24 = vmul.f32 1.442695, %v7672_v11  ;;  %v7689_v20 = vsub.f32 %v17211_v29, %v17439_v48 }
 0x5bc   : > { %v17493_v42 = vpop.xlane.xlu0 %7592  ;;  %19896 = vst [vmem:[#allocation109_spill] sm:$0xff] %v17518_v32  ;;  %v17528_v45 = vpop.eup %11751 }
 0x5bd   : > { %v7855_v56 = vpop.xlane.xlu2 %7854  ;;  %11753 = vpow2.f32 %v7806_v25  ;;  %v7780_v29 = vmul.f32 1.442695, %v7689_v20 }
 0x5be   : > { %v17495_v23 = vpop.xlane.xlu1 %7654 }
 0x5c1   : > { %7594 = vmax.xlane.f32.xlu0 %v17503_v4 }
 0x5c2   : > { %7902 = vadd.xlane.f32.xlu2 %v17499_v6 }
 0x5c3   : > { %7626 = vmax.xlane.f32.xlu1 %v17509_v47  ;;  %v17534_v25 = vpop.eup %11753 }
 0x5c4   : > { %v17516_v17 = vpop.xlane.xlu0 %7656  ;;  %19898 = vst [vmem:[#allocation103_spill] sm:$0xff] %v17534_v25 }
 0x5c5   : > { %v7889_v36 = vpop.xlane.xlu2 %7888 }
 0x5c6   : > { %v7919_v6 = vpop.xlane.xlu1 %7918  ;;  %11755 = vrcp.f32 %v7889_v36 }
 0x5c7   : > { %11757 = vrcp.f32 %v7855_v56  ;;  %v7748_v56 = vmul.f32 1.442695, %v7673_v21  ;;  %v19902_v21 = vld [vmem:[#allocation133_spill] sm:$0xff] }
 0x5c8   : > { %11759 = vpow2.f32 %v7842_v53  ;;  %v7688_v53 = vsub.f32 %v19899_v63, %v17389_v7 }
 0x5c9   : > { %7628 = vmax.xlane.f32.xlu0 %v17522_v22  ;;  %11761 = vpow2.f32 %v7746_v24  ;;  %v19901_v24 = vld [vmem:[#allocation135_spill] sm:$0xff] }
 0x5ca   : > { %7936 = vadd.xlane.f32.xlu2 %v17518_v32  ;;  %v7674_v20 = vsub.f32 %v19901_v24, %v17477_v26  ;;  %v7778_v7 = vmul.f32 1.442695, %v7688_v53 }
 0x5cb   : > { %7904 = vadd.xlane.f32.xlu1 %v17528_v45 }
 0x5cc   : > { %v7887_v13 = vpop.xlane.xlu0 %7886  ;;  %v11756_v48 = vpop.eup %11755 }
 0x5cd   : > { %v7891_v33 = vpop.xlane.xlu2 %7890  ;;  %11763 = vrcp.f32 %v7887_v13  ;;  %v11758_v36 = vpop.eup %11757  ;;  %v8063_v12 = vmul.f32 %v11756_v48, %v17271_v61 }
 0x5ce   : > { %v7857_v11 = vpop.xlane.xlu1 %7856  ;;  %v17538_v46 = vpop.eup %11759  ;;  %v8046_v13 = vmul.f32 %v11758_v36, %v19902_v21 }
 0x5cf   : > { %11765 = vrcp.f32 %v7857_v11  ;;  %19900 = vst [vmem:[#allocation105_spill] sm:$0xff] %v17538_v46  ;;  %v17543_v27 = vpop.eup %11761 }
 0x5d0   : > { %11767 = vpow2.f32 %v7780_v29  ;;  %v7704_v29 = vsub.f32 %v19903_v50, %v17437_v34  ;;  %v8110_v36 = vpack.c.bf16 %v8046_v13, %v8046_v13  ;;  %v19904_v34 = vld [vmem:[#allocation132_spill] sm:$0xff]  ;;  %v7723_v13 = vsub.f32 %v17275_v19, %v17516_v17  ;;  %v19906_v19 = vld [vmem:[#allocation138_spill] sm:$0xff] }
 0x5d1   : > { %7934 = vadd.xlane.f32.xlu0 %v17534_v25  ;;  %11769 = vpow2.f32 %v7748_v56  ;;  %v7750_v25 = vmul.f32 1.442695, %v7674_v20  ;;  %v7706_v17 = vsub.f32 %v19906_v19, %v17456_v10 }
 0x5d2   : > { %7970 = vadd.xlane.f32.xlu2 %v17538_v46  ;;  %11771 = vpow2.f32 %v7844_v39  ;;  %v8127_v46 = vpack.c.bf16 %v8063_v12, %v8063_v12  ;;  %v7705_v39 = vsub.f32 %v19904_v34, %v17435_v38  ;;  %v7810_v12 = vmul.f32 1.442695, %v7704_v29 }
 0x5d3   : > { %7874 = vadd.xlane.f32.xlu1 %v17543_v27  ;;  %v11764_v11 = vpop.eup %11763  ;;  %v8190_v38 = vunpack.c.l.b16 %v8110_v36 }
 0x5d4   : > { %v7951_v48 = vpop.xlane.xlu0 %7950  ;;  %v8062_v56 = vmul.f32 %v11764_v11, %v17290_v14  ;;  %v8320_v14 = vunpack.c.l.b16 %v8127_v46 }
 0x5d5   : > { %v7953_v61 = vpop.xlane.xlu2 %7952  ;;  %v11766_v63 = vpop.eup %11765 }
 0x5d6   : > { %11773 = vrcp.f32 %v7953_v61  ;;  %v17552_v32 = vpop.xlane.xlu1 %7858  ;;  %v8047_v26 = vmul.f32 %v11766_v63, %v17296_v16  ;;  %v17555_v53 = vpop.eup %11767  ;;  %v8126_v24 = vpack.c.bf16 %v8062_v56, %v8062_v56  ;;  %v7812_v61 = vmul.f32 1.442695, %v7705_v39 }
 0x5d7   : > { %11775 = vrcp.f32 %v7951_v48  ;;  %v17559_v21 = vpop.eup %11769  ;;  %v7848_v39 = vmul.f32 1.442695, %v7723_v13  ;;  %v7722_v13 = vsub.f32 %v17266_v43, %v17495_v23 }
 0x5d8   : > { %11777 = vpow2.f32 %v7778_v7  ;;  %v8111_v50 = vpack.c.bf16 %v8047_v26, %v8047_v26  ;;  %v8319_v20 = vunpack.c.l.b16 %v8126_v24  ;;  %v17563_v16 = vpop.eup %11771 }
 0x5d9   : > { %11779 = vrcp.f32 %v7919_v6  ;;  %7876 = vadd.xlane.f32.xlu0 %v17559_v21  ;;  %v7846_v23 = vmul.f32 1.442695, %v7722_v13 }
 0x5da   : > { %11781 = vrcp.f32 %v7891_v33  ;;  %7908 = vadd.xlane.f32.xlu2 %v17555_v53  ;;  %v8191_v7 = vunpack.c.l.b16 %v8111_v50  ;;  %v8335_v29 = vpack.c.b16 %v8320_v14, %v8319_v20  ;;  %v19905_v33 = vld [vmem:[#allocation131_spill] sm:$0xff]  ;;  %v7814_v20 = vmul.f32 1.442695, %v7706_v17 }
 0x5db   : > { %11783 = vpow2.f32 %v7750_v25  ;;  %7972 = vadd.xlane.f32.xlu1 %v17563_v16  ;;  %v7675_v46 = vsub.f32 %v19905_v33, %v17475_v59 }
 0x5dc   : > { %v11774_v11 = vpop.eup %11773  ;;  %11785 = vpow2.f32 %v7810_v12  ;;  %v7921_v56 = vpop.xlane.xlu0 %7920  ;;  %v8206_v25 = vpack.c.b16 %v8191_v7, %v8190_v38  ;;  %8391 = vmatmul.bf16.vlgmr.msra.gmra.mxu0 %v8335_v29 }
 0x5dd   : > { %v11776_v6 = vpop.eup %11775  ;;  %v8095_v48 = vmul.f32 %v11774_v11, %v17304_v55  ;;  %v7955_v63 = vpop.xlane.xlu2 %7954  ;;  %11787 = vrcp.f32 %v7921_v56  ;;  %v7752_v14 = vmul.f32 1.442695, %v7675_v46 }
 0x5de   : > { %v17571_v26 = vpop.eup %11777  ;;  %v8094_v36 = vmul.f32 %v11776_v6, %v17306_v41  ;;  %v7893_v50 = vpop.xlane.xlu1 %7892  ;;  %8262 = vmatmul.bf16.vlgmr.msrb.gmra.mxu3 %v8206_v25 }
 0x5df   : > { %v11780_v34 = vpop.eup %11779  ;;  %v8159_v24 = vpack.c.bf16 %v8095_v48, %v8095_v48  ;;  %11789 = vrcp.f32 %v7893_v50 }
 0x5e0   : > { %v11782_v59 = vpop.eup %11781  ;;  %v8158_v12 = vpack.c.bf16 %v8094_v36, %v8094_v36  ;;  %11791 = vpow2.f32 %v7812_v61  ;;  %v8078_v38 = vmul.f32 %v11780_v34, %v17280_v49  ;;  %v19907_v49 = vld [vmem:[#allocation129_spill] sm:$0xff] }
 0x5e1   : > { %v17576_v55 = vpop.eup %11783  ;;  %v8578_v10 = vunpack.c.l.b16 %v8159_v24  ;;  %7906 = vadd.xlane.f32.xlu0 %v17571_v26  ;;  %11793 = vpow2.f32 %v7848_v39  ;;  %v8064_v11 = vmul.f32 %v11782_v59, %v17288_v28  ;;  %v7690_v6 = vsub.f32 %v19907_v49, %v17460_v1 }
 0x5e2   : > { %v8577_v7 = vunpack.c.l.b16 %v8158_v12  ;;  %7878 = vadd.xlane.f32.xlu2 %v17576_v55  ;;  %v17581_v41 = vpop.eup %11785  ;;  %11795 = vpow2.f32 %v7752_v14  ;;  %v8142_v56 = vpack.c.bf16 %v8078_v38, %v8078_v38 }
 0x5e3   : > { %7938 = vadd.xlane.f32.xlu1 %v17581_v41  ;;  %v11788_v61 = vpop.eup %11787  ;;  %11797 = vpow2.f32 %v7814_v20  ;;  %v8128_v17 = vpack.c.bf16 %v8064_v11, %v8064_v11  ;;  %v7782_v34 = vmul.f32 1.442695, %v7690_v6 }
 0x5e4   : > { %v8593_v29 = vpack.c.b16 %v8578_v10, %v8577_v7  ;;  %v7923_v46 = vpop.xlane.xlu0 %7922  ;;  %v8079_v25 = vmul.f32 %v11788_v61, %v17317_v15  ;;  %v8448_v24 = vunpack.c.l.b16 %v8142_v56 }
 0x5e5   : > { %v7925_v33 = vpop.xlane.xlu2 %7924  ;;  %v11790_v48 = vpop.eup %11789  ;;  %11799 = vrcp.f32 %v7923_v46 }
 0x5e6   : > { %8649 = vmatmul.bf16.vlgmr.msra.gmra.mxu2 %v8593_v29  ;;  %v17590_v43 = vpop.eup %11791  ;;  %v7895_v28 = vpop.xlane.xlu1 %7894  ;;  %v8065_v19 = vmul.f32 %v11790_v48, %v17324_v8  ;;  %11801 = vrcp.f32 %v17552_v32  ;;  %v8143_v36 = vpack.c.bf16 %v8079_v25, %v8079_v25  ;;  %v19908_v8 = vld [vmem:[#allocation136_spill] sm:$0xff]  ;;  %v8321_v32 = vunpack.c.l.b16 %v8128_v17 }
 0x5e7   : > { %v17594_v1 = vpop.eup %11793  ;;  %11803 = vrcp.f32 %v7925_v33  ;;  %v7691_v59 = vsub.f32 %v19908_v8, %v17493_v42 }
 0x5e8   : > { %v8129_v39 = vpack.c.bf16 %v8065_v19, %v8065_v19  ;;  %11805 = vrcp.f32 %v7955_v63  ;;  %v8449_v15 = vunpack.c.l.b16 %v8143_v36  ;;  %v17598_v50 = vpop.eup %11795 }
 0x5e9   : > { %7940 = vadd.xlane.f32.xlu0 %v17590_v43  ;;  %11807 = vpow2.f32 %v7846_v23  ;;  %v17602_v14 = vpop.eup %11797  ;;  %v7784_v29 = vmul.f32 1.442695, %v7691_v59 }
 0x5ea   : > { %7976 = vadd.xlane.f32.xlu2 %v17594_v1  ;;  %v8322_v12 = vunpack.c.l.b16 %v8129_v39  ;;  %v8464_v20 = vpack.c.b16 %v8449_v15, %v8448_v24  ;;  %11809 = vpow2.f32 %v7782_v34 }
 0x5eb   : > { %7880 = vadd.xlane.f32.xlu1 %v17598_v50  ;;  %v11800_v38 = vpop.eup %11799 }
 0x5ec   : > { %v7861_v10 = vpop.xlane.xlu0 %7860  ;;  %v8336_v7 = vpack.c.b16 %v8322_v12, %v8321_v32  ;;  %v11802_v13 = vpop.eup %11801  ;;  %8520 = vmatmul.bf16.vlgmr.msra.gmra.mxu1 %v8464_v20  ;;  %v8080_v49 = vmul.f32 %v11800_v38, %v17331_v57 }
 0x5ed   : > { %v7927_v63 = vpop.xlane.xlu2 %7926  ;;  %v11804_v11 = vpop.eup %11803  ;;  %11811 = vrcp.f32 %v7861_v10  ;;  %v8048_v33 = vmul.f32 %v11802_v13, %v17312_v3 }
 0x5ee   : > { %v7957_v61 = vpop.xlane.xlu1 %7956  ;;  %8396 = vmatmul.bf16.gmra.mxu0 %v8336_v7  ;;  %v11806_v42 = vpop.eup %11805  ;;  %v8081_v46 = vmul.f32 %v11804_v11, %v17333_v0  ;;  %v8144_v25 = vpack.c.bf16 %v8080_v49, %v8080_v49 }
 0x5ef   : > { %11813 = vrcp.f32 %v7957_v61  ;;  %v17606_v6 = vpop.eup %11807  ;;  %v8096_v56 = vmul.f32 %v11806_v42, %v17319_v31  ;;  %v8112_v34 = vpack.c.bf16 %v8048_v33, %v8048_v33 }
 0x5f0   : > { %v17612_v48 = vpop.eup %11809  ;;  %11815 = vpow2.f32 %v7784_v29  ;;  %v8145_v39 = vpack.c.bf16 %v8081_v46, %v8081_v46  ;;  %v8450_v8 = vunpack.c.l.b16 %v8144_v25 }
 0x5f1   : > { %7974 = vadd.xlane.f32.xlu0 %v17606_v6  ;;  %v8160_v0 = vpack.c.bf16 %v8096_v56, %v8096_v56  ;;  %v8192_v32 = vunpack.c.l.b16 %v8112_v34 }
 0x5f2   : > { %7942 = vadd.xlane.f32.xlu2 %v17602_v14 }
 0x5f3   : > { %7910 = vadd.xlane.f32.xlu1 %v17612_v48  ;;  %v11812_v23 = vpop.eup %11811  ;;  %v8579_v20 = vunpack.c.l.b16 %v8160_v0 }
 0x5f4   : > { %v7863_v19 = vpop.xlane.xlu0 %7862  ;;  %v8049_v36 = vmul.f32 %v11812_v23, %v17348_v35  ;;  %v8451_v35 = vunpack.c.l.b16 %v8145_v39 }
 0x5f5   : > { %v7865_v57 = vpop.xlane.xlu2 %7864  ;;  %v11814_v17 = vpop.eup %11813  ;;  %11817 = vrcp.f32 %v7863_v19 }
 0x5f6   : > { %v7959_v24 = vpop.xlane.xlu1 %7958  ;;  %v8097_v3 = vmul.f32 %v11814_v17, %v17355_v30  ;;  %11819 = vrcp.f32 %v7895_v28  ;;  %v8113_v15 = vpack.c.bf16 %v8049_v36, %v8049_v36  ;;  %v17618_v31 = vpop.eup %11815  ;;  %v8465_v7 = vpack.c.b16 %v8451_v35, %v8450_v8 }
 0x5f7   : > { %11821 = vrcp.f32 %v7865_v57 }
 0x5f8   : > { %v8161_v59 = vpack.c.bf16 %v8097_v3, %v8097_v3  ;;  %11823 = vrcp.f32 %v7927_v63  ;;  %v8193_v12 = vunpack.c.l.b16 %v8113_v15 }
 0x5f9   : > { %7912 = vadd.xlane.f32.xlu0 %v17618_v31 }
 0x5fa   : > { %v8580_v38 = vunpack.c.l.b16 %v8161_v59  ;;  %v8207_v10 = vpack.c.b16 %v8193_v12, %v8192_v32 }
 0x5fb   : > { %v11818_v13 = vpop.eup %11817 }
 0x5fc   : > { %v7897_v11 = vpop.xlane.xlu0 %7896  ;;  %v8594_v28 = vpack.c.b16 %v8580_v38, %v8579_v20  ;;  %v11820_v29 = vpop.eup %11819  ;;  %8267 = vmatmul.bf16.gmra.mxu3 %v8207_v10  ;;  %8525 = vmatmul.bf16.gmra.mxu1 %v8465_v7  ;;  %v8050_v49 = vmul.f32 %v11818_v13, %v17363_v44 }
 0x5fd   : > { %v7867_v30 = vpop.xlane.xlu2 %7866  ;;  %v11822_v61 = vpop.eup %11821  ;;  %11825 = vrcp.f32 %v7897_v11  ;;  %v8066_v46 = vmul.f32 %v11820_v29, %v17340_v60 }
 0x5fe   : > { %v7929_v42 = vpop.xlane.xlu1 %7928  ;;  %8654 = vmatmul.bf16.gmra.mxu2 %v8594_v28  ;;  %v11824_v63 = vpop.eup %11823  ;;  %v8051_v33 = vmul.f32 %v11822_v61, %v17361_v52  ;;  %v8114_v25 = vpack.c.bf16 %v8050_v49, %v8050_v49 }
 0x5ff   : > { %11827 = vrcp.f32 %v7929_v42  ;;  %v8082_v56 = vmul.f32 %v11824_v63, %v17346_v18  ;;  %v8130_v39 = vpack.c.bf16 %v8066_v46, %v8066_v46 }
 0x600   : > { %v8115_v36 = vpack.c.bf16 %v8051_v33, %v8051_v33  ;;  %v8194_v60 = vunpack.c.l.b16 %v8114_v25  ;;  %v19909_v25 = vld [vmem:[#allocation137_spill] sm:$0xff] }
 0x601   : > { %v8146_v44 = vpack.c.bf16 %v8082_v56, %v8082_v56  ;;  %v8323_v32 = vunpack.c.l.b16 %v8130_v39 }
 0x602   : > { %v8195_v59 = vunpack.c.l.b16 %v8115_v36 }
 0x603   : > { %v11826_v23 = vpop.eup %11825  ;;  %v8452_v35 = vunpack.c.l.b16 %v8146_v44  ;;  %v19910_v44 = vld [vmem:[#allocation134_spill] sm:$0xff] }
 0x604   : > { %v7899_v19 = vpop.xlane.xlu0 %7898  ;;  %v8067_v34 = vmul.f32 %v11826_v23, %v17378_v2  ;;  %v8208_v2 = vpack.c.b16 %v8195_v59, %v8194_v60 }
 0x605   : > { %v7901_v57 = vpop.xlane.xlu2 %7900  ;;  %v11828_v17 = vpop.eup %11827  ;;  %11829 = vrcp.f32 %v7899_v19 }
 0x606   : > { %v7625_v3 = vpop.xlane.xlu1 %7624  ;;  %v8083_v0 = vmul.f32 %v11828_v17, %v17382_v37  ;;  %11831 = vrcp.f32 %v7959_v24  ;;  %v8131_v15 = vpack.c.bf16 %v8067_v34, %v8067_v34 }
 0x607   : > { %v7707_v52 = vsub.f32 %v17402_v62, %v7625_v3  ;;  %11833 = vrcp.f32 %v7901_v57 }
 0x608   : > { %v8147_v18 = vpack.c.bf16 %v8083_v0, %v8083_v0  ;;  %v8324_v12 = vunpack.c.l.b16 %v8131_v15 }
 0x609   : > { %v7816_v8 = vmul.f32 1.442695, %v7707_v52 }
 0x60a   : > { %v8453_v20 = vunpack.c.l.b16 %v8147_v18  ;;  %v8337_v38 = vpack.c.b16 %v8324_v12, %v8323_v32  ;;  %v19911_v12 = vld [vmem:[#allocation222_spill] sm:$0xff] }
 0x60b   : > { %11835 = vpow2.f32 %v7816_v8  ;;  %v11830_v10 = vpop.eup %11829 }
 0x60c   : > { %v7961_v37 = vpop.xlane.xlu0 %7960  ;;  %v8466_v13 = vpack.c.b16 %v8453_v20, %v8452_v35  ;;  %v11832_v24 = vpop.eup %11831  ;;  %8272 = vmatmul.bf16.gmra.mxu3 %v8208_v2  ;;  %8401 = vmatmul.bf16.gmra.mxu0 %v8337_v38  ;;  %v8068_v61 = vmul.f32 %v11830_v10, %v17393_v5  ;;  %v19912_v2 = vld [vmem:[#allocation142_spill] sm:$0xff] }
 0x60d   : > { %v7563_v7 = vpop.xlane.xlu2 %7562  ;;  %11837 = vrcp.f32 %v7961_v37  ;;  %v11834_v11 = vpop.eup %11833  ;;  %v8098_v42 = vmul.f32 %v11832_v24, %v17368_v58 }
 0x60e   : > { %v7676_v62 = vsub.f32 %v17411_v54, %v7563_v7  ;;  %8530 = vmatmul.bf16.gmra.mxu1 %v8466_v13  ;;  %v7931_v28 = vpop.xlane.xlu1 %7930  ;;  %11839 = vrcp.f32 %v7867_v30  ;;  %v8069_v49 = vmul.f32 %v11834_v11, %v17395_v40  ;;  %v8132_v33 = vpack.c.bf16 %v8068_v61, %v8068_v61  ;;  %v19913_v7 = vld [vmem:[#allocation139_spill] sm:$0xff]  ;;  %v19914_v11 = vld [vmem:[#allocation141_spill] sm:$0xff] }
 0x60f   : > { %v8162_v57 = vpack.c.bf16 %v8098_v42, %v8098_v42 }
 0x610   : > { %v7754_v29 = vmul.f32 1.442695, %v7676_v62  ;;  %v8133_v5 = vpack.c.bf16 %v8069_v49, %v8069_v49  ;;  %v8325_v40 = vunpack.c.l.b16 %v8132_v33 }
 0x611   : > { %v17631_v63 = vpop.eup %11835  ;;  %v8581_v36 = vunpack.c.l.b16 %v8162_v57  ;;  %v19916_v57 = vld [vmem:[#allocation221_spill] sm:$0xff] }
 0x612   : > { %11841 = vpow2.f32 %v7754_v29  ;;  %7944 = vadd.xlane.f32.xlu1 %v17631_v63  ;;  %v8326_v39 = vunpack.c.l.b16 %v8133_v5  ;;  %v19915_v29 = vld [vmem:[#allocation140_spill] sm:$0xff] }
 0x613   : > { %v11838_v54 = vpop.eup %11837  ;;  %11843 = vrcp.f32 %v7931_v28 }
 0x614   : > { %v7963_v56 = vpop.xlane.xlu0 %7962  ;;  %v8099_v23 = vmul.f32 %v11838_v54, %v19909_v25  ;;  %v11840_v30 = vpop.eup %11839  ;;  %v8338_v15 = vpack.c.b16 %v8326_v39, %v8325_v40 }
 0x615   : > { %v7965_v46 = vpop.xlane.xlu2 %7964  ;;  %v8052_v52 = vmul.f32 %v11840_v30, %v19910_v44 }
 0x616   : > { %11845 = vrcp.f32 %v7965_v46  ;;  %v7869_v58 = vpop.xlane.xlu1 %7868  ;;  %v8163_v19 = vpack.c.bf16 %v8099_v23, %v8099_v23 }
 0x617   : > { %11847 = vrcp.f32 %v7963_v56  ;;  %v8116_v10 = vpack.c.bf16 %v8052_v52, %v8052_v52 }
 0x618   : > { %v17636_v17 = vpop.eup %11841  ;;  %11849 = vrcp.f32 %v7869_v58  ;;  %v8582_v34 = vunpack.c.l.b16 %v8163_v19 }
 0x619   : > { %7882 = vadd.xlane.f32.xlu0 %v17636_v17  ;;  %v11844_v3 = vpop.eup %11843  ;;  %v8196_v49 = vunpack.c.l.b16 %v8116_v10 }
 0x61a   : > { %v8595_v0 = vpack.c.b16 %v8582_v34, %v8581_v36  ;;  %v8084_v28 = vmul.f32 %v11844_v3, %v19914_v11 }
 0x61c   : > { %v11846_v60 = vpop.eup %11845  ;;  %v7933_v59 = vpop.xlane.xlu0 %7932  ;;  %8659 = vmatmul.bf16.gmra.mxu2 %v8595_v0  ;;  %8406 = vmatmul.bf16.gmra.mxu0 %v8338_v15  ;;  %v8148_v30 = vpack.c.bf16 %v8084_v28, %v8084_v28 }
 0x61d   : > { %v11848_v18 = vpop.eup %11847  ;;  %v7661_v8 = vpop.xlane.xlu2 %7660  ;;  %11851 = vrcp.f32 %v7933_v59  ;;  %v8101_v61 = vmul.f32 %v11846_v60, %v19915_v29  ;;  %v19921_v29 = vld [vmem:[#allocation112_spill] sm:$0xff] }
 0x61e   : > { %v11850_v32 = vpop.eup %11849  ;;  %v7725_v35 = vsub.f32 %v19911_v12, %v7661_v8  ;;  %v7565_v20 = vpop.xlane.xlu1 %7564  ;;  %v8100_v37 = vmul.f32 %v11848_v18, %v19913_v7  ;;  %v8454_v0 = vunpack.c.l.b16 %v8148_v30  ;;  %v19918_v12 = vld [vmem:[#allocation101_spill] sm:$0xff]  ;;  %v19919_v7 = vld [vmem:[#allocation104_spill] sm:$0xff] }
 0x61f   : > { %v8053_v38 = vmul.f32 %v11850_v32, %v19912_v2  ;;  %v7677_v24 = vsub.f32 %v17452_v9, %v7565_v20  ;;  %v8165_v58 = vpack.c.bf16 %v8101_v61, %v8101_v61  ;;  %v19917_v9 = vld [vmem:[#allocation235_spill] sm:$0xff] }
 0x620   : > { %v7852_v13 = vmul.f32 1.442695, %v7725_v35  ;;  %v8164_v33 = vpack.c.bf16 %v8100_v37, %v8100_v37 }
 0x621   : > { %v8117_v62 = vpack.c.bf16 %v8053_v38, %v8053_v38  ;;  %v7756_v42 = vmul.f32 1.442695, %v7677_v24  ;;  %v8584_v52 = vunpack.c.l.b16 %v8165_v58 }
 0x622   : > { %11853 = vpow2.f32 %v7852_v13  ;;  %v8583_v34 = vunpack.c.l.b16 %v8164_v33  ;;  %v19920_v13 = vld [vmem:[#allocation234_spill] sm:$0xff] }
 0x623   : > { %v8197_v54 = vunpack.c.l.b16 %v8117_v62  ;;  %v11852_v46 = vpop.eup %11851  ;;  %11855 = vpow2.f32 %v7756_v42 }
 0x624   : > { %v7659_v25 = vpop.xlane.xlu0 %7658  ;;  %v8085_v5 = vmul.f32 %v11852_v46, %v19916_v57  ;;  %v8596_v18 = vpack.c.b16 %v8584_v52, %v8583_v34 }
 0x625   : > { %v7967_v56 = vpop.xlane.xlu2 %7966  ;;  %v8209_v23 = vpack.c.b16 %v8197_v54, %v8196_v49  ;;  %v7724_v19 = vsub.f32 %v19917_v9, %v7659_v25 }
 0x626   : > { %v7871_v40 = vpop.xlane.xlu1 %7870  ;;  %v8149_v36 = vpack.c.bf16 %v8085_v5, %v8085_v5 }
 0x627   : > { %8277 = vmatmul.bf16.gmra.mxu3 %v8209_v23  ;;  %v7850_v3 = vmul.f32 1.442695, %v7724_v19  ;;  %11857 = vrcp.f32 %v7871_v40 }
 0x628   : > { %v17648_v39 = vpop.eup %11853  ;;  %11859 = vrcp.f32 %v7967_v56  ;;  %v8455_v44 = vunpack.c.l.b16 %v8149_v36 }
 0x629   : > { %7980 = vadd.xlane.f32.xlu0 %v17648_v39  ;;  %v17651_v60 = vpop.eup %11855  ;;  %11861 = vpow2.f32 %v7850_v3 }
 0x62a   : > { %7884 = vadd.xlane.f32.xlu2 %v17651_v60  ;;  %v8467_v15 = vpack.c.b16 %v8455_v44, %v8454_v0 }
 0x62c   : > { %v7873_v59 = vpop.xlane.xlu0 %7872  ;;  %8535 = vmatmul.bf16.gmra.mxu1 %v8467_v15  ;;  %8664 = vmatmul.bf16.gmra.mxu2 %v8596_v18 }
 0x62d   : > { %v7597_v8 = vpop.xlane.xlu2 %7596  ;;  %v11858_v32 = vpop.eup %11857  ;;  %11863 = vrcp.f32 %v7873_v59 }
 0x62e   : > { %v7693_v35 = vsub.f32 %v19918_v12, %v7597_v8  ;;  %v11860_v20 = vpop.eup %11859  ;;  %v7969_v2 = vpop.xlane.xlu1 %7968  ;;  %v8054_v37 = vmul.f32 %v11858_v32, %v19919_v7  ;;  %v19922_v8 = vld [vmem:[#allocation102_spill] sm:$0xff] }
 0x62f   : > { %v17655_v38 = vpop.eup %11861  ;;  %11865 = vrcp.f32 %v7969_v2  ;;  %v8102_v24 = vmul.f32 %v11860_v20, %v19920_v13  ;;  %v19923_v13 = vld [vmem:[#allocation109_spill] sm:$0xff] }
 0x630   : > { %v7788_v10 = vmul.f32 1.442695, %v7693_v35  ;;  %7978 = vadd.xlane.f32.xlu1 %v17655_v38  ;;  %v8118_v42 = vpack.c.bf16 %v8054_v37, %v8054_v37 }
 0x631   : > { %v8166_v25 = vpack.c.bf16 %v8102_v24, %v8102_v24 }
 0x632   : > { %11867 = vpow2.f32 %v7788_v10  ;;  %v8198_v30 = vunpack.c.l.b16 %v8118_v42 }
 0x633   : > { %v11864_v62 = vpop.eup %11863 }
 0x634   : > { %v7595_v28 = vpop.xlane.xlu0 %7594  ;;  %v8055_v61 = vmul.f32 %v11864_v62, %v19921_v29 }
 0x635   : > { %v7903_v11 = vpop.xlane.xlu2 %7902  ;;  %v11866_v49 = vpop.eup %11865  ;;  %v7692_v54 = vsub.f32 %v17503_v4, %v7595_v28  ;;  %v8585_v4 = vunpack.c.l.b16 %v8166_v25 }
 0x636   : > { %v7627_v33 = vpop.xlane.xlu1 %7626  ;;  %v8119_v46 = vpack.c.bf16 %v8055_v61, %v8055_v61  ;;  %v8103_v56 = vmul.f32 %v11866_v49, %v17487_v51  ;;  %11869 = vrcp.f32 %v7903_v11  ;;  %v19924_v49 = vld [vmem:[#allocation103_spill] sm:$0xff] }
 0x637   : > { %v7786_v57 = vmul.f32 1.442695, %v7692_v54  ;;  %v7708_v5 = vsub.f32 %v17509_v47, %v7627_v33 }
 0x638   : > { %v17663_v23 = vpop.eup %11867  ;;  %v8199_v58 = vunpack.c.l.b16 %v8119_v46  ;;  %v8167_v9 = vpack.c.bf16 %v8103_v56, %v8103_v56 }
 0x639   : > { %7916 = vadd.xlane.f32.xlu1 %v17663_v23  ;;  %11871 = vpow2.f32 %v7786_v57  ;;  %v7818_v19 = vmul.f32 1.442695, %v7708_v5 }
 0x63a   : > { %v8210_v40 = vpack.c.b16 %v8199_v58, %v8198_v30  ;;  %v8586_v36 = vunpack.c.l.b16 %v8167_v9  ;;  %v19925_v58 = vld [vmem:[#allocation105_spill] sm:$0xff] }
 0x63b   : > { %11873 = vpow2.f32 %v7818_v19 }
 0x63c   : > { %8282 = vmatmul.bf16.gmra.mxu3 %v8210_v40  ;;  %v8597_v51 = vpack.c.b16 %v8586_v36, %v8585_v4  ;;  %v7629_v3 = vpop.xlane.xlu0 %7628  ;;  %v11870_v44 = vpop.eup %11869 }
 0x63d   : > { %v7937_v34 = vpop.xlane.xlu2 %7936  ;;  %v7709_v0 = vsub.f32 %v17522_v22, %v7629_v3  ;;  %v8070_v59 = vmul.f32 %v11870_v44, %v19922_v8 }
 0x63e   : > { %8669 = vmatmul.bf16.gmra.mxu2 %v8597_v51  ;;  %v7905_v47 = vpop.xlane.xlu1 %7904 }
 0x63f   : > { %v17668_v52 = vpop.eup %11871  ;;  %11875 = vrcp.f32 %v7905_v47  ;;  %v7820_v15 = vmul.f32 1.442695, %v7709_v0  ;;  %v8134_v10 = vpack.c.bf16 %v8070_v59, %v8070_v59 }
 0x640   : > { %11877 = vrcp.f32 %v7937_v34  ;;  %7914 = vadd.xlane.f32.xlu2 %v17668_v52 }
 0x641   : > { %v17671_v18 = vpop.eup %11873  ;;  %11879 = vpow2.f32 %v7820_v15  ;;  %v8327_v62 = vunpack.c.l.b16 %v8134_v10 }
 0x642   : > { %7946 = vadd.xlane.f32.xlu0 %v17671_v18 }
 0x644   : > { %v7935_v12 = vpop.xlane.xlu0 %7934 }
 0x645   : > { %v7971_v32 = vpop.xlane.xlu2 %7970  ;;  %v11876_v22 = vpop.eup %11875  ;;  %11881 = vrcp.f32 %v7935_v12 }
 0x646   : > { %v11878_v35 = vpop.eup %11877  ;;  %v7875_v20 = vpop.xlane.xlu1 %7874  ;;  %v8071_v2 = vmul.f32 %v11876_v22, %v17528_v45 }
 0x647   : > { %v17676_v7 = vpop.eup %11879  ;;  %11883 = vrcp.f32 %v7875_v20  ;;  %v8087_v24 = vmul.f32 %v11878_v35, %v19923_v13 }
 0x648   : > { %7948 = vadd.xlane.f32.xlu2 %v17676_v7  ;;  %v8135_v37 = vpack.c.bf16 %v8071_v2, %v8071_v2  ;;  %11885 = vrcp.f32 %v7971_v32 }
 0x649   : > { %v8151_v33 = vpack.c.bf16 %v8087_v24, %v8087_v24 }
 0x64a   : > { %v8328_v11 = vunpack.c.l.b16 %v8135_v37 }
 0x64b   : > { %v11882_v28 = vpop.eup %11881  ;;  %v8457_v5 = vunpack.c.l.b16 %v8151_v33 }
 0x64c   : > { %v8339_v61 = vpack.c.b16 %v8328_v11, %v8327_v62  ;;  %v7877_v42 = vpop.xlane.xlu0 %7876  ;;  %v8086_v54 = vmul.f32 %v11882_v28, %v19924_v49 }
 0x64d   : > { %v7909_v29 = vpop.xlane.xlu2 %7908  ;;  %v11884_v45 = vpop.eup %11883  ;;  %11887 = vrcp.f32 %v7877_v42 }
 0x64e   : > { %8411 = vmatmul.bf16.gmra.mxu0 %v8339_v61  ;;  %v7973_v46 = vpop.xlane.xlu1 %7972  ;;  %v11886_v56 = vpop.eup %11885  ;;  %v8150_v25 = vpack.c.bf16 %v8086_v54, %v8086_v54  ;;  %v8056_v30 = vmul.f32 %v11884_v45, %v17543_v27 }
 0x64f   : > { %11889 = vrcp.f32 %v7973_v46  ;;  %v8104_v9 = vmul.f32 %v11886_v56, %v19925_v58 }
 0x650   : > { %11891 = vrcp.f32 %v7909_v29  ;;  %v8456_v57 = vunpack.c.l.b16 %v8150_v25  ;;  %v8120_v3 = vpack.c.bf16 %v8056_v30, %v8056_v30 }
 0x651   : > { %v8168_v15 = vpack.c.bf16 %v8104_v9, %v8104_v9 }
 0x652   : > { %v8468_v19 = vpack.c.b16 %v8457_v5, %v8456_v57  ;;  %v8200_v59 = vunpack.c.l.b16 %v8120_v3 }
 0x653   : > { %v11888_v40 = vpop.eup %11887  ;;  %v8587_v22 = vunpack.c.l.b16 %v8168_v15 }
 0x654   : > { %v7907_v36 = vpop.xlane.xlu0 %7906  ;;  %8540 = vmatmul.bf16.gmra.mxu1 %v8468_v19  ;;  %v8057_v51 = vmul.f32 %v11888_v40, %v17559_v21 }
 0x655   : > { %v7879_v4 = vpop.xlane.xlu2 %7878  ;;  %v11890_v34 = vpop.eup %11889  ;;  %11893 = vrcp.f32 %v7907_v36 }
 0x656   : > { %v11892_v0 = vpop.eup %11891  ;;  %v7939_v44 = vpop.xlane.xlu1 %7938  ;;  %v8105_v47 = vmul.f32 %v11890_v34, %v17563_v16  ;;  %11895 = vrcp.f32 %v7879_v4  ;;  %v8121_v8 = vpack.c.bf16 %v8057_v51, %v8057_v51 }
 0x657   : > { %11897 = vrcp.f32 %v7939_v44  ;;  %v8073_v12 = vmul.f32 %v11892_v0, %v17555_v53 }
 0x658   : > { %v8169_v27 = vpack.c.bf16 %v8105_v47, %v8105_v47  ;;  %v8201_v32 = vunpack.c.l.b16 %v8121_v8 }
 0x659   : > { %v8392_v13 = vpop.f32.mrf.mxu0  ;;  %v8137_v24 = vpack.c.bf16 %v8073_v12, %v8073_v12 }
 0x65a   : > { %v8588_v35 = vunpack.c.l.b16 %v8169_v27  ;;  %v8211_v20 = vpack.c.b16 %v8201_v32, %v8200_v59  ;;  %v8706_v53 = vpack.c.bf16 %v8392_v13, %v8392_v13  ;;  %v19926_v27 = vld [vmem:[#allocation28_spill] sm:$0xff] }
 0x65b   : > { %v11894_v2 = vpop.eup %11893  ;;  %v8330_v54 = vunpack.c.l.b16 %v8137_v24 }
 0x65c   : > { %v8598_v21 = vpack.c.b16 %v8588_v35, %v8587_v22  ;;  %v7941_v10 = vpop.xlane.xlu0 %7940  ;;  %v11896_v37 = vpop.eup %11895  ;;  %8287 = vmatmul.bf16.gmra.mxu3 %v8211_v20  ;;  %v8072_v16 = vmul.f32 %v11894_v2, %v17571_v26  ;;  %v8758_v56 = vshrl.u32 %v8706_v53, 16 }
 0x65d   : > { %v11898_v62 = vpop.eup %11897  ;;  %11899 = vrcp.f32 %v7941_v10  ;;  %v7977_v28 = vpop.xlane.xlu2 %7976  ;;  %v8058_v61 = vmul.f32 %v11896_v37, %v17576_v55 }
 0x65e   : > { %8674 = vmatmul.bf16.gmra.mxu2 %v8598_v21  ;;  %v7881_v11 = vpop.xlane.xlu1 %7880  ;;  %v8136_v29 = vpack.c.bf16 %v8072_v16, %v8072_v16  ;;  %v8088_v33 = vmul.f32 %v11898_v62, %v17581_v41 }
 0x65f   : > { %11901 = vrcp.f32 %v7881_v11  ;;  %v8122_v30 = vpack.c.bf16 %v8058_v61, %v8058_v61 }
 0x660   : > { %v8329_v49 = vunpack.c.l.b16 %v8136_v29  ;;  %11903 = vrcp.f32 %v7977_v28  ;;  %v8152_v19 = vpack.c.bf16 %v8088_v33, %v8088_v33 }
 0x661   : > { %v8263_v42 = vpop.f32.mrf.mxu3  ;;  %v8394_v41 = vpop.f32.mrf.mxu0  ;;  %v8202_v0 = vunpack.c.l.b16 %v8122_v30 }
 0x662   : > { %v8690_v45 = vpack.c.bf16 %v8263_v42, %v8263_v42  ;;  %v8340_v46 = vpack.c.b16 %v8330_v54, %v8329_v49  ;;  %v8458_v15 = vunpack.c.l.b16 %v8152_v19 }
 0x663   : > { %v11900_v26 = vpop.eup %11899 }
 0x664   : > { %v8756_v25 = vpack.i.b16 %v8706_v53, %v8690_v45  ;;  %v8757_v57 = vshrl.u32 %v8690_v45, 16  ;;  %v7975_v5 = vpop.xlane.xlu0 %7974  ;;  %8416 = vmatmul.bf16.gmra.mxu0 %v8340_v46  ;;  %v8089_v9 = vmul.f32 %v11900_v26, %v17590_v43  ;;  %v8707_v43 = vpack.c.bf16 %v8394_v41, %v8394_v41 }
 0x665   : > { %v11902_v58 = vpop.eup %11901  ;;  %11905 = vrcp.f32 %v7975_v5 }
 0x666   : > { %v8759_v55 = vpack.i.b16 %v8758_v56, %v8757_v57  ;;  %v7911_v40 = vpop.xlane.xlu1 %7910  ;;  %v8059_v4 = vmul.f32 %v11902_v58, %v17598_v50  ;;  %v8153_v36 = vpack.c.bf16 %v8089_v9, %v8089_v9  ;;  %v11904_v34 = vpop.eup %11903  ;;  %v8950_v59 = vperm.slane %v8756_v25, %v19926_v27  ;;  %v19927_v57 = vld [vmem:[#allocation29_spill] sm:$0xff] }
 0x667   : > { %11907 = vrcp.f32 %v7911_v40  ;;  %v8107_v50 = vmul.f32 %v11904_v34, %v17594_v1  ;;  %v8770_v29 = vshrl.u32 %v8707_v43, 16 }
 0x668   : > { %v8123_v3 = vpack.c.bf16 %v8059_v4, %v8059_v4  ;;  %v8459_v8 = vunpack.c.l.b16 %v8153_v36  ;;  %v8976_v21 = vperm.slane %v8759_v55, %v19926_v27  ;;  %v8958_v28 = vrot.slane %v8950_v59, 4 }
 0x669   : > { %v8650_v51 = vpop.f32.mrf.mxu2  ;;  %v8265_v44 = vpop.f32.mrf.mxu3  ;;  %v8171_v54 = vpack.c.bf16 %v8107_v50, %v8107_v50 }
 0x66a   : > { %v8738_v47 = vpack.c.bf16 %v8650_v51, %v8650_v51  ;;  %v8691_v32 = vpack.c.bf16 %v8265_v44, %v8265_v44  ;;  %v8521_v12 = vpop.f32.mrf.mxu1  ;;  %v8203_v22 = vunpack.c.l.b16 %v8123_v3  ;;  %v8469_v20 = vpack.c.b16 %v8459_v8, %v8458_v15 }
 0x66b   : > { %v8722_v35 = vpack.c.bf16 %v8521_v12, %v8521_v12  ;;  %v11906_v2 = vpop.eup %11905  ;;  %v8984_v33 = vrot.slane %v8976_v21, 4  ;;  %v8590_v4 = vunpack.c.l.b16 %v8171_v54 }
 0x66c   : > { %v8764_v10 = vshrl.u32 %v8738_v47, 16  ;;  %v8212_v37 = vpack.c.b16 %v8203_v22, %v8202_v0  ;;  %v7913_v13 = vpop.xlane.xlu0 %7912  ;;  %v8769_v16 = vshrl.u32 %v8691_v32, 16  ;;  %8545 = vmatmul.bf16.gmra.mxu1 %v8469_v20  ;;  %v8106_v11 = vmul.f32 %v11906_v2, %v17606_v6  ;;  %v8397_v20 = vpop.f32.mrf.mxu0 }
 0x66d   : > { %v8762_v24 = vpack.i.b16 %v8738_v47, %v8722_v35  ;;  %v8763_v62 = vshrl.u32 %v8722_v35, 16  ;;  %v8768_v53 = vpack.i.b16 %v8707_v43, %v8691_v32  ;;  %11909 = vrcp.f32 %v7913_v13  ;;  %v11908_v61 = vpop.eup %11907 }
 0x66e   : > { %8292 = vmatmul.bf16.gmra.mxu3 %v8212_v37  ;;  %v8170_v49 = vpack.c.bf16 %v8106_v11, %v8106_v11  ;;  %v8771_v45 = vpack.i.b16 %v8770_v29, %v8769_v16  ;;  %v8074_v9 = vmul.f32 %v11908_v61, %v17612_v48 }
 0x66f   : > { %v8765_v42 = vpack.i.b16 %v8764_v10, %v8763_v62  ;;  %v8955_v1 = vperm.slane %v8762_v24, %v19926_v27  ;;  %v9002_v6 = vperm.slane %v8768_v53, %v19926_v27 }
 0x670   : > { %v8589_v58 = vunpack.c.l.b16 %v8170_v49  ;;  %v9028_v0 = vperm.slane %v8771_v45, %v19926_v27 }
 0x671   : > { %v8956_v46 = vrot.slane %v8955_v1, 4  ;;  %v8959_v26 = vsel %vm1358_vm0, %v8955_v1, %v8958_v28  ;;  %v8981_v56 = vperm.slane %v8765_v42, %v19926_v27  ;;  %v8652_v25 = vpop.f32.mrf.mxu2  ;;  %v9010_v62 = vrot.slane %v9002_v6, 4 }
 0x672   : > { %v8967_v5 = vperm.slane %v8959_v26, %v19927_v57  ;;  %v8523_v30 = vpop.f32.mrf.mxu1  ;;  %v8739_v3 = vpack.c.bf16 %v8652_v25, %v8652_v25  ;;  %v8599_v15 = vpack.c.b16 %v8590_v4, %v8589_v58  ;;  %v8138_v28 = vpack.c.bf16 %v8074_v9, %v8074_v9 }
 0x673   : > { %v8957_v19 = vsel %vm1358_vm0, %v8956_v46, %v8950_v59  ;;  %v8982_v55 = vrot.slane %v8981_v56, 4  ;;  %v8985_v40 = vsel %vm1358_vm0, %v8981_v56, %v8984_v33  ;;  %v11910_v41 = vpop.eup %11909  ;;  %v8723_v47 = vpack.c.bf16 %v8523_v30, %v8523_v30 }
 0x674   : > { %v8963_v36 = vperm.slane %v8957_v19, %v19927_v57  ;;  %v8970_v34 = vrot.slane %v8967_v5, 4  ;;  %v8993_v51 = vperm.slane %v8985_v40, %v19927_v57  ;;  %8679 = vmatmul.bf16.gmra.mxu2 %v8599_v15  ;;  %v8075_v35 = vmul.f32 %v11910_v41, %v17618_v31 }
 0x675   : > { %v8983_v44 = vsel %vm1358_vm0, %v8982_v55, %v8976_v21  ;;  %v8774_v22 = vpack.i.b16 %v8739_v3, %v8723_v47  ;;  %v8776_v10 = vshrl.u32 %v8739_v3, 16  ;;  %v8775_v24 = vshrl.u32 %v8723_v47, 16  ;;  %v8399_v3 = vpop.f32.mrf.mxu0 }
 0x676   : > { %v8968_v48 = vrot.slane %v8963_v36, 4  ;;  %v8971_v8 = vsel %vm1358_vm0, 0, %v8970_v34  ;;  %v8989_v59 = vperm.slane %v8983_v44, %v19927_v57  ;;  %v8996_v43 = vrot.slane %v8993_v51, 4 }
 0x677   : > { %v17710_v32 = vsel %vm1358_vm0, %v8970_v34, %v8963_v36  ;;  %v9783_v12 = vrot.slane %v8971_v8, 4  ;;  %v9007_v31 = vperm.slane %v8774_v22, %v19926_v27  ;;  %v8777_v53 = vpack.i.b16 %v8776_v10, %v8775_v24 }
 0x678   : > { %v8969_v50 = vsel %vm1358_vm0, 0, %v8968_v48  ;;  %v8994_v2 = vrot.slane %v8989_v59, 4  ;;  %v8997_v21 = vsel %vm1358_vm0, 0, %v8996_v43  ;;  %v17719_v13 = vsel %vm1358_vm0, %v8996_v43, %v8989_v59 }
 0x679   : > { %v17716_v37 = vsel %vm1358_vm0, %v9783_v12, %v8969_v50  ;;  %v9802_v16 = vrot.slane %v8997_v21, 4  ;;  %v8139_v61 = vpack.c.bf16 %v8075_v35, %v8075_v35  ;;  %v9008_v42 = vrot.slane %v9007_v31, 4  ;;  %v7943_v12 = vpop.xlane.xlu2 %7942 }
 0x67a   : > { %v8995_v11 = vsel %vm1358_vm0, 0, %v8994_v2  ;;  %v9011_v1 = vsel %vm1358_vm0, %v9007_v31, %v9010_v62  ;;  %v8526_v49 = vpop.f32.mrf.mxu1  ;;  %v9036_v54 = vrot.slane %v9028_v0, 4  ;;  %v9033_v45 = vperm.slane %v8777_v53, %v19926_v27 }
 0x67b   : > { %v17724_v29 = vsel %vm1358_vm0, %v9802_v16, %v8995_v11  ;;  %v9019_v33 = vperm.slane %v9011_v1, %v19927_v57  ;;  %v8708_v46 = vpack.c.bf16 %v8397_v20, %v8397_v20  ;;  %v9009_v26 = vsel %vm1358_vm0, %v9008_v42, %v9002_v6 }
 0x67c   : > { %v8331_v56 = vunpack.c.l.b16 %v8138_v28  ;;  %v8332_v25 = vunpack.c.l.b16 %v8139_v61  ;;  %v9015_v5 = vperm.slane %v9009_v26, %v19927_v57  ;;  %v9034_v58 = vrot.slane %v9033_v45, 4 }
 0x67d   : > { %v9022_v30 = vrot.slane %v9019_v33, 4  ;;  %v9037_v9 = vsel %vm1358_vm0, %v9033_v45, %v9036_v54  ;;  %v8724_v55 = vpack.c.bf16 %v8526_v49, %v8526_v49  ;;  %v8782_v48 = vshrl.u32 %v8708_v46, 16 }
 0x67e   : > { %v9045_v19 = vperm.slane %v9037_v9, %v19927_v57  ;;  %v8341_v40 = vpack.c.b16 %v8332_v25, %v8331_v56  ;;  %v9020_v41 = vrot.slane %v9015_v5, 4  ;;  %v9035_v34 = vsel %vm1358_vm0, %v9034_v58, %v9028_v0 }
 0x67f   : > { %v8268_v4 = vpop.f32.mrf.mxu3  ;;  %v9023_v36 = vsel %vm1358_vm0, 0, %v9022_v30  ;;  %v17736_v6 = vsel %vm1358_vm0, %v9022_v30, %v9015_v5  ;;  %v9041_v44 = vperm.slane %v9035_v34, %v19927_v57  ;;  %v8709_v50 = vpack.c.bf16 %v8399_v3, %v8399_v3 }
 0x680   : > { %v9048_v47 = vrot.slane %v9045_v19, 4  ;;  %v9821_v15 = vrot.slane %v9023_v36, 4  ;;  %8421 = vmatmul.bf16.gmra.mxu0 %v8341_v40  ;;  %v9021_v8 = vsel %vm1358_vm0, 0, %v9020_v41  ;;  %v8692_v59 = vpack.c.bf16 %v8268_v4, %v8268_v4 }
 0x681   : > { %v8655_v51 = vpop.f32.mrf.mxu2  ;;  %v9046_v22 = vrot.slane %v9041_v44, 4  ;;  %v8787_v21 = vshrl.u32 %v8724_v55, 16  ;;  %11911 = vrcp.f32 %v7943_v12  ;;  %v8794_v26 = vshrl.u32 %v8709_v50, 16 }
 0x682   : > { %v8740_v43 = vpack.c.bf16 %v8655_v51, %v8655_v51  ;;  %v9049_v35 = vsel %vm1358_vm0, 0, %v9048_v47  ;;  %v17742_v0 = vsel %vm1358_vm0, %v9821_v15, %v9021_v8  ;;  %v17745_v20 = vsel %vm1358_vm0, %v9048_v47, %v9041_v44  ;;  %v8528_v31 = vpop.f32.mrf.mxu1 }
 0x683   : > { %v9840_v2 = vrot.slane %v9049_v35, 4  ;;  %v8780_v10 = vpack.i.b16 %v8708_v46, %v8692_v59  ;;  %v9047_v16 = vsel %vm1358_vm0, 0, %v9046_v22  ;;  %v8781_v24 = vshrl.u32 %v8692_v59, 16 }
 0x684   : > { %v8786_v62 = vpack.i.b16 %v8740_v43, %v8724_v55  ;;  %v8788_v11 = vshrl.u32 %v8740_v43, 16  ;;  %v8725_v33 = vpack.c.bf16 %v8528_v31, %v8528_v31 }
 0x685   : > { %v17749_v28 = vsel %vm1358_vm0, %v9840_v2, %v9047_v16  ;;  %v9054_v53 = vperm.slane %v8780_v10, %v19926_v27  ;;  %v8783_v61 = vpack.i.b16 %v8782_v48, %v8781_v24  ;;  %v7945_v34 = vpop.xlane.xlu1 %7944 }
 0x686   : > { %v8789_v42 = vpack.i.b16 %v8788_v11, %v8787_v21  ;;  %v9059_v1 = vperm.slane %v8786_v62, %v19926_v27  ;;  %v8799_v44 = vshrl.u32 %v8725_v33, 16  ;;  %11913 = vrcp.f32 %v7945_v34 }
 0x687   : > { %v8270_v49 = vpop.f32.mrf.mxu3  ;;  %v9062_v54 = vrot.slane %v9054_v53, 4  ;;  %v9080_v56 = vperm.slane %v8783_v61, %v19926_v27  ;;  %v11912_v51 = vpop.eup %11911 }
 0x688   : > { %v8693_v45 = vpack.c.bf16 %v8270_v49, %v8270_v49  ;;  %v9060_v25 = vrot.slane %v9059_v1, 4  ;;  %v9085_v5 = vperm.slane %v8789_v42, %v19926_v27  ;;  %v17767_v24 = vmul.f32 %v11912_v51, %v17602_v14 }
 0x689   : > { %v8657_v46 = vpop.f32.mrf.mxu2  ;;  %v8402_v30 = vpop.f32.mrf.mxu0  ;;  %v9063_v58 = vsel %vm1358_vm0, %v9059_v1, %v9062_v54  ;;  %v9088_v40 = vrot.slane %v9080_v56, 4 }
 0x68a   : > { %v8792_v9 = vpack.i.b16 %v8709_v50, %v8693_v45  ;;  %v8793_v19 = vshrl.u32 %v8693_v45, 16  ;;  %v8741_v55 = vpack.c.bf16 %v8657_v46, %v8657_v46  ;;  %v9061_v4 = vsel %vm1358_vm0, %v9060_v25, %v9054_v53 }
 0x68b   : > { %v9071_v41 = vperm.slane %v9063_v58, %v19927_v57  ;;  %v9086_v36 = vrot.slane %v9085_v5, 4  ;;  %v9067_v3 = vperm.slane %v9061_v4, %v19927_v57  ;;  %v9089_v59 = vsel %vm1358_vm0, %v9085_v5, %v9088_v40  ;;  %v8531_v16 = vpop.f32.mrf.mxu1 }
 0x68c   : > { %v8795_v47 = vpack.i.b16 %v8794_v26, %v8793_v19  ;;  %v9106_v15 = vperm.slane %v8792_v9, %v19926_v27  ;;  %v7883_v43 = vpop.xlane.xlu0 %7882  ;;  %v8798_v12 = vpack.i.b16 %v8741_v55, %v8725_v33  ;;  %v9097_v50 = vperm.slane %v9089_v59, %v19927_v57  ;;  %v11914_v58 = vpop.eup %11913 }
 0x68d   : > { %v9074_v48 = vrot.slane %v9071_v41, 4  ;;  %v9087_v8 = vsel %vm1358_vm0, %v9086_v36, %v9080_v56  ;;  %v9072_v22 = vrot.slane %v9067_v3, 4  ;;  %v8800_v10 = vshrl.u32 %v8741_v55, 16 }
 0x68e   : > { %v9093_v35 = vperm.slane %v9087_v8, %v19927_v57  ;;  %v9132_v21 = vperm.slane %v8795_v47, %v19926_v27  ;;  %v9100_v62 = vrot.slane %v9097_v50, 4  ;;  %11915 = vrcp.f32 %v7883_v43 }
 0x68f   : > { %v9075_v2 = vsel %vm1358_vm0, 0, %v9074_v48  ;;  %v17770_v11 = vsel %vm1358_vm0, %v9074_v48, %v9067_v3  ;;  %v9114_v31 = vrot.slane %v9106_v15, 4  ;;  %v8801_v42 = vpack.i.b16 %v8800_v10, %v8799_v44  ;;  %v8273_v5 = vpop.f32.mrf.mxu3 }
 0x690   : > { %v9098_v53 = vrot.slane %v9093_v35, 4  ;;  %v9859_v61 = vrot.slane %v9075_v2, 4  ;;  %v9111_v1 = vperm.slane %v8798_v12, %v19926_v27  ;;  %v9073_v54 = vsel %vm1358_vm0, 0, %v9072_v22 }
 0x691   : > { %v8404_v49 = vpop.f32.mrf.mxu0  ;;  %v9101_v33 = vsel %vm1358_vm0, 0, %v9100_v62  ;;  %v17776_v45 = vsel %vm1358_vm0, %v9100_v62, %v9093_v35  ;;  %v8710_v14 = vpack.c.bf16 %v8402_v30, %v8402_v30  ;;  %v9140_v56 = vrot.slane %v9132_v21, 4 }
 0x692   : > { %v9860_v46 = vsel %vm1358_vm0, %v9859_v61, %v9073_v54  ;;  %v9878_v26 = vrot.slane %v9101_v33, 4  ;;  %v9112_v25 = vrot.slane %v9111_v1, 4  ;;  %v9858_v9 = vperm.slane %v17770_v11, %v19926_v27 }
 0x693   : > { %v9864_v19 = vperm.slane %v9860_v46, %v19926_v27  ;;  %v9115_v55 = vsel %vm1358_vm0, %v9111_v1, %v9114_v31  ;;  %v9137_v40 = vperm.slane %v8801_v42, %v19926_v27  ;;  %v9099_v4 = vsel %vm1358_vm0, 0, %v9098_v53  ;;  %v8533_v31 = vpop.f32.mrf.mxu1 }
 0x694   : > { %v9877_v30 = vperm.slane %v17776_v45, %v19926_v27  ;;  %v9113_v41 = vsel %vm1358_vm0, %v9112_v25, %v9106_v15  ;;  %v9123_v36 = vperm.slane %v9115_v55, %v19927_v57  ;;  %v17789_v34 = vpop.eup %11915  ;;  %v9879_v51 = vsel %vm1358_vm0, %v9878_v26, %v9099_v4 }
 0x695   : > { %v9119_v3 = vperm.slane %v9113_v41, %v19927_v57  ;;  %v9138_v44 = vrot.slane %v9137_v40, 4  ;;  %v8806_v47 = vshrl.u32 %v8710_v14, 16  ;;  %v9141_v8 = vsel %vm1358_vm0, %v9137_v40, %v9140_v56 }
 0x696   : > { %v9126_v48 = vrot.slane %v9123_v36, 4  ;;  %v17794_v59 = vpack.c.bf16 %v8531_v16, %v8531_v16  ;;  %v8694_v43 = vpack.c.bf16 %v8273_v5, %v8273_v5  ;;  %v17796_v12 = vrot.slane %v9864_v19, 4 }
 0x697   : > { %v9124_v22 = vrot.slane %v9119_v3, 4  ;;  %v9139_v15 = vsel %vm1358_vm0, %v9138_v44, %v9132_v21  ;;  %v9149_v35 = vperm.slane %v9141_v8, %v19927_v57  ;;  %v9883_v50 = vperm.slane %v9879_v51, %v19926_v27  ;;  %v8275_v4 = vpop.f32.mrf.mxu3 }
 0x698   : > { %v9127_v2 = vsel %vm1358_vm0, 0, %v9126_v48  ;;  %v9145_v10 = vperm.slane %v9139_v15, %v19927_v57  ;;  %v8804_v62 = vpack.i.b16 %v8710_v14, %v8694_v43  ;;  %v17805_v42 = vsel %vm1358_vm0, %v9126_v48, %v9119_v3 }
 0x699   : > { %v8407_v53 = vpop.f32.mrf.mxu0  ;;  %v9125_v16 = vsel %vm1358_vm0, 0, %v9124_v22  ;;  %v9152_v61 = vrot.slane %v9149_v35, 4  ;;  %v9897_v1 = vrot.slane %v9127_v2, 4  ;;  %v8805_v21 = vshrl.u32 %v8694_v43, 16 }
 0x69a   : > { %v9150_v54 = vrot.slane %v9145_v10, 4  ;;  %v17808_v33 = vperm.slane %v8804_v62, %v19926_v27  ;;  %v8711_v46 = vpack.c.bf16 %v8404_v49, %v8404_v49  ;;  %v17815_v25 = vpack.c.bf16 %v8533_v31, %v8533_v31 }
 0x69b   : > { %v9153_v26 = vsel %vm1358_vm0, 0, %v9152_v61  ;;  %v9898_v56 = vsel %vm1358_vm0, %v9897_v1, %v9125_v16  ;;  %v17813_v14 = vsel %vm1358_vm0, %v9152_v61, %v9145_v10  ;;  %v17817_v5 = vrot.slane %v9883_v50, 4 }
 0x69c   : > { %v9902_v19 = vperm.slane %v9898_v56, %v19926_v27  ;;  %v9916_v55 = vrot.slane %v9153_v26, 4  ;;  %v8811_v40 = vshrl.u32 %v17794_v59, 16  ;;  %v9151_v41 = vsel %vm1358_vm0, 0, %v9150_v54  ;;  %v7981_v3 = vpop.xlane.xlu0 %7980 }
 0x69d   : > { %v9896_v49 = vperm.slane %v17805_v42, %v19926_v27  ;;  %v9915_v36 = vperm.slane %v17813_v14, %v19926_v27  ;;  %v8807_v51 = vpack.i.b16 %v8806_v47, %v8805_v21  ;;  %v9166_v8 = vrot.slane %v17808_v33, 4  ;;  %v7885_v15 = vpop.xlane.xlu2 %7884 }
 0x69e   : > { %v9917_v48 = vsel %vm1358_vm0, %v9916_v55, %v9151_v41  ;;  %v8818_v43 = vshrl.u32 %v8711_v46, 16  ;;  %v8091_v22 = vmul.f32 %v11914_v58, %v17631_v63  ;;  %v8823_v50 = vshrl.u32 %v17815_v25, 16 }
 0x69f   : > { %v8660_v44 = vpop.f32.mrf.mxu2  ;;  %v9921_v35 = vperm.slane %v9917_v48, %v19926_v27  ;;  %v8154_v2 = vpack.c.bf16 %v17767_v24, %v17767_v24  ;;  %v8695_v10 = vpack.c.bf16 %v8275_v4, %v8275_v4  ;;  %v17833_v62 = vrot.slane %v9902_v19, 4 }
 0x6a0   : > { %11917 = vrcp.f32 %v7981_v3  ;;  %v8155_v47 = vpack.c.bf16 %v8091_v22, %v8091_v22  ;;  %v8742_v31 = vpack.c.bf16 %v8660_v44, %v8660_v44  ;;  %v9184_v61 = vperm.slane %v8807_v51, %v19926_v27 }
 0x6a1   : > { %v8409_v16 = vpop.f32.mrf.mxu0  ;;  %v8816_v1 = vpack.i.b16 %v8711_v46, %v8695_v10  ;;  %v8712_v54 = vpack.c.bf16 %v8407_v53, %v8407_v53  ;;  %11919 = vrcp.f32 %v7885_v15  ;;  %v8460_v63 = vunpack.c.l.b16 %v8154_v2 }
 0x6a2   : > { %v8461_v58 = vunpack.c.l.b16 %v8155_v47  ;;  %v8817_v21 = vshrl.u32 %v8695_v10, 16  ;;  %v8810_v26 = vpack.i.b16 %v8742_v31, %v17794_v59  ;;  %v17837_v55 = vrot.slane %v9921_v35, 4 }
 0x6a3   : > { %v7979_v56 = vpop.xlane.xlu1 %7978  ;;  %v17840_v24 = vperm.slane %v8816_v1, %v19926_v27  ;;  %v8812_v19 = vshrl.u32 %v8742_v31, 16  ;;  %v17842_v4 = vpack.c.bf16 %v8409_v16, %v8409_v16  ;;  %v9866_v53 = vsel %vm1358_vm0, %v17796_v12, %v9858_v9 }
 0x6a4   : > { %v8470_v41 = vpack.c.b16 %v8461_v58, %v8460_v63  ;;  %v8819_v3 = vpack.i.b16 %v8818_v43, %v8817_v21  ;;  %v9163_v46 = vperm.slane %v8810_v26, %v19926_v27  ;;  %v9192_v59 = vrot.slane %v9184_v61, 4 }
 0x6a5   : > { %v8830_v51 = vshrl.u32 %v8712_v54, 16  ;;  %v8813_v44 = vpack.i.b16 %v8812_v19, %v8811_v40  ;;  %11921 = vrcp.f32 %v7979_v56  ;;  %v9218_v15 = vrot.slane %v17840_v24, 4 }
 0x6a6   : > { %v17850_v22 = vpop.eup %11917  ;;  %8550 = vmatmul.bf16.gmra.mxu1 %v8470_v41  ;;  %v9164_v35 = vrot.slane %v9163_v46, 4  ;;  %v9167_v43 = vsel %vm1358_vm0, %v9163_v46, %v9166_v8  ;;  %v8842_v12 = vshrl.u32 %v17842_v4, 16  ;;  %v17860_v47 = vperm.slane %v9866_v53, %v19927_v57 }
 0x6a7   : > { %v8662_v48 = vpop.f32.mrf.mxu2  ;;  %v17854_v10 = vpop.eup %11919  ;;  %v9175_v11 = vperm.slane %v9167_v43, %v19927_v57  ;;  %v9189_v9 = vperm.slane %v8813_v44, %v19926_v27  ;;  %v9236_v31 = vperm.slane %v8819_v3, %v19926_v27  ;;  %v9885_v8 = vsel %vm1358_vm0, %v17817_v5, %v9877_v30 }
 0x6a8   : > { %v8743_v2 = vpack.c.bf16 %v8662_v48, %v8662_v48  ;;  %v9165_v16 = vsel %vm1358_vm0, %v9164_v35, %v17808_v33 }
 0x6a9   : > { %v9171_v63 = vperm.slane %v9165_v16, %v19927_v57  ;;  %v9178_v58 = vrot.slane %v9175_v11, 4  ;;  %v9190_v21 = vrot.slane %v9189_v9, 4  ;;  %v9193_v26 = vsel %vm1358_vm0, %v9189_v9, %v9192_v59 }
 0x6aa   : > { %v8278_v40 = vpop.f32.mrf.mxu3  ;;  %v9201_v56 = vperm.slane %v9193_v26, %v19927_v57  ;;  %v8824_v3 = vshrl.u32 %v8743_v2, 16  ;;  %v8822_v30 = vpack.i.b16 %v8743_v2, %v17815_v25  ;;  %v9244_v16 = vrot.slane %v9236_v31, 4 }
 0x6ab   : > { %v8696_v1 = vpack.c.bf16 %v8278_v40, %v8278_v40  ;;  %v17873_v46 = vpop.eup %11921  ;;  %v9176_v33 = vrot.slane %v9171_v63, 4  ;;  %v9179_v53 = vsel %vm1358_vm0, 0, %v9178_v58  ;;  %v9191_v45 = vsel %vm1358_vm0, %v9190_v21, %v9184_v61 }
 0x6ac   : > { %v9197_v5 = vperm.slane %v9191_v45, %v19927_v57  ;;  %v9204_v44 = vrot.slane %v9201_v56, 4  ;;  %v17880_v48 = vsel %vm1358_vm0, %v9178_v58, %v9171_v63  ;;  %v9935_v59 = vrot.slane %v9179_v53, 4  ;;  %v8536_v58 = vpop.f32.mrf.mxu1 }
 0x6ad   : > { %v8828_v19 = vpack.i.b16 %v8712_v54, %v8696_v1  ;;  %v8829_v41 = vshrl.u32 %v8696_v1, 16  ;;  %v9177_v54 = vsel %vm1358_vm0, 0, %v9176_v33  ;;  %v8825_v11 = vpack.i.b16 %v8824_v3, %v8823_v50 }
 0x6ae   : > { %v9202_v9 = vrot.slane %v9197_v5, 4  ;;  %v9205_v61 = vsel %vm1358_vm0, 0, %v9204_v44  ;;  %v9936_v2 = vsel %vm1358_vm0, %v9935_v59, %v9177_v54  ;;  %v17891_v40 = vsel %vm1358_vm0, %v9204_v44, %v9197_v5 }
 0x6af   : > { %v8831_v35 = vpack.i.b16 %v8830_v51, %v8829_v41  ;;  %v17884_v43 = vperm.slane %v8828_v19, %v19926_v27  ;;  %v9940_v1 = vperm.slane %v9936_v2, %v19926_v27  ;;  %v9954_v63 = vrot.slane %v9205_v61, 4 }
 0x6b0   : > { %v9904_v25 = vsel %vm1358_vm0, %v17833_v62, %v9896_v49  ;;  %v9203_v50 = vsel %vm1358_vm0, 0, %v9202_v9  ;;  %v9215_v21 = vperm.slane %v8822_v30, %v19926_v27  ;;  %v9241_v26 = vperm.slane %v8825_v11, %v19926_v27 }
 0x6b1   : > { %v17901_v51 = vperm.slane %v8831_v35, %v19926_v27  ;;  %v9955_v42 = vsel %vm1358_vm0, %v9954_v63, %v9203_v50  ;;  %v17911_v49 = vrot.slane %v9940_v1, 4  ;;  %v17914_v33 = vpack.c.bf16 %v8536_v58, %v8536_v58 }
 0x6b2   : > { %v9216_v62 = vrot.slane %v9215_v21, 4  ;;  %v9219_v3 = vsel %vm1358_vm0, %v9215_v21, %v9218_v15  ;;  %v9242_v45 = vrot.slane %v9241_v26, 4  ;;  %v9245_v30 = vsel %vm1358_vm0, %v9241_v26, %v9244_v16 }
 0x6b3   : > { %v9227_v53 = vperm.slane %v9219_v3, %v19927_v57  ;;  %v17919_v5 = vperm.slane %v9885_v8, %v19927_v57  ;;  %v9959_v44 = vperm.slane %v9955_v42, %v19926_v27  ;;  %v9253_v35 = vperm.slane %v9245_v30, %v19927_v57 }
 0x6b4   : > { %v9217_v54 = vsel %vm1358_vm0, %v9216_v62, %v17840_v24  ;;  %v9243_v9 = vsel %vm1358_vm0, %v9242_v45, %v9236_v31  ;;  %v9923_v8 = vsel %vm1358_vm0, %v17837_v55, %v9915_v36  ;;  %v17935_v16 = vperm.slane %v9904_v25, %v19927_v57  ;;  %v8538_v59 = vpop.f32.mrf.mxu1 }
 0x6b5   : > { %v9223_v15 = vperm.slane %v9217_v54, %v19927_v57  ;;  %v9230_v11 = vrot.slane %v9227_v53, 4  ;;  %v9249_v61 = vperm.slane %v9243_v9, %v19927_v57  ;;  %v9256_v2 = vrot.slane %v9253_v35, 4 }
 0x6b6   : > { %v17938_v24 = vperm.slane %v9923_v8, %v19927_v57  ;;  %v10413_v31 = vshrl.u32 %v17860_v47, 16  ;;  %v10414_v58 = vshrl.u32 %v17919_v5, 16  ;;  %v17951_v62 = vrot.slane %v9959_v44, 4  ;;  %v8280_v44 = vpop.f32.mrf.mxu3 }
 0x6b7   : > { %v9228_v1 = vrot.slane %v9223_v15, 4  ;;  %v9231_v63 = vsel %vm1358_vm0, 0, %v9230_v11  ;;  %v9254_v14 = vrot.slane %v9249_v61, 4  ;;  %v9257_v50 = vsel %vm1358_vm0, 0, %v9256_v2 }
 0x6b8   : > { %v17945_v36 = vsel %vm1358_vm0, %v9230_v11, %v9223_v15  ;;  %v9973_v55 = vrot.slane %v9231_v63, 4  ;;  %v17949_v21 = vsel %vm1358_vm0, %v9256_v2, %v9249_v61  ;;  %v9992_v26 = vrot.slane %v9257_v50, 4 }
 0x6b9   : > { %v9229_v25 = vsel %vm1358_vm0, 0, %v9228_v1  ;;  %v10415_v42 = vpack.i.b16 %v10414_v58, %v10413_v31  ;;  %v9255_v3 = vsel %vm1358_vm0, 0, %v9254_v14  ;;  %v10425_v35 = vshrl.u32 %v17935_v16, 16  ;;  %v7917_v1 = vpop.xlane.xlu1 %7916 }
 0x6ba   : > { %v9974_v53 = vsel %vm1358_vm0, %v9973_v55, %v9229_v25  ;;  %v9993_v54 = vsel %vm1358_vm0, %v9992_v26, %v9255_v3  ;;  %v10426_v15 = vshrl.u32 %v17938_v24, 16  ;;  %v9871_v9 = vrot.slane %v17860_v47, 4  ;;  %v8665_v25 = vpop.f32.mrf.mxu2 }
 0x6bb   : > { %v9978_v11 = vperm.slane %v9974_v53, %v19926_v27  ;;  %v9890_v8 = vrot.slane %v17919_v5, 4  ;;  %v10604_v2 = vunpack.c.l.b16 %v10415_v42  ;;  %v9909_v63 = vrot.slane %v17935_v16, 4 }
 0x6bc   : > { %v10427_v61 = vpack.i.b16 %v10426_v15, %v10425_v35  ;;  %v9928_v31 = vrot.slane %v17938_v24, 4  ;;  %v9997_v58 = vperm.slane %v9993_v54, %v19926_v27  ;;  %v9872_v14 = vsel %vm1358_vm0, 0, %v9871_v9 }
 0x6bd   : > { %v9891_v50 = vsel %vm1358_vm0, 0, %v9890_v8  ;;  %v8060_v55 = vmul.f32 %v17789_v34, %v17636_v17  ;;  %v9910_v3 = vsel %vm1358_vm0, 0, %v9909_v63  ;;  %11923 = vrcp.f32 %v7917_v1 }
 0x6be   : > { %v10605_v26 = vunpack.c.l.b16 %v10427_v61  ;;  %v9929_v42 = vsel %vm1358_vm0, 0, %v9928_v31  ;;  %v10418_v53 = vpack.i.b16 %v9891_v50, %v9872_v14  ;;  %v8061_v15 = vmul.f32 %v17854_v10, %v17651_v60 }
 0x6bf   : > { %v10430_v35 = vpack.i.b16 %v9929_v42, %v9910_v3  ;;  %v8124_v54 = vpack.c.bf16 %v8060_v55, %v8060_v55  ;;  %v10419_v8 = vshrl.u32 %v9872_v14, 16  ;;  %v10420_v19 = vshrl.u32 %v9891_v50, 16 }
 0x6c0   : > { %v10619_v9 = vpack.c.b16 %v10605_v26, %v10604_v2  ;;  %v10644_v30 = vunpack.c.l.b16 %v10418_v53  ;;  %v8125_v17 = vpack.c.bf16 %v8061_v15, %v8061_v15  ;;  %v10431_v34 = vshrl.u32 %v9910_v3, 16  ;;  %v7915_v3 = vpop.xlane.xlu2 %7914 }
 0x6c1   : > { %v10645_v56 = vunpack.c.l.b16 %v10430_v35  ;;  %v10432_v61 = vshrl.u32 %v9929_v42, 16  ;;  %v17977_v63 = vrot.slane %v9978_v11, 4  ;;  %v10421_v1 = vpack.i.b16 %v10420_v19, %v10419_v8 }
 0x6c2   : > { %10628 = vrot.lane.b32.xlu1 %v10619_v9, %s12238_s28  ;;  %v8697_v31 = vpack.c.bf16 %v8280_v44, %v8280_v44  ;;  %v8744_v41 = vpack.c.bf16 %v8665_v25, %v8665_v25  ;;  %v8204_v60 = vunpack.c.l.b16 %v8124_v54  ;;  %v8205_v10 = vunpack.c.l.b16 %v8125_v17 }
 0x6c3   : > { %v10659_v45 = vpack.c.b16 %v10645_v56, %v10644_v30  ;;  %v10433_v55 = vpack.i.b16 %v10432_v61, %v10431_v34  ;;  %v17982_v26 = vpack.c.bf16 %v8538_v59, %v8538_v59  ;;  %v17984_v42 = vpop.eup %11923  ;;  %v10684_v19 = vunpack.c.l.b16 %v10421_v1 }
 0x6c4   : > { %v8840_v2 = vpack.i.b16 %v17842_v4, %v8697_v31  ;;  %v8841_v14 = vshrl.u32 %v8697_v31, 16  ;;  %v8834_v50 = vpack.i.b16 %v8744_v41, %v17914_v33  ;;  %v8213_v11 = vpack.c.b16 %v8205_v10, %v8204_v60 }
 0x6c5   : > { %10668 = vrot.lane.b32.xlu0 %v10659_v45, %s12236_s19  ;;  %v10685_v44 = vunpack.c.l.b16 %v10433_v55  ;;  %v8836_v25 = vshrl.u32 %v8744_v41, 16  ;;  %v17987_v56 = vrot.slane %v9997_v58, 4  ;;  %v8108_v59 = vmul.f32 %v17873_v46, %v17655_v38  ;;  %v7947_v41 = vpop.xlane.xlu0 %7946  ;;  %v8667_v58 = vpop.f32.mrf.mxu2 }
 0x6c6   : > { %v8843_v30 = vpack.i.b16 %v8842_v12, %v8841_v14  ;;  %v9267_v53 = vperm.slane %v8834_v50, %v19926_v27  ;;  %8297 = vmatmul.bf16.gmra.mxu3 %v8213_v11  ;;  %v19928_v15 = vshrl.u32 %v17914_v33, 16  ;;  %11925 = vrcp.f32 %v7915_v3  ;;  %v8283_v11 = vpop.f32.mrf.mxu3 }
 0x6c7   : > { %v10699_v35 = vpack.c.b16 %v10685_v44, %v10684_v19  ;;  %v8109_v45 = vmul.f32 %v17850_v22, %v17648_v39  ;;  %v9314_v9 = vperm.slane %v8840_v2, %v19926_v27  ;;  %v19929_v12 = vrot.slane %v17884_v43, 4 }
 0x6c8   : > { %v8837_v54 = vpack.i.b16 %v8836_v25, %v19928_v15  ;;  %v9268_v4 = vrot.slane %v9267_v53, 4  ;;  %v8847_v38 = vshrl.u32 %v17982_v26, 16  ;;  %v8172_v17 = vpack.c.bf16 %v8108_v59, %v8108_v59 }
 0x6c9   : > { %v9271_v8 = vsel %vm1358_vm0, %v9267_v53, %v19929_v12  ;;  %10708 = vrot.lane.b32.xlu2 %v10699_v35, %s12237_s3  ;;  %v8173_v34 = vpack.c.bf16 %v8109_v45, %v8109_v45  ;;  %v9340_v39 = vperm.slane %v8843_v30, %v19926_v27  ;;  %11927 = vrcp.f32 %v7947_v41 }
 0x6ca   : > { %v9279_v46 = vperm.slane %v9271_v8, %v19927_v57  ;;  %v9293_v33 = vperm.slane %v8837_v54, %v19926_v27  ;;  %v9269_v22 = vsel %vm1358_vm0, %v9268_v4, %v17884_v43  ;;  %v8745_v61 = vpack.c.bf16 %v8667_v58, %v8667_v58 }
 0x6cb   : > { %v9275_v1 = vperm.slane %v9269_v22, %v19927_v57  ;;  %v19930_v10 = vrot.slane %v17901_v51, 4  ;;  %v9322_v2 = vrot.slane %v9314_v9, 4  ;;  %v8591_v50 = vunpack.c.l.b16 %v8172_v17 }
 0x6cc   : > { %v9282_v31 = vrot.slane %v9279_v46, 4  ;;  %v9294_v60 = vrot.slane %v9293_v33, 4  ;;  %v8846_v3 = vpack.i.b16 %v8745_v61, %v17982_v26  ;;  %v11926_v19 = vpop.eup %11925  ;;  %v8592_v30 = vunpack.c.l.b16 %v8173_v34  ;;  %v7949_v46 = vpop.xlane.xlu2 %7948 }
 0x6cd   : > { %v9297_v55 = vsel %vm1358_vm0, %v9293_v33, %v19930_v10  ;;  %v9280_v44 = vrot.slane %v9275_v1, 4  ;;  %v9348_v53 = vrot.slane %v9340_v39, 4  ;;  %v8848_v41 = vshrl.u32 %v8745_v61, 16  ;;  %v8670_v61 = vpop.f32.mrf.mxu2 }
 0x6ce   : > { %v9305_v14 = vperm.slane %v9297_v55, %v19927_v57  ;;  %v9283_v43 = vsel %vm1358_vm0, 0, %v9282_v31  ;;  %v9295_v25 = vsel %vm1358_vm0, %v9294_v60, %v17901_v51  ;;  %v8600_v45 = vpack.c.b16 %v8592_v30, %v8591_v50 }
 0x6cf   : > { %v9301_v59 = vperm.slane %v9295_v25, %v19927_v57  ;;  %v10011_v15 = vrot.slane %v9283_v43, 4  ;;  %v9281_v54 = vsel %vm1358_vm0, 0, %v9280_v44  ;;  %v9319_v26 = vperm.slane %v8846_v3, %v19926_v27  ;;  %v18021_v58 = vpop.eup %11927 }
 0x6d0   : > { %v9308_v35 = vrot.slane %v9305_v14, 4  ;;  %v18025_v8 = vsel %vm1358_vm0, %v9282_v31, %v9275_v1  ;;  %8684 = vmatmul.bf16.gmra.mxu2 %v8600_v45  ;;  %v8849_v22 = vpack.i.b16 %v8848_v41, %v8847_v38  ;;  %v18034_v14 = vpack.c.bf16 %v8283_v11, %v8283_v11  ;;  %v8285_v45 = vpop.f32.mrf.mxu3 }
 0x6d1   : > { %v9306_v4 = vrot.slane %v9301_v59, 4  ;;  %v10012_v51 = vsel %vm1358_vm0, %v10011_v15, %v9281_v54  ;;  %v9320_v10 = vrot.slane %v9319_v26, 4  ;;  %v9323_v55 = vsel %vm1358_vm0, %v9319_v26, %v9322_v2 }
 0x6d2   : > { %v9309_v12 = vsel %vm1358_vm0, 0, %v9308_v35  ;;  %v10016_v33 = vperm.slane %v10012_v51, %v19926_v27  ;;  %v18030_v17 = vsel %vm1358_vm0, %v9308_v35, %v9301_v59  ;;  %v9331_v31 = vperm.slane %v9323_v55, %v19927_v57 }
 0x6d3   : > { %v10030_v34 = vrot.slane %v9309_v12, 4  ;;  %v9307_v60 = vsel %vm1358_vm0, 0, %v9306_v4  ;;  %v9345_v50 = vperm.slane %v8849_v22, %v19926_v27  ;;  %11929 = vrcp.f32 %v7949_v46 }
 0x6d4   : > { %v10010_v3 = vperm.slane %v18025_v8, %v19926_v27  ;;  %v18041_v44 = vrot.slane %v10016_v33, 4  ;;  %v10029_v38 = vperm.slane %v18030_v17, %v19926_v27  ;;  %v9321_v43 = vsel %vm1358_vm0, %v9320_v10, %v9314_v9 }
 0x6d5   : > { %v10031_v1 = vsel %vm1358_vm0, %v10030_v34, %v9307_v60  ;;  %v9327_v2 = vperm.slane %v9321_v43, %v19927_v57  ;;  %v9334_v11 = vrot.slane %v9331_v31, 4  ;;  %v9346_v25 = vrot.slane %v9345_v50, 4  ;;  %v8672_v43 = vpop.f32.mrf.mxu2 }
 0x6d6   : > { %v9349_v30 = vsel %vm1358_vm0, %v9345_v50, %v9348_v53  ;;  %v10035_v59 = vperm.slane %v10031_v1, %v19926_v27  ;;  %v8853_v15 = vshrl.u32 %v18034_v14, 16  ;;  %v8076_v54 = vmul.f32 %v11926_v19, %v17668_v52 }
 0x6d7   : > { %v9357_v35 = vperm.slane %v9349_v30, %v19927_v57  ;;  %v9332_v41 = vrot.slane %v9327_v2, 4  ;;  %v9335_v26 = vsel %vm1358_vm0, 0, %v9334_v11  ;;  %v9347_v9 = vsel %vm1358_vm0, %v9346_v25, %v9340_v39  ;;  %v8412_v25 = vpop.f32.mrf.mxu0 }
 0x6d8   : > { %v18054_v4 = vpack.c.bf16 %v8670_v61, %v8670_v61  ;;  %v9353_v12 = vperm.slane %v9347_v9, %v19927_v57  ;;  %v18058_v53 = vsel %vm1358_vm0, %v9334_v11, %v9327_v2  ;;  %v10049_v46 = vrot.slane %v9335_v26, 4 }
 0x6d9   : > { %v9360_v51 = vrot.slane %v9357_v35, 4  ;;  %v18060_v33 = vpop.eup %11929  ;;  %v9333_v34 = vsel %vm1358_vm0, 0, %v9332_v41  ;;  %v8077_v52 = vmul.f32 %v17984_v42, %v17663_v23  ;;  %v8140_v19 = vpack.c.bf16 %v8076_v54, %v8076_v54 }
 0x6da   : > { %v18065_v22 = vpack.c.bf16 %v8285_v45, %v8285_v45  ;;  %v9358_v39 = vrot.slane %v9353_v12, 4  ;;  %v10050_v60 = vsel %vm1358_vm0, %v10049_v46, %v9333_v34  ;;  %v18072_v55 = vrot.slane %v10035_v59, 4 }
 0x6db   : > { %v9361_v61 = vsel %vm1358_vm0, 0, %v9360_v51  ;;  %v18070_v10 = vsel %vm1358_vm0, %v9360_v51, %v9353_v12  ;;  %v10054_v1 = vperm.slane %v10050_v60, %v19926_v27  ;;  %v8860_v31 = vshrl.u32 %v18054_v4, 16 }
 0x6dc   : > { %v8141_v50 = vpack.c.bf16 %v8077_v52, %v8077_v52  ;;  %v10068_v2 = vrot.slane %v9361_v61, 4  ;;  %v8333_v11 = vunpack.c.l.b16 %v8140_v19  ;;  %v9359_v30 = vsel %vm1358_vm0, 0, %v9358_v39 }
 0x6dd   : > { %v8865_v59 = vshrl.u32 %v18065_v22, 16  ;;  %v19931_v54 = vperm.slane %v17880_v48, %v19926_v27  ;;  %v18087_v41 = vrot.slane %v10054_v1, 4  ;;  %v18089_v26 = vpack.c.bf16 %v8672_v43, %v8672_v43 }
 0x6de   : > { %v8334_v35 = vunpack.c.l.b16 %v8141_v50  ;;  %v19932_v12 = vperm.slane %v17891_v40, %v19926_v27  ;;  %v19933_v48 = vperm.slane %v17945_v36, %v19926_v27  ;;  %v19934_v52 = vperm.slane %v17949_v21, %v19926_v27 }
 0x6df   : > { %v9942_v45 = vsel %vm1358_vm0, %v17911_v49, %v19931_v54  ;;  %v10069_v40 = vsel %vm1358_vm0, %v10068_v2, %v9359_v30 }
 0x6e0   : > { %v18092_v9 = vperm.slane %v9942_v45, %v19927_v57  ;;  %v9961_v51 = vsel %vm1358_vm0, %v17951_v62, %v19932_v12  ;;  %v8342_v46 = vpack.c.b16 %v8334_v35, %v8333_v11  ;;  %v9980_v49 = vsel %vm1358_vm0, %v17977_v63, %v19933_v48 }
 0x6e1   : > { %v18100_v34 = vperm.slane %v9961_v51, %v19927_v57  ;;  %v9999_v19 = vsel %vm1358_vm0, %v17987_v56, %v19934_v52  ;;  %v18114_v62 = vperm.slane %v9980_v49, %v19927_v57  ;;  %v8714_v63 = vpack.c.bf16 %v8412_v25, %v8412_v25 }
 0x6e2   : > { %v18117_v39 = vperm.slane %v9999_v19, %v19927_v57  ;;  %v10437_v61 = vshrl.u32 %v18092_v9, 16  ;;  %8426 = vmatmul.bf16.gmra.mxu0 %v8342_v46  ;;  %v9947_v60 = vrot.slane %v18092_v9, 4  ;;  %v10073_v2 = vperm.slane %v10069_v40, %v19926_v27 }
 0x6e3   : > { %v10438_v36 = vshrl.u32 %v18100_v34, 16  ;;  %v9966_v21 = vrot.slane %v18100_v34, 4  ;;  %v10449_v56 = vshrl.u32 %v18114_v62, 16  ;;  %v9985_v50 = vrot.slane %v18114_v62, 4 }
 0x6e4   : > { %v10450_v1 = vshrl.u32 %v18117_v39, 16  ;;  %v10004_v43 = vrot.slane %v18117_v39, 4  ;;  %v8854_v30 = vshrl.u32 %v8714_v63, 16  ;;  %v9948_v35 = vsel %vm1358_vm0, 0, %v9947_v60 }
 0x6e5   : > { %v10439_v11 = vpack.i.b16 %v10438_v36, %v10437_v61  ;;  %v9967_v25 = vsel %vm1358_vm0, 0, %v9966_v21  ;;  %v9986_v45 = vsel %vm1358_vm0, 0, %v9985_v50  ;;  %v8852_v46 = vpack.i.b16 %v8714_v63, %v18034_v14  ;;  %v8414_v36 = vpop.f32.mrf.mxu0  ;;  %v8541_v50 = vpop.f32.mrf.mxu1 }
 0x6e6   : > { %v10451_v54 = vpack.i.b16 %v10450_v1, %v10449_v56  ;;  %v10005_v12 = vsel %vm1358_vm0, 0, %v10004_v43  ;;  %v8855_v48 = vpack.i.b16 %v8854_v30, %v8853_v15  ;;  %v10442_v49 = vpack.i.b16 %v9967_v25, %v9948_v35 }
 0x6e7   : > { %v10606_v51 = vunpack.c.l.b16 %v10439_v11  ;;  %v10454_v19 = vpack.i.b16 %v10005_v12, %v9986_v45  ;;  %v10443_v40 = vshrl.u32 %v9948_v35, 16  ;;  %v10444_v61 = vshrl.u32 %v9967_v25, 16 }
 0x6e8   : > { %v10607_v52 = vunpack.c.l.b16 %v10451_v54  ;;  %v10074_v60 = vrot.slane %v10073_v2, 4  ;;  %v8872_v56 = vshrl.u32 %v18089_v26, 16  ;;  %v10646_v21 = vunpack.c.l.b16 %v10442_v49 }
 0x6e9   : > { %v10455_v1 = vshrl.u32 %v9986_v45, 16  ;;  %v10647_v43 = vunpack.c.l.b16 %v10454_v19  ;;  %v10445_v11 = vpack.i.b16 %v10444_v61, %v10443_v40  ;;  %v10456_v23 = vshrl.u32 %v10005_v12, 16 }
 0x6ea   : > { %v10620_v42 = vpack.c.b16 %v10607_v52, %v10606_v51  ;;  %v9366_v63 = vperm.slane %v8852_v46, %v19926_v27  ;;  %v8092_v14 = vmul.f32 %v18021_v58, %v17671_v18  ;;  %v8093_v15 = vmul.f32 %v18060_v33, %v17676_v7 }
 0x6eb   : > { %v8715_v30 = vpack.c.bf16 %v8414_v36, %v8414_v36  ;;  %v9392_v2 = vperm.slane %v8855_v48, %v19926_v27  ;;  %v10660_v35 = vpack.c.b16 %v10647_v43, %v10646_v21  ;;  %v10457_v54 = vpack.i.b16 %v10456_v23, %v10455_v1 }
 0x6ec   : > { %10630 = vrot.lane.b32.xlu1 %v10620_v42, %s12238_s28  ;;  %v8730_v25 = vpack.c.bf16 %v8541_v50, %v8541_v50  ;;  %v10686_v45 = vunpack.c.l.b16 %v10445_v11  ;;  %v8156_v51 = vpack.c.bf16 %v8092_v14, %v8092_v14  ;;  %v8157_v49 = vpack.c.bf16 %v8093_v15, %v8093_v15 }
 0x6ed   : > { %v8866_v12 = vshrl.u32 %v8715_v30, 16  ;;  %10670 = vrot.lane.b32.xlu0 %v10660_v35, %s12236_s19  ;;  %v10687_v46 = vunpack.c.l.b16 %v10457_v54  ;;  %v10018_v7 = vsel %vm1358_vm0, %v18041_v44, %v10010_v3  ;;  %v9374_v33 = vrot.slane %v9366_v63, 4  ;;  %v18164_v44 = vpop.f32.mrf.mxu3 }
 0x6ee   : > { %v8858_v18 = vpack.i.b16 %v18054_v4, %v8730_v25  ;;  %v8859_v58 = vshrl.u32 %v8730_v25, 16  ;;  %v8462_v42 = vunpack.c.l.b16 %v8156_v51  ;;  %v8463_v23 = vunpack.c.l.b16 %v8157_v49 }
 0x6ef   : > { %v8864_v48 = vpack.i.b16 %v8715_v30, %v18065_v22  ;;  %v9400_v52 = vrot.slane %v9392_v2, 4  ;;  %v10700_v19 = vpack.c.b16 %v10687_v46, %v10686_v45  ;;  %v8867_v21 = vpack.i.b16 %v8866_v12, %v8865_v59 }
 0x6f0   : > { %v8861_v40 = vpack.i.b16 %v8860_v31, %v8859_v58  ;;  %v9371_v61 = vperm.slane %v8858_v18, %v19926_v27  ;;  %v8471_v36 = vpack.c.b16 %v8463_v23, %v8462_v42  ;;  %v18157_v8 = vperm.slane %v10018_v7, %v19927_v57 }
 0x6f1   : > { %v10037_v3 = vsel %vm1358_vm0, %v18072_v55, %v10029_v38  ;;  %10710 = vrot.lane.b32.xlu2 %v10700_v19, %s12237_s3  ;;  %v18173_v59 = vperm.slane %v8864_v48, %v19926_v27  ;;  %v19935_v38 = vperm.slane %v18058_v53, %v19926_v27  ;;  %v19936_v50 = vperm.slane %v18070_v10, %v19926_v27 }
 0x6f2   : > { %v9372_v4 = vrot.slane %v9371_v61, 4  ;;  %v9375_v31 = vsel %vm1358_vm0, %v9371_v61, %v9374_v33  ;;  %v9397_v1 = vperm.slane %v8861_v40, %v19926_v27  ;;  %v18170_v22 = vperm.slane %v10037_v3, %v19927_v57  ;;  %8555 = vmatmul.bf16.gmra.mxu1 %v8471_v36 }
 0x6f3   : > { %v9383_v17 = vperm.slane %v9375_v31, %v19927_v57  ;;  %v10056_v55 = vsel %vm1358_vm0, %v18087_v41, %v19935_v38  ;;  %v10075_v43 = vsel %vm1358_vm0, %v10074_v60, %v19936_v50  ;;  %v18196_v10 = vperm.slane %v8867_v21, %v19926_v27 }
 0x6f4   : > { %v9373_v11 = vsel %vm1358_vm0, %v9372_v4, %v9366_v63  ;;  %v9398_v14 = vrot.slane %v9397_v1, 4  ;;  %v9401_v15 = vsel %vm1358_vm0, %v9397_v1, %v9400_v52  ;;  %v18188_v30 = vperm.slane %v10056_v55, %v19927_v57  ;;  %v8543_v4 = vpop.f32.mrf.mxu1 }
 0x6f5   : > { %v9379_v35 = vperm.slane %v9373_v11, %v19927_v57  ;;  %v9386_v54 = vrot.slane %v9383_v17, 4  ;;  %v9409_v53 = vperm.slane %v9401_v15, %v19927_v57  ;;  %v18193_v41 = vperm.slane %v10075_v43, %v19927_v57  ;;  %v18218_v31 = vpop.f32.mrf.mxu3 }
 0x6f6   : > { %v9399_v60 = vsel %vm1358_vm0, %v9398_v14, %v9392_v2  ;;  %v10461_v63 = vshrl.u32 %v18157_v8, 16  ;;  %v10462_v25 = vshrl.u32 %v18170_v22, 16  ;;  %v10473_v58 = vshrl.u32 %v18188_v30, 16 }
 0x6f7   : > { %v9384_v45 = vrot.slane %v9379_v35, 4  ;;  %v9387_v51 = vsel %vm1358_vm0, 0, %v9386_v54  ;;  %v9405_v49 = vperm.slane %v9399_v60, %v19927_v57  ;;  %v9412_v12 = vrot.slane %v9409_v53, 4 }
 0x6f8   : > { %v10087_v46 = vrot.slane %v9387_v51, 4  ;;  %v10463_v18 = vpack.i.b16 %v10462_v25, %v10461_v63  ;;  %v10474_v7 = vshrl.u32 %v18193_v41, 16  ;;  %v9426_v33 = vrot.slane %v18173_v59, 4 }
 0x6f9   : > { %v9385_v2 = vsel %vm1358_vm0, 0, %v9384_v45  ;;  %v9410_v42 = vrot.slane %v9405_v49, 4  ;;  %v9413_v23 = vsel %vm1358_vm0, 0, %v9412_v12  ;;  %v18209_v48 = vsel %vm1358_vm0, %v9386_v54, %v9379_v35 }
 0x6fa   : > { %v10088_v52 = vsel %vm1358_vm0, %v10087_v46, %v9385_v2  ;;  %v18213_v19 = vsel %vm1358_vm0, %v9412_v12, %v9405_v49  ;;  %v10475_v40 = vpack.i.b16 %v10474_v7, %v10473_v58  ;;  %v9452_v61 = vrot.slane %v18196_v10, 4 }
 0x6fb   : > { %v9411_v36 = vsel %vm1358_vm0, 0, %v9410_v42  ;;  %v10092_v21 = vperm.slane %v10088_v52, %v19926_v27  ;;  %v10106_v3 = vrot.slane %v9413_v23, 4  ;;  %v10608_v1 = vunpack.c.l.b16 %v10463_v18  ;;  %v8417_v18 = vpop.f32.mrf.mxu0  ;;  %v8675_v23 = vpop.f32.mrf.mxu2 }
 0x6fc   : > { %v10609_v17 = vunpack.c.l.b16 %v10475_v40  ;;  %v10023_v38 = vrot.slane %v18157_v8, 4  ;;  %v10042_v55 = vrot.slane %v18170_v22, 4  ;;  %v10086_v50 = vperm.slane %v18209_v48, %v19926_v27 }
 0x6fd   : > { %v10105_v43 = vperm.slane %v18213_v19, %v19926_v27  ;;  %v10061_v11 = vrot.slane %v18188_v30, 4  ;;  %v10080_v14 = vrot.slane %v18193_v41, 4  ;;  %v8731_v53 = vpack.c.bf16 %v8543_v4, %v8543_v4 }
 0x6fe   : > { %v10621_v15 = vpack.c.b16 %v10609_v17, %v10608_v1  ;;  %v10024_v35 = vsel %vm1358_vm0, 0, %v10023_v38  ;;  %v10043_v54 = vsel %vm1358_vm0, 0, %v10042_v55  ;;  %v10107_v60 = vsel %vm1358_vm0, %v10106_v3, %v9411_v36 }
 0x6ff   : > { %v10062_v63 = vsel %vm1358_vm0, 0, %v10061_v11  ;;  %v10081_v25 = vsel %vm1358_vm0, 0, %v10080_v14  ;;  %v10466_v45 = vpack.i.b16 %v10043_v54, %v10024_v35  ;;  %v18233_v51 = vrot.slane %v10092_v21, 4 }
 0x700   : > { %10632 = vrot.lane.b32.xlu1 %v10621_v15, %s12238_s28  ;;  %v10478_v49 = vpack.i.b16 %v10081_v25, %v10062_v63  ;;  %v8870_v12 = vpack.i.b16 %v18089_v26, %v8731_v53  ;;  %v8871_v46 = vshrl.u32 %v8731_v53, 16  ;;  %v10467_v58 = vshrl.u32 %v10024_v35, 16  ;;  %v8546_v15 = vpop.f32.mrf.mxu1  ;;  %v8293_v53 = vpop.f32.mrf.mxu3 }
 0x701   : > { %v10468_v7 = vshrl.u32 %v10043_v54, 16  ;;  %v10479_v2 = vshrl.u32 %v10062_v63, 16  ;;  %v10480_v42 = vshrl.u32 %v10081_v25, 16  ;;  %v10648_v52 = vunpack.c.l.b16 %v10466_v45 }
 0x702   : > { %v10649_v40 = vunpack.c.l.b16 %v10478_v49  ;;  %v8873_v36 = vpack.i.b16 %v8872_v56, %v8871_v46  ;;  %v9423_v21 = vperm.slane %v8870_v12, %v19926_v27  ;;  %v8700_v1 = vpack.c.bf16 %v18164_v44, %v18164_v44 }
 0x703   : > { %v10469_v3 = vpack.i.b16 %v10468_v7, %v10467_v58  ;;  %v10481_v4 = vpack.i.b16 %v10480_v42, %v10479_v2  ;;  %v8716_v17 = vpack.c.bf16 %v8417_v18, %v8417_v18  ;;  %v10111_v35 = vperm.slane %v10107_v60, %v19926_v27 }
 0x704   : > { %v10661_v38 = vpack.c.b16 %v10649_v40, %v10648_v52  ;;  %v9424_v55 = vrot.slane %v9423_v21, 4  ;;  %v9427_v11 = vsel %vm1358_vm0, %v9423_v21, %v9426_v33  ;;  %v9449_v14 = vperm.slane %v8873_v36, %v19926_v27 }
 0x705   : > { %v9435_v26 = vperm.slane %v9427_v11, %v19927_v57  ;;  %v10688_v56 = vunpack.c.l.b16 %v10469_v3  ;;  %v10689_v54 = vunpack.c.l.b16 %v10481_v4  ;;  %v8748_v45 = vpack.c.bf16 %v8675_v23, %v8675_v23 }
 0x706   : > { %10672 = vrot.lane.b32.xlu0 %v10661_v38, %s12236_s19  ;;  %v9425_v44 = vsel %vm1358_vm0, %v9424_v55, %v18173_v59  ;;  %v9450_v63 = vrot.slane %v9449_v14, 4  ;;  %v9453_v25 = vsel %vm1358_vm0, %v9449_v14, %v9452_v61  ;;  %v8877_v18 = vshrl.u32 %v8700_v1, 16 }
 0x707   : > { %v9431_v33 = vperm.slane %v9425_v44, %v19927_v57  ;;  %v9438_v49 = vrot.slane %v9435_v26, 4  ;;  %v9461_v12 = vperm.slane %v9453_v25, %v19927_v57  ;;  %v10701_v60 = vpack.c.b16 %v10689_v54, %v10688_v56 }
 0x708   : > { %v9451_v46 = vsel %vm1358_vm0, %v9450_v63, %v18196_v10  ;;  %v8876_v58 = vpack.i.b16 %v8716_v17, %v8700_v1  ;;  %v8878_v7 = vshrl.u32 %v8716_v17, 16  ;;  %v8701_v10 = vpack.c.bf16 %v18218_v31, %v18218_v31  ;;  %v8677_v1 = vpop.f32.mrf.mxu2  ;;  %v8419_v17 = vpop.f32.mrf.mxu0 }
 0x709   : > { %v9436_v2 = vrot.slane %v9431_v33, 4  ;;  %v9439_v42 = vsel %vm1358_vm0, 0, %v9438_v49  ;;  %v9457_v59 = vperm.slane %v9451_v46, %v19927_v57  ;;  %v9464_v52 = vrot.slane %v9461_v12, 4  ;;  %10712 = vrot.lane.b32.xlu2 %v10701_v60, %s12237_s3 }
 0x70a   : > { %v18258_v61 = vsel %vm1358_vm0, %v9438_v49, %v9431_v33  ;;  %v10125_v23 = vrot.slane %v9439_v42, 4  ;;  %v9470_v40 = vperm.slane %v8876_v58, %v19926_v27  ;;  %v8879_v4 = vpack.i.b16 %v8878_v7, %v8877_v18  ;;  %v8548_v33 = vpop.f32.mrf.mxu1  ;;  %v8295_v18 = vpop.f32.mrf.mxu3 }
 0x70b   : > { %v9437_v36 = vsel %vm1358_vm0, 0, %v9436_v2  ;;  %v9462_v21 = vrot.slane %v9457_v59, 4  ;;  %v9465_v3 = vsel %vm1358_vm0, 0, %v9464_v52  ;;  %v18265_v38 = vrot.slane %v10111_v35, 4 }
 0x70c   : > { %v10126_v55 = vsel %vm1358_vm0, %v10125_v23, %v9437_v36  ;;  %v18269_v11 = vsel %vm1358_vm0, %v9464_v52, %v9457_v59  ;;  %v10144_v14 = vrot.slane %v9465_v3, 4  ;;  %v10124_v31 = vperm.slane %v18258_v61, %v19926_v27 }
 0x70d   : > { %v9463_v26 = vsel %vm1358_vm0, 0, %v9462_v21  ;;  %v10130_v56 = vperm.slane %v10126_v55, %v19926_v27  ;;  %v8884_v54 = vshrl.u32 %v8748_v45, 16  ;;  %v9478_v63 = vrot.slane %v9470_v40, 4 }
 0x70e   : > { %v10145_v44 = vsel %vm1358_vm0, %v10144_v14, %v9463_v26  ;;  %v8749_v25 = vpack.c.bf16 %v8677_v1, %v8677_v1  ;;  %v8717_v35 = vpack.c.bf16 %v8419_v17, %v8419_v17  ;;  %v10143_v49 = vperm.slane %v18269_v11, %v19926_v27  ;;  %v11403_v11 = vld [vmem:[#allocation13 + $0x10] sm:$0xff] }
 0x70f   : > { %v9496_v12 = vperm.slane %v8879_v4, %v19926_v27  ;;  %v8889_v60 = vshrl.u32 %v8701_v10, 16  ;;  %v8732_v46 = vpack.c.bf16 %v8546_v15, %v8546_v15  ;;  %v10149_v58 = vperm.slane %v10145_v44, %v19926_v27 }
 0x710   : > { %v8888_v7 = vpack.i.b16 %v8717_v35, %v8701_v10  ;;  %v8890_v2 = vshrl.u32 %v8717_v35, 16  ;;  %v18280_v42 = vpack.c.bf16 %v8293_v53, %v8293_v53  ;;  %v18282_v59 = vrot.slane %v10130_v56, 4 }
 0x711   : > { %v8882_v52 = vpack.i.b16 %v8748_v45, %v8732_v46  ;;  %v8883_v23 = vshrl.u32 %v8732_v46, 16  ;;  %v8733_v36 = vpack.c.bf16 %v8548_v33, %v8548_v33  ;;  %v8896_v21 = vshrl.u32 %v8749_v25, 16 }
 0x712   : > { %v8891_v3 = vpack.i.b16 %v8890_v2, %v8889_v60  ;;  %v9522_v1 = vperm.slane %v8888_v7, %v19926_v27  ;;  %v18285_v17 = vpack.c.bf16 %v8295_v18, %v8295_v18  ;;  %v18288_v10 = vrot.slane %v10149_v58, 4  ;;  %v8680_v18 = vpop.f32.mrf.mxu2 }
 0x713   : > { %v8885_v4 = vpack.i.b16 %v8884_v54, %v8883_v23  ;;  %v9475_v15 = vperm.slane %v8882_v52, %v19926_v27  ;;  %v8894_v55 = vpack.i.b16 %v8749_v25, %v8733_v36  ;;  %v8895_v14 = vshrl.u32 %v8733_v36, 16  ;;  %v11408_v23 = vld [vmem:[#allocation13 + $0x38] sm:$0xff] }
 0x714   : > { %v9504_v53 = vrot.slane %v9496_v12, 4  ;;  %v9548_v26 = vperm.slane %v8891_v3, %v19926_v27  ;;  %v8901_v45 = vshrl.u32 %v18280_v42, 16  ;;  %v9530_v60 = vrot.slane %v9522_v1, 4  ;;  %11551 = vmatpush.bf16.msra.mxu3 %v11408_v23  ;;  %10856 = vmatpush.bf16.msrb.mxu0 %v11408_v23 }
 0x715   : > { %v9476_v56 = vrot.slane %v9475_v15, 4  ;;  %v9479_v44 = vsel %vm1358_vm0, %v9475_v15, %v9478_v63  ;;  %v9501_v35 = vperm.slane %v8885_v4, %v19926_v27  ;;  %v8897_v33 = vpack.i.b16 %v8896_v21, %v8895_v14 }
 0x716   : > { %v9487_v54 = vperm.slane %v9479_v44, %v19927_v57  ;;  %v9527_v46 = vperm.slane %v8894_v55, %v19926_v27  ;;  %v9556_v4 = vrot.slane %v9548_v26, 4  ;;  %v18304_v14 = vpack.c.bf16 %v8680_v18, %v8680_v18 }
 0x717   : > { %v9477_v58 = vsel %vm1358_vm0, %v9476_v56, %v9470_v40  ;;  %v9502_v7 = vrot.slane %v9501_v35, 4  ;;  %v9505_v2 = vsel %vm1358_vm0, %v9501_v35, %v9504_v53  ;;  %v9553_v52 = vperm.slane %v8897_v33, %v19926_v27  ;;  %v11407_v40 = vld [vmem:[#allocation13 + $0x30] sm:$0xff] }
 0x718   : > { %v9483_v63 = vperm.slane %v9477_v58, %v19927_v57  ;;  %v9490_v36 = vrot.slane %v9487_v54, 4  ;;  %v9513_v21 = vperm.slane %v9505_v2, %v19927_v57  ;;  %v9528_v3 = vrot.slane %v9527_v46, 4  ;;  %11552 = vmatpush.bf16.msra.mxu3 %v11407_v40  ;;  %10857 = vmatpush.bf16.msrb.mxu0 %v11407_v40 }
 0x719   : > { %v9503_v15 = vsel %vm1358_vm0, %v9502_v7, %v9496_v12  ;;  %v9531_v55 = vsel %vm1358_vm0, %v9527_v46, %v9530_v60  ;;  %v9554_v2 = vrot.slane %v9553_v52, 4  ;;  %v9557_v18 = vsel %vm1358_vm0, %v9553_v52, %v9556_v4 }
 0x71a   : > { %v9488_v53 = vrot.slane %v9483_v63, 4  ;;  %v9491_v56 = vsel %vm1358_vm0, 0, %v9490_v36  ;;  %v9509_v44 = vperm.slane %v9503_v15, %v19927_v57  ;;  %v9516_v35 = vrot.slane %v9513_v21, 4 }
 0x71b   : > { %v10163_v33 = vrot.slane %v9491_v56, 4  ;;  %v9529_v54 = vsel %vm1358_vm0, %v9528_v3, %v9522_v1  ;;  %v9539_v58 = vperm.slane %v9531_v55, %v19927_v57  ;;  %v18314_v7 = vsel %vm1358_vm0, %v9490_v36, %v9483_v63  ;;  %v11406_v1 = vld [vmem:[#allocation13 + $0x28] sm:$0xff] }
 0x71c   : > { %v9489_v12 = vsel %vm1358_vm0, 0, %v9488_v53  ;;  %v9514_v60 = vrot.slane %v9509_v44, 4  ;;  %v9517_v46 = vsel %vm1358_vm0, 0, %v9516_v35  ;;  %v9535_v21 = vperm.slane %v9529_v54, %v19927_v57  ;;  %11553 = vmatpush.bf16.msra.mxu3 %v11406_v1  ;;  %10858 = vmatpush.bf16.msrb.mxu0 %v11406_v1 }
 0x71d   : > { %v10164_v23 = vsel %vm1358_vm0, %v10163_v33, %v9489_v12  ;;  %v10182_v15 = vrot.slane %v9517_v46, 4  ;;  %v18321_v53 = vsel %vm1358_vm0, %v9516_v35, %v9509_v44  ;;  %v9542_v56 = vrot.slane %v9539_v58, 4  ;;  %v8422_v33 = vpop.f32.mrf.mxu0 }
 0x71e   : > { %v9515_v3 = vsel %vm1358_vm0, 0, %v9514_v60  ;;  %v10168_v55 = vperm.slane %v10164_v23, %v19926_v27  ;;  %v9540_v63 = vrot.slane %v9535_v21, 4  ;;  %v9555_v36 = vsel %vm1358_vm0, %v9554_v2, %v9548_v26  ;;  %v11405_v26 = vld [vmem:[#allocation13 + $0x20] sm:$0xff] }
 0x71f   : > { %v10183_v52 = vsel %vm1358_vm0, %v10182_v15, %v9515_v3  ;;  %v9565_v4 = vperm.slane %v9557_v18, %v19927_v57  ;;  %v9543_v40 = vsel %vm1358_vm0, 0, %v9542_v56  ;;  %v9561_v12 = vperm.slane %v9555_v36, %v19927_v57 }
 0x720   : > { %v10187_v54 = vperm.slane %v10183_v52, %v19926_v27  ;;  %v9541_v35 = vsel %vm1358_vm0, 0, %v9540_v63  ;;  %v10201_v46 = vrot.slane %v9543_v40, 4  ;;  %v18333_v2 = vrot.slane %v10168_v55, 4  ;;  %11554 = vmatpush.bf16.msra.mxu3 %v11405_v26  ;;  %10859 = vmatpush.bf16.msrb.mxu0 %v11405_v26 }
 0x721   : > { %v9568_v58 = vrot.slane %v9565_v4, 4  ;;  %v9566_v23 = vrot.slane %v9561_v12, 4  ;;  %v8718_v15 = vpack.c.bf16 %v8422_v33, %v8422_v33  ;;  %v18339_v52 = vsel %vm1358_vm0, %v9542_v56, %v9535_v21 }
 0x722   : > { %v10202_v36 = vsel %vm1358_vm0, %v10201_v46, %v9541_v35  ;;  %v10094_v1 = vsel %vm1358_vm0, %v18233_v51, %v10086_v50  ;;  %v18347_v55 = vrot.slane %v10187_v54, 4  ;;  %v10113_v48 = vsel %vm1358_vm0, %v18265_v38, %v10105_v43  ;;  %v11404_v50 = vld [vmem:[#allocation13 + $0x18] sm:$0xff] }
 0x723   : > { %v9569_v3 = vsel %vm1358_vm0, 0, %v9568_v58  ;;  %v9567_v63 = vsel %vm1358_vm0, 0, %v9566_v23  ;;  %v10206_v4 = vperm.slane %v10202_v36, %v19926_v27  ;;  %v8900_v40 = vpack.i.b16 %v8718_v15, %v18280_v42 }
 0x724   : > { %v10220_v33 = vrot.slane %v9569_v3, 4  ;;  %v8902_v60 = vshrl.u32 %v8718_v15, 16  ;;  %v18353_v21 = vperm.slane %v10094_v1, %v19927_v57  ;;  %v18361_v51 = vsel %vm1358_vm0, %v9568_v58, %v9561_v12  ;;  %11555 = vmatpush.bf16.msra.mxu3 %v11404_v50  ;;  %10860 = vmatpush.bf16.msrb.mxu0 %v11404_v50 }
 0x725   : > { %v18365_v54 = vperm.slane %v10113_v48, %v19927_v57  ;;  %v10132_v19 = vsel %vm1358_vm0, %v18282_v59, %v10124_v31  ;;  %v18376_v38 = vperm.slane %v8900_v40, %v19926_v27  ;;  %v10151_v61 = vsel %vm1358_vm0, %v18288_v10, %v10143_v49  ;;  %v8424_v40 = vpop.f32.mrf.mxu0 }
 0x726   : > { %v10221_v56 = vsel %vm1358_vm0, %v10220_v33, %v9567_v63  ;;  %v8903_v43 = vpack.i.b16 %v8902_v60, %v8901_v45  ;;  %v18379_v12 = vperm.slane %v10132_v19, %v19927_v57  ;;  %v10485_v58 = vshrl.u32 %v18353_v21, 16 }
 0x727   : > { %19937 = vst [vmem:[#allocation108_spill] sm:$0xff] %v18365_v54  ;;  %v10225_v35 = vperm.slane %v10221_v56, %v19926_v27  ;;  %v10486_v31 = vshrl.u32 %v18365_v54, 16  ;;  %v10099_v59 = vrot.slane %v18353_v21, 4  ;;  %v10200_v42 = vperm.slane %v18339_v52, %v19926_v27 }
 0x728   : > { %v10207_v45 = vrot.slane %v10206_v4, 4  ;;  %v18394_v46 = vperm.slane %v10151_v61, %v19927_v57  ;;  %v10118_v23 = vrot.slane %v18365_v54, 4  ;;  %v10497_v15 = vshrl.u32 %v18379_v12, 16  ;;  %11556 = vmatpush.bf16.msra.mxu3 %v11403_v11  ;;  %10861 = vmatpush.bf16.msrb.mxu0 %v11403_v11 }
 0x729   : > { %v10226_v49 = vrot.slane %v10225_v35, 4  ;;  %v10487_v10 = vpack.i.b16 %v10486_v31, %v10485_v58  ;;  %v10100_v26 = vsel %vm1358_vm0, 0, %v10099_v59  ;;  %v10137_v52 = vrot.slane %v18379_v12, 4  ;;  %v8551_v35 = vpop.f32.mrf.mxu1 }
 0x72a   : > { %v10498_v3 = vshrl.u32 %v18394_v46, 16  ;;  %v10156_v36 = vrot.slane %v18394_v46, 4  ;;  %v9582_v1 = vrot.slane %v18376_v38, 4  ;;  %v18404_v63 = vperm.slane %v8903_v43, %v19926_v27 }
 0x72b   : > { %v10119_v4 = vsel %vm1358_vm0, 0, %v10118_v23  ;;  %v10491_v33 = vshrl.u32 %v10100_v26, 16  ;;  %v10138_v50 = vsel %vm1358_vm0, 0, %v10137_v52  ;;  %v10610_v60 = vunpack.c.l.b16 %v10487_v10 }
 0x72c   : > { %v10499_v48 = vpack.i.b16 %v10498_v3, %v10497_v15  ;;  %v10157_v56 = vsel %vm1358_vm0, 0, %v10156_v36  ;;  %v10490_v19 = vpack.i.b16 %v10119_v4, %v10100_v26  ;;  %v10492_v58 = vshrl.u32 %v10119_v4, 16 }
 0x72d   : > { %v10502_v61 = vpack.i.b16 %v10157_v56, %v10138_v50  ;;  %v10503_v31 = vshrl.u32 %v10138_v50, 16  ;;  %v10504_v59 = vshrl.u32 %v10157_v56, 16  ;;  %v8719_v25 = vpack.c.bf16 %v8424_v40, %v8424_v40 }
 0x72e   : > { %v10611_v43 = vunpack.c.l.b16 %v10499_v48  ;;  %v10650_v18 = vunpack.c.l.b16 %v10490_v19  ;;  %v10493_v44 = vpack.i.b16 %v10492_v58, %v10491_v33  ;;  %v8734_v15 = vpack.c.bf16 %v8551_v35, %v8551_v35  ;;  %v8682_v48 = vpop.f32.mrf.mxu2 }
 0x72f   : > { %v10651_v23 = vunpack.c.l.b16 %v10502_v61  ;;  %v10505_v54 = vpack.i.b16 %v10504_v59, %v10503_v31  ;;  %v8912_v52 = vpack.i.b16 %v8719_v25, %v18285_v17  ;;  %v8914_v36 = vshrl.u32 %v8719_v25, 16 }
 0x730   : > { %v10622_v3 = vpack.c.b16 %v10611_v43, %v10610_v60  ;;  %v19938_v26 = vperm.slane %v18314_v7, %v19926_v27  ;;  %v10690_v50 = vunpack.c.l.b16 %v10493_v44  ;;  %v8906_v40 = vpack.i.b16 %v18304_v14, %v8734_v15 }
 0x731   : > { %v10662_v4 = vpack.c.b16 %v10651_v23, %v10650_v18  ;;  %v10691_v10 = vunpack.c.l.b16 %v10505_v54  ;;  %v9608_v33 = vrot.slane %v18404_v63, 4  ;;  %v19939_v60 = vshrl.u32 %v18285_v17, 16 }
 0x732   : > { %v10170_v11 = vsel %vm1358_vm0, %v18333_v2, %v19938_v26  ;;  %10634 = vrot.lane.b32.xlu1 %v10622_v3, %s12238_s28  ;;  %v8907_v25 = vshrl.u32 %v8734_v15, 16  ;;  %v9579_v44 = vperm.slane %v8906_v40, %v19926_v27  ;;  %v19940_v2 = vperm.slane %v18321_v53, %v19926_v27  ;;  %v11402_v3 = vld [vmem:[#allocation13 + $0x8] sm:$0xff] }
 0x733   : > { %v8915_v56 = vpack.i.b16 %v8914_v36, %v19939_v60  ;;  %v18421_v19 = vperm.slane %v10170_v11, %v19927_v57  ;;  %10674 = vrot.lane.b32.xlu0 %v10662_v4, %s12236_s19  ;;  %v10702_v7 = vpack.c.b16 %v10691_v10, %v10690_v50  ;;  %v10208_v54 = vsel %vm1358_vm0, %v10207_v45, %v10200_v42  ;;  %v11401_v50 = vld [vmem:[#allocation13] sm:$0xff] }
 0x734   : > { %v10189_v18 = vsel %vm1358_vm0, %v18347_v55, %v19940_v2  ;;  %v18431_v35 = vpack.c.bf16 %v8682_v48, %v8682_v48  ;;  %v18434_v17 = vperm.slane %v8912_v52, %v19926_v27  ;;  %v19941_v61 = vshrl.u32 %v18304_v14, 16  ;;  %11557 = vmatpush.bf16.msra.mxu3 %v11402_v3  ;;  %10862 = vmatpush.bf16.msrb.mxu0 %v11402_v3 }
 0x735   : > { %v18439_v31 = vperm.slane %v10189_v18, %v19927_v57  ;;  %10714 = vrot.lane.b32.xlu2 %v10702_v7, %s12237_s3  ;;  %v9580_v59 = vrot.slane %v9579_v44, 4  ;;  %v9583_v53 = vsel %vm1358_vm0, %v9579_v44, %v9582_v1  ;;  %v18444_v55 = vperm.slane %v10208_v54, %v19927_v57 }
 0x736   : > { %v8909_v58 = vpack.i.b16 %v19941_v61, %v8907_v25  ;;  %v19942_v42 = vperm.slane %v18361_v51, %v19926_v27  ;;  %v18451_v43 = vperm.slane %v8915_v56, %v19926_v27  ;;  %v9591_v14 = vperm.slane %v9583_v53, %v19927_v57 }
 0x737   : > { %v9581_v1 = vsel %vm1358_vm0, %v9580_v59, %v18376_v38  ;;  %v10509_v52 = vshrl.u32 %v18421_v19, 16  ;;  %v10510_v51 = vshrl.u32 %v18439_v31, 16  ;;  %v10175_v40 = vrot.slane %v18421_v19, 4 }
 0x738   : > { %v10227_v45 = vsel %vm1358_vm0, %v10226_v49, %v19942_v42  ;;  %v9605_v23 = vperm.slane %v8909_v58, %v19926_v27  ;;  %v10521_v49 = vshrl.u32 %v18444_v55, 16  ;;  %v9587_v36 = vperm.slane %v9581_v1, %v19927_v57  ;;  %11558 = vmatpush.bf16.msra.mxu3 %v11401_v50  ;;  %10863 = vmatpush.bf16.msrb.mxu0 %v11401_v50 }
 0x739   : > { %v18456_v15 = vperm.slane %v10227_v45, %v19927_v57  ;;  %v9594_v26 = vrot.slane %v9591_v14, 4  ;;  %v10511_v48 = vpack.i.b16 %v10510_v51, %v10509_v52  ;;  %v9634_v54 = vrot.slane %v18434_v17, 4 }
 0x73a   : > { %v9606_v11 = vrot.slane %v9605_v23, 4  ;;  %v9609_v4 = vsel %vm1358_vm0, %v9605_v23, %v9608_v33  ;;  %v9592_v60 = vrot.slane %v9587_v36, 4  ;;  %v8920_v33 = vshrl.u32 %v18431_v35, 16 }
 0x73b   : > { %v9617_v10 = vperm.slane %v9609_v4, %v19927_v57  ;;  %v10522_v38 = vshrl.u32 %v18456_v15, 16  ;;  %v9595_v56 = vsel %vm1358_vm0, 0, %v9594_v26  ;;  %v18472_v7 = vsel %vm1358_vm0, %v9594_v26, %v9587_v36 }
 0x73c   : > { %v9607_v25 = vsel %vm1358_vm0, %v9606_v11, %v18404_v63  ;;  %v10239_v18 = vrot.slane %v9595_v56, 4  ;;  %v9660_v61 = vrot.slane %v18451_v43, 4  ;;  %v9593_v58 = vsel %vm1358_vm0, 0, %v9592_v60 }
 0x73d   : > { %v9613_v44 = vperm.slane %v9607_v25, %v19927_v57  ;;  %v9620_v2 = vrot.slane %v9617_v10, 4  ;;  %v10523_v59 = vpack.i.b16 %v10522_v38, %v10521_v49  ;;  %v10238_v42 = vperm.slane %v18472_v7, %v19926_v27  ;;  %v8553_v10 = vpop.f32.mrf.mxu1 }
 0x73e   : > { %v10240_v45 = vsel %vm1358_vm0, %v10239_v18, %v9593_v58  ;;  %v10612_v23 = vunpack.c.l.b16 %v10511_v48  ;;  %v10176_v1 = vsel %vm1358_vm0, 0, %v10175_v40  ;;  %v10194_v51 = vrot.slane %v18439_v31, 4 }
 0x73f   : > { %v9618_v53 = vrot.slane %v9613_v44, 4  ;;  %v9621_v63 = vsel %vm1358_vm0, 0, %v9620_v2  ;;  %v10613_v3 = vunpack.c.l.b16 %v10523_v59  ;;  %v10213_v49 = vrot.slane %v18444_v55, 4 }
 0x740   : > { %v10258_v14 = vrot.slane %v9621_v63, 4  ;;  %v10232_v36 = vrot.slane %v18456_v15, 4  ;;  %v10244_v26 = vperm.slane %v10240_v45, %v19926_v27  ;;  %v10253_v11 = vsel %vm1358_vm0, %v9620_v2, %v9613_v44 }
 0x741   : > { %v9619_v52 = vsel %vm1358_vm0, 0, %v9618_v53  ;;  %v10623_v50 = vpack.c.b16 %v10613_v3, %v10612_v23  ;;  %v10195_v48 = vsel %vm1358_vm0, 0, %v10194_v51  ;;  %v10214_v38 = vsel %vm1358_vm0, 0, %v10213_v49 }
 0x742   : > { %v10259_v4 = vsel %vm1358_vm0, %v10258_v14, %v9619_v52  ;;  %v10233_v40 = vsel %vm1358_vm0, 0, %v10232_v36  ;;  %v10515_v60 = vshrl.u32 %v10176_v1, 16  ;;  %v10514_v25 = vpack.i.b16 %v10195_v48, %v10176_v1 }
 0x743   : > { %v10263_v56 = vperm.slane %v10259_v4, %v19926_v27  ;;  %10636 = vrot.lane.b32.xlu1 %v10623_v50, %s12238_s28  ;;  %v10526_v7 = vpack.i.b16 %v10233_v40, %v10214_v38  ;;  %v10516_v18 = vshrl.u32 %v10195_v48, 16  ;;  %v10527_v58 = vshrl.u32 %v10214_v38, 16 }
 0x744   : > { %v10528_v44 = vshrl.u32 %v10233_v40, 16  ;;  %v8735_v2 = vpack.c.bf16 %v8553_v10, %v8553_v10  ;;  %v10412_v59 = vpack.i.b16 %v17919_v5, %v17860_v47  ;;  %v10652_v53 = vunpack.c.l.b16 %v10514_v25  ;;  %v10629_v5 = vpop.permute.xlu1 %10628 }
 0x745   : > { %v10653_v63 = vunpack.c.l.b16 %v10526_v7  ;;  %v10517_v45 = vpack.i.b16 %v10516_v18, %v10515_v60  ;;  %v10424_v14 = vpack.i.b16 %v17938_v24, %v17935_v16  ;;  %v10245_v23 = vrot.slane %v10244_v26, 4  ;;  %v10669_v24 = vpop.permute.xlu0 %10668  ;;  %v10709_v7 = vpop.permute.xlu2 %10708 }
 0x746   : > { %v10529_v3 = vpack.i.b16 %v10528_v44, %v10527_v58  ;;  %v8918_v52 = vpack.i.b16 %v18431_v35, %v8735_v2  ;;  %v8919_v51 = vshrl.u32 %v8735_v2, 16  ;;  %v10264_v1 = vrot.slane %v10263_v56, 4 }
 0x747   : > { %v10663_v49 = vpack.c.b16 %v10653_v63, %v10652_v53  ;;  %v10580_v36 = vunpack.c.l.b16 %v10412_v59  ;;  %v10581_v4 = vunpack.c.l.b16 %v10424_v14  ;;  %v10692_v50 = vunpack.c.l.b16 %v10517_v45 }
 0x748   : > { %v10693_v10 = vunpack.c.l.b16 %v10529_v3  ;;  %v8921_v48 = vpack.i.b16 %v8920_v33, %v8919_v51  ;;  %v9631_v47 = vperm.slane %v8918_v52, %v19926_v27  ;;  %v10257_v38 = vperm.slane %v10253_v11, %v19926_v27 }
 0x749   : > { %10676 = vrot.lane.b32.xlu0 %v10663_v49, %s12236_s19  ;;  %v10595_v16 = vpack.c.b16 %v10581_v4, %v10580_v36  ;;  %v10246_v25 = vsel %vm1358_vm0, %v10245_v23, %v10238_v42 }
 0x74a   : > { %v10703_v35 = vpack.c.b16 %v10693_v10, %v10692_v50  ;;  %v9632_v26 = vrot.slane %v9631_v47, 4  ;;  %v9635_v40 = vsel %vm1358_vm0, %v9631_v47, %v9634_v54  ;;  %v9657_v60 = vperm.slane %v8921_v48, %v19926_v27 }
 0x74b   : > { %v9643_v56 = vperm.slane %v9635_v40, %v19927_v57  ;;  %v10727_v33 = vsel %vm6932_vm1, %v10595_v16, %v10629_v5  ;;  %v10265_v11 = vsel %vm1358_vm0, %v10264_v1, %v10257_v38  ;;  %v18525_v3 = vperm.slane %v10246_v25, %v19927_v57 }
 0x74c   : > { %10716 = vrot.lane.b32.xlu2 %v10703_v35, %s12237_s3  ;;  %v9633_v18 = vsel %vm1358_vm0, %v9632_v26, %v18434_v17  ;;  %v9658_v58 = vrot.slane %v9657_v60, 4  ;;  %v9661_v54 = vsel %vm1358_vm0, %v9657_v60, %v9660_v61  ;;  %v10750_v44 = vsel %vm10746_vm4, %v10727_v33, %v10669_v24 }
 0x74d   : > { %v9639_v2 = vperm.slane %v9633_v18, %v19927_v57  ;;  %v9646_v59 = vrot.slane %v9643_v56, 4  ;;  %v9669_v42 = vperm.slane %v9661_v54, %v19927_v57  ;;  %v10768_v53 = vsel %vm10763_vm5, %v10750_v44, %v10709_v7 }
 0x74e   : > { %v9659_v63 = vsel %vm1358_vm0, %v9658_v58, %v18451_v43  ;;  %10869 = vmatmul.bf16.vlgmr.msra.gmra.mxu3 %v10768_v53  ;;  %v18528_v52 = vperm.slane %v10265_v11, %v19927_v57  ;;  %v10251_v5 = vrot.slane %v18525_v3, 4  ;;  %v10448_v26 = vpack.i.b16 %v18117_v39, %v18114_v62 }
 0x74f   : > { %v9644_v45 = vrot.slane %v9639_v2, 4  ;;  %v9647_v17 = vsel %vm1358_vm0, 0, %v9646_v59  ;;  %v9665_v14 = vperm.slane %v9659_v63, %v19927_v57  ;;  %v9672_v23 = vrot.slane %v9669_v42, 4 }
 0x750   : > { %v10277_v61 = vrot.slane %v9647_v17, 4  ;;  %v10272_v43 = vsel %vm1358_vm0, %v9646_v59, %v9639_v2  ;;  %v10270_v38 = vrot.slane %v18528_v52, 4  ;;  %v10534_v40 = vshrl.u32 %v18528_v52, 16  ;;  %v8298_v2 = vpop.f32.mrf.mxu3 }
 0x751   : > { %v9645_v51 = vsel %vm1358_vm0, 0, %v9644_v45  ;;  %v9670_v1 = vrot.slane %v9665_v14, 4  ;;  %v9673_v49 = vsel %vm1358_vm0, 0, %v9672_v23  ;;  %v10291_v48 = vsel %vm1358_vm0, %v9672_v23, %v9665_v14 }
 0x752   : > { %v10278_v36 = vsel %vm1358_vm0, %v10277_v61, %v9645_v51  ;;  %v10296_v4 = vrot.slane %v9673_v49, 4  ;;  %v10276_v16 = vperm.slane %v10272_v43, %v19926_v27  ;;  %v10436_v60 = vpack.i.b16 %v18100_v34, %v18092_v9 }
 0x753   : > { %v9671_v50 = vsel %vm1358_vm0, 0, %v9670_v1  ;;  %v10282_v10 = vperm.slane %v10278_v36, %v19926_v27  ;;  %v10295_v56 = vperm.slane %v10291_v48, %v19926_v27  ;;  %v10271_v11 = vsel %vm1358_vm0, 0, %v10270_v38  ;;  %v8685_v1 = vpop.f32.mrf.mxu2 }
 0x754   : > { %v10297_v47 = vsel %vm1358_vm0, %v10296_v4, %v9671_v50  ;;  %v10252_v18 = vsel %vm1358_vm0, 0, %v10251_v5  ;;  %v10533_v62 = vshrl.u32 %v18525_v3, 16  ;;  %v10583_v39 = vunpack.c.l.b16 %v10448_v26 }
 0x755   : > { %v10283_v24 = vrot.slane %v10282_v10, 4  ;;  %v10301_v35 = vperm.slane %v10297_v47, %v19926_v27  ;;  %v10540_v34 = vshrl.u32 %v10271_v11, 16  ;;  %v9788_v44 = vperm.slane %v17716_v37, %v19926_v27 }
 0x756   : > { %v10535_v59 = vpack.i.b16 %v10534_v40, %v10533_v62  ;;  %v10582_v42 = vunpack.c.l.b16 %v10436_v60  ;;  %v10539_v53 = vshrl.u32 %v10252_v18, 16  ;;  %v9782_v23 = vperm.slane %v17710_v32, %v19926_v27 }
 0x757   : > { %v10302_v33 = vrot.slane %v10301_v35, 4  ;;  %v10284_v25 = vsel %vm1358_vm0, %v10283_v24, %v10276_v16  ;;  %v10538_v51 = vpack.i.b16 %v10271_v11, %v10252_v18  ;;  %v9807_v37 = vperm.slane %v17724_v29, %v19926_v27  ;;  %v10711_v29 = vpop.permute.xlu2 %10710 }
 0x758   : > { %v18551_v7 = vperm.slane %v10284_v25, %v19927_v57  ;;  %v10596_v61 = vpack.c.b16 %v10583_v39, %v10582_v42  ;;  %v10541_v4 = vpack.i.b16 %v10540_v34, %v10539_v53  ;;  %v9789_v5 = vrot.slane %v9788_v44, 4  ;;  %v8300_v44 = vpop.f32.mrf.mxu3 }
 0x759   : > { %v10303_v58 = vsel %vm1358_vm0, %v10302_v33, %v10295_v56  ;;  %v9826_v32 = vperm.slane %v17742_v0, %v19926_v27  ;;  %v10614_v38 = vunpack.c.l.b16 %v10535_v59  ;;  %v10654_v26 = vunpack.c.l.b16 %v10538_v51 }
 0x75a   : > { %v18557_v54 = vperm.slane %v10303_v58, %v19927_v57  ;;  %v10289_v9 = vrot.slane %v18551_v7, 4  ;;  %v10545_v63 = vshrl.u32 %v18551_v7, 16  ;;  %v8704_v33 = vpack.c.bf16 %v8298_v2, %v8298_v2 }
 0x75b   : > { %v9808_v58 = vrot.slane %v9807_v37, 4  ;;  %v10694_v39 = vunpack.c.l.b16 %v10541_v4  ;;  %v9845_v0 = vperm.slane %v17749_v28, %v19926_v27  ;;  %v9801_v34 = vperm.slane %v17719_v13, %v19926_v27  ;;  %v8687_v37 = vpop.f32.mrf.mxu2 }
 0x75c   : > { %v10546_v45 = vshrl.u32 %v18557_v54, 16  ;;  %v10290_v17 = vsel %vm1358_vm0, 0, %v10289_v9  ;;  %v10308_v14 = vrot.slane %v18557_v54, 4  ;;  %v9790_v42 = vsel %vm1358_vm0, %v9789_v5, %v9782_v23 }
 0x75d   : > { %v10551_v48 = vshrl.u32 %v10290_v17, 16  ;;  %v9820_v53 = vperm.slane %v17736_v6, %v19926_v27  ;;  %v8925_v28 = vshrl.u32 %v8704_v33, 16  ;;  %v10460_v13 = vpack.i.b16 %v18170_v22, %v18157_v8 }
 0x75e   : > { %v10547_v49 = vpack.i.b16 %v10546_v45, %v10545_v63  ;;  %v10631_v43 = vpop.permute.xlu1 %10630  ;;  %v10309_v36 = vsel %vm1358_vm0, 0, %v10308_v14  ;;  %v9827_v63 = vrot.slane %v9826_v32, 4  ;;  %v9839_v45 = vperm.slane %v17745_v20, %v19926_v27 }
 0x75f   : > { %v10730_v50 = vsel %vm6932_vm1, %v10596_v61, %v10631_v43  ;;  %v10550_v10 = vpack.i.b16 %v10309_v36, %v10290_v17  ;;  %v10552_v47 = vshrl.u32 %v10309_v36, 16  ;;  %v10671_v24 = vpop.permute.xlu0 %10670  ;;  %v8427_v35 = vpop.f32.mrf.mxu0  ;;  %v9794_v14 = vperm.slane %v9790_v42, %v19927_v57 }
 0x760   : > { %v10615_v16 = vunpack.c.l.b16 %v10547_v49  ;;  %v10752_v60 = vsel %vm10746_vm4, %v10730_v50, %v10671_v24  ;;  %v8720_v18 = vpack.c.bf16 %v8427_v35, %v8427_v35  ;;  %v9809_v61 = vsel %vm1358_vm0, %v9808_v58, %v9801_v34 }
 0x761   : > { %v10655_v40 = vunpack.c.l.b16 %v10550_v10  ;;  %v10553_v56 = vpack.i.b16 %v10552_v47, %v10551_v48  ;;  %v10771_v11 = vsel %vm10763_vm5, %v10752_v60, %v10711_v29  ;;  %v9846_v51 = vrot.slane %v9845_v0, 4 }
 0x762   : > { %v10624_v25 = vpack.c.b16 %v10615_v16, %v10614_v38  ;;  %10874 = vmatmul.bf16.gmra.mxu3 %v10771_v11  ;;  %v8926_v59 = vshrl.u32 %v8720_v18, 16  ;;  %v8924_v17 = vpack.i.b16 %v8720_v18, %v8704_v33  ;;  %v8705_v23 = vpack.c.bf16 %v8300_v44, %v8300_v44 }
 0x763   : > { %v10664_v62 = vpack.c.b16 %v10655_v40, %v10654_v26  ;;  %v10695_v9 = vunpack.c.l.b16 %v10553_v56  ;;  %v10472_v6 = vpack.i.b16 %v18193_v41, %v18188_v30  ;;  %v9813_v20 = vperm.slane %v9809_v61, %v19927_v57 }
 0x764   : > { %10638 = vrot.lane.b32.xlu1 %v10624_v25, %s12238_s28  ;;  %v8752_v43 = vpack.c.bf16 %v8685_v1, %v8685_v1  ;;  %v8927_v36 = vpack.i.b16 %v8926_v59, %v8925_v28  ;;  %v9795_v50 = vrot.slane %v9794_v14, 4  ;;  %v10389_v10 = vshrl.u32 %v9794_v14, 16 }
 0x765   : > { %10678 = vrot.lane.b32.xlu0 %v10664_v62, %s12236_s19  ;;  %v10704_v2 = vpack.c.b16 %v10695_v9, %v10694_v39  ;;  %v10390_v48 = vshrl.u32 %v9813_v20, 16  ;;  %v9814_v8 = vrot.slane %v9813_v20, 4  ;;  %v10388_v22 = vpack.i.b16 %v9813_v20, %v9794_v14 }
 0x766   : > { %v18595_v47 = vpack.c.bf16 %v8687_v37, %v8687_v37  ;;  %v9678_v5 = vperm.slane %v8924_v17, %v19926_v27  ;;  %v10584_v32 = vunpack.c.l.b16 %v10460_v13  ;;  %v9796_v38 = vsel %vm1358_vm0, 0, %v9795_v50 }
 0x767   : > { %10718 = vrot.lane.b32.xlu2 %v10704_v2, %s12237_s3  ;;  %v8429_v49 = vpop.f32.mrf.mxu0  ;;  %v10585_v16 = vunpack.c.l.b16 %v10472_v6  ;;  %v9828_v30 = vsel %vm1358_vm0, %v9827_v63, %v9820_v53  ;;  %v10391_v41 = vpack.i.b16 %v10390_v48, %v10389_v10  ;;  %v9815_v1 = vsel %vm1358_vm0, 0, %v9814_v8 }
 0x768   : > { %v8721_v4 = vpack.c.bf16 %v8429_v49, %v8429_v49  ;;  %v18602_v24 = vperm.slane %v8927_v36, %v19926_v27  ;;  %v9832_v29 = vperm.slane %v9828_v30, %v19927_v57  ;;  %v10394_v26 = vpack.i.b16 %v9815_v1, %v9796_v38 }
 0x769   : > { %v9847_v60 = vsel %vm1358_vm0, %v9846_v51, %v9839_v45  ;;  %v10395_v56 = vshrl.u32 %v9796_v38, 16  ;;  %v10396_v33 = vshrl.u32 %v9815_v1, 16  ;;  %v8937_v25 = vshrl.u32 %v8705_v23, 16 }
 0x76a   : > { %v8936_v35 = vpack.i.b16 %v8721_v4, %v8705_v23  ;;  %v8938_v40 = vshrl.u32 %v8721_v4, 16  ;;  %v8932_v11 = vshrl.u32 %v8752_v43, 16  ;;  %v8944_v18 = vshrl.u32 %v18595_v47, 16 }
 0x76b   : > { %v9851_v58 = vperm.slane %v9847_v60, %v19927_v57  ;;  %v9686_v62 = vrot.slane %v9678_v5, 4  ;;  %v10597_v9 = vpack.c.b16 %v10585_v16, %v10584_v32  ;;  %v9833_v0 = vrot.slane %v9832_v29, 4  ;;  %v10713_v60 = vpop.permute.xlu2 %10712 }
 0x76c   : > { %v18608_v34 = vpack.i.b16 %v10396_v33, %v10395_v56  ;;  %v10401_v2 = vshrl.u32 %v9832_v29, 16  ;;  %v9712_v53 = vrot.slane %v18602_v24, 4  ;;  %v8939_v63 = vpack.i.b16 %v8938_v40, %v8937_v25 }
 0x76d   : > { %v10402_v59 = vshrl.u32 %v9851_v58, 16  ;;  %v9852_v42 = vrot.slane %v9851_v58, 4  ;;  %v18612_v45 = vperm.slane %v8936_v35, %v19926_v27  ;;  %v10400_v28 = vpack.i.b16 %v9851_v58, %v9832_v29 }
 0x76e   : > { %v9834_v51 = vsel %vm1358_vm0, 0, %v9833_v0  ;;  %v10602_v23 = vunpack.c.l.b16 %v10391_v41  ;;  %v18616_v49 = vunpack.c.l.b16 %v10388_v22  ;;  %v18629_v35 = vunpack.c.l.b16 %v10394_v26 }
 0x76f   : > { %v8556_v39 = vpop.f32.mrf.mxu1  ;;  %v10403_v61 = vpack.i.b16 %v10402_v59, %v10401_v2  ;;  %v9853_v37 = vsel %vm1358_vm0, 0, %v9852_v42  ;;  %v18618_v6 = vunpack.c.l.b16 %v10400_v28  ;;  %v9756_v26 = vperm.slane %v8939_v63, %v19926_v27 }
 0x770   : > { %v8736_v44 = vpack.c.bf16 %v8556_v39, %v8556_v39  ;;  %v10406_v50 = vpack.i.b16 %v9853_v37, %v9834_v51  ;;  %v10408_v48 = vshrl.u32 %v9853_v37, 16 }
 0x771   : > { %v10603_v4 = vunpack.c.l.b16 %v10403_v61  ;;  %v10594_v8 = vpack.c.b16 %v18618_v6, %v18616_v49 }
 0x772   : > { %v8930_v17 = vpack.i.b16 %v8752_v43, %v8736_v44  ;;  %v8931_v13 = vshrl.u32 %v8736_v44, 16  ;;  %v10633_v14 = vpop.permute.xlu1 %10632  ;;  %v10407_v43 = vshrl.u32 %v9834_v51, 16  ;;  %v18631_v29 = vunpack.c.l.b16 %v10406_v50 }
 0x773   : > { %v10733_v10 = vsel %vm6932_vm1, %v10597_v9, %v10633_v14  ;;  %v18626_v16 = vpack.c.b16 %v10603_v4, %v10602_v23 }
 0x774   : > { %v8933_v20 = vpack.i.b16 %v8932_v11, %v8931_v13  ;;  %v9683_v36 = vperm.slane %v8930_v17, %v19926_v27  ;;  %v10409_v40 = vpack.i.b16 %v10408_v48, %v10407_v43 }
 0x776   : > { %v9684_v32 = vrot.slane %v9683_v36, 4  ;;  %v9687_v38 = vsel %vm1358_vm0, %v9683_v36, %v9686_v62  ;;  %v9709_v22 = vperm.slane %v8933_v20, %v19926_v27  ;;  %v10683_v14 = vunpack.c.l.b16 %v10409_v40 }
 0x777   : > { %v9695_v30 = vperm.slane %v9687_v38, %v19927_v57  ;;  %v8558_v1 = vpop.f32.mrf.mxu1  ;;  %v10682_v20 = vunpack.c.l.b16 %v18608_v34  ;;  %v9738_v36 = vrot.slane %v18612_v45, 4 }
 0x778   : > { %v10673_v41 = vpop.permute.xlu0 %10672  ;;  %v9685_v56 = vsel %vm1358_vm0, %v9684_v32, %v9678_v5  ;;  %v9710_v33 = vrot.slane %v9709_v22, 4  ;;  %v9713_v25 = vsel %vm1358_vm0, %v9709_v22, %v9712_v53  ;;  %v8737_v44 = vpack.c.bf16 %v8558_v1, %v8558_v1 }
 0x779   : > { %v10754_v11 = vsel %vm10746_vm4, %v10733_v10, %v10673_v41  ;;  %v9691_v58 = vperm.slane %v9685_v56, %v19927_v57  ;;  %v9698_v62 = vrot.slane %v9695_v30, 4  ;;  %v9721_v39 = vperm.slane %v9713_v25, %v19927_v57 }
 0x77a   : > { %v10774_v9 = vsel %vm10763_vm5, %v10754_v11, %v10713_v60  ;;  %v9711_v0 = vsel %vm1358_vm0, %v9710_v33, %v18602_v24  ;;  %v10658_v5 = vpack.c.b16 %v18631_v29, %v18629_v35  ;;  %v8942_v17 = vpack.i.b16 %v18595_v47, %v8737_v44 }
 0x77b   : > { %10879 = vmatmul.bf16.gmra.mxu3 %v10774_v9  ;;  %v9696_v2 = vrot.slane %v9691_v58, 4  ;;  %v9699_v59 = vsel %vm1358_vm0, 0, %v9698_v62  ;;  %v9717_v42 = vperm.slane %v9711_v0, %v19927_v57  ;;  %v9724_v53 = vrot.slane %v9721_v39, 4 }
 0x77c   : > { %v10315_v28 = vrot.slane %v9699_v59, 4  ;;  %v8943_v13 = vshrl.u32 %v8737_v44, 16  ;;  %v9735_v50 = vperm.slane %v8942_v17, %v19926_v27  ;;  %v9764_v10 = vrot.slane %v9756_v26, 4 }
 0x77d   : > { %v9697_v63 = vsel %vm1358_vm0, 0, %v9696_v2  ;;  %v9722_v61 = vrot.slane %v9717_v42, 4  ;;  %v9725_v24 = vsel %vm1358_vm0, 0, %v9724_v53  ;;  %v18658_v32 = vpack.c.b16 %v10683_v14, %v10682_v20 }
 0x77e   : > { %v10316_v51 = vsel %vm1358_vm0, %v10315_v28, %v9697_v63  ;;  %v10334_v23 = vrot.slane %v9725_v24, 4  ;;  %v8945_v37 = vpack.i.b16 %v8944_v18, %v8943_v13  ;;  %v9736_v22 = vrot.slane %v9735_v50, 4 }
 0x77f   : > { %v9723_v4 = vsel %vm1358_vm0, 0, %v9722_v61  ;;  %v10320_v38 = vperm.slane %v10316_v51, %v19926_v27  ;;  %v9739_v47 = vsel %vm1358_vm0, %v9735_v50, %v9738_v36  ;;  %v10310_v60 = vsel %vm1358_vm0, %v9698_v62, %v9691_v58 }
 0x780   : > { %v10335_v43 = vsel %vm1358_vm0, %v10334_v23, %v9723_v4  ;;  %v9761_v48 = vperm.slane %v8945_v37, %v19926_v27  ;;  %v9747_v34 = vperm.slane %v9739_v47, %v19927_v57  ;;  %v9737_v1 = vsel %vm1358_vm0, %v9736_v22, %v18612_v45 }
 0x781   : > { %v10339_v18 = vperm.slane %v10335_v43, %v19926_v27  ;;  %v9743_v56 = vperm.slane %v9737_v1, %v19927_v57  ;;  %v10321_v11 = vrot.slane %v10320_v38, 4  ;;  %v10329_v39 = vsel %vm1358_vm0, %v9724_v53, %v9717_v42 }
 0x782   : > { %v9762_v30 = vrot.slane %v9761_v48, 4  ;;  %v9765_v41 = vsel %vm1358_vm0, %v9761_v48, %v9764_v10  ;;  %v9750_v33 = vrot.slane %v9747_v34, 4  ;;  %v10314_v45 = vperm.slane %v10310_v60, %v19926_v27 }
 0x783   : > { %v9773_v40 = vperm.slane %v9765_v41, %v19927_v57  ;;  %v10340_v44 = vrot.slane %v10339_v18, 4  ;;  %v9748_v2 = vrot.slane %v9743_v56, 4  ;;  %v10333_v17 = vperm.slane %v10329_v39, %v19926_v27 }
 0x784   : > { %v9763_v25 = vsel %vm1358_vm0, %v9762_v30, %v9756_v26  ;;  %v9751_v59 = vsel %vm1358_vm0, 0, %v9750_v33  ;;  %v10348_v13 = vsel %vm1358_vm0, %v9750_v33, %v9743_v56  ;;  %v10322_v61 = vsel %vm1358_vm0, %v10321_v11, %v10314_v45 }
 0x785   : > { %v9769_v9 = vperm.slane %v9763_v25, %v19927_v57  ;;  %v9776_v0 = vrot.slane %v9773_v40, 4  ;;  %v10353_v62 = vrot.slane %v9751_v59, 4  ;;  %v9749_v26 = vsel %vm1358_vm0, 0, %v9748_v2 }
 0x786   : > { %v18686_v23 = vperm.slane %v10322_v61, %v19927_v57  ;;  %v10341_v37 = vsel %vm1358_vm0, %v10340_v44, %v10333_v17  ;;  %v10352_v4 = vperm.slane %v10348_v13, %v19926_v27  ;;  %v10496_v61 = vpack.i.b16 %v18394_v46, %v18379_v12 }
 0x787   : > { %v9774_v28 = vrot.slane %v9769_v9, 4  ;;  %v9777_v58 = vsel %vm1358_vm0, 0, %v9776_v0  ;;  %v10354_v14 = vsel %vm1358_vm0, %v10353_v62, %v9749_v26  ;;  %v10367_v63 = vsel %vm1358_vm0, %v9776_v0, %v9769_v9 }
 0x788   : > { %v10372_v42 = vrot.slane %v9777_v58, 4  ;;  %v10358_v24 = vperm.slane %v10354_v14, %v19926_v27  ;;  %v18691_v36 = vperm.slane %v10341_v37, %v19927_v57  ;;  %v10327_v10 = vrot.slane %v18686_v23, 4 }
 0x789   : > { %v9775_v53 = vsel %vm1358_vm0, 0, %v9774_v28  ;;  %v10371_v43 = vperm.slane %v10367_v63, %v19926_v27  ;;  %v10557_v1 = vshrl.u32 %v18686_v23, 16  ;;  %v10508_v35 = vpack.i.b16 %v18439_v31, %v18421_v19 }
 0x78a   : > { %v10373_v51 = vsel %vm1358_vm0, %v10372_v42, %v9775_v53  ;;  %v10359_v50 = vrot.slane %v10358_v24, 4  ;;  %v10346_v38 = vrot.slane %v18691_v36, 4  ;;  %v10558_v47 = vshrl.u32 %v18691_v36, 16 }
 0x78b   : > { %v10377_v20 = vperm.slane %v10373_v51, %v19926_v27  ;;  %v10328_v27 = vsel %vm1358_vm0, 0, %v10327_v10  ;;  %v19943_v51 = vld [vmem:[#allocation108_spill] sm:$0xff] }
 0x78c   : > { %v10360_v22 = vsel %vm1358_vm0, %v10359_v50, %v10352_v4  ;;  %v10347_v30 = vsel %vm1358_vm0, 0, %v10346_v38  ;;  %v10559_v56 = vpack.i.b16 %v10558_v47, %v10557_v1  ;;  %v10563_v0 = vshrl.u32 %v10328_v27, 16 }
 0x78d   : > { %v10378_v48 = vrot.slane %v10377_v20, 4  ;;  %v18700_v18 = vperm.slane %v10360_v22, %v19927_v57  ;;  %v10564_v60 = vshrl.u32 %v10347_v30, 16  ;;  %v10562_v9 = vpack.i.b16 %v10347_v30, %v10328_v27 }
 0x78e   : > { %v10616_v58 = vunpack.c.l.b16 %v10559_v56  ;;  %v10484_v37 = vpack.i.b16 %v19943_v51, %v18353_v21  ;;  %v10587_v20 = vunpack.c.l.b16 %v10496_v61  ;;  %v10544_v27 = vpack.i.b16 %v18557_v54, %v18551_v7 }
 0x78f   : > { %v10379_v34 = vsel %vm1358_vm0, %v10378_v48, %v10371_v43  ;;  %v10365_v40 = vrot.slane %v18700_v18, 4  ;;  %v10569_v33 = vshrl.u32 %v18700_v18, 16  ;;  %v10565_v59 = vpack.i.b16 %v10564_v60, %v10563_v0  ;;  %v10715_v21 = vpop.permute.xlu2 %10714  ;;  %v18747_v60 = vld [vmem:[%s18841_s8] ss:$0 sm:$0xff] }
 0x790   : > { %v18705_v41 = vperm.slane %v10379_v34, %v19927_v57  ;;  %v10656_v17 = vunpack.c.l.b16 %v10562_v9  ;;  %v10586_v4 = vunpack.c.l.b16 %v10484_v37  ;;  %v10591_v31 = vunpack.c.l.b16 %v10544_v27 }
 0x791   : > { %v10366_v39 = vsel %vm1358_vm0, 0, %v10365_v40  ;;  %v10696_v14 = vunpack.c.l.b16 %v10565_v59 }
 0x792   : > { %v10570_v25 = vshrl.u32 %v18705_v41, 16  ;;  %v10384_v11 = vrot.slane %v18705_v41, 4  ;;  %v10575_v45 = vshrl.u32 %v10366_v39, 16  ;;  %v10598_v50 = vpack.c.b16 %v10587_v20, %v10586_v4 }
 0x794   : > { %v10571_v57 = vpack.i.b16 %v10570_v25, %v10569_v33  ;;  %v10385_v44 = vsel %vm1358_vm0, 0, %v10384_v11 }
 0x795   : > { %v10574_v2 = vpack.i.b16 %v10385_v44, %v10366_v39  ;;  %v10576_v28 = vshrl.u32 %v10385_v44, 16 }
 0x796   : > { %v10617_v62 = vunpack.c.l.b16 %v10571_v57 }
 0x797   : > { %v10657_v26 = vunpack.c.l.b16 %v10574_v2  ;;  %v10577_v13 = vpack.i.b16 %v10576_v28, %v10575_v45  ;;  %v10568_v28 = vpack.i.b16 %v18705_v41, %v18700_v18 }
 0x798   : > { %v10625_v42 = vpack.c.b16 %v10617_v62, %v10616_v58  ;;  %v10556_v62 = vpack.i.b16 %v18691_v36, %v18686_v23 }
 0x799   : > { %v10665_v53 = vpack.c.b16 %v10657_v26, %v10656_v17  ;;  %v10697_v63 = vunpack.c.l.b16 %v10577_v13  ;;  %v10593_v13 = vunpack.c.l.b16 %v10568_v28 }
 0x79a   : > { %10640 = vrot.lane.b32.xlu1 %v10625_v42, %s12238_s28 }
 0x79b   : > { %10680 = vrot.lane.b32.xlu0 %v10665_v53, %s12236_s19  ;;  %v10705_v24 = vpack.c.b16 %v10697_v63, %v10696_v14  ;;  %v10592_v53 = vunpack.c.l.b16 %v10556_v62 }
 0x79d   : > { %10720 = vrot.lane.b32.xlu2 %v10705_v24, %s12237_s3  ;;  %v10601_v14 = vpack.c.b16 %v10593_v13, %v10592_v53 }
 0x7a2   : > { %10626 = vrot.lane.b32.xlu1 %v18626_v16, %s12238_s28  ;;  %v10520_v16 = vpack.i.b16 %v18456_v15, %v18444_v55  ;;  %v10532_v55 = vpack.i.b16 %v18528_v52, %v18525_v3 }
 0x7a3   : > { %10666 = vrot.lane.b32.xlu0 %v10658_v5, %s12236_s19  ;;  %v10588_v5 = vunpack.c.l.b16 %v10508_v35 }
 0x7a4   : > { %v10635_v12 = vpop.permute.xlu1 %10634  ;;  %v10589_v29 = vunpack.c.l.b16 %v10520_v16  ;;  %v10590_v15 = vunpack.c.l.b16 %v10532_v55 }
 0x7a5   : > { %v10736_v46 = vsel %vm6932_vm1, %v10598_v50, %v10635_v12  ;;  %v10675_v10 = vpop.permute.xlu0 %10674  ;;  %10706 = vrot.lane.b32.xlu2 %v18658_v32, %s12237_s3 }
 0x7a6   : > { %v10756_v43 = vsel %vm10746_vm4, %v10736_v46, %v10675_v10  ;;  %v10599_v22 = vpack.c.b16 %v10589_v29, %v10588_v5  ;;  %v10717_v32 = vpop.permute.xlu2 %10716  ;;  %v10600_v40 = vpack.c.b16 %v10591_v31, %v10590_v15 }
 0x7a7   : > { %v10777_v48 = vsel %vm10763_vm5, %v10756_v43, %v10715_v21 }
 0x7a8   : > { %10884 = vmatmul.bf16.gmra.mxu3 %v10777_v48 }
 0x7b5   : > { %v10637_v38 = vpop.permute.xlu1 %10636 }
 0x7b6   : > { %v10739_v47 = vsel %vm6932_vm1, %v10599_v22, %v10637_v38 }
 0x7bb   : > { %v10677_v34 = vpop.permute.xlu0 %10676 }
 0x7bc   : > { %v10758_v30 = vsel %vm10746_vm4, %v10739_v47, %v10677_v34 }
 0x7bd   : > { %v10780_v1 = vsel %vm10763_vm5, %v10758_v30, %v10717_v32 }
 0x7be   : > { %10889 = vmatmul.bf16.gmra.mxu3 %v10780_v1 }
 0x7c1   : > { %v10719_v11 = vpop.permute.xlu2 %10718 }
 0x7d1   : > { %v10870_v19 = vpop.f32.mrf.mxu3 }
 0x7d2   : > { %v10871_v52 = vadd.f32 %v18747_v60, %v10870_v19 }
 0x7d6   : > { %v10639_v56 = vpop.permute.xlu1 %10638 }
 0x7d7   : > { %v10742_v33 = vsel %vm6932_vm1, %v10600_v40, %v10639_v56  ;;  %v10679_v25 = vpop.permute.xlu0 %10678 }
 0x7d8   : > { %v10760_v7 = vsel %vm10746_vm4, %v10742_v33, %v10679_v25 }
 0x7d9   : > { %v10872_v54 = vpop.f32.mrf.mxu3  ;;  %v10783_v3 = vsel %vm10763_vm5, %v10760_v7, %v10719_v11 }
 0x7da   : > { %v10873_v39 = vadd.f32 %v18747_v60, %v10872_v54  ;;  %10894 = vmatmul.bf16.gmra.mxu3 %v10783_v3 }
 0x7dc   : > { %v11498_v9 = vpack.c.bf16 %v10873_v39, %v10871_v52 }
 0x7de   : > { %11544 = vst [vmem:[%s18755_s30 + $0x8] sm:$0xff] %v11498_v9  }
 0x7e5   : > { %v10875_v0 = vpop.f32.mrf.mxu3 }
 0x7e6   : > { %v10876_v44 = vadd.f32 %v18747_v60, %v10875_v0 }
 0x7ed   : > { %v10877_v57 = vpop.f32.mrf.mxu3 }
 0x7ee   : > { %v10878_v2 = vadd.f32 %v18747_v60, %v10877_v57 }
 0x7f0   : > { %v11503_v59 = vpack.c.bf16 %v10878_v2, %v10876_v44 }
 0x7f2   : > { %11545 = vst [vmem:[%s18755_s30 + $0x10] sm:$0xff] %v11503_v59  }
 0x7f7   : > { %v10721_v63 = vpop.permute.xlu2 %10720 }
 0x7fe   : > { %v10880_v45 = vpop.f32.mrf.mxu3 }
 0x7ff   : > { %v10881_v17 = vadd.f32 %v18747_v60, %v10880_v45  ;;  %v10707_v20 = vpop.permute.xlu2 %10706 }
 0x806   : > { %v10882_v58 = vpop.f32.mrf.mxu3 }
 0x807   : > { %v10883_v26 = vadd.f32 %v18747_v60, %v10882_v58 }
 0x809   : > { %v11508_v42 = vpack.c.bf16 %v10883_v26, %v10881_v17 }
 0x80b   : > { %11546 = vst [vmem:[%s18755_s30 + $0x18] sm:$0xff] %v11508_v42  }
 0x80c   : > { %v10641_v61 = vpop.permute.xlu1 %10640 }
 0x80d   : > { %v10745_v24 = vsel %vm6932_vm1, %v10601_v14, %v10641_v61  ;;  %v10681_v51 = vpop.permute.xlu0 %10680 }
 0x80e   : > { %v10762_v18 = vsel %vm10746_vm4, %v10745_v24, %v10681_v51 }
 0x80f   : > { %v10786_v41 = vsel %vm10763_vm5, %v10762_v18, %v10721_v63 }
 0x810   : > { %10899 = vmatmul.bf16.gmra.mxu3 %v10786_v41 }
 0x814   : > { %v10627_v23 = vpop.permute.xlu1 %10626 }
 0x815   : > { %v10724_v36 = vsel %vm6932_vm1, %v10594_v8, %v10627_v23  ;;  %v10667_v37 = vpop.permute.xlu0 %10666 }
 0x816   : > { %v10748_v4 = vsel %vm10746_vm4, %v10724_v36, %v10667_v37 }
 0x817   : > { %v10765_v50 = vsel %vm10763_vm5, %v10748_v4, %v10707_v20 }
 0x818   : > { %10864 = vmatmul.bf16.vlgmr.msrb.gmra.mxu0 %v10765_v50 }
 0x82b   : > { %v10885_v12 = vpop.f32.mrf.mxu3 }
 0x82c   : > { %v10886_v10 = vadd.f32 %v18747_v60, %v10885_v12 }
 0x833   : > { %v10887_v46 = vpop.f32.mrf.mxu3 }
 0x834   : > { %v10888_v21 = vadd.f32 %v18747_v60, %v10887_v46 }
 0x836   : > { %v11513_v43 = vpack.c.bf16 %v10888_v21, %v10886_v10 }
 0x838   : > { %11547 = vst [vmem:[%s18755_s30 + $0x20] sm:$0xff] %v11513_v43  }
 0x841   : > { %v10890_v49 = vpop.f32.mrf.mxu3 }
 0x842   : > { %v10891_v8 = vadd.f32 %v18747_v60, %v10890_v49 }
 0x849   : > { %v10892_v6 = vpop.f32.mrf.mxu3 }
 0x84a   : > { %v10893_v48 = vadd.f32 %v18747_v60, %v10892_v6 }
 0x84c   : > { %v11518_v16 = vpack.c.bf16 %v10893_v48, %v10891_v8 }
 0x84e   : > { %11548 = vst [vmem:[%s18755_s30 + $0x28] sm:$0xff] %v11518_v16  }
 0x85d   : > { %v10895_v35 = vpop.f32.mrf.mxu3 }
 0x85e   : > { %v10896_v5 = vadd.f32 %v18747_v60, %v10895_v35 }
 0x865   : > { %v10897_v29 = vpop.f32.mrf.mxu3 }
 0x866   : > { %v10898_v38 = vadd.f32 %v18747_v60, %v10897_v29 }
 0x868   : > { %v11523_v22 = vpack.c.bf16 %v10898_v38, %v10896_v5 }
 0x86a   : > { %11549 = vst [vmem:[%s18755_s30 + $0x30] sm:$0xff] %v11523_v22  }
 0x893   : > { %v10900_v47 = vpop.f32.mrf.mxu3 }
 0x894   : > { %v10901_v30 = vadd.f32 %v18747_v60, %v10900_v47 }
 0x895   : > { %v10865_v34 = vpop.f32.mrf.mxu0 }
 0x896   : > { %v10866_v55 = vadd.f32 %v18747_v60, %v10865_v34 }
 0x89b   : > { %v10902_v32 = vpop.f32.mrf.mxu3 }
 0x89c   : > { %v10903_v1 = vadd.f32 %v18747_v60, %v10902_v32 }
 0x89d   : > { %v10867_v27 = vpop.f32.mrf.mxu0 }
 0x89e   : > { %v11528_v19 = vpack.c.bf16 %v10903_v1, %v10901_v30  ;;  %v10868_v31 = vadd.f32 %v18747_v60, %v10867_v27 }
 0x8a0   : > { %11550 = vst [vmem:[%s18755_s30 + $0x38] sm:$0xff] %v11528_v19   ;;  %v11493_v15 = vpack.c.bf16 %v10868_v31, %v10866_v55 }
 0x8a2   : > { %11494 = vst [vmem:[%s18755_s30] sm:$0xff] %v11493_v15  }
 0x8a3   : > { %12160 = shalt.err (!%p12157_p0)
}
 0x8a4   : > { %s12242_s5 = smov 4  }
 0x8a5   : > { %11577 = dma.vmem_to_hbm [thread:$0]  (%p12373_p5), %s10953_s20, 1024, %s10955_s26, %s10938_s12, %s12236_s19, %s12236_s19, %s12242_s5  }
 0x8a6 PF: > { %s19946_s28 = sld [smem:[#allocation21_spill]]  ;;  %p11600_p3 = pnand %p11116_p11, %p12338_p6 }
 0x8a7   : > { %s19948_s9 = sld [smem:[#allocation23_spill]] }
 0x8a8   : > { %p11601_p7 = pneg %p11600_p3 }
 0x8ac   : > { %s10969_s25 = sand.u32 1, %s19946_s28  }
 0x8ad   : > { %s10970_s18 = scalar_lea.sflag [#allocation6], %s10969_s25 }
 0x8ae   : > { %12202 = dma.done.wait (%p11601_p7), %s10970_s18, 1024  }
 0x8af   : > { %12204 = vsyncadd (%p11601_p7), %s10970_s18, 4294966272  ;;  %s30_s14 = sadd.s32 1, %s19948_s9   ;;  %s19949_s27 = sld [smem:[#allocation22_spill]] }
 0x8b0   : > { %p27_p9 = scmp.ge.s32.totalorder %s30_s14, 4   ;;  %s19950_s11 = sld [smem:[#allocation27_spill]] }
 0x8b1   : > { %s19951_s19 = sld [smem:[#allocation25_spill]]  ;;  %s19952_s30 = smov %s12211_s10 }
 0x8b2   : > { %s19954_s12 = smov %s12223_s13 }
 0x8b3   :  { %29 = sbr.rel (!%p27_p9) target bundleno = 16 (0x10), region = 141 }
 0x8b5   : > { %s19953_s10 = smov %s19949_s27 }
 0x8b7   : > { %s19955_s13 = smov %s19951_s19 }
 0x8b8   :  { %10976 = vsyncpa [#allocation5], 1 }
 0x8b9   :  { %10978 = vsyncpa [#allocation5 + $0x1], 1 }
 0x8ba   :  { %10979 = vsyncpa [#allocation8], 1 }
 0x8bb   :  { %10981 = vsyncpa [#allocation8 + $0x1], 1 }
 0x8bc   :  { %10982 = vsyncpa [#allocation11], 1 }
 0x8bd   :  { %10983 = vsyncpa [#allocation14], 1 }
 0x8be   :  { %10984 = vsyncpa [#allocation6], 1 }
 0x8bf   :  { %10986 = vsyncpa [#allocation6 + $0x1], 1 }

</bundles_post_ra>
